<compile_context>
chip_gen: v6e
topology: v6e:2x2x1
jax: 0.10.0
libtpu: 0.0.40
codegen_flags: <defaults>
</compile_context>

<pallas_src>
import math

import jax
import jax.numpy as jnp
from jax.experimental import pallas as pl
from jax.experimental.pallas import tpu as pltpu


def _round_up(x, m):
    return (x + m - 1) // m * m


def _conv_geom(hc, wc):
    """Flat padded-buffer geometry for a 3x3 'same' conv over an (hc, wc) image."""
    p = wc + 2                               # row pitch (even)
    m = hc * p                               # GEMM rows (wc valid + 2 garbage cols per row)
    r = _round_up((hc + 2) * p + 2, 8)       # +2: the (kh=2,kw=2) tap over-reads 2 rows
    return p, m, r


# ----------------------------------------------------------------------------
# Parameter init (PyTorch Conv2d / ConvTranspose2d default init, PyTorch layouts)
# ----------------------------------------------------------------------------
def _init_conv(key, cout, cin, kh, kw):
    k1, k2 = jax.random.split(key)
    bound = 1.0 / math.sqrt(cin * kh * kw)
    w = jax.random.uniform(k1, (cout, cin, kh, kw), jnp.float32, -bound, bound)
    b = jax.random.uniform(k2, (cout,), jnp.float32, -bound, bound)
    return w, b


def _init_convT(key, cin, cout, kh, kw):
    k1, k2 = jax.random.split(key)
    bound = 1.0 / math.sqrt(cin * kh * kw)
    w = jax.random.uniform(k1, (cin, cout, kh, kw), jnp.float32, -bound, bound)
    b = jax.random.uniform(k2, (cout,), jnp.float32, -bound, bound)
    return w, b


def init_params(key, mode="autoencoder_only", encoding_size=8):
    if mode != "autoencoder_only":
        # TODO(synk): smp.Unet('efficientnet-b0') segmentators not translated.
        raise NotImplementedError("Only 'autoencoder_only' mode is implemented in Pallas.")
    keys = jax.random.split(key, 6)
    return {
        "enc_conv1": _init_conv(keys[0], 64, 3, 3, 3),
        "enc_conv2": _init_conv(keys[1], 32, 64, 3, 3),
        "enc_conv3": _init_conv(keys[2], encoding_size, 32, 3, 3),
        "dec_convT1": _init_convT(keys[3], encoding_size, 32, 2, 2),
        "dec_convT2": _init_convT(keys[4], 32, 64, 2, 2),
        "dec_convT3": _init_convT(keys[5], 64, 3, 2, 2),
    }


# ----------------------------------------------------------------------------
# One-time repack of the PyTorch-layout params into GEMM-friendly kernel operands
# ----------------------------------------------------------------------------
def prepare_kernel_params(params):
    def conv_w(w):  # (Co,Ci,3,3) -> (9,Ci,Co), tap index k = 3*kh + kw
        co, ci = w.shape[0], w.shape[1]
        return jnp.transpose(w, (2, 3, 1, 0)).reshape(9, ci, co).astype(jnp.bfloat16)

    def convT_blockdiag(w, groups, pad_to=None):
        # (Ci,Co,2,2) -> block-diag (groups*Ci, groups*4*Co); columns ordered (dh, dw, co).
        ci, co = w.shape[0], w.shape[1]
        w2d = jnp.transpose(w, (0, 2, 3, 1)).reshape(ci, 4 * co)
        bd = jnp.kron(jnp.eye(groups, dtype=w2d.dtype), w2d)
        if pad_to is not None and bd.shape[1] < pad_to:      # lane-dense (unmasked) stores
            bd = jnp.pad(bd, ((0, 0), (0, pad_to - bd.shape[1])))
        return bd.astype(jnp.bfloat16)

    def row(b, reps=1, pad_to=None):
        r = jnp.tile(jnp.asarray(b, jnp.float32), reps).reshape(1, -1)
        if pad_to is not None and r.shape[1] < pad_to:
            r = jnp.pad(r, ((0, 0), (0, pad_to - r.shape[1])))
        return r

    w1, b1 = params["enc_conv1"]
    w2, b2 = params["enc_conv2"]
    w3, b3 = params["enc_conv3"]
    d1, e1 = params["dec_convT1"]
    d2, e2 = params["dec_convT2"]
    d3, e3 = params["dec_convT3"]
    return {
        "w1": conv_w(w1), "b1": row(b1),
        "w2": conv_w(w2), "b2": row(b2),
        "w3": conv_w(w3), "b3": row(b3),
        "B1": convT_blockdiag(d1, 1), "c1": row(e1, 4),
        "B2": convT_blockdiag(d2, 4), "c2": row(e2, 16),
        "B3": convT_blockdiag(d3, 16, pad_to=256), "c3": row(e3, 64, pad_to=256),
    }


# ----------------------------------------------------------------------------
# The fused Pallas kernel (grid over the batch)
# ----------------------------------------------------------------------------
def _forward_slab(kp, xp1, H, W):
    """xp1: (N, R1, Cin) bf16 flat zero-padded input.  Returns (N, H/8*W/8, 256) f32 slab."""
    N, r1_in, Cin = xp1.shape
    C1, C2, C3 = kp["w1"].shape[2], kp["w2"].shape[2], kp["w3"].shape[2]
    L = kp["B3"].shape[1]                                   # 256 lane-dense decoder output

    H1, W1 = H, W
    H2, W2 = H // 2, W // 2
    H3, W3 = H // 4, W // 4
    H4, W4 = H // 8, W // 8
    P1, M1, R1 = _conv_geom(H1, W1)
    P2, M2, R2 = _conv_geom(H2, W2)
    P3, M3, R3 = _conv_geom(H3, W3)
    M0 = H4 * W4
    assert r1_in == R1, (r1_in, R1)

    f32, bf16 = jnp.float32, jnp.bfloat16

    # Per-image activation footprint guard (everything is VMEM resident per grid step).
    scratch_bytes = (R1 * Cin * 2 + R2 * C1 * 2 + R3 * C2 * 2 +
                     M1 * C1 * 4 + M2 * C2 * 4 + M3 * C3 * 4 +
                     (M1 // 2) * C1 * 2 + (M2 // 2) * C2 * 2 + (M3 // 2) * C3 * 2 +
                     M0 * C3 * 2 + M0 * L * 4)
    if scratch_bytes > 24 * 2 ** 20:
        # TODO(synk): row-band tiling (extra grid axis with a 2-row halo) for large images.
        raise NotImplementedError("image too large for the fully VMEM-resident kernel")

    def kernel(xp1_ref, w1_ref, b1_ref, w2_ref, b2_ref, w3_ref, b3_ref,
               B1_ref, c1_ref, B2_ref, c2_ref, B3_ref, c3_ref,
               o_ref,
               xp2, xp3, y1, y2, y3, wp1, wp2, wp3, a0):

        def conv3x3_relu(load_tap, w_ref, b_ref, y_ref, pitch):
            # 3x3 'same' conv as 9 accumulating GEMMs; every tap is a free contiguous
            # row-offset view of the flat padded bf16 buffer (no relayout, no cast).
            m = y_ref.shape[0]
            acc = jnp.dot(load_tap(0, m), w_ref[0], preferred_element_type=f32)
            for k in range(1, 9):
                kh, kw = divmod(k, 3)
                acc = acc + jnp.dot(load_tap(kh * pitch + kw, m), w_ref[k],
                                    preferred_element_type=f32)
            y_ref[...] = jnp.maximum(acc + b_ref[...], 0.0)   # staged in VMEM scratch

        def zero_halo(dst, h_img, pitch, ch, rows):
            # Thin top / bottom strips only; the interleaved 1-row left/right pad slots
            # are re-zeroed by the pool write loop.
            dst[pl.ds(0, pitch + 1), :] = jnp.zeros((pitch + 1, ch), bf16)
            tail = rows - (h_img + 1) * pitch
            dst[pl.ds((h_img + 1) * pitch, tail), :] = jnp.zeros((tail, ch), bf16)

        def write_padded(dst, pitch, ch):
            zero_pair = jnp.zeros((2, ch), bf16)

            def write_row(i, r):
                dst[pl.ds((i + 1) * pitch + 1, r.shape[0]), :] = r
                # right pad of pooled row i + left pad of pooled row i+1
                dst[pl.ds((i + 2) * pitch - 1, 2), :] = zero_pair

            return write_row

        def pool2x2(y_ref, wp_ref, hc, wc, pitch, write_row):
            # w-parity max: two static stride-2 reads over the whole conv output
            # (pitch is even, so flat-row parity == column parity).
            mh = (hc * pitch) // 2
            wp_ref[...] = jnp.maximum(y_ref[pl.ds(0, mh, 2), :],
                                      y_ref[pl.ds(1, mh, 2), :]).astype(bf16)
            half, w_out = pitch // 2, wc // 2

            def body(i, carry):
                r = jnp.maximum(wp_ref[pl.ds((2 * i) * half, w_out), :],
                                wp_ref[pl.ds((2 * i + 1) * half, w_out), :])
                write_row(i, r)
                return carry

            jax.lax.fori_loop(0, hc // 2, body, 0, unroll=True)

        # ------------------ encoder (fully VMEM resident, one image per step) ------------
        conv3x3_relu(lambda off, m: xp1_ref[0, pl.ds(off, m), :], w1_ref, b1_ref, y1, P1)
        zero_halo(xp2, H2, P2, C1, R2)
        pool2x2(y1, wp1, H1, W1, P1, write_padded(xp2, P2, C1))

        conv3x3_relu(lambda off, m: xp2[pl.ds(off, m), :], w2_ref, b2_ref, y2, P2)
        zero_halo(xp3, H3, P3, C2, R3)
        pool2x2(y2, wp2, H2, W2, P2, write_padded(xp3, P3, C2))

        conv3x3_relu(lambda off, m: xp3[pl.ds(off, m), :], w3_ref, b3_ref, y3, P3)

        def write_a0(i, r):
            a0[pl.ds(i * W4, W4), :] = r                      # pixel-major decoder input

        pool2x2(y3, wp3, H3, W3, P3, write_a0)

        # ------------- decoder: 3 block-diagonal GEMMs, lane-dense 256-wide output -------
        # lanes: (d1h,d1w,c1) -> (d1h,d1w,d2h,d2w,c2) -> (d1h,d1w,d2h,d2w,d3h,d3w,c)+pad
        z = a0[...]                                           # (M0, C3) bf16
        z = jnp.maximum(jnp.dot(z, B1_ref[...], preferred_element_type=f32)
                        + c1_ref[...], 0.0)
        z = jnp.maximum(jnp.dot(z.astype(bf16), B2_ref[...], preferred_element_type=f32)
                        + c2_ref[...], 0.0)
        z = jax.nn.sigmoid(jnp.dot(z.astype(bf16), B3_ref[...], preferred_element_type=f32)
                           + c3_ref[...])
        o_ref[0] = z                                          # unmasked 256-lane store

    def _full(a):
        return pl.BlockSpec(a.shape, lambda n: (0,) * a.ndim)  # weights resident across grid

    grid_spec = pltpu.PrefetchScalarGridSpec(
        num_scalar_prefetch=0,
        grid=(N,),
        in_specs=[pl.BlockSpec((1, R1, Cin), lambda n: (n, 0, 0)),
                  _full(kp["w1"]), _full(kp["b1"]),
                  _full(kp["w2"]), _full(kp["b2"]),
                  _full(kp["w3"]), _full(kp["b3"]),
                  _full(kp["B1"]), _full(kp["c1"]),
                  _full(kp["B2"]), _full(kp["c2"]),
                  _full(kp["B3"]), _full(kp["c3"])],
        out_specs=pl.BlockSpec((1, M0, L), lambda n: (n, 0, 0)),
        scratch_shapes=[
            pltpu.VMEM((R2, C1), bf16),        # xp2: flat padded input of conv2
            pltpu.VMEM((R3, C2), bf16),        # xp3: flat padded input of conv3
            pltpu.VMEM((M1, C1), f32),         # y1 : conv1 output (rows = h*P1 + w)
            pltpu.VMEM((M2, C2), f32),         # y2
            pltpu.VMEM((M3, C3), f32),         # y3
            pltpu.VMEM((M1 // 2, C1), bf16),   # wp1: w-parity pooled conv1 output
            pltpu.VMEM((M2 // 2, C2), bf16),   # wp2
            pltpu.VMEM((M3 // 2, C3), bf16),   # wp3
            pltpu.VMEM((M0, C3), bf16),        # a0 : decoder input (pixel-major)
        ])

    return pl.pallas_call(
        kernel,
        out_shape=jax.ShapeDtypeStruct((N, M0, L), f32),
        grid_spec=grid_spec,
        compiler_params=pltpu.CompilerParams(
            dimension_semantics=("parallel",),
            vmem_limit_bytes=32 * 1024 * 1024),
    )(xp1,
      kp["w1"], kp["b1"], kp["w2"], kp["b2"], kp["w3"], kp["b3"],
      kp["B1"], kp["c1"], kp["B2"], kp["c2"], kp["B3"], kp["c3"])


@jax.jit
def segmentation_autoencoder_forward(kparams, x_nchw):
    """'autoencoder_only' forward.  Input NCHW float32, output (recon NCHW, None, None)."""
    N, Cin, H, W = x_nchw.shape
    assert H % 8 == 0 and W % 8 == 0, "spatial dims must be multiples of 8"
    P1, _, R1 = _conv_geom(H, W)

    # One-time input layout plumbing: NCHW -> flat zero-padded rows of pitch P1 = W+2 (bf16).
    x = jnp.transpose(x_nchw, (0, 2, 3, 1))
    xp = jnp.pad(x, ((0, 0), (1, 1), (1, 1), (0, 0))).reshape(N, (H + 2) * P1, Cin)
    xp = jnp.pad(xp, ((0, 0), (0, R1 - (H + 2) * P1), (0, 0))).astype(jnp.bfloat16)

    slab = _forward_slab(kparams, xp, H, W)                   # (N, H/8*W/8, 256)

    H4, W4 = H // 8, W // 8
    # slab rows = (h0, w0); lanes = (d1h, d1w, d2h, d2w, d3h, d3w, c) + 64 zero-pad lanes
    y = slab[..., :192].reshape(N, H4, W4, 2, 2, 2, 2, 2, 2, 3)
    y = jnp.transpose(y, (0, 9, 1, 3, 5, 7, 2, 4, 6, 8))      # (n,c,h0,d1h,d2h,d3h,w0,d1w,d2w,d3w)
    recon = y.reshape(N, 3, H, W)
    return recon, None, None


# ----------------------------------------------------------------------------
# Plain-JAX reference (f32, XLA only) for a numeric sanity check
# ----------------------------------------------------------------------------
def _ref_conv3x3_relu(x, w, b):
    n, h, wd, ci = x.shape
    co = w.shape[0]
    xp = jnp.pad(x, ((0, 0), (1, 1), (1, 1), (0, 0)))
    cols = [xp[:, kh:kh + h, kw:kw + wd, :] for kh in range(3) for kw in range(3)]
    patches = jnp.concatenate(cols, axis=-1).reshape(n * h * wd, 9 * ci)
    w2d = jnp.transpose(w, (2, 3, 1, 0)).reshape(9 * ci, co)
    out = jnp.maximum(patches @ w2d + b[None, :], 0.0)
    return out.reshape(n, h, wd, co)


def _ref_maxpool(x):
    n, h, w, c = x.shape
    return jnp.max(x.reshape(n, h // 2, 2, w // 2, 2, c), axis=(2, 4))


def _ref_convT2x2(x, w, b, act):
    n, h, wd, ci = x.shape
    co = w.shape[1]
    w2d = jnp.transpose(w, (0, 2, 3, 1)).reshape(ci, 4 * co)
    out = x.reshape(n * h * wd, ci) @ w2d + jnp.tile(b, 4)[None, :]
    out = jnp.maximum(out, 0.0) if act == "relu" else jax.nn.sigmoid(out)
    out = out.reshape(n, h, wd, 2, 2, co).transpose(0, 1, 3, 2, 4, 5)
    return out.reshape(n, 2 * h, 2 * wd, co)


def _reference_forward(params, x_nchw):
    x = jnp.transpose(x_nchw, (0, 2, 3, 1))
    x = _ref_maxpool(_ref_conv3x3_relu(x, *params["enc_conv1"]))
    x = _ref_maxpool(_ref_conv3x3_relu(x, *params["enc_conv2"]))
    x = _ref_maxpool(_ref_conv3x3_relu(x, *params["enc_conv3"]))
    x = _ref_convT2x2(x, *params["dec_convT1"], act="relu")
    x = _ref_convT2x2(x, *params["dec_convT2"], act="relu")
    x = _ref_convT2x2(x, *params["dec_convT3"], act="sigmoid")
    return jnp.transpose(x, (0, 3, 1, 2))


# ----------------------------------------------------------------------------
if __name__ == "__main__":
    key = jax.random.PRNGKey(0)
    k_param, k_data = jax.random.split(key)

    encoding_size = 8
    params = init_params(k_param, mode="autoencoder_only", encoding_size=encoding_size)
    kparams = prepare_kernel_params(params)

    # small input consistent with the module: batch=2, channels=3, spatial=16x16
    x = jax.random.normal(k_data, (2, 3, 16, 16), jnp.float32)

    recon, seg1, seg2 = segmentation_autoencoder_forward(kparams, x)
    recon = jax.block_until_ready(recon)

    assert recon.shape == (2, 3, 16, 16), recon.shape
    assert recon.dtype == jnp.float32
    assert bool(jnp.all(jnp.isfinite(recon)))
    assert bool(jnp.all((recon >= 0.0) & (recon <= 1.0)))      # sigmoid output range
    assert seg1 is None and seg2 is None

    # numeric check against a plain-JAX f32 reference (kernel matmuls / activations are bf16)
    ref = _reference_forward(params, x)
    max_err = float(jnp.max(jnp.abs(recon - ref)))
    assert max_err < 5e-2, f"kernel/reference mismatch: max abs err = {max_err}"

    print("KERNEL_OK")
</pallas_src>

<mosaic_0001>
module attributes {stable_mosaic.version = 11 : i64} {
  func.func @kernel(%arg0: i32, %arg1: memref<1x328x3xbf16, #tpu.memory_space<vmem>>, %arg2: memref<9x3x64xbf16, #tpu.memory_space<vmem>>, %arg3: memref<1x64xf32, #tpu.memory_space<vmem>>, %arg4: memref<9x64x32xbf16, #tpu.memory_space<vmem>>, %arg5: memref<1x32xf32, #tpu.memory_space<vmem>>, %arg6: memref<9x32x8xbf16, #tpu.memory_space<vmem>>, %arg7: memref<1x8xf32, #tpu.memory_space<vmem>>, %arg8: memref<8x128xbf16, #tpu.memory_space<vmem>>, %arg9: memref<1x128xf32, #tpu.memory_space<vmem>>, %arg10: memref<128x1024xbf16, #tpu.memory_space<vmem>>, %arg11: memref<1x1024xf32, #tpu.memory_space<vmem>>, %arg12: memref<1024x256xbf16, #tpu.memory_space<vmem>>, %arg13: memref<1x256xf32, #tpu.memory_space<vmem>>, %arg14: memref<1x4x256xf32, #tpu.memory_space<vmem>>, %arg15: memref<104x64xbf16, #tpu.memory_space<vmem>>, %arg16: memref<40x32xbf16, #tpu.memory_space<vmem>>, %arg17: memref<288x64xf32, #tpu.memory_space<vmem>>, %arg18: memref<80x32xf32, #tpu.memory_space<vmem>>, %arg19: memref<24x8xf32, #tpu.memory_space<vmem>>, %arg20: memref<144x64xbf16, #tpu.memory_space<vmem>>, %arg21: memref<40x32xbf16, #tpu.memory_space<vmem>>, %arg22: memref<12x8xbf16, #tpu.memory_space<vmem>>, %arg23: memref<4x8xbf16, #tpu.memory_space<vmem>>) attributes {dimension_semantics = [#tpu.dimension_semantics<parallel>], iteration_bounds = array<i64: 2>, scalar_prefetch = 0 : i64, scratch_operands = 9 : i64, tpu.core_type = #tpu.core_type<tc>, window_params = [{transform_indices = @transform_0, window_bounds = array<i64: 1, 328, 3>}, {pipeline_mode = #tpu.pipeline_mode<synchronous>, transform_indices = @transform_1, window_bounds = array<i64: 9, 3, 64>}, {pipeline_mode = #tpu.pipeline_mode<synchronous>, transform_indices = @transform_2, window_bounds = array<i64: 1, 64>}, {pipeline_mode = #tpu.pipeline_mode<synchronous>, transform_indices = @transform_3, window_bounds = array<i64: 9, 64, 32>}, {pipeline_mode = #tpu.pipeline_mode<synchronous>, transform_indices = @transform_4, window_bounds = array<i64: 1, 32>}, {pipeline_mode = #tpu.pipeline_mode<synchronous>, transform_indices = @transform_5, window_bounds = array<i64: 9, 32, 8>}, {pipeline_mode = #tpu.pipeline_mode<synchronous>, transform_indices = @transform_6, window_bounds = array<i64: 1, 8>}, {pipeline_mode = #tpu.pipeline_mode<synchronous>, transform_indices = @transform_7, window_bounds = array<i64: 8, 128>}, {pipeline_mode = #tpu.pipeline_mode<synchronous>, transform_indices = @transform_8, window_bounds = array<i64: 1, 128>}, {pipeline_mode = #tpu.pipeline_mode<synchronous>, transform_indices = @transform_9, window_bounds = array<i64: 128, 1024>}, {pipeline_mode = #tpu.pipeline_mode<synchronous>, transform_indices = @transform_10, window_bounds = array<i64: 1, 1024>}, {pipeline_mode = #tpu.pipeline_mode<synchronous>, transform_indices = @transform_11, window_bounds = array<i64: 1024, 256>}, {pipeline_mode = #tpu.pipeline_mode<synchronous>, transform_indices = @transform_12, window_bounds = array<i64: 1, 256>}, {transform_indices = @transform_13, window_bounds = array<i64: 1, 4, 256>}]} {
    %c0 = arith.constant 0 : index
    %c0_0 = arith.constant 0 : index
    %c0_1 = arith.constant 0 : index
    %0 = vector.load %arg1[%c0, %c0_0, %c0_1] : memref<1x328x3xbf16, #tpu.memory_space<vmem>>, vector<1x288x3xbf16>
    %1 = vector.shape_cast %0 : vector<1x288x3xbf16> to vector<288x3xbf16>
    %c0_2 = arith.constant 0 : index
    %c0_3 = arith.constant 0 : index
    %c0_4 = arith.constant 0 : index
    %2 = vector.load %arg2[%c0_2, %c0_3, %c0_4] : memref<9x3x64xbf16, #tpu.memory_space<vmem>>, vector<1x3x64xbf16>
    %3 = vector.shape_cast %2 : vector<1x3x64xbf16> to vector<3x64xbf16>
    %cst = arith.constant dense<0.000000e+00> : vector<288x64xf32>
    %4 = tpu.matmul %1, %3, %cst {dimension_numbers = #tpu.dot_dimension_numbers<[1], [0], [0], [1], [0, 0, 1, 1], [], []>} : vector<288x3xbf16>, vector<3x64xbf16>, vector<288x64xf32> -> vector<288x64xf32>
    %c0_5 = arith.constant 0 : index
    %c1 = arith.constant 1 : index
    %c0_6 = arith.constant 0 : index
    %5 = vector.load %arg1[%c0_5, %c1, %c0_6] : memref<1x328x3xbf16, #tpu.memory_space<vmem>>, vector<1x288x3xbf16>
    %6 = vector.shape_cast %5 : vector<1x288x3xbf16> to vector<288x3xbf16>
    %c1_7 = arith.constant 1 : index
    %c0_8 = arith.constant 0 : index
    %c0_9 = arith.constant 0 : index
    %7 = vector.load %arg2[%c1_7, %c0_8, %c0_9] : memref<9x3x64xbf16, #tpu.memory_space<vmem>>, vector<1x3x64xbf16>
    %8 = vector.shape_cast %7 : vector<1x3x64xbf16> to vector<3x64xbf16>
    %cst_10 = arith.constant dense<0.000000e+00> : vector<288x64xf32>
    %9 = tpu.matmul %6, %8, %cst_10 {dimension_numbers = #tpu.dot_dimension_numbers<[1], [0], [0], [1], [0, 0, 1, 1], [], []>} : vector<288x3xbf16>, vector<3x64xbf16>, vector<288x64xf32> -> vector<288x64xf32>
    %10 = arith.addf %4, %9 : vector<288x64xf32>
    %c0_11 = arith.constant 0 : index
    %c2 = arith.constant 2 : index
    %c0_12 = arith.constant 0 : index
    %11 = vector.load %arg1[%c0_11, %c2, %c0_12] : memref<1x328x3xbf16, #tpu.memory_space<vmem>>, vector<1x288x3xbf16>
    %12 = vector.shape_cast %11 : vector<1x288x3xbf16> to vector<288x3xbf16>
    %c2_13 = arith.constant 2 : index
    %c0_14 = arith.constant 0 : index
    %c0_15 = arith.constant 0 : index
    %13 = vector.load %arg2[%c2_13, %c0_14, %c0_15] : memref<9x3x64xbf16, #tpu.memory_space<vmem>>, vector<1x3x64xbf16>
    %14 = vector.shape_cast %13 : vector<1x3x64xbf16> to vector<3x64xbf16>
    %cst_16 = arith.constant dense<0.000000e+00> : vector<288x64xf32>
    %15 = tpu.matmul %12, %14, %cst_16 {dimension_numbers = #tpu.dot_dimension_numbers<[1], [0], [0], [1], [0, 0, 1, 1], [], []>} : vector<288x3xbf16>, vector<3x64xbf16>, vector<288x64xf32> -> vector<288x64xf32>
    %16 = arith.addf %10, %15 : vector<288x64xf32>
    %c0_17 = arith.constant 0 : index
    %c18 = arith.constant 18 : index
    %c0_18 = arith.constant 0 : index
    %17 = vector.load %arg1[%c0_17, %c18, %c0_18] : memref<1x328x3xbf16, #tpu.memory_space<vmem>>, vector<1x288x3xbf16>
    %18 = vector.shape_cast %17 : vector<1x288x3xbf16> to vector<288x3xbf16>
    %c3 = arith.constant 3 : index
    %c0_19 = arith.constant 0 : index
    %c0_20 = arith.constant 0 : index
    %19 = vector.load %arg2[%c3, %c0_19, %c0_20] : memref<9x3x64xbf16, #tpu.memory_space<vmem>>, vector<1x3x64xbf16>
    %20 = vector.shape_cast %19 : vector<1x3x64xbf16> to vector<3x64xbf16>
    %cst_21 = arith.constant dense<0.000000e+00> : vector<288x64xf32>
    %21 = tpu.matmul %18, %20, %cst_21 {dimension_numbers = #tpu.dot_dimension_numbers<[1], [0], [0], [1], [0, 0, 1, 1], [], []>} : vector<288x3xbf16>, vector<3x64xbf16>, vector<288x64xf32> -> vector<288x64xf32>
    %22 = arith.addf %16, %21 : vector<288x64xf32>
    %c0_22 = arith.constant 0 : index
    %c19 = arith.constant 19 : index
    %c0_23 = arith.constant 0 : index
    %23 = vector.load %arg1[%c0_22, %c19, %c0_23] : memref<1x328x3xbf16, #tpu.memory_space<vmem>>, vector<1x288x3xbf16>
    %24 = vector.shape_cast %23 : vector<1x288x3xbf16> to vector<288x3xbf16>
    %c4 = arith.constant 4 : index
    %c0_24 = arith.constant 0 : index
    %c0_25 = arith.constant 0 : index
    %25 = vector.load %arg2[%c4, %c0_24, %c0_25] : memref<9x3x64xbf16, #tpu.memory_space<vmem>>, vector<1x3x64xbf16>
    %26 = vector.shape_cast %25 : vector<1x3x64xbf16> to vector<3x64xbf16>
    %cst_26 = arith.constant dense<0.000000e+00> : vector<288x64xf32>
    %27 = tpu.matmul %24, %26, %cst_26 {dimension_numbers = #tpu.dot_dimension_numbers<[1], [0], [0], [1], [0, 0, 1, 1], [], []>} : vector<288x3xbf16>, vector<3x64xbf16>, vector<288x64xf32> -> vector<288x64xf32>
    %28 = arith.addf %22, %27 : vector<288x64xf32>
    %c0_27 = arith.constant 0 : index
    %c20 = arith.constant 20 : index
    %c0_28 = arith.constant 0 : index
    %29 = vector.load %arg1[%c0_27, %c20, %c0_28] : memref<1x328x3xbf16, #tpu.memory_space<vmem>>, vector<1x288x3xbf16>
    %30 = vector.shape_cast %29 : vector<1x288x3xbf16> to vector<288x3xbf16>
    %c5 = arith.constant 5 : index
    %c0_29 = arith.constant 0 : index
    %c0_30 = arith.constant 0 : index
    %31 = vector.load %arg2[%c5, %c0_29, %c0_30] : memref<9x3x64xbf16, #tpu.memory_space<vmem>>, vector<1x3x64xbf16>
    %32 = vector.shape_cast %31 : vector<1x3x64xbf16> to vector<3x64xbf16>
    %cst_31 = arith.constant dense<0.000000e+00> : vector<288x64xf32>
    %33 = tpu.matmul %30, %32, %cst_31 {dimension_numbers = #tpu.dot_dimension_numbers<[1], [0], [0], [1], [0, 0, 1, 1], [], []>} : vector<288x3xbf16>, vector<3x64xbf16>, vector<288x64xf32> -> vector<288x64xf32>
    %34 = arith.addf %28, %33 : vector<288x64xf32>
    %c0_32 = arith.constant 0 : index
    %c36 = arith.constant 36 : index
    %c0_33 = arith.constant 0 : index
    %35 = vector.load %arg1[%c0_32, %c36, %c0_33] : memref<1x328x3xbf16, #tpu.memory_space<vmem>>, vector<1x288x3xbf16>
    %36 = vector.shape_cast %35 : vector<1x288x3xbf16> to vector<288x3xbf16>
    %c6 = arith.constant 6 : index
    %c0_34 = arith.constant 0 : index
    %c0_35 = arith.constant 0 : index
    %37 = vector.load %arg2[%c6, %c0_34, %c0_35] : memref<9x3x64xbf16, #tpu.memory_space<vmem>>, vector<1x3x64xbf16>
    %38 = vector.shape_cast %37 : vector<1x3x64xbf16> to vector<3x64xbf16>
    %cst_36 = arith.constant dense<0.000000e+00> : vector<288x64xf32>
    %39 = tpu.matmul %36, %38, %cst_36 {dimension_numbers = #tpu.dot_dimension_numbers<[1], [0], [0], [1], [0, 0, 1, 1], [], []>} : vector<288x3xbf16>, vector<3x64xbf16>, vector<288x64xf32> -> vector<288x64xf32>
    %40 = arith.addf %34, %39 : vector<288x64xf32>
    %c0_37 = arith.constant 0 : index
    %c37 = arith.constant 37 : index
    %c0_38 = arith.constant 0 : index
    %41 = vector.load %arg1[%c0_37, %c37, %c0_38] : memref<1x328x3xbf16, #tpu.memory_space<vmem>>, vector<1x288x3xbf16>
    %42 = vector.shape_cast %41 : vector<1x288x3xbf16> to vector<288x3xbf16>
    %c7 = arith.constant 7 : index
    %c0_39 = arith.constant 0 : index
    %c0_40 = arith.constant 0 : index
    %43 = vector.load %arg2[%c7, %c0_39, %c0_40] : memref<9x3x64xbf16, #tpu.memory_space<vmem>>, vector<1x3x64xbf16>
    %44 = vector.shape_cast %43 : vector<1x3x64xbf16> to vector<3x64xbf16>
    %cst_41 = arith.constant dense<0.000000e+00> : vector<288x64xf32>
    %45 = tpu.matmul %42, %44, %cst_41 {dimension_numbers = #tpu.dot_dimension_numbers<[1], [0], [0], [1], [0, 0, 1, 1], [], []>} : vector<288x3xbf16>, vector<3x64xbf16>, vector<288x64xf32> -> vector<288x64xf32>
    %46 = arith.addf %40, %45 : vector<288x64xf32>
    %c0_42 = arith.constant 0 : index
    %c38 = arith.constant 38 : index
    %c0_43 = arith.constant 0 : index
    %47 = vector.load %arg1[%c0_42, %c38, %c0_43] : memref<1x328x3xbf16, #tpu.memory_space<vmem>>, vector<1x288x3xbf16>
    %48 = vector.shape_cast %47 : vector<1x288x3xbf16> to vector<288x3xbf16>
    %c8 = arith.constant 8 : index
    %c0_44 = arith.constant 0 : index
    %c0_45 = arith.constant 0 : index
    %49 = vector.load %arg2[%c8, %c0_44, %c0_45] : memref<9x3x64xbf16, #tpu.memory_space<vmem>>, vector<1x3x64xbf16>
    %50 = vector.shape_cast %49 : vector<1x3x64xbf16> to vector<3x64xbf16>
    %cst_46 = arith.constant dense<0.000000e+00> : vector<288x64xf32>
    %51 = tpu.matmul %48, %50, %cst_46 {dimension_numbers = #tpu.dot_dimension_numbers<[1], [0], [0], [1], [0, 0, 1, 1], [], []>} : vector<288x3xbf16>, vector<3x64xbf16>, vector<288x64xf32> -> vector<288x64xf32>
    %52 = arith.addf %46, %51 : vector<288x64xf32>
    %c0_47 = arith.constant 0 : index
    %c0_48 = arith.constant 0 : index
    %53 = vector.load %arg3[%c0_47, %c0_48] : memref<1x64xf32, #tpu.memory_space<vmem>>, vector<1x64xf32>
    %54 = vector.broadcast %53 : vector<1x64xf32> to vector<288x64xf32>
    %55 = arith.addf %52, %54 : vector<288x64xf32>
    %cst_49 = arith.constant 0.000000e+00 : f32
    %56 = vector.broadcast %cst_49 : f32 to vector<288x64xf32>
    %57 = arith.maximumf %55, %56 : vector<288x64xf32>
    %c0_50 = arith.constant 0 : index
    %c0_51 = arith.constant 0 : index
    %58 = vector.load %arg17[%c0_50, %c0_51] : memref<288x64xf32, #tpu.memory_space<vmem>>, vector<288x64xf32>
    tpu.vector_store %arg17[%c0_50, %c0_51], %57 {strides = array<i32>} : memref<288x64xf32, #tpu.memory_space<vmem>>, vector<288x64xf32>,
    %cst_52 = arith.constant 0.000000e+00 : bf16
    %59 = vector.broadcast %cst_52 : bf16 to vector<11x64xbf16>
    %c0_53 = arith.constant 0 : index
    %c0_54 = arith.constant 0 : index
    %60 = vector.load %arg15[%c0_53, %c0_54] : memref<104x64xbf16, #tpu.memory_space<vmem>>, vector<11x64xbf16>
    tpu.vector_store %arg15[%c0_53, %c0_54], %59 {strides = array<i32>} : memref<104x64xbf16, #tpu.memory_space<vmem>>, vector<11x64xbf16>,
    %cst_55 = arith.constant 0.000000e+00 : bf16
    %61 = vector.broadcast %cst_55 : bf16 to vector<14x64xbf16>
    %c90 = arith.constant 90 : index
    %c0_56 = arith.constant 0 : index
    %62 = vector.load %arg15[%c90, %c0_56] : memref<104x64xbf16, #tpu.memory_space<vmem>>, vector<14x64xbf16>
    tpu.vector_store %arg15[%c90, %c0_56], %61 {strides = array<i32>} : memref<104x64xbf16, #tpu.memory_space<vmem>>, vector<14x64xbf16>,
    %cst_57 = arith.constant 0.000000e+00 : bf16
    %63 = vector.broadcast %cst_57 : bf16 to vector<2x64xbf16>
    %c0_58 = arith.constant 0 : index
    %c0_59 = arith.constant 0 : index
    %64 = tpu.strided_load %arg17[%c0_58, %c0_59] {strides = array<i32: 2, 1>} : memref<288x64xf32, #tpu.memory_space<vmem>>, vector<144x64xf32>
    %c1_60 = arith.constant 1 : index
    %c0_61 = arith.constant 0 : index
    %65 = tpu.strided_load %arg17[%c1_60, %c0_61] {strides = array<i32: 2, 1>} : memref<288x64xf32, #tpu.memory_space<vmem>>, vector<144x64xf32>
    %66 = arith.maximumf %64, %65 : vector<144x64xf32>
    %67 = arith.truncf %66 : vector<144x64xf32> to vector<144x64xbf16>
    %c0_62 = arith.constant 0 : index
    %c0_63 = arith.constant 0 : index
    %68 = vector.load %arg20[%c0_62, %c0_63] : memref<144x64xbf16, #tpu.memory_space<vmem>>, vector<144x64xbf16>
    tpu.vector_store %arg20[%c0_62, %c0_63], %67 {strides = array<i32>} : memref<144x64xbf16, #tpu.memory_space<vmem>>, vector<144x64xbf16>,
    %c0_i32 = arith.constant 0 : i32
    %c2_i32 = arith.constant 2 : i32
    %69 = arith.muli %c2_i32, %c0_i32 : i32
    %c9_i32 = arith.constant 9 : i32
    %70 = arith.muli %69, %c9_i32 : i32
    %71 = arith.index_cast %70 : i32 to index
    %c0_64 = arith.constant 0 : index
    %72 = vector.load %arg20[%71, %c0_64] : memref<144x64xbf16, #tpu.memory_space<vmem>>, vector<8x64xbf16>
    %c2_i32_65 = arith.constant 2 : i32
    %73 = arith.muli %c2_i32_65, %c0_i32 : i32
    %c1_i32 = arith.constant 1 : i32
    %74 = arith.addi %73, %c1_i32 : i32
    %c9_i32_66 = arith.constant 9 : i32
    %75 = arith.muli %74, %c9_i32_66 : i32
    %76 = arith.index_cast %75 : i32 to index
    %c0_67 = arith.constant 0 : index
    %77 = vector.load %arg20[%76, %c0_67] : memref<144x64xbf16, #tpu.memory_space<vmem>>, vector<8x64xbf16>
    %78 = arith.maximumf %72, %77 : vector<8x64xbf16>
    %c1_i32_68 = arith.constant 1 : i32
    %79 = arith.addi %c0_i32, %c1_i32_68 : i32
    %c10_i32 = arith.constant 10 : i32
    %80 = arith.muli %79, %c10_i32 : i32
    %c1_i32_69 = arith.constant 1 : i32
    %81 = arith.addi %80, %c1_i32_69 : i32
    %82 = arith.index_cast %81 : i32 to index
    %c0_70 = arith.constant 0 : index
    %83 = vector.load %arg15[%82, %c0_70] : memref<104x64xbf16, #tpu.memory_space<vmem>>, vector<8x64xbf16>
    tpu.vector_store %arg15[%82, %c0_70], %78 {strides = array<i32>} : memref<104x64xbf16, #tpu.memory_space<vmem>>, vector<8x64xbf16>,
    %c2_i32_71 = arith.constant 2 : i32
    %84 = arith.addi %c0_i32, %c2_i32_71 : i32
    %c10_i32_72 = arith.constant 10 : i32
    %85 = arith.muli %84, %c10_i32_72 : i32
    %c1_i32_73 = arith.constant 1 : i32
    %86 = arith.subi %85, %c1_i32_73 : i32
    %87 = arith.index_cast %86 : i32 to index
    %c0_74 = arith.constant 0 : index
    %88 = vector.load %arg15[%87, %c0_74] : memref<104x64xbf16, #tpu.memory_space<vmem>>, vector<2x64xbf16>
    tpu.vector_store %arg15[%87, %c0_74], %63 {strides = array<i32>} : memref<104x64xbf16, #tpu.memory_space<vmem>>, vector<2x64xbf16>,
    %c1_i32_75 = arith.constant 1 : i32
    %c2_i32_76 = arith.constant 2 : i32
    %89 = arith.muli %c2_i32_76, %c1_i32_75 : i32
    %c9_i32_77 = arith.constant 9 : i32
    %90 = arith.muli %89, %c9_i32_77 : i32
    %91 = arith.index_cast %90 : i32 to index
    %c0_78 = arith.constant 0 : index
    %92 = vector.load %arg20[%91, %c0_78] : memref<144x64xbf16, #tpu.memory_space<vmem>>, vector<8x64xbf16>
    %c2_i32_79 = arith.constant 2 : i32
    %93 = arith.muli %c2_i32_79, %c1_i32_75 : i32
    %c1_i32_80 = arith.constant 1 : i32
    %94 = arith.addi %93, %c1_i32_80 : i32
    %c9_i32_81 = arith.constant 9 : i32
    %95 = arith.muli %94, %c9_i32_81 : i32
    %96 = arith.index_cast %95 : i32 to index
    %c0_82 = arith.constant 0 : index
    %97 = vector.load %arg20[%96, %c0_82] : memref<144x64xbf16, #tpu.memory_space<vmem>>, vector<8x64xbf16>
    %98 = arith.maximumf %92, %97 : vector<8x64xbf16>
    %c1_i32_83 = arith.constant 1 : i32
    %99 = arith.addi %c1_i32_75, %c1_i32_83 : i32
    %c10_i32_84 = arith.constant 10 : i32
    %100 = arith.muli %99, %c10_i32_84 : i32
    %c1_i32_85 = arith.constant 1 : i32
    %101 = arith.addi %100, %c1_i32_85 : i32
    %102 = arith.index_cast %101 : i32 to index
    %c0_86 = arith.constant 0 : index
    %103 = vector.load %arg15[%102, %c0_86] : memref<104x64xbf16, #tpu.memory_space<vmem>>, vector<8x64xbf16>
    tpu.vector_store %arg15[%102, %c0_86], %98 {strides = array<i32>} : memref<104x64xbf16, #tpu.memory_space<vmem>>, vector<8x64xbf16>,
    %c2_i32_87 = arith.constant 2 : i32
    %104 = arith.addi %c1_i32_75, %c2_i32_87 : i32
    %c10_i32_88 = arith.constant 10 : i32
    %105 = arith.muli %104, %c10_i32_88 : i32
    %c1_i32_89 = arith.constant 1 : i32
    %106 = arith.subi %105, %c1_i32_89 : i32
    %107 = arith.index_cast %106 : i32 to index
    %c0_90 = arith.constant 0 : index
    %108 = vector.load %arg15[%107, %c0_90] : memref<104x64xbf16, #tpu.memory_space<vmem>>, vector<2x64xbf16>
    tpu.vector_store %arg15[%107, %c0_90], %63 {strides = array<i32>} : memref<104x64xbf16, #tpu.memory_space<vmem>>, vector<2x64xbf16>,
    %c2_i32_91 = arith.constant 2 : i32
    %c2_i32_92 = arith.constant 2 : i32
    %109 = arith.muli %c2_i32_92, %c2_i32_91 : i32
    %c9_i32_93 = arith.constant 9 : i32
    %110 = arith.muli %109, %c9_i32_93 : i32
    %111 = arith.index_cast %110 : i32 to index
    %c0_94 = arith.constant 0 : index
    %112 = vector.load %arg20[%111, %c0_94] : memref<144x64xbf16, #tpu.memory_space<vmem>>, vector<8x64xbf16>
    %c2_i32_95 = arith.constant 2 : i32
    %113 = arith.muli %c2_i32_95, %c2_i32_91 : i32
    %c1_i32_96 = arith.constant 1 : i32
    %114 = arith.addi %113, %c1_i32_96 : i32
    %c9_i32_97 = arith.constant 9 : i32
    %115 = arith.muli %114, %c9_i32_97 : i32
    %116 = arith.index_cast %115 : i32 to index
    %c0_98 = arith.constant 0 : index
    %117 = vector.load %arg20[%116, %c0_98] : memref<144x64xbf16, #tpu.memory_space<vmem>>, vector<8x64xbf16>
    %118 = arith.maximumf %112, %117 : vector<8x64xbf16>
    %c1_i32_99 = arith.constant 1 : i32
    %119 = arith.addi %c2_i32_91, %c1_i32_99 : i32
    %c10_i32_100 = arith.constant 10 : i32
    %120 = arith.muli %119, %c10_i32_100 : i32
    %c1_i32_101 = arith.constant 1 : i32
    %121 = arith.addi %120, %c1_i32_101 : i32
    %122 = arith.index_cast %121 : i32 to index
    %c0_102 = arith.constant 0 : index
    %123 = vector.load %arg15[%122, %c0_102] : memref<104x64xbf16, #tpu.memory_space<vmem>>, vector<8x64xbf16>
    tpu.vector_store %arg15[%122, %c0_102], %118 {strides = array<i32>} : memref<104x64xbf16, #tpu.memory_space<vmem>>, vector<8x64xbf16>,
    %c2_i32_103 = arith.constant 2 : i32
    %124 = arith.addi %c2_i32_91, %c2_i32_103 : i32
    %c10_i32_104 = arith.constant 10 : i32
    %125 = arith.muli %124, %c10_i32_104 : i32
    %c1_i32_105 = arith.constant 1 : i32
    %126 = arith.subi %125, %c1_i32_105 : i32
    %127 = arith.index_cast %126 : i32 to index
    %c0_106 = arith.constant 0 : index
    %128 = vector.load %arg15[%127, %c0_106] : memref<104x64xbf16, #tpu.memory_space<vmem>>, vector<2x64xbf16>
    tpu.vector_store %arg15[%127, %c0_106], %63 {strides = array<i32>} : memref<104x64xbf16, #tpu.memory_space<vmem>>, vector<2x64xbf16>,
    %c3_i32 = arith.constant 3 : i32
    %c2_i32_107 = arith.constant 2 : i32
    %129 = arith.muli %c2_i32_107, %c3_i32 : i32
    %c9_i32_108 = arith.constant 9 : i32
    %130 = arith.muli %129, %c9_i32_108 : i32
    %131 = arith.index_cast %130 : i32 to index
    %c0_109 = arith.constant 0 : index
    %132 = vector.load %arg20[%131, %c0_109] : memref<144x64xbf16, #tpu.memory_space<vmem>>, vector<8x64xbf16>
    %c2_i32_110 = arith.constant 2 : i32
    %133 = arith.muli %c2_i32_110, %c3_i32 : i32
    %c1_i32_111 = arith.constant 1 : i32
    %134 = arith.addi %133, %c1_i32_111 : i32
    %c9_i32_112 = arith.constant 9 : i32
    %135 = arith.muli %134, %c9_i32_112 : i32
    %136 = arith.index_cast %135 : i32 to index
    %c0_113 = arith.constant 0 : index
    %137 = vector.load %arg20[%136, %c0_113] : memref<144x64xbf16, #tpu.memory_space<vmem>>, vector<8x64xbf16>
    %138 = arith.maximumf %132, %137 : vector<8x64xbf16>
    %c1_i32_114 = arith.constant 1 : i32
    %139 = arith.addi %c3_i32, %c1_i32_114 : i32
    %c10_i32_115 = arith.constant 10 : i32
    %140 = arith.muli %139, %c10_i32_115 : i32
    %c1_i32_116 = arith.constant 1 : i32
    %141 = arith.addi %140, %c1_i32_116 : i32
    %142 = arith.index_cast %141 : i32 to index
    %c0_117 = arith.constant 0 : index
    %143 = vector.load %arg15[%142, %c0_117] : memref<104x64xbf16, #tpu.memory_space<vmem>>, vector<8x64xbf16>
    tpu.vector_store %arg15[%142, %c0_117], %138 {strides = array<i32>} : memref<104x64xbf16, #tpu.memory_space<vmem>>, vector<8x64xbf16>,
    %c2_i32_118 = arith.constant 2 : i32
    %144 = arith.addi %c3_i32, %c2_i32_118 : i32
    %c10_i32_119 = arith.constant 10 : i32
    %145 = arith.muli %144, %c10_i32_119 : i32
    %c1_i32_120 = arith.constant 1 : i32
    %146 = arith.subi %145, %c1_i32_120 : i32
    %147 = arith.index_cast %146 : i32 to index
    %c0_121 = arith.constant 0 : index
    %148 = vector.load %arg15[%147, %c0_121] : memref<104x64xbf16, #tpu.memory_space<vmem>>, vector<2x64xbf16>
    tpu.vector_store %arg15[%147, %c0_121], %63 {strides = array<i32>} : memref<104x64xbf16, #tpu.memory_space<vmem>>, vector<2x64xbf16>,
    %c4_i32 = arith.constant 4 : i32
    %c2_i32_122 = arith.constant 2 : i32
    %149 = arith.muli %c2_i32_122, %c4_i32 : i32
    %c9_i32_123 = arith.constant 9 : i32
    %150 = arith.muli %149, %c9_i32_123 : i32
    %151 = arith.index_cast %150 : i32 to index
    %c0_124 = arith.constant 0 : index
    %152 = vector.load %arg20[%151, %c0_124] : memref<144x64xbf16, #tpu.memory_space<vmem>>, vector<8x64xbf16>
    %c2_i32_125 = arith.constant 2 : i32
    %153 = arith.muli %c2_i32_125, %c4_i32 : i32
    %c1_i32_126 = arith.constant 1 : i32
    %154 = arith.addi %153, %c1_i32_126 : i32
    %c9_i32_127 = arith.constant 9 : i32
    %155 = arith.muli %154, %c9_i32_127 : i32
    %156 = arith.index_cast %155 : i32 to index
    %c0_128 = arith.constant 0 : index
    %157 = vector.load %arg20[%156, %c0_128] : memref<144x64xbf16, #tpu.memory_space<vmem>>, vector<8x64xbf16>
    %158 = arith.maximumf %152, %157 : vector<8x64xbf16>
    %c1_i32_129 = arith.constant 1 : i32
    %159 = arith.addi %c4_i32, %c1_i32_129 : i32
    %c10_i32_130 = arith.constant 10 : i32
    %160 = arith.muli %159, %c10_i32_130 : i32
    %c1_i32_131 = arith.constant 1 : i32
    %161 = arith.addi %160, %c1_i32_131 : i32
    %162 = arith.index_cast %161 : i32 to index
    %c0_132 = arith.constant 0 : index
    %163 = vector.load %arg15[%162, %c0_132] : memref<104x64xbf16, #tpu.memory_space<vmem>>, vector<8x64xbf16>
    tpu.vector_store %arg15[%162, %c0_132], %158 {strides = array<i32>} : memref<104x64xbf16, #tpu.memory_space<vmem>>, vector<8x64xbf16>,
    %c2_i32_133 = arith.constant 2 : i32
    %164 = arith.addi %c4_i32, %c2_i32_133 : i32
    %c10_i32_134 = arith.constant 10 : i32
    %165 = arith.muli %164, %c10_i32_134 : i32
    %c1_i32_135 = arith.constant 1 : i32
    %166 = arith.subi %165, %c1_i32_135 : i32
    %167 = arith.index_cast %166 : i32 to index
    %c0_136 = arith.constant 0 : index
    %168 = vector.load %arg15[%167, %c0_136] : memref<104x64xbf16, #tpu.memory_space<vmem>>, vector<2x64xbf16>
    tpu.vector_store %arg15[%167, %c0_136], %63 {strides = array<i32>} : memref<104x64xbf16, #tpu.memory_space<vmem>>, vector<2x64xbf16>,
    %c5_i32 = arith.constant 5 : i32
    %c2_i32_137 = arith.constant 2 : i32
    %169 = arith.muli %c2_i32_137, %c5_i32 : i32
    %c9_i32_138 = arith.constant 9 : i32
    %170 = arith.muli %169, %c9_i32_138 : i32
    %171 = arith.index_cast %170 : i32 to index
    %c0_139 = arith.constant 0 : index
    %172 = vector.load %arg20[%171, %c0_139] : memref<144x64xbf16, #tpu.memory_space<vmem>>, vector<8x64xbf16>
    %c2_i32_140 = arith.constant 2 : i32
    %173 = arith.muli %c2_i32_140, %c5_i32 : i32
    %c1_i32_141 = arith.constant 1 : i32
    %174 = arith.addi %173, %c1_i32_141 : i32
    %c9_i32_142 = arith.constant 9 : i32
    %175 = arith.muli %174, %c9_i32_142 : i32
    %176 = arith.index_cast %175 : i32 to index
    %c0_143 = arith.constant 0 : index
    %177 = vector.load %arg20[%176, %c0_143] : memref<144x64xbf16, #tpu.memory_space<vmem>>, vector<8x64xbf16>
    %178 = arith.maximumf %172, %177 : vector<8x64xbf16>
    %c1_i32_144 = arith.constant 1 : i32
    %179 = arith.addi %c5_i32, %c1_i32_144 : i32
    %c10_i32_145 = arith.constant 10 : i32
    %180 = arith.muli %179, %c10_i32_145 : i32
    %c1_i32_146 = arith.constant 1 : i32
    %181 = arith.addi %180, %c1_i32_146 : i32
    %182 = arith.index_cast %181 : i32 to index
    %c0_147 = arith.constant 0 : index
    %183 = vector.load %arg15[%182, %c0_147] : memref<104x64xbf16, #tpu.memory_space<vmem>>, vector<8x64xbf16>
    tpu.vector_store %arg15[%182, %c0_147], %178 {strides = array<i32>} : memref<104x64xbf16, #tpu.memory_space<vmem>>, vector<8x64xbf16>,
    %c2_i32_148 = arith.constant 2 : i32
    %184 = arith.addi %c5_i32, %c2_i32_148 : i32
    %c10_i32_149 = arith.constant 10 : i32
    %185 = arith.muli %184, %c10_i32_149 : i32
    %c1_i32_150 = arith.constant 1 : i32
    %186 = arith.subi %185, %c1_i32_150 : i32
    %187 = arith.index_cast %186 : i32 to index
    %c0_151 = arith.constant 0 : index
    %188 = vector.load %arg15[%187, %c0_151] : memref<104x64xbf16, #tpu.memory_space<vmem>>, vector<2x64xbf16>
    tpu.vector_store %arg15[%187, %c0_151], %63 {strides = array<i32>} : memref<104x64xbf16, #tpu.memory_space<vmem>>, vector<2x64xbf16>,
    %c6_i32 = arith.constant 6 : i32
    %c2_i32_152 = arith.constant 2 : i32
    %189 = arith.muli %c2_i32_152, %c6_i32 : i32
    %c9_i32_153 = arith.constant 9 : i32
    %190 = arith.muli %189, %c9_i32_153 : i32
    %191 = arith.index_cast %190 : i32 to index
    %c0_154 = arith.constant 0 : index
    %192 = vector.load %arg20[%191, %c0_154] : memref<144x64xbf16, #tpu.memory_space<vmem>>, vector<8x64xbf16>
    %c2_i32_155 = arith.constant 2 : i32
    %193 = arith.muli %c2_i32_155, %c6_i32 : i32
    %c1_i32_156 = arith.constant 1 : i32
    %194 = arith.addi %193, %c1_i32_156 : i32
    %c9_i32_157 = arith.constant 9 : i32
    %195 = arith.muli %194, %c9_i32_157 : i32
    %196 = arith.index_cast %195 : i32 to index
    %c0_158 = arith.constant 0 : index
    %197 = vector.load %arg20[%196, %c0_158] : memref<144x64xbf16, #tpu.memory_space<vmem>>, vector<8x64xbf16>
    %198 = arith.maximumf %192, %197 : vector<8x64xbf16>
    %c1_i32_159 = arith.constant 1 : i32
    %199 = arith.addi %c6_i32, %c1_i32_159 : i32
    %c10_i32_160 = arith.constant 10 : i32
    %200 = arith.muli %199, %c10_i32_160 : i32
    %c1_i32_161 = arith.constant 1 : i32
    %201 = arith.addi %200, %c1_i32_161 : i32
    %202 = arith.index_cast %201 : i32 to index
    %c0_162 = arith.constant 0 : index
    %203 = vector.load %arg15[%202, %c0_162] : memref<104x64xbf16, #tpu.memory_space<vmem>>, vector<8x64xbf16>
    tpu.vector_store %arg15[%202, %c0_162], %198 {strides = array<i32>} : memref<104x64xbf16, #tpu.memory_space<vmem>>, vector<8x64xbf16>,
    %c2_i32_163 = arith.constant 2 : i32
    %204 = arith.addi %c6_i32, %c2_i32_163 : i32
    %c10_i32_164 = arith.constant 10 : i32
    %205 = arith.muli %204, %c10_i32_164 : i32
    %c1_i32_165 = arith.constant 1 : i32
    %206 = arith.subi %205, %c1_i32_165 : i32
    %207 = arith.index_cast %206 : i32 to index
    %c0_166 = arith.constant 0 : index
    %208 = vector.load %arg15[%207, %c0_166] : memref<104x64xbf16, #tpu.memory_space<vmem>>, vector<2x64xbf16>
    tpu.vector_store %arg15[%207, %c0_166], %63 {strides = array<i32>} : memref<104x64xbf16, #tpu.memory_space<vmem>>, vector<2x64xbf16>,
    %c7_i32 = arith.constant 7 : i32
    %c2_i32_167 = arith.constant 2 : i32
    %209 = arith.muli %c2_i32_167, %c7_i32 : i32
    %c9_i32_168 = arith.constant 9 : i32
    %210 = arith.muli %209, %c9_i32_168 : i32
    %211 = arith.index_cast %210 : i32 to index
    %c0_169 = arith.constant 0 : index
    %212 = vector.load %arg20[%211, %c0_169] : memref<144x64xbf16, #tpu.memory_space<vmem>>, vector<8x64xbf16>
    %c2_i32_170 = arith.constant 2 : i32
    %213 = arith.muli %c2_i32_170, %c7_i32 : i32
    %c1_i32_171 = arith.constant 1 : i32
    %214 = arith.addi %213, %c1_i32_171 : i32
    %c9_i32_172 = arith.constant 9 : i32
    %215 = arith.muli %214, %c9_i32_172 : i32
    %216 = arith.index_cast %215 : i32 to index
    %c0_173 = arith.constant 0 : index
    %217 = vector.load %arg20[%216, %c0_173] : memref<144x64xbf16, #tpu.memory_space<vmem>>, vector<8x64xbf16>
    %218 = arith.maximumf %212, %217 : vector<8x64xbf16>
    %c1_i32_174 = arith.constant 1 : i32
    %219 = arith.addi %c7_i32, %c1_i32_174 : i32
    %c10_i32_175 = arith.constant 10 : i32
    %220 = arith.muli %219, %c10_i32_175 : i32
    %c1_i32_176 = arith.constant 1 : i32
    %221 = arith.addi %220, %c1_i32_176 : i32
    %222 = arith.index_cast %221 : i32 to index
    %c0_177 = arith.constant 0 : index
    %223 = vector.load %arg15[%222, %c0_177] : memref<104x64xbf16, #tpu.memory_space<vmem>>, vector<8x64xbf16>
    tpu.vector_store %arg15[%222, %c0_177], %218 {strides = array<i32>} : memref<104x64xbf16, #tpu.memory_space<vmem>>, vector<8x64xbf16>,
    %c2_i32_178 = arith.constant 2 : i32
    %224 = arith.addi %c7_i32, %c2_i32_178 : i32
    %c10_i32_179 = arith.constant 10 : i32
    %225 = arith.muli %224, %c10_i32_179 : i32
    %c1_i32_180 = arith.constant 1 : i32
    %226 = arith.subi %225, %c1_i32_180 : i32
    %227 = arith.index_cast %226 : i32 to index
    %c0_181 = arith.constant 0 : index
    %228 = vector.load %arg15[%227, %c0_181] : memref<104x64xbf16, #tpu.memory_space<vmem>>, vector<2x64xbf16>
    tpu.vector_store %arg15[%227, %c0_181], %63 {strides = array<i32>} : memref<104x64xbf16, #tpu.memory_space<vmem>>, vector<2x64xbf16>,
    %c8_i32 = arith.constant 8 : i32
    %c0_182 = arith.constant 0 : index
    %c0_183 = arith.constant 0 : index
    %229 = vector.load %arg15[%c0_182, %c0_183] : memref<104x64xbf16, #tpu.memory_space<vmem>>, vector<80x64xbf16>
    %c0_184 = arith.constant 0 : index
    %c0_185 = arith.constant 0 : index
    %c0_186 = arith.constant 0 : index
    %230 = vector.load %arg4[%c0_184, %c0_185, %c0_186] : memref<9x64x32xbf16, #tpu.memory_space<vmem>>, vector<1x64x32xbf16>
    %231 = vector.shape_cast %230 : vector<1x64x32xbf16> to vector<64x32xbf16>
    %cst_187 = arith.constant dense<0.000000e+00> : vector<80x32xf32>
    %232 = tpu.matmul %229, %231, %cst_187 {dimension_numbers = #tpu.dot_dimension_numbers<[1], [0], [0], [1], [0, 0, 1, 1], [], []>} : vector<80x64xbf16>, vector<64x32xbf16>, vector<80x32xf32> -> vector<80x32xf32>
    %c1_188 = arith.constant 1 : index
    %c0_189 = arith.constant 0 : index
    %233 = vector.load %arg15[%c1_188, %c0_189] : memref<104x64xbf16, #tpu.memory_space<vmem>>, vector<80x64xbf16>
    %c1_190 = arith.constant 1 : index
    %c0_191 = arith.constant 0 : index
    %c0_192 = arith.constant 0 : index
    %234 = vector.load %arg4[%c1_190, %c0_191, %c0_192] : memref<9x64x32xbf16, #tpu.memory_space<vmem>>, vector<1x64x32xbf16>
    %235 = vector.shape_cast %234 : vector<1x64x32xbf16> to vector<64x32xbf16>
    %cst_193 = arith.constant dense<0.000000e+00> : vector<80x32xf32>
    %236 = tpu.matmul %233, %235, %cst_193 {dimension_numbers = #tpu.dot_dimension_numbers<[1], [0], [0], [1], [0, 0, 1, 1], [], []>} : vector<80x64xbf16>, vector<64x32xbf16>, vector<80x32xf32> -> vector<80x32xf32>
    %237 = arith.addf %232, %236 : vector<80x32xf32>
    %c2_194 = arith.constant 2 : index
    %c0_195 = arith.constant 0 : index
    %238 = vector.load %arg15[%c2_194, %c0_195] : memref<104x64xbf16, #tpu.memory_space<vmem>>, vector<80x64xbf16>
    %c2_196 = arith.constant 2 : index
    %c0_197 = arith.constant 0 : index
    %c0_198 = arith.constant 0 : index
    %239 = vector.load %arg4[%c2_196, %c0_197, %c0_198] : memref<9x64x32xbf16, #tpu.memory_space<vmem>>, vector<1x64x32xbf16>
    %240 = vector.shape_cast %239 : vector<1x64x32xbf16> to vector<64x32xbf16>
    %cst_199 = arith.constant dense<0.000000e+00> : vector<80x32xf32>
    %241 = tpu.matmul %238, %240, %cst_199 {dimension_numbers = #tpu.dot_dimension_numbers<[1], [0], [0], [1], [0, 0, 1, 1], [], []>} : vector<80x64xbf16>, vector<64x32xbf16>, vector<80x32xf32> -> vector<80x32xf32>
    %242 = arith.addf %237, %241 : vector<80x32xf32>
    %c10 = arith.constant 10 : index
    %c0_200 = arith.constant 0 : index
    %243 = vector.load %arg15[%c10, %c0_200] : memref<104x64xbf16, #tpu.memory_space<vmem>>, vector<80x64xbf16>
    %c3_201 = arith.constant 3 : index
    %c0_202 = arith.constant 0 : index
    %c0_203 = arith.constant 0 : index
    %244 = vector.load %arg4[%c3_201, %c0_202, %c0_203] : memref<9x64x32xbf16, #tpu.memory_space<vmem>>, vector<1x64x32xbf16>
    %245 = vector.shape_cast %244 : vector<1x64x32xbf16> to vector<64x32xbf16>
    %cst_204 = arith.constant dense<0.000000e+00> : vector<80x32xf32>
    %246 = tpu.matmul %243, %245, %cst_204 {dimension_numbers = #tpu.dot_dimension_numbers<[1], [0], [0], [1], [0, 0, 1, 1], [], []>} : vector<80x64xbf16>, vector<64x32xbf16>, vector<80x32xf32> -> vector<80x32xf32>
    %247 = arith.addf %242, %246 : vector<80x32xf32>
    %c11 = arith.constant 11 : index
    %c0_205 = arith.constant 0 : index
    %248 = vector.load %arg15[%c11, %c0_205] : memref<104x64xbf16, #tpu.memory_space<vmem>>, vector<80x64xbf16>
    %c4_206 = arith.constant 4 : index
    %c0_207 = arith.constant 0 : index
    %c0_208 = arith.constant 0 : index
    %249 = vector.load %arg4[%c4_206, %c0_207, %c0_208] : memref<9x64x32xbf16, #tpu.memory_space<vmem>>, vector<1x64x32xbf16>
    %250 = vector.shape_cast %249 : vector<1x64x32xbf16> to vector<64x32xbf16>
    %cst_209 = arith.constant dense<0.000000e+00> : vector<80x32xf32>
    %251 = tpu.matmul %248, %250, %cst_209 {dimension_numbers = #tpu.dot_dimension_numbers<[1], [0], [0], [1], [0, 0, 1, 1], [], []>} : vector<80x64xbf16>, vector<64x32xbf16>, vector<80x32xf32> -> vector<80x32xf32>
    %252 = arith.addf %247, %251 : vector<80x32xf32>
    %c12 = arith.constant 12 : index
    %c0_210 = arith.constant 0 : index
    %253 = vector.load %arg15[%c12, %c0_210] : memref<104x64xbf16, #tpu.memory_space<vmem>>, vector<80x64xbf16>
    %c5_211 = arith.constant 5 : index
    %c0_212 = arith.constant 0 : index
    %c0_213 = arith.constant 0 : index
    %254 = vector.load %arg4[%c5_211, %c0_212, %c0_213] : memref<9x64x32xbf16, #tpu.memory_space<vmem>>, vector<1x64x32xbf16>
    %255 = vector.shape_cast %254 : vector<1x64x32xbf16> to vector<64x32xbf16>
    %cst_214 = arith.constant dense<0.000000e+00> : vector<80x32xf32>
    %256 = tpu.matmul %253, %255, %cst_214 {dimension_numbers = #tpu.dot_dimension_numbers<[1], [0], [0], [1], [0, 0, 1, 1], [], []>} : vector<80x64xbf16>, vector<64x32xbf16>, vector<80x32xf32> -> vector<80x32xf32>
    %257 = arith.addf %252, %256 : vector<80x32xf32>
    %c20_215 = arith.constant 20 : index
    %c0_216 = arith.constant 0 : index
    %258 = vector.load %arg15[%c20_215, %c0_216] : memref<104x64xbf16, #tpu.memory_space<vmem>>, vector<80x64xbf16>
    %c6_217 = arith.constant 6 : index
    %c0_218 = arith.constant 0 : index
    %c0_219 = arith.constant 0 : index
    %259 = vector.load %arg4[%c6_217, %c0_218, %c0_219] : memref<9x64x32xbf16, #tpu.memory_space<vmem>>, vector<1x64x32xbf16>
    %260 = vector.shape_cast %259 : vector<1x64x32xbf16> to vector<64x32xbf16>
    %cst_220 = arith.constant dense<0.000000e+00> : vector<80x32xf32>
    %261 = tpu.matmul %258, %260, %cst_220 {dimension_numbers = #tpu.dot_dimension_numbers<[1], [0], [0], [1], [0, 0, 1, 1], [], []>} : vector<80x64xbf16>, vector<64x32xbf16>, vector<80x32xf32> -> vector<80x32xf32>
    %262 = arith.addf %257, %261 : vector<80x32xf32>
    %c21 = arith.constant 21 : index
    %c0_221 = arith.constant 0 : index
    %263 = vector.load %arg15[%c21, %c0_221] : memref<104x64xbf16, #tpu.memory_space<vmem>>, vector<80x64xbf16>
    %c7_222 = arith.constant 7 : index
    %c0_223 = arith.constant 0 : index
    %c0_224 = arith.constant 0 : index
    %264 = vector.load %arg4[%c7_222, %c0_223, %c0_224] : memref<9x64x32xbf16, #tpu.memory_space<vmem>>, vector<1x64x32xbf16>
    %265 = vector.shape_cast %264 : vector<1x64x32xbf16> to vector<64x32xbf16>
    %cst_225 = arith.constant dense<0.000000e+00> : vector<80x32xf32>
    %266 = tpu.matmul %263, %265, %cst_225 {dimension_numbers = #tpu.dot_dimension_numbers<[1], [0], [0], [1], [0, 0, 1, 1], [], []>} : vector<80x64xbf16>, vector<64x32xbf16>, vector<80x32xf32> -> vector<80x32xf32>
    %267 = arith.addf %262, %266 : vector<80x32xf32>
    %c22 = arith.constant 22 : index
    %c0_226 = arith.constant 0 : index
    %268 = vector.load %arg15[%c22, %c0_226] : memref<104x64xbf16, #tpu.memory_space<vmem>>, vector<80x64xbf16>
    %c8_227 = arith.constant 8 : index
    %c0_228 = arith.constant 0 : index
    %c0_229 = arith.constant 0 : index
    %269 = vector.load %arg4[%c8_227, %c0_228, %c0_229] : memref<9x64x32xbf16, #tpu.memory_space<vmem>>, vector<1x64x32xbf16>
    %270 = vector.shape_cast %269 : vector<1x64x32xbf16> to vector<64x32xbf16>
    %cst_230 = arith.constant dense<0.000000e+00> : vector<80x32xf32>
    %271 = tpu.matmul %268, %270, %cst_230 {dimension_numbers = #tpu.dot_dimension_numbers<[1], [0], [0], [1], [0, 0, 1, 1], [], []>} : vector<80x64xbf16>, vector<64x32xbf16>, vector<80x32xf32> -> vector<80x32xf32>
    %272 = arith.addf %267, %271 : vector<80x32xf32>
    %c0_231 = arith.constant 0 : index
    %c0_232 = arith.constant 0 : index
    %273 = vector.load %arg5[%c0_231, %c0_232] : memref<1x32xf32, #tpu.memory_space<vmem>>, vector<1x32xf32>
    %274 = vector.broadcast %273 : vector<1x32xf32> to vector<80x32xf32>
    %275 = arith.addf %272, %274 : vector<80x32xf32>
    %cst_233 = arith.constant 0.000000e+00 : f32
    %276 = vector.broadcast %cst_233 : f32 to vector<80x32xf32>
    %277 = arith.maximumf %275, %276 : vector<80x32xf32>
    %c0_234 = arith.constant 0 : index
    %c0_235 = arith.constant 0 : index
    %278 = vector.load %arg18[%c0_234, %c0_235] : memref<80x32xf32, #tpu.memory_space<vmem>>, vector<80x32xf32>
    tpu.vector_store %arg18[%c0_234, %c0_235], %277 {strides = array<i32>} : memref<80x32xf32, #tpu.memory_space<vmem>>, vector<80x32xf32>,
    %cst_236 = arith.constant 0.000000e+00 : bf16
    %279 = vector.broadcast %cst_236 : bf16 to vector<7x32xbf16>
    %c0_237 = arith.constant 0 : index
    %c0_238 = arith.constant 0 : index
    %280 = vector.load %arg16[%c0_237, %c0_238] : memref<40x32xbf16, #tpu.memory_space<vmem>>, vector<7x32xbf16>
    tpu.vector_store %arg16[%c0_237, %c0_238], %279 {strides = array<i32>} : memref<40x32xbf16, #tpu.memory_space<vmem>>, vector<7x32xbf16>,
    %cst_239 = arith.constant 0.000000e+00 : bf16
    %281 = vector.broadcast %cst_239 : bf16 to vector<10x32xbf16>
    %c30 = arith.constant 30 : index
    %c0_240 = arith.constant 0 : index
    %282 = vector.load %arg16[%c30, %c0_240] : memref<40x32xbf16, #tpu.memory_space<vmem>>, vector<10x32xbf16>
    tpu.vector_store %arg16[%c30, %c0_240], %281 {strides = array<i32>} : memref<40x32xbf16, #tpu.memory_space<vmem>>, vector<10x32xbf16>,
    %cst_241 = arith.constant 0.000000e+00 : bf16
    %283 = vector.broadcast %cst_241 : bf16 to vector<2x32xbf16>
    %c0_242 = arith.constant 0 : index
    %c0_243 = arith.constant 0 : index
    %284 = tpu.strided_load %arg18[%c0_242, %c0_243] {strides = array<i32: 2, 1>} : memref<80x32xf32, #tpu.memory_space<vmem>>, vector<40x32xf32>
    %c1_244 = arith.constant 1 : index
    %c0_245 = arith.constant 0 : index
    %285 = tpu.strided_load %arg18[%c1_244, %c0_245] {strides = array<i32: 2, 1>} : memref<80x32xf32, #tpu.memory_space<vmem>>, vector<40x32xf32>
    %286 = arith.maximumf %284, %285 : vector<40x32xf32>
    %287 = arith.truncf %286 : vector<40x32xf32> to vector<40x32xbf16>
    %c0_246 = arith.constant 0 : index
    %c0_247 = arith.constant 0 : index
    %288 = vector.load %arg21[%c0_246, %c0_247] : memref<40x32xbf16, #tpu.memory_space<vmem>>, vector<40x32xbf16>
    tpu.vector_store %arg21[%c0_246, %c0_247], %287 {strides = array<i32>} : memref<40x32xbf16, #tpu.memory_space<vmem>>, vector<40x32xbf16>,
    %c0_i32_248 = arith.constant 0 : i32
    %c2_i32_249 = arith.constant 2 : i32
    %289 = arith.muli %c2_i32_249, %c0_i32_248 : i32
    %c5_i32_250 = arith.constant 5 : i32
    %290 = arith.muli %289, %c5_i32_250 : i32
    %291 = arith.index_cast %290 : i32 to index
    %c0_251 = arith.constant 0 : index
    %292 = vector.load %arg21[%291, %c0_251] : memref<40x32xbf16, #tpu.memory_space<vmem>>, vector<4x32xbf16>
    %c2_i32_252 = arith.constant 2 : i32
    %293 = arith.muli %c2_i32_252, %c0_i32_248 : i32
    %c1_i32_253 = arith.constant 1 : i32
    %294 = arith.addi %293, %c1_i32_253 : i32
    %c5_i32_254 = arith.constant 5 : i32
    %295 = arith.muli %294, %c5_i32_254 : i32
    %296 = arith.index_cast %295 : i32 to index
    %c0_255 = arith.constant 0 : index
    %297 = vector.load %arg21[%296, %c0_255] : memref<40x32xbf16, #tpu.memory_space<vmem>>, vector<4x32xbf16>
    %298 = arith.maximumf %292, %297 : vector<4x32xbf16>
    %c1_i32_256 = arith.constant 1 : i32
    %299 = arith.addi %c0_i32_248, %c1_i32_256 : i32
    %c6_i32_257 = arith.constant 6 : i32
    %300 = arith.muli %299, %c6_i32_257 : i32
    %c1_i32_258 = arith.constant 1 : i32
    %301 = arith.addi %300, %c1_i32_258 : i32
    %302 = arith.index_cast %301 : i32 to index
    %c0_259 = arith.constant 0 : index
    %303 = vector.load %arg16[%302, %c0_259] : memref<40x32xbf16, #tpu.memory_space<vmem>>, vector<4x32xbf16>
    tpu.vector_store %arg16[%302, %c0_259], %298 {strides = array<i32>} : memref<40x32xbf16, #tpu.memory_space<vmem>>, vector<4x32xbf16>,
    %c2_i32_260 = arith.constant 2 : i32
    %304 = arith.addi %c0_i32_248, %c2_i32_260 : i32
    %c6_i32_261 = arith.constant 6 : i32
    %305 = arith.muli %304, %c6_i32_261 : i32
    %c1_i32_262 = arith.constant 1 : i32
    %306 = arith.subi %305, %c1_i32_262 : i32
    %307 = arith.index_cast %306 : i32 to index
    %c0_263 = arith.constant 0 : index
    %308 = vector.load %arg16[%307, %c0_263] : memref<40x32xbf16, #tpu.memory_space<vmem>>, vector<2x32xbf16>
    tpu.vector_store %arg16[%307, %c0_263], %283 {strides = array<i32>} : memref<40x32xbf16, #tpu.memory_space<vmem>>, vector<2x32xbf16>,
    %c1_i32_264 = arith.constant 1 : i32
    %c2_i32_265 = arith.constant 2 : i32
    %309 = arith.muli %c2_i32_265, %c1_i32_264 : i32
    %c5_i32_266 = arith.constant 5 : i32
    %310 = arith.muli %309, %c5_i32_266 : i32
    %311 = arith.index_cast %310 : i32 to index
    %c0_267 = arith.constant 0 : index
    %312 = vector.load %arg21[%311, %c0_267] : memref<40x32xbf16, #tpu.memory_space<vmem>>, vector<4x32xbf16>
    %c2_i32_268 = arith.constant 2 : i32
    %313 = arith.muli %c2_i32_268, %c1_i32_264 : i32
    %c1_i32_269 = arith.constant 1 : i32
    %314 = arith.addi %313, %c1_i32_269 : i32
    %c5_i32_270 = arith.constant 5 : i32
    %315 = arith.muli %314, %c5_i32_270 : i32
    %316 = arith.index_cast %315 : i32 to index
    %c0_271 = arith.constant 0 : index
    %317 = vector.load %arg21[%316, %c0_271] : memref<40x32xbf16, #tpu.memory_space<vmem>>, vector<4x32xbf16>
    %318 = arith.maximumf %312, %317 : vector<4x32xbf16>
    %c1_i32_272 = arith.constant 1 : i32
    %319 = arith.addi %c1_i32_264, %c1_i32_272 : i32
    %c6_i32_273 = arith.constant 6 : i32
    %320 = arith.muli %319, %c6_i32_273 : i32
    %c1_i32_274 = arith.constant 1 : i32
    %321 = arith.addi %320, %c1_i32_274 : i32
    %322 = arith.index_cast %321 : i32 to index
    %c0_275 = arith.constant 0 : index
    %323 = vector.load %arg16[%322, %c0_275] : memref<40x32xbf16, #tpu.memory_space<vmem>>, vector<4x32xbf16>
    tpu.vector_store %arg16[%322, %c0_275], %318 {strides = array<i32>} : memref<40x32xbf16, #tpu.memory_space<vmem>>, vector<4x32xbf16>,
    %c2_i32_276 = arith.constant 2 : i32
    %324 = arith.addi %c1_i32_264, %c2_i32_276 : i32
    %c6_i32_277 = arith.constant 6 : i32
    %325 = arith.muli %324, %c6_i32_277 : i32
    %c1_i32_278 = arith.constant 1 : i32
    %326 = arith.subi %325, %c1_i32_278 : i32
    %327 = arith.index_cast %326 : i32 to index
    %c0_279 = arith.constant 0 : index
    %328 = vector.load %arg16[%327, %c0_279] : memref<40x32xbf16, #tpu.memory_space<vmem>>, vector<2x32xbf16>
    tpu.vector_store %arg16[%327, %c0_279], %283 {strides = array<i32>} : memref<40x32xbf16, #tpu.memory_space<vmem>>, vector<2x32xbf16>,
    %c2_i32_280 = arith.constant 2 : i32
    %c2_i32_281 = arith.constant 2 : i32
    %329 = arith.muli %c2_i32_281, %c2_i32_280 : i32
    %c5_i32_282 = arith.constant 5 : i32
    %330 = arith.muli %329, %c5_i32_282 : i32
    %331 = arith.index_cast %330 : i32 to index
    %c0_283 = arith.constant 0 : index
    %332 = vector.load %arg21[%331, %c0_283] : memref<40x32xbf16, #tpu.memory_space<vmem>>, vector<4x32xbf16>
    %c2_i32_284 = arith.constant 2 : i32
    %333 = arith.muli %c2_i32_284, %c2_i32_280 : i32
    %c1_i32_285 = arith.constant 1 : i32
    %334 = arith.addi %333, %c1_i32_285 : i32
    %c5_i32_286 = arith.constant 5 : i32
    %335 = arith.muli %334, %c5_i32_286 : i32
    %336 = arith.index_cast %335 : i32 to index
    %c0_287 = arith.constant 0 : index
    %337 = vector.load %arg21[%336, %c0_287] : memref<40x32xbf16, #tpu.memory_space<vmem>>, vector<4x32xbf16>
    %338 = arith.maximumf %332, %337 : vector<4x32xbf16>
    %c1_i32_288 = arith.constant 1 : i32
    %339 = arith.addi %c2_i32_280, %c1_i32_288 : i32
    %c6_i32_289 = arith.constant 6 : i32
    %340 = arith.muli %339, %c6_i32_289 : i32
    %c1_i32_290 = arith.constant 1 : i32
    %341 = arith.addi %340, %c1_i32_290 : i32
    %342 = arith.index_cast %341 : i32 to index
    %c0_291 = arith.constant 0 : index
    %343 = vector.load %arg16[%342, %c0_291] : memref<40x32xbf16, #tpu.memory_space<vmem>>, vector<4x32xbf16>
    tpu.vector_store %arg16[%342, %c0_291], %338 {strides = array<i32>} : memref<40x32xbf16, #tpu.memory_space<vmem>>, vector<4x32xbf16>,
    %c2_i32_292 = arith.constant 2 : i32
    %344 = arith.addi %c2_i32_280, %c2_i32_292 : i32
    %c6_i32_293 = arith.constant 6 : i32
    %345 = arith.muli %344, %c6_i32_293 : i32
    %c1_i32_294 = arith.constant 1 : i32
    %346 = arith.subi %345, %c1_i32_294 : i32
    %347 = arith.index_cast %346 : i32 to index
    %c0_295 = arith.constant 0 : index
    %348 = vector.load %arg16[%347, %c0_295] : memref<40x32xbf16, #tpu.memory_space<vmem>>, vector<2x32xbf16>
    tpu.vector_store %arg16[%347, %c0_295], %283 {strides = array<i32>} : memref<40x32xbf16, #tpu.memory_space<vmem>>, vector<2x32xbf16>,
    %c3_i32_296 = arith.constant 3 : i32
    %c2_i32_297 = arith.constant 2 : i32
    %349 = arith.muli %c2_i32_297, %c3_i32_296 : i32
    %c5_i32_298 = arith.constant 5 : i32
    %350 = arith.muli %349, %c5_i32_298 : i32
    %351 = arith.index_cast %350 : i32 to index
    %c0_299 = arith.constant 0 : index
    %352 = vector.load %arg21[%351, %c0_299] : memref<40x32xbf16, #tpu.memory_space<vmem>>, vector<4x32xbf16>
    %c2_i32_300 = arith.constant 2 : i32
    %353 = arith.muli %c2_i32_300, %c3_i32_296 : i32
    %c1_i32_301 = arith.constant 1 : i32
    %354 = arith.addi %353, %c1_i32_301 : i32
    %c5_i32_302 = arith.constant 5 : i32
    %355 = arith.muli %354, %c5_i32_302 : i32
    %356 = arith.index_cast %355 : i32 to index
    %c0_303 = arith.constant 0 : index
    %357 = vector.load %arg21[%356, %c0_303] : memref<40x32xbf16, #tpu.memory_space<vmem>>, vector<4x32xbf16>
    %358 = arith.maximumf %352, %357 : vector<4x32xbf16>
    %c1_i32_304 = arith.constant 1 : i32
    %359 = arith.addi %c3_i32_296, %c1_i32_304 : i32
    %c6_i32_305 = arith.constant 6 : i32
    %360 = arith.muli %359, %c6_i32_305 : i32
    %c1_i32_306 = arith.constant 1 : i32
    %361 = arith.addi %360, %c1_i32_306 : i32
    %362 = arith.index_cast %361 : i32 to index
    %c0_307 = arith.constant 0 : index
    %363 = vector.load %arg16[%362, %c0_307] : memref<40x32xbf16, #tpu.memory_space<vmem>>, vector<4x32xbf16>
    tpu.vector_store %arg16[%362, %c0_307], %358 {strides = array<i32>} : memref<40x32xbf16, #tpu.memory_space<vmem>>, vector<4x32xbf16>,
    %c2_i32_308 = arith.constant 2 : i32
    %364 = arith.addi %c3_i32_296, %c2_i32_308 : i32
    %c6_i32_309 = arith.constant 6 : i32
    %365 = arith.muli %364, %c6_i32_309 : i32
    %c1_i32_310 = arith.constant 1 : i32
    %366 = arith.subi %365, %c1_i32_310 : i32
    %367 = arith.index_cast %366 : i32 to index
    %c0_311 = arith.constant 0 : index
    %368 = vector.load %arg16[%367, %c0_311] : memref<40x32xbf16, #tpu.memory_space<vmem>>, vector<2x32xbf16>
    tpu.vector_store %arg16[%367, %c0_311], %283 {strides = array<i32>} : memref<40x32xbf16, #tpu.memory_space<vmem>>, vector<2x32xbf16>,
    %c4_i32_312 = arith.constant 4 : i32
    %c0_313 = arith.constant 0 : index
    %c0_314 = arith.constant 0 : index
    %369 = vector.load %arg16[%c0_313, %c0_314] : memref<40x32xbf16, #tpu.memory_space<vmem>>, vector<24x32xbf16>
    %c0_315 = arith.constant 0 : index
    %c0_316 = arith.constant 0 : index
    %c0_317 = arith.constant 0 : index
    %370 = vector.load %arg6[%c0_315, %c0_316, %c0_317] : memref<9x32x8xbf16, #tpu.memory_space<vmem>>, vector<1x32x8xbf16>
    %371 = vector.shape_cast %370 : vector<1x32x8xbf16> to vector<32x8xbf16>
    %cst_318 = arith.constant dense<0.000000e+00> : vector<24x8xf32>
    %372 = tpu.matmul %369, %371, %cst_318 {dimension_numbers = #tpu.dot_dimension_numbers<[1], [0], [0], [1], [0, 0, 1, 1], [], []>} : vector<24x32xbf16>, vector<32x8xbf16>, vector<24x8xf32> -> vector<24x8xf32>
    %c1_319 = arith.constant 1 : index
    %c0_320 = arith.constant 0 : index
    %373 = vector.load %arg16[%c1_319, %c0_320] : memref<40x32xbf16, #tpu.memory_space<vmem>>, vector<24x32xbf16>
    %c1_321 = arith.constant 1 : index
    %c0_322 = arith.constant 0 : index
    %c0_323 = arith.constant 0 : index
    %374 = vector.load %arg6[%c1_321, %c0_322, %c0_323] : memref<9x32x8xbf16, #tpu.memory_space<vmem>>, vector<1x32x8xbf16>
    %375 = vector.shape_cast %374 : vector<1x32x8xbf16> to vector<32x8xbf16>
    %cst_324 = arith.constant dense<0.000000e+00> : vector<24x8xf32>
    %376 = tpu.matmul %373, %375, %cst_324 {dimension_numbers = #tpu.dot_dimension_numbers<[1], [0], [0], [1], [0, 0, 1, 1], [], []>} : vector<24x32xbf16>, vector<32x8xbf16>, vector<24x8xf32> -> vector<24x8xf32>
    %377 = arith.addf %372, %376 : vector<24x8xf32>
    %c2_325 = arith.constant 2 : index
    %c0_326 = arith.constant 0 : index
    %378 = vector.load %arg16[%c2_325, %c0_326] : memref<40x32xbf16, #tpu.memory_space<vmem>>, vector<24x32xbf16>
    %c2_327 = arith.constant 2 : index
    %c0_328 = arith.constant 0 : index
    %c0_329 = arith.constant 0 : index
    %379 = vector.load %arg6[%c2_327, %c0_328, %c0_329] : memref<9x32x8xbf16, #tpu.memory_space<vmem>>, vector<1x32x8xbf16>
    %380 = vector.shape_cast %379 : vector<1x32x8xbf16> to vector<32x8xbf16>
    %cst_330 = arith.constant dense<0.000000e+00> : vector<24x8xf32>
    %381 = tpu.matmul %378, %380, %cst_330 {dimension_numbers = #tpu.dot_dimension_numbers<[1], [0], [0], [1], [0, 0, 1, 1], [], []>} : vector<24x32xbf16>, vector<32x8xbf16>, vector<24x8xf32> -> vector<24x8xf32>
    %382 = arith.addf %377, %381 : vector<24x8xf32>
    %c6_331 = arith.constant 6 : index
    %c0_332 = arith.constant 0 : index
    %383 = vector.load %arg16[%c6_331, %c0_332] : memref<40x32xbf16, #tpu.memory_space<vmem>>, vector<24x32xbf16>
    %c3_333 = arith.constant 3 : index
    %c0_334 = arith.constant 0 : index
    %c0_335 = arith.constant 0 : index
    %384 = vector.load %arg6[%c3_333, %c0_334, %c0_335] : memref<9x32x8xbf16, #tpu.memory_space<vmem>>, vector<1x32x8xbf16>
    %385 = vector.shape_cast %384 : vector<1x32x8xbf16> to vector<32x8xbf16>
    %cst_336 = arith.constant dense<0.000000e+00> : vector<24x8xf32>
    %386 = tpu.matmul %383, %385, %cst_336 {dimension_numbers = #tpu.dot_dimension_numbers<[1], [0], [0], [1], [0, 0, 1, 1], [], []>} : vector<24x32xbf16>, vector<32x8xbf16>, vector<24x8xf32> -> vector<24x8xf32>
    %387 = arith.addf %382, %386 : vector<24x8xf32>
    %c7_337 = arith.constant 7 : index
    %c0_338 = arith.constant 0 : index
    %388 = vector.load %arg16[%c7_337, %c0_338] : memref<40x32xbf16, #tpu.memory_space<vmem>>, vector<24x32xbf16>
    %c4_339 = arith.constant 4 : index
    %c0_340 = arith.constant 0 : index
    %c0_341 = arith.constant 0 : index
    %389 = vector.load %arg6[%c4_339, %c0_340, %c0_341] : memref<9x32x8xbf16, #tpu.memory_space<vmem>>, vector<1x32x8xbf16>
    %390 = vector.shape_cast %389 : vector<1x32x8xbf16> to vector<32x8xbf16>
    %cst_342 = arith.constant dense<0.000000e+00> : vector<24x8xf32>
    %391 = tpu.matmul %388, %390, %cst_342 {dimension_numbers = #tpu.dot_dimension_numbers<[1], [0], [0], [1], [0, 0, 1, 1], [], []>} : vector<24x32xbf16>, vector<32x8xbf16>, vector<24x8xf32> -> vector<24x8xf32>
    %392 = arith.addf %387, %391 : vector<24x8xf32>
    %c8_343 = arith.constant 8 : index
    %c0_344 = arith.constant 0 : index
    %393 = vector.load %arg16[%c8_343, %c0_344] : memref<40x32xbf16, #tpu.memory_space<vmem>>, vector<24x32xbf16>
    %c5_345 = arith.constant 5 : index
    %c0_346 = arith.constant 0 : index
    %c0_347 = arith.constant 0 : index
    %394 = vector.load %arg6[%c5_345, %c0_346, %c0_347] : memref<9x32x8xbf16, #tpu.memory_space<vmem>>, vector<1x32x8xbf16>
    %395 = vector.shape_cast %394 : vector<1x32x8xbf16> to vector<32x8xbf16>
    %cst_348 = arith.constant dense<0.000000e+00> : vector<24x8xf32>
    %396 = tpu.matmul %393, %395, %cst_348 {dimension_numbers = #tpu.dot_dimension_numbers<[1], [0], [0], [1], [0, 0, 1, 1], [], []>} : vector<24x32xbf16>, vector<32x8xbf16>, vector<24x8xf32> -> vector<24x8xf32>
    %397 = arith.addf %392, %396 : vector<24x8xf32>
    %c12_349 = arith.constant 12 : index
    %c0_350 = arith.constant 0 : index
    %398 = vector.load %arg16[%c12_349, %c0_350] : memref<40x32xbf16, #tpu.memory_space<vmem>>, vector<24x32xbf16>
    %c6_351 = arith.constant 6 : index
    %c0_352 = arith.constant 0 : index
    %c0_353 = arith.constant 0 : index
    %399 = vector.load %arg6[%c6_351, %c0_352, %c0_353] : memref<9x32x8xbf16, #tpu.memory_space<vmem>>, vector<1x32x8xbf16>
    %400 = vector.shape_cast %399 : vector<1x32x8xbf16> to vector<32x8xbf16>
    %cst_354 = arith.constant dense<0.000000e+00> : vector<24x8xf32>
    %401 = tpu.matmul %398, %400, %cst_354 {dimension_numbers = #tpu.dot_dimension_numbers<[1], [0], [0], [1], [0, 0, 1, 1], [], []>} : vector<24x32xbf16>, vector<32x8xbf16>, vector<24x8xf32> -> vector<24x8xf32>
    %402 = arith.addf %397, %401 : vector<24x8xf32>
    %c13 = arith.constant 13 : index
    %c0_355 = arith.constant 0 : index
    %403 = vector.load %arg16[%c13, %c0_355] : memref<40x32xbf16, #tpu.memory_space<vmem>>, vector<24x32xbf16>
    %c7_356 = arith.constant 7 : index
    %c0_357 = arith.constant 0 : index
    %c0_358 = arith.constant 0 : index
    %404 = vector.load %arg6[%c7_356, %c0_357, %c0_358] : memref<9x32x8xbf16, #tpu.memory_space<vmem>>, vector<1x32x8xbf16>
    %405 = vector.shape_cast %404 : vector<1x32x8xbf16> to vector<32x8xbf16>
    %cst_359 = arith.constant dense<0.000000e+00> : vector<24x8xf32>
    %406 = tpu.matmul %403, %405, %cst_359 {dimension_numbers = #tpu.dot_dimension_numbers<[1], [0], [0], [1], [0, 0, 1, 1], [], []>} : vector<24x32xbf16>, vector<32x8xbf16>, vector<24x8xf32> -> vector<24x8xf32>
    %407 = arith.addf %402, %406 : vector<24x8xf32>
    %c14 = arith.constant 14 : index
    %c0_360 = arith.constant 0 : index
    %408 = vector.load %arg16[%c14, %c0_360] : memref<40x32xbf16, #tpu.memory_space<vmem>>, vector<24x32xbf16>
    %c8_361 = arith.constant 8 : index
    %c0_362 = arith.constant 0 : index
    %c0_363 = arith.constant 0 : index
    %409 = vector.load %arg6[%c8_361, %c0_362, %c0_363] : memref<9x32x8xbf16, #tpu.memory_space<vmem>>, vector<1x32x8xbf16>
    %410 = vector.shape_cast %409 : vector<1x32x8xbf16> to vector<32x8xbf16>
    %cst_364 = arith.constant dense<0.000000e+00> : vector<24x8xf32>
    %411 = tpu.matmul %408, %410, %cst_364 {dimension_numbers = #tpu.dot_dimension_numbers<[1], [0], [0], [1], [0, 0, 1, 1], [], []>} : vector<24x32xbf16>, vector<32x8xbf16>, vector<24x8xf32> -> vector<24x8xf32>
    %412 = arith.addf %407, %411 : vector<24x8xf32>
    %c0_365 = arith.constant 0 : index
    %c0_366 = arith.constant 0 : index
    %413 = vector.load %arg7[%c0_365, %c0_366] : memref<1x8xf32, #tpu.memory_space<vmem>>, vector<1x8xf32>
    %414 = vector.broadcast %413 : vector<1x8xf32> to vector<24x8xf32>
    %415 = arith.addf %412, %414 : vector<24x8xf32>
    %cst_367 = arith.constant 0.000000e+00 : f32
    %416 = vector.broadcast %cst_367 : f32 to vector<24x8xf32>
    %417 = arith.maximumf %415, %416 : vector<24x8xf32>
    %c0_368 = arith.constant 0 : index
    %c0_369 = arith.constant 0 : index
    %418 = vector.load %arg19[%c0_368, %c0_369] : memref<24x8xf32, #tpu.memory_space<vmem>>, vector<24x8xf32>
    tpu.vector_store %arg19[%c0_368, %c0_369], %417 {strides = array<i32>} : memref<24x8xf32, #tpu.memory_space<vmem>>, vector<24x8xf32>,
    %c0_370 = arith.constant 0 : index
    %c0_371 = arith.constant 0 : index
    %419 = tpu.strided_load %arg19[%c0_370, %c0_371] {strides = array<i32: 2, 1>} : memref<24x8xf32, #tpu.memory_space<vmem>>, vector<12x8xf32>
    %c1_372 = arith.constant 1 : index
    %c0_373 = arith.constant 0 : index
    %420 = tpu.strided_load %arg19[%c1_372, %c0_373] {strides = array<i32: 2, 1>} : memref<24x8xf32, #tpu.memory_space<vmem>>, vector<12x8xf32>
    %421 = arith.maximumf %419, %420 : vector<12x8xf32>
    %422 = arith.truncf %421 : vector<12x8xf32> to vector<12x8xbf16>
    %c0_374 = arith.constant 0 : index
    %c0_375 = arith.constant 0 : index
    %423 = vector.load %arg22[%c0_374, %c0_375] : memref<12x8xbf16, #tpu.memory_space<vmem>>, vector<12x8xbf16>
    tpu.vector_store %arg22[%c0_374, %c0_375], %422 {strides = array<i32>} : memref<12x8xbf16, #tpu.memory_space<vmem>>, vector<12x8xbf16>,
    %c0_i32_376 = arith.constant 0 : i32
    %c2_i32_377 = arith.constant 2 : i32
    %424 = arith.muli %c2_i32_377, %c0_i32_376 : i32
    %c3_i32_378 = arith.constant 3 : i32
    %425 = arith.muli %424, %c3_i32_378 : i32
    %426 = arith.index_cast %425 : i32 to index
    %c0_379 = arith.constant 0 : index
    %427 = vector.load %arg22[%426, %c0_379] : memref<12x8xbf16, #tpu.memory_space<vmem>>, vector<2x8xbf16>
    %c2_i32_380 = arith.constant 2 : i32
    %428 = arith.muli %c2_i32_380, %c0_i32_376 : i32
    %c1_i32_381 = arith.constant 1 : i32
    %429 = arith.addi %428, %c1_i32_381 : i32
    %c3_i32_382 = arith.constant 3 : i32
    %430 = arith.muli %429, %c3_i32_382 : i32
    %431 = arith.index_cast %430 : i32 to index
    %c0_383 = arith.constant 0 : index
    %432 = vector.load %arg22[%431, %c0_383] : memref<12x8xbf16, #tpu.memory_space<vmem>>, vector<2x8xbf16>
    %433 = arith.maximumf %427, %432 : vector<2x8xbf16>
    %c2_i32_384 = arith.constant 2 : i32
    %434 = arith.muli %c0_i32_376, %c2_i32_384 : i32
    %435 = arith.index_cast %434 : i32 to index
    %c0_385 = arith.constant 0 : index
    %436 = vector.load %arg23[%435, %c0_385] : memref<4x8xbf16, #tpu.memory_space<vmem>>, vector<2x8xbf16>
    tpu.vector_store %arg23[%435, %c0_385], %433 {strides = array<i32>} : memref<4x8xbf16, #tpu.memory_space<vmem>>, vector<2x8xbf16>,
    %c1_i32_386 = arith.constant 1 : i32
    %c2_i32_387 = arith.constant 2 : i32
    %437 = arith.muli %c2_i32_387, %c1_i32_386 : i32
    %c3_i32_388 = arith.constant 3 : i32
    %438 = arith.muli %437, %c3_i32_388 : i32
    %439 = arith.index_cast %438 : i32 to index
    %c0_389 = arith.constant 0 : index
    %440 = vector.load %arg22[%439, %c0_389] : memref<12x8xbf16, #tpu.memory_space<vmem>>, vector<2x8xbf16>
    %c2_i32_390 = arith.constant 2 : i32
    %441 = arith.muli %c2_i32_390, %c1_i32_386 : i32
    %c1_i32_391 = arith.constant 1 : i32
    %442 = arith.addi %441, %c1_i32_391 : i32
    %c3_i32_392 = arith.constant 3 : i32
    %443 = arith.muli %442, %c3_i32_392 : i32
    %444 = arith.index_cast %443 : i32 to index
    %c0_393 = arith.constant 0 : index
    %445 = vector.load %arg22[%444, %c0_393] : memref<12x8xbf16, #tpu.memory_space<vmem>>, vector<2x8xbf16>
    %446 = arith.maximumf %440, %445 : vector<2x8xbf16>
    %c2_i32_394 = arith.constant 2 : i32
    %447 = arith.muli %c1_i32_386, %c2_i32_394 : i32
    %448 = arith.index_cast %447 : i32 to index
    %c0_395 = arith.constant 0 : index
    %449 = vector.load %arg23[%448, %c0_395] : memref<4x8xbf16, #tpu.memory_space<vmem>>, vector<2x8xbf16>
    tpu.vector_store %arg23[%448, %c0_395], %446 {strides = array<i32>} : memref<4x8xbf16, #tpu.memory_space<vmem>>, vector<2x8xbf16>,
    %c2_i32_396 = arith.constant 2 : i32
    %c0_397 = arith.constant 0 : index
    %c0_398 = arith.constant 0 : index
    %450 = vector.load %arg23[%c0_397, %c0_398] : memref<4x8xbf16, #tpu.memory_space<vmem>>, vector<4x8xbf16>
    %c0_399 = arith.constant 0 : index
    %c0_400 = arith.constant 0 : index
    %451 = vector.load %arg8[%c0_399, %c0_400] : memref<8x128xbf16, #tpu.memory_space<vmem>>, vector<8x128xbf16>
    %cst_401 = arith.constant dense<0.000000e+00> : vector<4x128xf32>
    %452 = tpu.matmul %450, %451, %cst_401 {dimension_numbers = #tpu.dot_dimension_numbers<[1], [0], [0], [1], [0, 0, 1, 1], [], []>} : vector<4x8xbf16>, vector<8x128xbf16>, vector<4x128xf32> -> vector<4x128xf32>
    %c0_402 = arith.constant 0 : index
    %c0_403 = arith.constant 0 : index
    %453 = vector.load %arg9[%c0_402, %c0_403] : memref<1x128xf32, #tpu.memory_space<vmem>>, vector<1x128xf32>
    %454 = vector.broadcast %453 : vector<1x128xf32> to vector<4x128xf32>
    %455 = arith.addf %452, %454 : vector<4x128xf32>
    %cst_404 = arith.constant 0.000000e+00 : f32
    %456 = vector.broadcast %cst_404 : f32 to vector<4x128xf32>
    %457 = arith.maximumf %455, %456 : vector<4x128xf32>
    %458 = arith.truncf %457 : vector<4x128xf32> to vector<4x128xbf16>
    %c0_405 = arith.constant 0 : index
    %c0_406 = arith.constant 0 : index
    %459 = vector.load %arg10[%c0_405, %c0_406] : memref<128x1024xbf16, #tpu.memory_space<vmem>>, vector<128x1024xbf16>
    %cst_407 = arith.constant dense<0.000000e+00> : vector<4x1024xf32>
    %460 = tpu.matmul %458, %459, %cst_407 {dimension_numbers = #tpu.dot_dimension_numbers<[1], [0], [0], [1], [0, 0, 1, 1], [], []>} : vector<4x128xbf16>, vector<128x1024xbf16>, vector<4x1024xf32> -> vector<4x1024xf32>
    %c0_408 = arith.constant 0 : index
    %c0_409 = arith.constant 0 : index
    %461 = vector.load %arg11[%c0_408, %c0_409] : memref<1x1024xf32, #tpu.memory_space<vmem>>, vector<1x1024xf32>
    %462 = vector.broadcast %461 : vector<1x1024xf32> to vector<4x1024xf32>
    %463 = arith.addf %460, %462 : vector<4x1024xf32>
    %cst_410 = arith.constant 0.000000e+00 : f32
    %464 = vector.broadcast %cst_410 : f32 to vector<4x1024xf32>
    %465 = arith.maximumf %463, %464 : vector<4x1024xf32>
    %466 = arith.truncf %465 : vector<4x1024xf32> to vector<4x1024xbf16>
    %c0_411 = arith.constant 0 : index
    %c0_412 = arith.constant 0 : index
    %467 = vector.load %arg12[%c0_411, %c0_412] : memref<1024x256xbf16, #tpu.memory_space<vmem>>, vector<1024x256xbf16>
    %cst_413 = arith.constant dense<0.000000e+00> : vector<4x256xf32>
    %468 = tpu.matmul %466, %467, %cst_413 {dimension_numbers = #tpu.dot_dimension_numbers<[1], [0], [0], [1], [0, 0, 1, 1], [], []>} : vector<4x1024xbf16>, vector<1024x256xbf16>, vector<4x256xf32> -> vector<4x256xf32>
    %c0_414 = arith.constant 0 : index
    %c0_415 = arith.constant 0 : index
    %469 = vector.load %arg13[%c0_414, %c0_415] : memref<1x256xf32, #tpu.memory_space<vmem>>, vector<1x256xf32>
    %470 = vector.broadcast %469 : vector<1x256xf32> to vector<4x256xf32>
    %471 = arith.addf %468, %470 : vector<4x256xf32>
    %472 = arith.negf %471 : vector<4x256xf32>
    %473 = math.exp %472 : vector<4x256xf32>
    %cst_416 = arith.constant 1.000000e+00 : f32
    %474 = vector.broadcast %cst_416 : f32 to vector<4x256xf32>
    %475 = arith.addf %474, %473 : vector<4x256xf32>
    %476 = arith.divf %474, %475 : vector<4x256xf32>
    %c0_417 = arith.constant 0 : index
    %c0_418 = arith.constant 0 : index
    %c0_419 = arith.constant 0 : index
    %477 = vector.load %arg14[%c0_417, %c0_418, %c0_419] : memref<1x4x256xf32, #tpu.memory_space<vmem>>, vector<1x4x256xf32>
    %478 = vector.shape_cast %477 : vector<1x4x256xf32> to vector<4x256xf32>
    %479 = vector.shape_cast %476 : vector<4x256xf32> to vector<1x4x256xf32>
    tpu.vector_store %arg14[%c0_417, %c0_418, %c0_419], %479 {strides = array<i32>} : memref<1x4x256xf32, #tpu.memory_space<vmem>>, vector<1x4x256xf32>,
    return
  }
  func.func @transform_0(%arg0: i32) -> (i32, i32, i32) {
    %c0_i32 = arith.constant 0 : i32
    %c0_i32_0 = arith.constant 0 : i32
    %c0_i32_1 = arith.constant 0 : i32
    return %arg0, %c0_i32, %c0_i32_0 : i32, i32, i32
  }
  func.func @transform_1(%arg0: i32) -> (i32, i32, i32) {
    %c0_i32 = arith.constant 0 : i32
    %c0_i32_0 = arith.constant 0 : i32
    %c0_i32_1 = arith.constant 0 : i32
    %c0_i32_2 = arith.constant 0 : i32
    return %c0_i32, %c0_i32_0, %c0_i32_1 : i32, i32, i32
  }
  func.func @transform_2(%arg0: i32) -> (i32, i32) {
    %c0_i32 = arith.constant 0 : i32
    %c0_i32_0 = arith.constant 0 : i32
    %c0_i32_1 = arith.constant 0 : i32
    return %c0_i32, %c0_i32_0 : i32, i32
  }
  func.func @transform_3(%arg0: i32) -> (i32, i32, i32) {
    %c0_i32 = arith.constant 0 : i32
    %c0_i32_0 = arith.constant 0 : i32
    %c0_i32_1 = arith.constant 0 : i32
    %c0_i32_2 = arith.constant 0 : i32
    return %c0_i32, %c0_i32_0, %c0_i32_1 : i32, i32, i32
  }
  func.func @transform_4(%arg0: i32) -> (i32, i32) {
    %c0_i32 = arith.constant 0 : i32
    %c0_i32_0 = arith.constant 0 : i32
    %c0_i32_1 = arith.constant 0 : i32
    return %c0_i32, %c0_i32_0 : i32, i32
  }
  func.func @transform_5(%arg0: i32) -> (i32, i32, i32) {
    %c0_i32 = arith.constant 0 : i32
    %c0_i32_0 = arith.constant 0 : i32
    %c0_i32_1 = arith.constant 0 : i32
    %c0_i32_2 = arith.constant 0 : i32
    return %c0_i32, %c0_i32_0, %c0_i32_1 : i32, i32, i32
  }
  func.func @transform_6(%arg0: i32) -> (i32, i32) {
    %c0_i32 = arith.constant 0 : i32
    %c0_i32_0 = arith.constant 0 : i32
    %c0_i32_1 = arith.constant 0 : i32
    return %c0_i32, %c0_i32_0 : i32, i32
  }
  func.func @transform_7(%arg0: i32) -> (i32, i32) {
    %c0_i32 = arith.constant 0 : i32
    %c0_i32_0 = arith.constant 0 : i32
    %c0_i32_1 = arith.constant 0 : i32
    return %c0_i32, %c0_i32_0 : i32, i32
  }
  func.func @transform_8(%arg0: i32) -> (i32, i32) {
    %c0_i32 = arith.constant 0 : i32
    %c0_i32_0 = arith.constant 0 : i32
    %c0_i32_1 = arith.constant 0 : i32
    return %c0_i32, %c0_i32_0 : i32, i32
  }
  func.func @transform_9(%arg0: i32) -> (i32, i32) {
    %c0_i32 = arith.constant 0 : i32
    %c0_i32_0 = arith.constant 0 : i32
    %c0_i32_1 = arith.constant 0 : i32
    return %c0_i32, %c0_i32_0 : i32, i32
  }
  func.func @transform_10(%arg0: i32) -> (i32, i32) {
    %c0_i32 = arith.constant 0 : i32
    %c0_i32_0 = arith.constant 0 : i32
    %c0_i32_1 = arith.constant 0 : i32
    return %c0_i32, %c0_i32_0 : i32, i32
  }
  func.func @transform_11(%arg0: i32) -> (i32, i32) {
    %c0_i32 = arith.constant 0 : i32
    %c0_i32_0 = arith.constant 0 : i32
    %c0_i32_1 = arith.constant 0 : i32
    return %c0_i32, %c0_i32_0 : i32, i32
  }
  func.func @transform_12(%arg0: i32) -> (i32, i32) {
    %c0_i32 = arith.constant 0 : i32
    %c0_i32_0 = arith.constant 0 : i32
    %c0_i32_1 = arith.constant 0 : i32
    return %c0_i32, %c0_i32_0 : i32, i32
  }
  func.func @transform_13(%arg0: i32) -> (i32, i32, i32) {
    %c0_i32 = arith.constant 0 : i32
    %c0_i32_0 = arith.constant 0 : i32
    %c0_i32_1 = arith.constant 0 : i32
    return %arg0, %c0_i32, %c0_i32_0 : i32, i32, i32
  }
}

</mosaic_0001>

<bundles_post_ra>
// kernel: segmentation_autoencoder_forward.1
= control target key start
LH: loop header
LB: loop body
LE: loop exit
PB: predicated region body
PF: predicated region fallthrough
CT: control target
= control target key end

     0   :  { %s11085_s25 = smov 0   ;;  %s14499_s0 = inlined_call_operand.vmem [shape: bf16[2,328,3], index: 0, kind: input, shape index: {}]   ;;  %s14500_s1 = inlined_call_operand.vmem [shape: bf16[9,3,64], index: 1, kind: input, shape index: {}]   ;;  %s14501_s2 = inlined_call_operand.vmem [shape: f32[1,64], index: 2, kind: input, shape index: {}]   ;;  %s14502_s3 = inlined_call_operand.vmem [shape: bf16[9,64,32], index: 3, kind: input, shape index: {}]   ;;  %s14503_s4 = inlined_call_operand.vmem [shape: f32[1,32], index: 4, kind: input, shape index: {}]   ;;  %s14504_s5 = inlined_call_operand.vmem [shape: bf16[9,32,8], index: 5, kind: input, shape index: {}]   ;;  %s14505_s6 = inlined_call_operand.vmem [shape: f32[1,8], index: 6, kind: input, shape index: {}]   ;;  %s14506_s7 = inlined_call_operand.vmem [shape: bf16[8,128], index: 7, kind: input, shape index: {}]   ;;  %s14507_s8 = inlined_call_operand.vmem [shape: f32[1,128], index: 8, kind: input, shape index: {}]   ;;  %s14508_s9 = inlined_call_operand.vmem [shape: bf16[128,1024], index: 9, kind: input, shape index: {}]   ;;  %s14509_s10 = inlined_call_operand.vmem [shape: f32[1,1024], index: 10, kind: input, shape index: {}]   ;;  %s14510_s11 = inlined_call_operand.vmem [shape: bf16[1024,256], index: 11, kind: input, shape index: {}]   ;;  %s14511_s12 = inlined_call_operand.vmem [shape: f32[1,256], index: 12, kind: input, shape index: {}]   ;;  %s14512_s13 = inlined_call_operand.vmem [shape: f32[2,4,256], index: 13, kind: output, shape index: {}]  }
   0x1 LB: > { %s8936_s26 = sadd.s32 4294967295, %s11008_s25   ;;  %p8940_p0 = scmp.ge.s32.totalorder %s11008_s25, 1  ;;  %s11008_s25 = sphi %s11085_s25, %s23_s25  }
   0x2   : > { %p387_p1 = scmp.lt.s32.totalorder %s11008_s25, 3 }
   0x4   : > { %p388_p2 = pnand %p8940_p0, %p387_p1 }
   0x6   : > { %391 = sbr.rel (%p388_p2) target bundleno = 2072 (0x818), region = 72 }
   0xb   : > { %v8944_v0 = vld [vmem:[%s14500_s1 + $0x2] sm:$0x3]  ;;  %vm779_vm0 = vcmask 1040384   ;;  %vm780_vm1 = vcmask 1041408   ;;  %p431_p3 = scmp.lt.s32.totalorder %s8936_s26, 1  ;;  %v11010_v1 = vmov 65535  }
   0xc   : > { %v781_v2 = vsel %vm779_vm0, 4294967295, %v11010_v1  ;;  %v478_v3 = vld [vmem:[%s14500_s1] sm:$0x3]  ;;  %v9000_v5 = vld [vmem:[%s14500_s1 + $0x4] sm:$0x3]  ;;  %vm724_vm2 = vcmask 23552  }
   0xd   : > { %v11099_v4 = vsel %vm780_vm1, %v781_v2, 0  ;;  %s14836_s26 = smov (!%p431_p3, %s8936_s26), 1  ;;  %v9020_v6 = vld [vmem:[%s14500_s1 + $0x6] sm:$0x3]  ;;  %v9058_v20 = vld [vmem:[%s14500_s1 + $0x8] sm:$0x3] }
   0xe   : > { %v784_v7 = vand.u32 %v8944_v0, %v11099_v4  ;;  %v1000_v8 = vand.u32 %v11099_v4, %v478_v3  ;;  %v1278_v9 = vand.u32 %v9000_v5, %v11099_v4  ;;  %v1717_v10 = vand.u32 %v9020_v6, %v11099_v4  ;;  %s10642_s18 = smul.u32 164, %s14836_s26  ;;  %s9654_s30 = sshll.u32 %s14836_s26, 3 }
   0xf   : > { %vm14537_vm3 = vsmask.f32 7424  ;;  %v11155_v36 = vand.u32 %v9058_v20, %v11099_v4  ;;  %vm14538_vm4 = vcmask 1046528   ;;  %vm14532_vm5 = vsmask.f32 6400  ;;  %s440_s16 = scalar_lea.vmem %s14512_s13, %s9654_s30 }
  0x10   : > { %9970 = vmatprep.subr.bf16.mxu0 %v784_v7  ;;  %10008 = vmatprep.subr.bf16.mxu1 %v1000_v8  ;;  %s11117_s21 = scalar_lea.vmem %s14499_s0, %s10642_s18  ;;  %vm14534_vm6 = vcmask 1045504   ;;  %vm14533_vm7 = vsmask.f32 5376  ;;  %vm14531_vm8 = vcmask 1044480   ;;  %vm14539_vm9 = vcmask 517120  }
  0x11   : > { %9971 = vmatpush3.bf16.msra.mxu0 %v784_v7  ;;  %10009 = vmatpush3.bf16.msra.mxu1 %v1000_v8  ;;  %v442_v11 = vld [vmem:[%s11117_s21] sm:$0xf]  ;;  %v11121_v12 = vld [vmem:[%s11117_s21 + $0x4] sm:$0xf]  ;;  %v11125_v14 = vld [vmem:[%s11117_s21 + $0x8] sm:$0xff]   ;;  %vm4009_vm12 = vcmask 519168  }
  0x12   : > { %10046 = vmatprep.subr.bf16.mxu0 %v1278_v9  ;;  %10084 = vmatprep.subr.bf16.mxu1 %v1717_v10  ;;  %v8945_v13 = vcombine.low %v442_v11, %v11121_v12  ;;  %v11128_v15 = vld [vmem:[%s11117_s21 + $0x10] sm:$0xff]   ;;  %v584_v18 = vshll.u32 %v11125_v14, 16  ;;  %v588_v19 = vshrl.u32 %v11125_v14, 16  ;;  %v11140_v22 = vld [vmem:[%s11117_s21 + $0x18] sm:$0xff]   ;;  %v11144_v24 = vld [vmem:[%s11117_s21 + $0x20] sm:$0xff]   ;;  %vm4017_vm13 = vcmask 519169  }
  0x13   : > { %v592_v21 = vshll.u32 %v11128_v15, 16  ;;  %v596_v23 = vshrl.u32 %v11128_v15, 16  ;;  %v600_v28 = vshll.u32 %v11140_v22, 16  ;;  %v608_v31 = vshll.u32 %v11144_v24, 16  ;;  %v11151_v32 = vld [vmem:[%s11117_s21 + $0x28] sm:$0xff]   ;;  %v11164_v42 = vld [vmem:[%s11117_s21 + $0x30] sm:$0xff]  }
  0x14   : > { %v577_v16 = vshrl.u32 %v8945_v13, 16  ;;  %v579_v17 = vshll.u32 %v8945_v13, 16  ;;  %10010 = vmatprep.mubr.msk.bf16.mxu1 %vm724_vm2, %v8945_v13  ;;  %v586_v26 = vrot.slane %v584_v18, 1  ;;  %v604_v35 = vshrl.u32 %v11140_v22, 16  ;;  %v11168_v44 = vld [vmem:[%s11117_s21 + $0x38] sm:$0xff]   ;;  %v11179_v50 = vld [vmem:[%s11117_s21 + $0x40] sm:$0xff]  }
  0x15   : > { %10011 = vmatmul.mubr.msk.bf16.vlgmr.msra.gmra.mxu1 %vm724_vm2, %v11125_v14  ;;  %v594_v27 = vrot.slane %v592_v21, 1  ;;  %v602_v34 = vrot.slane %v600_v28, 1  ;;  %v612_v39 = vshrl.u32 %v11144_v24, 16  ;;  %v616_v40 = vshll.u32 %v11151_v32, 16  ;;  %v11183_v52 = vld [vmem:[%s11117_s21 + $0x48] sm:$0xff]   ;;  %v11188_v55 = vld [vmem:[%s11117_s21 + $0x50] sm:$0xff]  }
  0x16   : > { %v581_v25 = vrot.slane %v579_v17, 1  ;;  %10014 = vmatprep.mubr.msk.bf16.mxu1 %vm724_vm2, %v11128_v15  ;;  %10085 = vmatpush3.bf16.msra.mxu1 %v1717_v10  ;;  %v590_v30 = vor.u32 %v588_v19, %v586_v26  ;;  %v610_v43 = vrot.slane %v608_v31, 1  ;;  %v620_v48 = vshrl.u32 %v11151_v32, 16  ;;  %v11192_v57 = vld [vmem:[%s11117_s21 + $0x58] sm:$0xff]   ;;  %v11196_v60 = vld [vmem:[%s11117_s21 + $0x60] sm:$0xff]   ;;  %v11201_v0 = vld [vmem:[%s11117_s21 + $0x68] sm:$0xff]  }
  0x17   : > { %v598_v33 = vor.u32 %v596_v23, %v594_v27  ;;  %v606_v45 = vor.u32 %v604_v35, %v602_v34  ;;  %v618_v47 = vrot.slane %v616_v40, 1  ;;  %v624_v49 = vshll.u32 %v11164_v42, 16  ;;  %v11206_v3 = vld [vmem:[%s11117_s21 + $0x70] sm:$0xff]   ;;  %v11214_v8 = vld [vmem:[%s11117_s21 + $0x78] sm:$0xff]   ;;  %v11248_v40 = vld [vmem:[%s11117_s21 + $0x88] sm:$0xff]  }
  0x18   : > { %v582_v29 = vor.u32 %v581_v25, %v577_v16  ;;  %v595_v38 = vsel %vm14537_vm3, %v590_v30, %v594_v27  ;;  %v614_v46 = vor.u32 %v612_v39, %v610_v43  ;;  %v632_v51 = vshll.u32 %v11168_v44, 16  ;;  %v1179_v27 = vld [vmem:[%s11117_s21] sm:$0xe] }
  0x19   : > { %v603_v41 = vsel %vm14537_vm3, %v598_v33, %v602_v34  ;;  %v611_v53 = vsel %vm14537_vm3, %v606_v45, %v610_v43  ;;  %v628_v54 = vshrl.u32 %v11164_v42, 16  ;;  %v626_v58 = vrot.slane %v624_v49, 1  ;;  %v11236_v33 = vld [vmem:[%s11117_s21 + $0x80] sm:$0xff]  }
  0x1a   : > { %v587_v37 = vsel %vm14537_vm3, %v582_v29, %v586_v26  ;;  %v619_v56 = vsel %vm14537_vm3, %v614_v46, %v618_v47  ;;  %v640_v59 = vshll.u32 %v11179_v50, 16  ;;  %v622_v61 = vor.u32 %v620_v48, %v618_v47 }
  0x1b   : > { %9972 = vmatprep.mubr.msk.bf16.mxu0 %vm724_vm2, %v587_v37  ;;  %v634_v62 = vrot.slane %v632_v51, 1  ;;  %v648_v63 = vshll.u32 %v11183_v52, 16  ;;  %v630_v1 = vor.u32 %v628_v54, %v626_v58  ;;  %v656_v2 = vshll.u32 %v11188_v55, 16 }
  0x1c   : > { %9973 = vmatmul.mubr.msk.bf16.vlgmr.msra.gmra.mxu0 %vm724_vm2, %v595_v38  ;;  %v636_v5 = vshrl.u32 %v11168_v44, 16  ;;  %v644_v6 = vshrl.u32 %v11179_v50, 16  ;;  %v664_v7 = vshll.u32 %v11192_v57, 16  ;;  %v672_v10 = vshll.u32 %v11196_v60, 16 }
  0x1d   : > { %10047 = vmatpush3.bf16.msra.mxu0 %v1278_v9  ;;  %9976 = vmatprep.mubr.msk.bf16.mxu0 %vm724_vm2, %v603_v41  ;;  %v642_v9 = vrot.slane %v640_v59, 1  ;;  %v627_v11 = vsel %vm14537_vm3, %v622_v61, %v626_v58  ;;  %v652_v13 = vshrl.u32 %v11183_v52, 16  ;;  %v660_v16 = vshrl.u32 %v11188_v55, 16 }
  0x1e   : > { %10015 = vmatmul.mubr.msk.bf16.gmra.mxu1 %vm724_vm2, %v11140_v22  ;;  %10122 = vmatprep.subr.bf16.mxu0 %v11155_v36  ;;  %v680_v17 = vshll.u32 %v11201_v0, 16  ;;  %v635_v18 = vsel %vm14537_vm3, %v630_v1, %v634_v62  ;;  %v650_v19 = vrot.slane %v648_v63, 1  ;;  %v658_v20 = vrot.slane %v656_v2, 1  ;;  %v11281_v1 = vld [vmem:[%s11117_s21 + $0x90] ss:$0 sps:$4 sm:$0x11]  }
  0x1f   : > { %10018 = vmatprep.mubr.msk.bf16.mxu1 %vm724_vm2, %v11144_v24  ;;  %v688_v21 = vshll.u32 %v11206_v3, 16  ;;  %v11225_v23 = vrot.slane %v664_v7, 1  ;;  %v668_v25 = vshrl.u32 %v11192_v57, 16  ;;  %v696_v26 = vshll.u32 %v11214_v8, 16 }
  0x20   : > { %v1187_v28 = vrot.slane %v11125_v14, 1  ;;  %v11231_v29 = vrot.slane %v672_v10, 1  ;;  %v676_v30 = vshrl.u32 %v11196_v60, 16  ;;  %v684_v31 = vshrl.u32 %v11201_v0, 16 }
  0x21   : > { %v9001_v34 = vcombine.low %v1179_v27, %v11121_v12  ;;  %v638_v35 = vor.u32 %v636_v5, %v634_v62  ;;  %v11240_v37 = vrot.slane %v680_v17, 1  ;;  %v1189_v38 = vrot.slane %v11128_v15, 1 }
  0x22   : > { %v11244_v14 = vrot.slane %v688_v21, 1  ;;  %v692_v39 = vshrl.u32 %v11206_v3, 16  ;;  %v646_v12 = vor.u32 %v644_v6, %v642_v9  ;;  %v11252_v43 = vrot.slane %v696_v26, 1 }
  0x23   : > { %v1186_v41 = vrot.slane %v9001_v34, 1  ;;  %v700_v45 = vshrl.u32 %v11214_v8, 16  ;;  %v11256_v46 = vsel %vm14538_vm4, %v1187_v28, %v1189_v38  ;;  %v1191_v47 = vrot.slane %v11140_v22, 1  ;;  %v11325_v34 = vld [vmem:[%s11117_s21 + $0x10] sm:$0xff]  }
  0x24   : > { %9977 = vmatmul.mubr.msk.bf16.gmra.mxu0 %vm724_vm2, %v611_v53  ;;  %v1193_v48 = vrot.slane %v11144_v24, 1  ;;  %v643_v49 = vsel %vm14537_vm3, %v638_v35, %v642_v9  ;;  %v704_v51 = vshll.u32 %v11236_v33, 16  ;;  %v708_v53 = vshrl.u32 %v11236_v33, 16  ;;  %v11301_v9 = vld [vmem:[%s11117_s21 + $0xc] sm:$0xf] }
  0x25   : > { %9980 = vmatprep.mubr.msk.bf16.mxu0 %vm724_vm2, %v619_v56  ;;  %v11261_v15 = vsel %vm14538_vm4, %v1186_v41, %v1187_v28  ;;  %v11269_v54 = vsel %vm14538_vm4, %v1189_v38, %v1191_v47  ;;  %v1195_v58 = vrot.slane %v11151_v32, 1  ;;  %v1197_v59 = vrot.slane %v11164_v42, 1 }
  0x26   : > { %10019 = vmatmul.mubr.msk.bf16.gmra.mxu1 %vm724_vm2, %v11151_v32  ;;  %v11272_v56 = vsel %vm14538_vm4, %v1191_v47, %v1193_v48  ;;  %v651_v22 = vsel %vm14537_vm3, %v646_v12, %v650_v19  ;;  %v1199_v24 = vrot.slane %v11168_v44, 1  ;;  %v1201_v61 = vrot.slane %v11179_v50, 1  ;;  %v1493_v32 = vld [vmem:[%s11117_s21 + $0x8] sm:$0xe]  ;;  %v11339_v12 = vld [vmem:[%s11117_s21 + $0x18] sm:$0xff]  }
  0x27   : > { %10022 = vmatprep.mubr.msk.bf16.mxu1 %vm724_vm2, %v11164_v42  ;;  %v654_v62 = vor.u32 %v652_v13, %v650_v19  ;;  %v712_v63 = vshll.u32 %v11248_v40, 16  ;;  %v11284_v2 = vsel %vm14538_vm4, %v1193_v48, %v1195_v58  ;;  %v11287_v5 = vsel %vm14538_vm4, %v1195_v58, %v1197_v59 }
  0x28   : > { %v11292_v42 = vsel %vm14538_vm4, %v1197_v59, %v1199_v24  ;;  %v1205_v6 = vrot.slane %v11188_v55, 1  ;;  %v662_v7 = vor.u32 %v660_v16, %v658_v20  ;;  %v716_v10 = vshrl.u32 %v11248_v40, 16  ;;  %v11353_v59 = vld [vmem:[%s11117_s21 + $0x28] sm:$0xff]  }
  0x29   : > { %v1207_v17 = vrot.slane %v11192_v57, 1  ;;  %v670_v16 = vor.u32 %v668_v25, %v11225_v23  ;;  %v706_v19 = vrot.slane %v704_v51, 1  ;;  %v678_v21 = vor.u32 %v676_v30, %v11231_v29 }
  0x2a   : > { %v714_v26 = vrot.slane %v712_v63, 1  ;;  %v720_v27 = vshll.u32 %v11281_v1, 16  ;;  %v1211_v25 = vrot.slane %v11201_v0, 1  ;;  %v1213_v35 = vrot.slane %v11206_v3, 1 }
  0x2b   : > { %v11321_v28 = vsel %vm14538_vm4, %v1205_v6, %v1207_v17  ;;  %v667_v30 = vsel %vm14537_vm3, %v662_v7, %v11225_v23  ;;  %v686_v38 = vor.u32 %v684_v31, %v11240_v37  ;;  %v694_v41 = vor.u32 %v692_v39, %v11244_v14 }
  0x2c   : > { %9981 = vmatmul.mubr.msk.bf16.gmra.mxu0 %vm724_vm2, %v627_v11  ;;  %v702_v47 = vor.u32 %v700_v45, %v11252_v43  ;;  %v710_v48 = vor.u32 %v708_v53, %v706_v19  ;;  %v11349_v58 = vsel %vm14538_vm4, %v1211_v25, %v1213_v35  ;;  %v718_v23 = vor.u32 %v716_v10, %v714_v26 }
  0x2d   : > { %9984 = vmatprep.mubr.msk.bf16.mxu0 %vm724_vm2, %v635_v18  ;;  %v659_v18 = vsel %vm14537_vm3, %v654_v62, %v658_v20  ;;  %v9021_v20 = vcombine.low %v1493_v32, %v11301_v9  ;;  %v722_v31 = vrot.slane %v720_v27, 1  ;;  %v1215_v39 = vrot.slane %v11214_v8, 1  ;;  %v11371_v32 = vld [vmem:[%s11117_s21 + $0x30] sm:$0xff]  }
  0x2e   : > { %10023 = vmatmul.mubr.msk.bf16.gmra.mxu1 %vm724_vm2, %v11168_v44  ;;  %v11295_v44 = vsel %vm14538_vm4, %v1199_v24, %v1201_v61  ;;  %v1217_v45 = vrot.slane %v11236_v33, 1  ;;  %v675_v53 = vsel %vm14537_vm3, %v670_v16, %v11231_v29  ;;  %v11367_v62 = vsel %vm14537_vm3, %v686_v38, %v11244_v14 }
  0x2f   : > { %10026 = vmatprep.mubr.msk.bf16.mxu1 %vm724_vm2, %v11179_v50  ;;  %v1203_v50 = vrot.slane %v11183_v52, 1  ;;  %v1625_v24 = vrot.slane %v9021_v20, 1  ;;  %v1628_v63 = vrot.slane %v11339_v12, 1  ;;  %v1219_v14 = vrot.slane %v11248_v40, 1 }
  0x30   : > { %v11377_v29 = vsel %vm14538_vm4, %v1215_v39, %v1217_v45  ;;  %v11389_v7 = vsel %vm14537_vm3, %v702_v47, %v706_v19  ;;  %v11392_v10 = vsel %vm14537_vm3, %v710_v48, %v714_v26  ;;  %v1948_v38 = vshrl.u32 %v11325_v34, 16 }
  0x31   : > { %v11307_v11 = vsel %vm14538_vm4, %v1201_v61, %v1203_v50  ;;  %v11310_v13 = vsel %vm14538_vm4, %v1203_v50, %v1205_v6  ;;  %v1626_v61 = vrot.slane %v11325_v34, 1  ;;  %v11374_v50 = vsel %vm14538_vm4, %v1213_v35, %v1215_v39 }
  0x32   : > { %v1221_v6 = vrot.slane %v11281_v1, 1  ;;  %v11405_v1 = vsel %vm14538_vm4, %v1217_v45, %v1219_v14  ;;  %v1950_v45 = vrot.slane %v1948_v38, 1  ;;  %vm14542_vm10 = vsmask.f32 1280 }
  0x33   : > { %v11418_v26 = vsel %vm14538_vm4, %v1626_v61, %v1628_v63  ;;  %vm12381_vm11 = vmand %vm14539_vm9, %vm14542_vm10  ;;  %vm4374_vm14 = vcmask 516096   ;;  %vm14530_vm15 = vsmask.f32 256  ;;  %vm14535_vm1 = vmmov 0  }
  0x34   : > { %9985 = vmatmul.mubr.msk.bf16.gmra.mxu0 %vm724_vm2, %v643_v49  ;;  %v11343_v49 = vld [vmem:[%s11117_s21 + $0x20] sm:$0xff]   ;;  %v11408_v16 = vsel %vm14538_vm4, %v1219_v14, %v1221_v6  ;;  %vm12496_vm0 = vmand %vm4374_vm14, %vm14530_vm15  ;;  %vm14540_vm14 = vsmask.f32 3328  ;;  %vm4203_vm15 = vsmask.f32 7440 }
  0x35   : > { %9988 = vmatprep.mubr.msk.bf16.mxu0 %vm724_vm2, %v651_v22  ;;  %v683_v22 = vsel %vm14537_vm3, %v678_v21, %v11240_v37  ;;  %v14513_v37 = vrot.slane %v11343_v49, 1  ;;  %v2379_v21 = vld [vmem:[%s11117_s21 + $0x8] sm:$0xc] }
  0x36   : > { %10027 = vmatmul.mubr.msk.bf16.gmra.mxu1 %vm724_vm2, %v11183_v52  ;;  %v1209_v52 = vrot.slane %v11196_v60, 1 }
  0x37   : > { %10030 = vmatprep.mubr.msk.bf16.mxu1 %vm724_vm2, %v11188_v55  ;;  %v11424_v35 = vsel %vm14538_vm4, %v1628_v63, %v14513_v37  ;;  %v2387_v63 = vrot.slane %v11325_v34, 2 }
  0x38   : > { %v11328_v55 = vsel %vm14538_vm4, %v1207_v17, %v1209_v52  ;;  %v11346_v51 = vsel %vm14538_vm4, %v1209_v52, %v1211_v25  ;;  %v11395_v17 = vsel %vm14537_vm3, %v718_v23, %v722_v31  ;;  %v9098_v52 = vld [vmem:[%s14500_s1 + $0xc] sm:$0x3]  ;;  %v1940_v25 = vshrl.u32 %v9021_v20, 16 }
  0x39   : > { %v11431_v48 = vand.u32 %v9098_v52, %v11099_v4  ;;  %v1957_v23 = vshrl.u32 %v11339_v12, 16  ;;  %v1960_v31 = vshll.u32 %v11339_v12, 16  ;;  %v11444_v52 = vld [vmem:[%s11117_s21 + $0x38] sm:$0xff]  }
  0x3a   : > { %v1942_v47 = vrot.slane %v1940_v25, 1  ;;  %v1975_v25 = vshrl.u32 %v11353_v59, 16 }
  0x3c   : > { %9989 = vmatmul.mubr.msk.bf16.gmra.mxu0 %vm724_vm2, %v659_v18  ;;  %v11402_v18 = vsel %vm14538_vm4, %v1625_v24, %v1626_v61  ;;  %v9079_v24 = vcombine.low %v2379_v21, %v11301_v9  ;;  %v1962_v61 = vrot.slane %v1960_v31, 2  ;;  %v1966_v21 = vshrl.u32 %v11343_v49, 16  ;;  %v11463_v31 = vld [vmem:[%s11117_s21 + $0x40] sm:$0xff]  }
  0x3d   : > { %9992 = vmatprep.mubr.msk.bf16.mxu0 %vm724_vm2, %v667_v30  ;;  %v1943_v30 = vshll.u32 %v9021_v20, 16 }
  0x3e   : > { %10031 = vmatmul.mubr.msk.bf16.gmra.mxu1 %vm724_vm2, %v11192_v57  ;;  %v11383_v57 = vsel %vm14537_vm3, %v694_v41, %v11252_v43  ;;  %v9078_v43 = vld [vmem:[%s14500_s1 + $0xa] sm:$0x3]  ;;  %v1951_v41 = vshll.u32 %v11325_v34, 16  ;;  %vm4296_vm3 = vcmask 519170  }
  0x3f   : > { %10034 = vmatprep.mubr.msk.bf16.mxu1 %vm724_vm2, %v11196_v60  ;;  %v11411_v19 = vand.u32 %v9078_v43, %v11099_v4  ;;  %v1945_v39 = vrot.slane %v1943_v30, 2  ;;  %v2389_v43 = vrot.slane %v11339_v12, 2  ;;  %v1978_v12 = vshll.u32 %v11353_v59, 16 }
  0x40   : > { %v1953_v20 = vrot.slane %v1951_v41, 2  ;;  %v1968_v41 = vrot.slane %v1966_v21, 1 }
  0x41   : > { %10160 = vmatprep.subr.bf16.mxu1 %v11411_v19  ;;  %v1946_v14 = vor.u32 %v1945_v39, %v1942_v47  ;;  %v11456_v30 = vsel %vm14534_vm6, %v2387_v63, %v2389_v43  ;;  %v1980_v39 = vrot.slane %v1978_v12, 2 }
  0x42   : > { %v1954_v6 = vor.u32 %v1953_v20, %v1950_v45  ;;  %v2391_v45 = vrot.slane %v11343_v49, 2  ;;  %v2393_v20 = vrot.slane %v11353_v59, 2 }
  0x44   : > { %9993 = vmatmul.mubr.msk.bf16.gmra.mxu0 %vm724_vm2, %v675_v53  ;;  %v1959_v53 = vrot.slane %v1957_v23, 1  ;;  %v11450_v34 = vsel %vm14532_vm5, %v1946_v14, %v1954_v6  ;;  %v1977_v23 = vrot.slane %v1975_v25, 1  ;;  %v1993_v14 = vshrl.u32 %v11444_v52, 16 }
  0x45   : > { %9996 = vmatprep.mubr.msk.bf16.mxu0 %vm724_vm2, %v683_v22  ;;  %v2386_v22 = vrot.slane %v9079_v24, 2  ;;  %v1984_v24 = vshrl.u32 %v11371_v32, 16  ;;  %v11479_v21 = vsel %vm14534_vm6, %v2389_v43, %v2391_v45 }
  0x46   : > { %10035 = vmatmul.mubr.msk.bf16.gmra.mxu1 %vm724_vm2, %v11201_v0  ;;  %v1963_v9 = vor.u32 %v1962_v61, %v1959_v53  ;;  %v1969_v0 = vshll.u32 %v11343_v49, 16  ;;  %v11471_v53 = vld [vmem:[%s11117_s21 + $0x48] sm:$0xff]  }
  0x47   : > { %10038 = vmatprep.mubr.msk.bf16.mxu1 %vm724_vm2, %v11206_v3  ;;  %v11453_v3 = vsel %vm14534_vm6, %v2386_v22, %v2387_v63  ;;  %v1987_v63 = vshll.u32 %v11371_v32, 16  ;;  %v1981_v22 = vor.u32 %v1980_v39, %v1977_v23  ;;  %v2395_v23 = vrot.slane %v11371_v32, 2 }
  0x48   : > { %v11460_v38 = vsel %vm14532_vm5, %v1954_v6, %v1963_v9  ;;  %v1971_v47 = vrot.slane %v1969_v0, 2  ;;  %v1996_v6 = vshll.u32 %v11444_v52, 16  ;;  %v1986_v0 = vrot.slane %v1984_v24, 1 }
  0x49   : > { %v1989_v12 = vrot.slane %v1987_v63, 2  ;;  %v2397_v39 = vrot.slane %v11444_v52, 2  ;;  %v2005_v63 = vshll.u32 %v11463_v31, 16  ;;  %v2014_v27 = vshll.u32 %v11471_v53, 16 }
  0x4a   : > { %v1972_v61 = vor.u32 %v1971_v47, %v1968_v41  ;;  %v1995_v41 = vrot.slane %v1993_v14, 1  ;;  %v1998_v47 = vrot.slane %v1996_v6, 2  ;;  %v11506_v14 = vsel %vm14534_vm6, %v2393_v20, %v2395_v23 }
  0x4b   : > { %14549 = vst [vmem:[#allocation12_spill] sm:$0xff] %v11506_v14  ;;  %v2016_v60 = vrot.slane %v2014_v27, 2 }
  0x4c   : > { %9997 = vmatmul.mubr.msk.bf16.gmra.mxu0 %vm724_vm2, %v11367_v62  ;;  %v11482_v62 = vsel %vm14534_vm6, %v2391_v45, %v2393_v20  ;;  %v11487_v25 = vsel %vm14532_vm5, %v1963_v9, %v1972_v61  ;;  %v11495_v43 = vsel %vm14532_vm5, %v1972_v61, %v1981_v22  ;;  %v11501_v9 = vld [vmem:[%s11117_s21 + $0x58] sm:$0xff]   ;;  %v1990_v45 = vor.u32 %v1989_v12, %v1986_v0 }
  0x4d   : > { %10000 = vmatprep.mubr.msk.bf16.mxu0 %vm724_vm2, %v11383_v57  ;;  %v11492_v57 = vld [vmem:[%s11117_s21 + $0x50] sm:$0xff]   ;;  %14548 = vst [vmem:[#allocation11_spill] sm:$0xff] %v11495_v43  ;;  %v1999_v24 = vor.u32 %v1998_v47, %v1995_v41  ;;  %v11509_v61 = vsel %vm14534_vm6, %v2395_v23, %v2397_v39  ;;  %v2007_v12 = vrot.slane %v2005_v63, 2  ;;  %v11519_v47 = vld [vmem:[%s11117_s21 + $0x60] sm:$0xff]   ;;  %v2399_v20 = vrot.slane %v11463_v31, 2 }
  0x4e   : > { %10039 = vmatmul.mubr.msk.bf16.gmra.mxu1 %vm724_vm2, %v11214_v8  ;;  %v2002_v8 = vshrl.u32 %v11463_v31, 16  ;;  %14550 = vst [vmem:[#allocation13_spill] sm:$0xff] %v11509_v61  ;;  %v11513_v37 = vsel %vm14532_vm5, %v1981_v22, %v1990_v45  ;;  %v2401_v43 = vrot.slane %v11471_v53, 2  ;;  %v2020_v23 = vshrl.u32 %v11492_v57, 16 }
  0x4f   : > { %10042 = vmatprep.mubr.msk.bf16.mxu1 %vm724_vm2, %v11236_v33  ;;  %v2011_v33 = vshrl.u32 %v11471_v53, 16  ;;  %14551 = vst [vmem:[#allocation14_spill] sm:$0xff] %v11513_v37  ;;  %v11516_v0 = vsel %vm14532_vm5, %v1990_v45, %v1999_v24  ;;  %v2023_v45 = vshll.u32 %v11492_v57, 16  ;;  %v2029_v63 = vshrl.u32 %v11501_v9, 16 }
  0x50   : > { %v2004_v6 = vrot.slane %v2002_v8, 1  ;;  %14552 = vst [vmem:[#allocation15_spill] sm:$0xff] %v11516_v0  ;;  %v11527_v8 = vld [vmem:[%s11117_s21 + $0x68] sm:$0xff]   ;;  %v11535_v0 = vsel %vm14534_vm6, %v2397_v39, %v2399_v20  ;;  %v2022_v61 = vrot.slane %v2020_v23, 1  ;;  %v2403_v39 = vrot.slane %v11492_v57, 2 }
  0x51   : > { %v2013_v41 = vrot.slane %v2011_v33, 1  ;;  %v2032_v33 = vshll.u32 %v11501_v9, 16  ;;  %14553 = vst [vmem:[#allocation16_spill] sm:$0xff] %v11535_v0  ;;  %v2031_v37 = vrot.slane %v2029_v63, 1 }
  0x52   : > { %v2008_v22 = vor.u32 %v2007_v12, %v2004_v6  ;;  %v2025_v12 = vrot.slane %v2023_v45, 2  ;;  %v2041_v45 = vshll.u32 %v11519_v47, 16  ;;  %v11562_v63 = vsel %vm14534_vm6, %v2401_v43, %v2403_v39 }
  0x53   : > { %v2017_v27 = vor.u32 %v2016_v60, %v2013_v41  ;;  %v2034_v14 = vrot.slane %v2032_v33, 2  ;;  %v2405_v41 = vrot.slane %v11501_v9, 2  ;;  %14557 = vst [vmem:[#allocation20_spill] sm:$0xff] %v11562_v63  ;;  %v2409_v63 = vrot.slane %v11527_v8, 2 }
  0x54   : > { %10001 = vmatmul.mubr.msk.bf16.gmra.mxu0 %vm724_vm2, %v11389_v7  ;;  %v11538_v7 = vsel %vm14534_vm6, %v2399_v20, %v2401_v43  ;;  %v11543_v6 = vsel %vm14532_vm5, %v1999_v24, %v2008_v22  ;;  %v11557_v24 = vld [vmem:[%s11117_s21 + $0x78] sm:$0xff]   ;;  %v2026_v20 = vor.u32 %v2025_v12, %v2022_v61  ;;  %v11575_v12 = vld [vmem:[%s11117_s21 + $0x80] sm:$0xff]   ;;  %v2407_v43 = vrot.slane %v11519_v47, 2 }
  0x55   : > { %10004 = vmatprep.mubr.msk.bf16.mxu0 %vm724_vm2, %v11392_v10  ;;  %14554 = vst [vmem:[#allocation17_spill] sm:$0xff] %v11538_v7  ;;  %14555 = vst [vmem:[#allocation18_spill] sm:$0xff] %v11543_v6  ;;  %v11548_v10 = vld [vmem:[%s11117_s21 + $0x70] sm:$0xff]   ;;  %v11551_v60 = vsel %vm14532_vm5, %v2008_v22, %v2017_v27  ;;  %v2035_v23 = vor.u32 %v2034_v14, %v2031_v37  ;;  %v11565_v22 = vsel %vm14534_vm6, %v2403_v39, %v2405_v41 }
  0x56   : > { %10043 = vmatmul.mubr.msk.bf16.gmra.mxu1 %vm724_vm2, %v11248_v40  ;;  %14556 = vst [vmem:[#allocation19_spill] sm:$0xff] %v11551_v60  ;;  %v2038_v40 = vshrl.u32 %v11519_v47, 16  ;;  %14558 = vst [vmem:[#allocation21_spill] sm:$0xff] %v11565_v22  ;;  %v2050_v60 = vshll.u32 %v11527_v8, 16  ;;  %v11569_v7 = vsel %vm14532_vm5, %v2017_v27, %v2026_v20  ;;  %v2043_v37 = vrot.slane %v2041_v45, 2 }
  0x57   : > { %10086 = vmatprep.mubr.msk.bf16.mxu1 %vm724_vm2, %v11402_v18  ;;  %v2047_v18 = vshrl.u32 %v11527_v8, 16  ;;  %14559 = vst [vmem:[#allocation22_spill] sm:$0xff] %v11569_v7  ;;  %v11572_v61 = vsel %vm14532_vm5, %v2026_v20, %v2035_v23  ;;  %v2056_v39 = vshrl.u32 %v11548_v10, 16  ;;  %v2059_v20 = vshll.u32 %v11548_v10, 16 }
  0x58   : > { %v2040_v33 = vrot.slane %v2038_v40, 1  ;;  %14560 = vst [vmem:[#allocation23_spill] sm:$0xff] %v11572_v61  ;;  %v2052_v6 = vrot.slane %v2050_v60, 2  ;;  %v11583_v40 = vld [vmem:[%s11117_s21 + $0x88] sm:$0xff]   ;;  %v2065_v45 = vshrl.u32 %v11557_v24, 16  ;;  %v11591_v61 = vsel %vm14534_vm6, %v2405_v41, %v2407_v43 }
  0x59   : > { %v2049_v14 = vrot.slane %v2047_v18, 1  ;;  %v2068_v18 = vshll.u32 %v11557_v24, 16  ;;  %v11594_v22 = vsel %vm14534_vm6, %v2407_v43, %v2409_v63  ;;  %v2413_v41 = vrot.slane %v11557_v24, 2 }
  0x5a   : > { %v2044_v27 = vor.u32 %v2043_v37, %v2040_v33  ;;  %v2061_v37 = vrot.slane %v2059_v20, 2  ;;  %v2067_v7 = vrot.slane %v2065_v45, 1  ;;  %v2083_v20 = vshrl.u32 %v11583_v40, 16 }
  0x5b   : > { %v2053_v60 = vor.u32 %v2052_v6, %v2049_v14  ;;  %v2070_v0 = vrot.slane %v2068_v18, 2  ;;  %v2411_v6 = vrot.slane %v11548_v10, 2  ;;  %v11611_v14 = vld [vmem:[%s11117_s21 + $0x90] sm:$0xff]   ;;  %v2086_v45 = vshll.u32 %v11583_v40, 16 }
  0x5c   : > { %10005 = vmatmul.mubr.msk.bf16.gmra.mxu0 %vm724_vm2, %v11395_v17  ;;  %v2058_v17 = vrot.slane %v2056_v39, 1  ;;  %v11599_v33 = vsel %vm14532_vm5, %v2035_v23, %v2044_v27  ;;  %v2077_v39 = vshll.u32 %v11575_v12, 16 }
  0x5d   : > { %10048 = vmatprep.mubr.msk.bf16.mxu0 %vm724_vm2, %v11261_v15  ;;  %v11605_v15 = vsel %vm14532_vm5, %v2044_v27, %v2053_v60  ;;  %v2071_v43 = vor.u32 %v2070_v0, %v2067_v7  ;;  %v2085_v7 = vrot.slane %v2083_v20, 1 }
  0x5e   : > { %10087 = vmatmul.mubr.msk.bf16.vlgmr.msra.gmra.mxu1 %vm724_vm2, %v11418_v26  ;;  %14561 = vst [vmem:[#allocation24_spill] sm:$0xff] %v11605_v15  ;;  %v2074_v26 = vshrl.u32 %v11575_v12, 16  ;;  %v2062_v23 = vor.u32 %v2061_v37, %v2058_v17  ;;  %v2079_v0 = vrot.slane %v2077_v39, 2  ;;  %v14564_v17 = vrot.slane %v11353_v59, 1 }
  0x5f   : > { %10090 = vmatprep.mubr.msk.bf16.mxu1 %vm724_vm2, %v11424_v35  ;;  %10161 = vmatpush3.bf16.msra.mxu1 %v11411_v19  ;;  %v11616_v35 = vsel %vm14534_vm6, %v2409_v63, %v2411_v6  ;;  %v11619_v19 = vsel %vm14534_vm6, %v2411_v6, %v2413_v41  ;;  %v14565_v37 = vrot.slane %v11343_v49, 1  ;;  %v2415_v6 = vrot.slane %v11575_v12, 2 }
  0x60   : > { %14562 = vst [vmem:[#allocation25_spill] sm:$0xff] %v11616_v35  ;;  %v2076_v27 = vrot.slane %v2074_v26, 1  ;;  %v11623_v18 = vsel %vm14532_vm5, %v2053_v60, %v2062_v23  ;;  %v11626_v15 = vsel %vm14532_vm5, %v2062_v23, %v2071_v43  ;;  %v2088_v35 = vrot.slane %v2086_v45, 2 }
  0x61   : > { %14563 = vst [vmem:[#allocation26_spill] sm:$0xff] %v11626_v15  ;;  %v1633_v63 = vsel %vm14538_vm4, %v14565_v37, %v14564_v17  ;;  %v2417_v26 = vrot.slane %v11583_v40, 2  ;;  %v14566_v60 = vrot.slane %v11371_v32, 1  ;;  %v14567_v23 = vmov %v14564_v17 }
  0x62   : > { %v2080_v20 = vor.u32 %v2079_v0, %v2076_v27  ;;  %v2092_v15 = vshrl.u32 %v11611_v14, 16  ;;  %v2095_v49 = vshll.u32 %v11611_v14, 16  ;;  %v2089_v45 = vor.u32 %v2088_v35, %v2085_v7 }
  0x63   : > { %v1635_v39 = vsel %vm14538_vm4, %v14567_v23, %v14566_v60  ;;  %v11648_v17 = vsel %vm14534_vm6, %v2413_v41, %v2415_v6  ;;  %v1638_v41 = vrot.slane %v11463_v31, 1  ;;  %v1640_v32 = vrot.slane %v11471_v53, 1  ;;  %v10694_v23 = vld [vmem:[%s11117_s21 + $0x98] ss:$0 sps:$4 sm:$0x11]  }
  0x64   : > { %10049 = vmatmul.mubr.msk.bf16.vlgmr.msra.gmra.mxu0 %vm724_vm2, %v11256_v46  ;;  %v11651_v46 = vsel %vm14534_vm6, %v2415_v6, %v2417_v26  ;;  %v11656_v59 = vsel %vm14532_vm5, %v2071_v43, %v2080_v20  ;;  %v2094_v27 = vrot.slane %v2092_v15, 1  ;;  %v2097_v0 = vrot.slane %v2095_v49, 2  ;;  %v2693_v49 = vld [vmem:[%s11117_s21 + $0x10] sm:$0xc] }
  0x65   : > { %10123 = vmatpush3.bf16.msra.mxu0 %v11155_v36  ;;  %10052 = vmatprep.mubr.msk.bf16.mxu0 %vm724_vm2, %v11269_v54  ;;  %v1636_v36 = vrot.slane %v11444_v52, 1  ;;  %v11661_v54 = vsel %vm14532_vm5, %v2080_v20, %v2089_v45  ;;  %v2419_v43 = vrot.slane %v11611_v14, 2  ;;  %v14568_v15 = vmov %v14566_v60 }
  0x66   : > { %10091 = vmatmul.mubr.msk.bf16.gmra.mxu1 %vm724_vm2, %v1633_v63  ;;  %10198 = vmatprep.subr.bf16.mxu0 %v11431_v48  ;;  %v11664_v35 = vor.u32 %v2097_v0, %v2094_v27  ;;  %v1642_v63 = vrot.slane %v11492_v57, 1  ;;  %v1644_v53 = vrot.slane %v11501_v9, 1  ;;  %v1646_v57 = vrot.slane %v11519_v47, 1  ;;  %v14583_v27 = vld [vmem:[#allocation24_spill] sm:$0xff] }
  0x67   : > { %10094 = vmatprep.mubr.msk.bf16.mxu1 %vm724_vm2, %v1635_v39  ;;  %v1637_v37 = vsel %vm14538_vm4, %v14568_v15, %v1636_v36  ;;  %v1639_v52 = vsel %vm14538_vm4, %v1636_v36, %v1638_v41  ;;  %v11680_v31 = vsel %vm14534_vm6, %v2417_v26, %v2419_v43  ;;  %v1641_v26 = vsel %vm14538_vm4, %v1638_v41, %v1640_v32  ;;  %v14581_v39 = vld [vmem:[#allocation23_spill] sm:$0xff]  ;;  %v14582_v20 = vld [vmem:[#allocation25_spill] sm:$0xff] }
  0x68   : > { %v11668_v7 = vsel %vm14532_vm5, %v2089_v45, %v11664_v35  ;;  %v1645_v60 = vsel %vm14538_vm4, %v1642_v63, %v1644_v53  ;;  %v1650_v9 = vrot.slane %v11548_v10, 1  ;;  %v11807_v45 = vld [vmem:[%s11117_s21 + $0x14] sm:$0xf]  ;;  %v11815_v0 = vld [vmem:[%s11117_s21 + $0x18] sm:$0xff]  }
  0x69   : > { %v3148_v15 = vshrl.u32 %v11815_v0, 16 }
  0x6c   : > { %10053 = vmatmul.mubr.msk.bf16.gmra.mxu0 %vm724_vm2, %v11272_v56  ;;  %v9136_v56 = vld [vmem:[%s14500_s1 + $0xe] sm:$0x3] }
  0x6d   : > { %10056 = vmatprep.mubr.msk.bf16.mxu0 %vm724_vm2, %v11284_v2  ;;  %v3364_v6 = vand.u32 %v9136_v56, %v11099_v4  ;;  %v1643_v2 = vsel %vm14538_vm4, %v1640_v32, %v1642_v63  ;;  %v10696_v32 = vld [vmem:[%s11117_s21 + $0x98] ss:$0 sps:$4 sm:$0x33]   ;;  %v11829_v56 = vld [vmem:[%s11117_s21 + $0x20] sm:$0xff]  }
  0x6e   : > { %10095 = vmatmul.mubr.msk.bf16.gmra.mxu1 %vm724_vm2, %v1637_v37  ;;  %v3151_v37 = vshll.u32 %v11815_v0, 16 }
  0x6f   : > { %10098 = vmatprep.mubr.msk.bf16.mxu1 %vm724_vm2, %v1639_v52  ;;  %10236 = vmatprep.subr.bf16.mxu1 %v3364_v6 }
  0x74   : > { %10057 = vmatmul.mubr.msk.bf16.gmra.mxu0 %vm724_vm2, %v11287_v5  ;;  %v1647_v5 = vsel %vm14538_vm4, %v1644_v53, %v1646_v57  ;;  %v11834_v53 = vld [vmem:[%s11117_s21 + $0x28] sm:$0xff]  }
  0x75   : > { %10060 = vmatprep.mubr.msk.bf16.mxu0 %vm724_vm2, %v11292_v42  ;;  %v1648_v42 = vrot.slane %v11527_v8, 1  ;;  %v1654_v8 = vrot.slane %v11575_v12, 1 }
  0x76   : > { %10099 = vmatmul.mubr.msk.bf16.gmra.mxu1 %vm724_vm2, %v1641_v26 }
  0x77   : > { %10102 = vmatprep.mubr.msk.bf16.mxu1 %vm724_vm2, %v1643_v2  ;;  %v1649_v47 = vsel %vm14538_vm4, %v1646_v57, %v1648_v42  ;;  %v3153_v2 = vrot.slane %v3151_v37, 3 }
  0x7c   : > { %10061 = vmatmul.mubr.msk.bf16.gmra.mxu0 %vm724_vm2, %v11295_v44  ;;  %v1651_v44 = vsel %vm14538_vm4, %v1648_v42, %v1650_v9 }
  0x7d   : > { %10064 = vmatprep.mubr.msk.bf16.mxu0 %vm724_vm2, %v11307_v11  ;;  %v1652_v11 = vrot.slane %v11557_v24, 1  ;;  %v1658_v24 = vrot.slane %v11611_v14, 1 }
  0x7e   : > { %10103 = vmatmul.mubr.msk.bf16.gmra.mxu1 %vm724_vm2, %v1645_v60  ;;  %v2101_v60 = vshrl.u32 %v10696_v32, 16 }
  0x7f   : > { %10106 = vmatprep.mubr.msk.bf16.mxu1 %vm724_vm2, %v1647_v5  ;;  %v1653_v10 = vsel %vm14538_vm4, %v1650_v9, %v1652_v11  ;;  %v2104_v5 = vshll.u32 %v10696_v32, 16 }
  0x84   : > { %10065 = vmatmul.mubr.msk.bf16.gmra.mxu0 %vm724_vm2, %v11310_v13  ;;  %v1655_v13 = vsel %vm14538_vm4, %v1652_v11, %v1654_v8  ;;  %v3157_v11 = vshrl.u32 %v11829_v56, 16 }
  0x85   : > { %10068 = vmatprep.mubr.msk.bf16.mxu0 %vm724_vm2, %v11321_v28  ;;  %v1656_v28 = vrot.slane %v11583_v40, 1 }
  0x86   : > { %10107 = vmatmul.mubr.msk.bf16.gmra.mxu1 %vm724_vm2, %v1649_v47 }
  0x87   : > { %10110 = vmatprep.mubr.msk.bf16.mxu1 %vm724_vm2, %v1651_v44  ;;  %v1657_v12 = vsel %vm14538_vm4, %v1654_v8, %v1656_v28  ;;  %v2421_v44 = vrot.slane %v10696_v32, 2  ;;  %v3160_v8 = vshll.u32 %v11829_v56, 16 }
  0x8c   : > { %10069 = vmatmul.mubr.msk.bf16.gmra.mxu0 %vm724_vm2, %v11328_v55  ;;  %v1659_v55 = vsel %vm14538_vm4, %v1656_v28, %v1658_v24 }
  0x8d   : > { %10072 = vmatprep.mubr.msk.bf16.mxu0 %vm724_vm2, %v11346_v51  ;;  %v1660_v51 = vrot.slane %v10694_v23, 1  ;;  %v3169_v23 = vshll.u32 %v11834_v53, 16 }
  0x8e   : > { %10111 = vmatmul.mubr.msk.bf16.gmra.mxu1 %vm724_vm2, %v1653_v10 }
  0x8f   : > { %10114 = vmatprep.mubr.msk.bf16.mxu1 %vm724_vm2, %v1655_v13  ;;  %v1661_v40 = vsel %vm14538_vm4, %v1658_v24, %v1660_v51  ;;  %v3166_v24 = vshrl.u32 %v11834_v53, 16  ;;  %vm14544_vm4 = vsmask.f32 7946 }
  0x94   : > { %10073 = vmatmul.mubr.msk.bf16.gmra.mxu0 %vm724_vm2, %v11349_v58  ;;  %v9156_v58 = vld [vmem:[%s14500_s1 + $0x10] sm:$0x3] }
  0x95   : > { %10076 = vmatprep.mubr.msk.bf16.mxu0 %vm724_vm2, %v11374_v50  ;;  %v11761_v50 = vand.u32 %v9156_v58, %v11099_v4  ;;  %v14571_v4 = vld [vmem:[#allocation14_spill] sm:$0xff]  ;;  %v2422_v58 = vsel %vm14534_vm6, %v2419_v43, %v2421_v44  ;;  %v2828_v44 = vrot.slane %v11829_v56, 2 }
  0x96   : > { %10115 = vmatmul.mubr.msk.bf16.gmra.mxu1 %vm724_vm2, %v1657_v12  ;;  %v2103_v12 = vrot.slane %v2101_v60, 1 }
  0x97   : > { %10118 = vmatprep.mubr.msk.bf16.mxu1 %vm724_vm2, %v1659_v55  ;;  %v2106_v55 = vrot.slane %v2104_v5, 2 }
  0x99   : > { %v2107_v14 = vor.u32 %v2106_v55, %v2103_v12 }
  0x9c   : > { %10077 = vmatmul.mubr.msk.bf16.gmra.mxu0 %vm724_vm2, %v11377_v29  ;;  %v14569_v29 = vld [vmem:[#allocation12_spill] sm:$0xff] }
  0x9d   : > { %10080 = vmatprep.mubr.msk.bf16.mxu0 %vm724_vm2, %v11405_v1  ;;  %v14570_v1 = vld [vmem:[#allocation11_spill] sm:$0xff] }
  0x9e   : > { %10119 = vmatmul.mubr.msk.bf16.gmra.mxu1 %vm724_vm2, %v1661_v40 }
  0x9f   : > { %10162 = vmatprep.mubr.msk.bf16.mxu1 %vm724_vm2, %v11453_v3  ;;  %v14575_v3 = vld [vmem:[#allocation18_spill] sm:$0xff] }
  0xa4   : > { %10081 = vmatmul.mubr.msk.bf16.gmra.mxu0 %vm724_vm2, %v11408_v16  ;;  %v14572_v16 = vld [vmem:[#allocation13_spill] sm:$0xff] }
  0xa5   : > { %10124 = vmatprep.mubr.msk.bf16.mxu0 %vm724_vm2, %v11450_v34  ;;  %v14574_v34 = vld [vmem:[#allocation15_spill] sm:$0xff] }
  0xa6   : > { %10163 = vmatmul.mubr.msk.bf16.vlgmr.msra.gmra.mxu1 %vm724_vm2, %v11456_v30  ;;  %v14576_v30 = vld [vmem:[#allocation17_spill] sm:$0xff] }
  0xa7   : > { %10166 = vmatprep.mubr.msk.bf16.mxu1 %vm724_vm2, %v11479_v21  ;;  %10237 = vmatpush3.bf16.msra.mxu1 %v3364_v6  ;;  %v14578_v21 = vld [vmem:[#allocation19_spill] sm:$0xff] }
  0xac   : > { %10125 = vmatmul.mubr.msk.bf16.vlgmr.msra.gmra.mxu0 %vm724_vm2, %v11460_v38  ;;  %v14577_v38 = vld [vmem:[#allocation20_spill] sm:$0xff] }
  0xad   : > { %10199 = vmatpush3.bf16.msra.mxu0 %v11431_v48  ;;  %10128 = vmatprep.mubr.msk.bf16.mxu0 %vm724_vm2, %v11487_v25  ;;  %v14573_v48 = vld [vmem:[#allocation16_spill] sm:$0xff]  ;;  %v14580_v25 = vld [vmem:[#allocation21_spill] sm:$0xff] }
  0xae   : > { %10167 = vmatmul.mubr.msk.bf16.gmra.mxu1 %vm724_vm2, %v11482_v62  ;;  %10274 = vmatprep.subr.bf16.mxu0 %v11761_v50  ;;  %v14579_v62 = vld [vmem:[#allocation22_spill] sm:$0xff] }
  0xaf   : > { %10170 = vmatprep.mubr.msk.bf16.mxu1 %vm724_vm2, %v14569_v29  ;;  %v3159_v29 = vrot.slane %v3157_v11, 2 }
  0xb4   : > { %10129 = vmatmul.mubr.msk.bf16.gmra.mxu0 %vm724_vm2, %v14570_v1  ;;  %v3162_v1 = vrot.slane %v3160_v8, 3 }
  0xb5   : > { %10132 = vmatprep.mubr.msk.bf16.mxu0 %vm724_vm2, %v14571_v4  ;;  %v11858_v4 = vld [vmem:[%s11117_s21 + $0x30] sm:$0xff]  }
  0xb6   : > { %10171 = vmatmul.mubr.msk.bf16.gmra.mxu1 %vm724_vm2, %v14572_v16 }
  0xb7   : > { %10174 = vmatprep.mubr.msk.bf16.mxu1 %vm724_vm2, %v14573_v48 }
  0xbc   : > { %10133 = vmatmul.mubr.msk.bf16.gmra.mxu0 %vm724_vm2, %v14574_v34 }
  0xbd   : > { %10136 = vmatprep.mubr.msk.bf16.mxu0 %vm724_vm2, %v14575_v3  ;;  %v3168_v3 = vrot.slane %v3166_v24, 2 }
  0xbe   : > { %10175 = vmatmul.mubr.msk.bf16.gmra.mxu1 %vm724_vm2, %v14576_v30  ;;  %v3171_v30 = vrot.slane %v3169_v23, 3 }
  0xbf   : > { %10178 = vmatprep.mubr.msk.bf16.mxu1 %vm724_vm2, %v14577_v38  ;;  %v11864_v38 = vld [vmem:[%s11117_s21 + $0x38] sm:$0xff]  }
  0xc4   : > { %10137 = vmatmul.mubr.msk.bf16.gmra.mxu0 %vm724_vm2, %v14578_v21 }
  0xc5   : > { %10140 = vmatprep.mubr.msk.bf16.mxu0 %vm724_vm2, %v14579_v62 }
  0xc6   : > { %10179 = vmatmul.mubr.msk.bf16.gmra.mxu1 %vm724_vm2, %v14580_v25 }
  0xc7   : > { %10182 = vmatprep.mubr.msk.bf16.mxu1 %vm724_vm2, %v11591_v61  ;;  %v11812_v61 = vcombine.low %v2693_v49, %v11807_v45  ;;  %v3175_v49 = vshrl.u32 %v11858_v4, 16 }
  0xc9   : > { %v3140_v36 = vshrl.u32 %v11812_v61, 16  ;;  %v3143_v41 = vshll.u32 %v11812_v61, 16  ;;  %v2825_v25 = vrot.slane %v11812_v61, 2 }
  0xcb   : > { %v3142_v6 = vrot.slane %v3140_v36, 2  ;;  %v3145_v26 = vrot.slane %v3143_v41, 3  ;;  %v3184_v36 = vshrl.u32 %v11864_v38, 16  ;;  %v3187_v41 = vshll.u32 %v11864_v38, 16 }
  0xcc   : > { %10141 = vmatmul.mubr.msk.bf16.gmra.mxu0 %vm724_vm2, %v14581_v39 }
  0xcd   : > { %10144 = vmatprep.mubr.msk.bf16.mxu0 %vm724_vm2, %v11599_v33  ;;  %v3146_v13 = vor.u32 %v3145_v26, %v3142_v6  ;;  %v11889_v26 = vld [vmem:[%s11117_s21 + $0x40] sm:$0xff]   ;;  %v3186_v5 = vrot.slane %v3184_v36, 2 }
  0xce   : > { %10183 = vmatmul.mubr.msk.bf16.gmra.mxu1 %vm724_vm2, %v11594_v22  ;;  %v3196_v24 = vshll.u32 %v11889_v26, 16 }
  0xcf   : > { %10186 = vmatprep.mubr.msk.bf16.mxu1 %vm724_vm2, %v14582_v20  ;;  %v3163_v20 = vor.u32 %v3162_v1, %v3159_v29 }
  0xd4   : > { %10145 = vmatmul.mubr.msk.bf16.gmra.mxu0 %vm724_vm2, %v14583_v27  ;;  %v3178_v27 = vshll.u32 %v11858_v4, 16 }
  0xd5   : > { %10148 = vmatprep.mubr.msk.bf16.mxu0 %vm724_vm2, %v11623_v18  ;;  %v10012_v22 = vpop.f32.mrf.mxu1 }
  0xd6   : > { %10187 = vmatmul.mubr.msk.bf16.gmra.mxu1 %vm724_vm2, %v11619_v19  ;;  %v14584_v19 = vld [vmem:[#allocation26_spill] sm:$0xff]  ;;  %v3180_v6 = vrot.slane %v3178_v27, 3  ;;  %v11922_v27 = vld [vmem:[%s11117_s21 + $0x58] sm:$0xff]  }
  0xd7   : > { %v1036_v33 = vpop.f32.mrf.mxu1  ;;  %10190 = vmatprep.mubr.msk.bf16.mxu1 %vm724_vm2, %v11648_v17  ;;  %v3150_v17 = vrot.slane %v3148_v15, 2  ;;  %v2108_v15 = vsel %vm14532_vm5, %v11664_v35, %v2107_v14  ;;  %v3189_v35 = vrot.slane %v3187_v41, 3  ;;  %v3198_v14 = vrot.slane %v3196_v24, 3  ;;  %v11946_v24 = vld [vmem:[%s11117_s21 + $0x60] sm:$0xff]   ;;  %vm12802_vm5 = vmor %vm14540_vm14, %vm4203_vm15 }
  0xd8   : > { %v2834_v41 = vrot.slane %v11864_v38, 2  ;;  %14585 = vst [vmem:[#allocation12_spill] sm:$0xff] %v11946_v24  ;;  %vm14543_vm14 = vsmask.f32 3338 }
  0xd9   : > { %v10013_v52 = vpop.f32.mrf.mxu1  ;;  %v3154_v28 = vor.u32 %v3153_v2, %v3150_v17  ;;  %v3190_v55 = vor.u32 %v3189_v35, %v3186_v5 }
  0xdb   : > { %v1039_v18 = vpop.f32.mrf.mxu1  ;;  %v3155_v34 = vsel %vm14533_vm7, %v3146_v13, %v3154_v28 }
  0xdc   : > { %v9974_v63 = vpop.f32.mrf.mxu0  ;;  %10149 = vmatmul.mubr.msk.bf16.gmra.mxu0 %vm724_vm2, %v14584_v19  ;;  %v3177_v19 = vrot.slane %v3175_v49, 2 }
  0xdd   : > { %v11836_v57 = vadd.f32 %v10012_v22, %v9974_v63  ;;  %10152 = vmatprep.mubr.msk.bf16.mxu0 %vm724_vm2, %v11656_v59  ;;  %v3164_v63 = vsel %vm14533_vm7, %v3154_v28, %v3163_v20  ;;  %v3193_v28 = vshrl.u32 %v11889_v26, 16 }
  0xde   : > { %v820_v42 = vpop.f32.mrf.mxu0  ;;  %v10016_v9 = vpop.f32.mrf.mxu1  ;;  %10191 = vmatmul.mubr.msk.bf16.gmra.mxu1 %vm724_vm2, %v11651_v46  ;;  %v3181_v13 = vor.u32 %v3180_v6, %v3177_v19  ;;  %v3220_v6 = vshrl.u32 %v11922_v27, 16 }
  0xdf   : > { %v11842_v47 = vadd.f32 %v1036_v33, %v820_v42  ;;  %10194 = vmatprep.mubr.msk.bf16.mxu1 %vm724_vm2, %v11680_v31  ;;  %v3172_v33 = vor.u32 %v3171_v30, %v3168_v3  ;;  %v11894_v42 = vld [vmem:[%s11117_s21 + $0x48] sm:$0xff]   ;;  %v3195_v30 = vrot.slane %v3193_v28, 2 }
  0xe0   : > { %v9975_v10 = vpop.f32.mrf.mxu0  ;;  %v1052_v59 = vpop.f32.mrf.mxu1 }
  0xe1   : > { %v11850_v46 = vadd.f32 %v10013_v52, %v9975_v10  ;;  %v3173_v60 = vsel %vm14533_vm7, %v3163_v20, %v3172_v33  ;;  %v2830_v10 = vrot.slane %v11834_v53, 2  ;;  %v3182_v3 = vsel %vm14533_vm7, %v3172_v33, %v3181_v13 }
  0xe2   : > { %v823_v31 = vpop.f32.mrf.mxu0  ;;  %v10017_v51 = vpop.f32.mrf.mxu1  ;;  %v3191_v20 = vsel %vm14533_vm7, %v3181_v13, %v3190_v55 }
  0xe3   : > { %v11852_v40 = vadd.f32 %v1039_v18, %v823_v31  ;;  %v3202_v31 = vshrl.u32 %v11894_v42, 16 }
  0xe4   : > { %v9978_v16 = vpop.f32.mrf.mxu0  ;;  %10153 = vmatmul.mubr.msk.bf16.gmra.mxu0 %vm724_vm2, %v11661_v54  ;;  %v1055_v48 = vpop.f32.mrf.mxu1  ;;  %v2826_v54 = vrot.slane %v11815_v0, 2 }
  0xe5   : > { %v11866_v21 = vadd.f32 %v10016_v9, %v9978_v16  ;;  %10156 = vmatprep.mubr.msk.bf16.mxu0 %vm724_vm2, %v11668_v7  ;;  %v3204_v49 = vrot.slane %v3202_v31, 2 }
  0xe6   : > { %v836_v43 = vpop.f32.mrf.mxu0  ;;  %v10020_v62 = vpop.f32.mrf.mxu1  ;;  %10195 = vmatmul.mubr.msk.bf16.gmra.mxu1 %vm724_vm2, %v2422_v58  ;;  %v2827_v32 = vsel %vm14534_vm6, %v2825_v25, %v2826_v54  ;;  %v2829_v29 = vsel %vm14534_vm6, %v2826_v54, %v2828_v44 }
  0xe7   : > { %v11873_v39 = vadd.f32 %v1052_v59, %v836_v43  ;;  %10238 = vmatprep.mubr.msk.bf16.mxu1 %vm724_vm2, %v3155_v34  ;;  %v11917_v43 = vld [vmem:[%s11117_s21 + $0x50] sm:$0xff]  }
  0xe8   : > { %v9979_v7 = vpop.f32.mrf.mxu0  ;;  %v1068_v22 = vpop.f32.mrf.mxu1 }
  0xe9   : > { %v11880_v61 = vadd.f32 %v10017_v51, %v9979_v7  ;;  %v3205_v51 = vshll.u32 %v11894_v42, 16 }
  0xea   : > { %v839_v37 = vpop.f32.mrf.mxu0  ;;  %v10021_v52 = vpop.f32.mrf.mxu1 }
  0xeb   : > { %v11885_v18 = vadd.f32 %v1055_v48, %v839_v37  ;;  %v2831_v48 = vsel %vm14534_vm6, %v2828_v44, %v2830_v10  ;;  %v3207_v54 = vrot.slane %v3205_v51, 3  ;;  %v3199_v37 = vor.u32 %v3198_v14, %v3195_v30 }
  0xec   : > { %v9982_v17 = vpop.f32.mrf.mxu0  ;;  %10157 = vmatmul.mubr.msk.bf16.gmra.mxu0 %vm724_vm2, %v2108_v15  ;;  %v1071_v2 = vpop.f32.mrf.mxu1  ;;  %v3222_v51 = vrot.slane %v3220_v6, 2 }
  0xed   : > { %v11896_v9 = vadd.f32 %v10020_v62, %v9982_v17  ;;  %10200 = vmatprep.mubr.msk.bf16.mxu0 %vm724_vm2, %v2827_v32  ;;  %v3208_v19 = vor.u32 %v3207_v54, %v3204_v49  ;;  %v3223_v17 = vshll.u32 %v11922_v27, 16 }
  0xee   : > { %v852_v11 = vpop.f32.mrf.mxu0  ;;  %v10024_v8 = vpop.f32.mrf.mxu1  ;;  %10239 = vmatmul.mubr.msk.bf16.vlgmr.msra.gmra.mxu1 %vm724_vm2, %v3164_v63 }
  0xef   : > { %v11902_v59 = vadd.f32 %v1068_v22, %v852_v11  ;;  %10242 = vmatprep.mubr.msk.bf16.mxu1 %vm724_vm2, %v3173_v60  ;;  %v2832_v22 = vrot.slane %v11858_v4, 2  ;;  %v3209_v31 = vsel %vm14533_vm7, %v3199_v37, %v3208_v19 }
  0xf0   : > { %v9983_v23 = vpop.f32.mrf.mxu0  ;;  %v1084_v12 = vpop.f32.mrf.mxu1 }
  0xf1   : > { %v11909_v58 = vadd.f32 %v10021_v52, %v9983_v23  ;;  %v3211_v52 = vshrl.u32 %v11917_v43, 16  ;;  %v2833_v60 = vsel %vm14534_vm6, %v2830_v10, %v2832_v22  ;;  %v2835_v44 = vsel %vm14534_vm6, %v2832_v22, %v2834_v41 }
  0xf2   : > { %v855_v1 = vpop.f32.mrf.mxu0  ;;  %v10025_v16 = vpop.f32.mrf.mxu1  ;;  %v3225_v10 = vrot.slane %v3223_v17, 3 }
  0xf3   : > { %v11913_v34 = vadd.f32 %v1071_v2, %v855_v1  ;;  %v3213_v13 = vrot.slane %v3211_v52, 2 }
  0xf4   : > { %v9986_v62 = vpop.f32.mrf.mxu0  ;;  %10201 = vmatmul.mubr.msk.bf16.vlgmr.msra.gmra.mxu0 %vm724_vm2, %v2829_v29  ;;  %v1087_v25 = vpop.f32.mrf.mxu1  ;;  %v11951_v29 = vld [vmem:[%s11117_s21 + $0x68] sm:$0xff]   ;;  %v3226_v54 = vor.u32 %v3225_v10, %v3222_v51  ;;  %v2842_v51 = vrot.slane %v11922_v27, 2 }
  0xf5   : > { %v11924_v7 = vadd.f32 %v10024_v8, %v9986_v62  ;;  %10275 = vmatpush3.bf16.msra.mxu0 %v11761_v50  ;;  %10204 = vmatprep.mubr.msk.bf16.mxu0 %vm724_vm2, %v2831_v48  ;;  %v3214_v50 = vshll.u32 %v11917_v43, 16  ;;  %v3200_v8 = vsel %vm14533_vm7, %v3190_v55, %v3199_v37  ;;  %14586 = vst [vmem:[#allocation11_spill] sm:$0xff] %v11951_v29  ;;  %v2836_v55 = vrot.slane %v11889_v26, 2 }
  0xf6   : > { %v868_v33 = vpop.f32.mrf.mxu0  ;;  %v10028_v36 = vpop.f32.mrf.mxu1  ;;  %10243 = vmatmul.mubr.msk.bf16.gmra.mxu1 %vm724_vm2, %v3182_v3  ;;  %v2838_v3 = vrot.slane %v11894_v42, 2  ;;  %v3229_v62 = vshrl.u32 %v11946_v24, 16  ;;  %v3238_v22 = vshrl.u32 %v11951_v29, 16 }
  0xf7   : > { %v11931_v15 = vadd.f32 %v1084_v12, %v868_v33  ;;  %10246 = vmatprep.mubr.msk.bf16.mxu1 %vm724_vm2, %v3191_v20  ;;  %v3216_v28 = vrot.slane %v3214_v50, 3  ;;  %v3241_v33 = vshll.u32 %v11951_v29, 16  ;;  %v2837_v37 = vsel %vm14534_vm6, %v2834_v41, %v2836_v55 }
  0xf8   : > { %v9987_v32 = vpop.f32.mrf.mxu0  ;;  %v1100_v63 = vpop.f32.mrf.mxu1  ;;  %v3231_v17 = vrot.slane %v3229_v62, 2 }
  0xf9   : > { %v11938_v2 = vadd.f32 %v10025_v16, %v9987_v32  ;;  %v3217_v14 = vor.u32 %v3216_v28, %v3213_v13  ;;  %v2839_v32 = vsel %vm14534_vm6, %v2836_v55, %v2838_v3  ;;  %v3240_v13 = vrot.slane %v3238_v22, 2  ;;  %v11979_v28 = vld [vmem:[%s11117_s21 + $0x78] sm:$0xff]  }
  0xfa   : > { %v871_v5 = vpop.f32.mrf.mxu0  ;;  %v10029_v35 = vpop.f32.mrf.mxu1  ;;  %v3243_v41 = vrot.slane %v3241_v33, 3  ;;  %14588 = vst [vmem:[#allocation13_spill] sm:$0xff] %v11979_v28  ;;  %v3259_v22 = vshll.u32 %v11979_v28, 16 }
  0xfb   : > { %v11942_v11 = vadd.f32 %v1087_v25, %v871_v5  ;;  %v3232_v25 = vshll.u32 %v11946_v24, 16  ;;  %v3218_v6 = vsel %vm14533_vm7, %v3208_v19, %v3217_v14  ;;  %v11974_v5 = vld [vmem:[%s11117_s21 + $0x70] sm:$0xff]   ;;  %v2840_v19 = vrot.slane %v11917_v43, 2 }
  0xfc   : > { %v9990_v23 = vpop.f32.mrf.mxu0  ;;  %10205 = vmatmul.mubr.msk.bf16.gmra.mxu0 %vm724_vm2, %v2833_v60  ;;  %v1103_v12 = vpop.f32.mrf.mxu1  ;;  %14587 = vst [vmem:[#allocation14_spill] sm:$0xff] %v11974_v5 }
  0xfd   : > { %v11953_v1 = vadd.f32 %v10028_v36, %v9990_v23  ;;  %10208 = vmatprep.mubr.msk.bf16.mxu0 %vm724_vm2, %v2835_v44  ;;  %v3234_v60 = vrot.slane %v3232_v25, 3  ;;  %v3244_v25 = vor.u32 %v3243_v41, %v3240_v13 }
  0xfe   : > { %v884_v16 = vpop.f32.mrf.mxu0  ;;  %v10032_v48 = vpop.f32.mrf.mxu1  ;;  %10247 = vmatmul.mubr.msk.bf16.gmra.mxu1 %vm724_vm2, %v3200_v8  ;;  %v3227_v8 = vsel %vm14533_vm7, %v3217_v14, %v3226_v54 }
  0xff   : > { %v11959_v30 = vadd.f32 %v1100_v63, %v884_v16  ;;  %10250 = vmatprep.mubr.msk.bf16.mxu1 %vm724_vm2, %v3209_v31  ;;  %v3235_v55 = vor.u32 %v3234_v60, %v3231_v17  ;;  %v3247_v16 = vshrl.u32 %v11974_v5, 16 }
 0x100   : > { %v9991_v20 = vpop.f32.mrf.mxu0  ;;  %v1116_v49 = vpop.f32.mrf.mxu1 }
 0x101   : > { %v11966_v36 = vadd.f32 %v10029_v35, %v9991_v20  ;;  %v3256_v20 = vshrl.u32 %v11979_v28, 16  ;;  %v3236_v17 = vsel %vm14533_vm7, %v3226_v54, %v3235_v55  ;;  %v3249_v60 = vrot.slane %v3247_v16, 2 }
 0x102   : > { %v887_v52 = vpop.f32.mrf.mxu0  ;;  %v10033_v50 = vpop.f32.mrf.mxu1  ;;  %v3245_v41 = vsel %vm14533_vm7, %v3235_v55, %v3244_v25  ;;  %v2844_v54 = vrot.slane %v11946_v24, 2  ;;  %v2846_v16 = vrot.slane %v11951_v29, 2 }
 0x103   : > { %v11970_v63 = vadd.f32 %v1103_v12, %v887_v52 }
 0x104   : > { %v9994_v44 = vpop.f32.mrf.mxu0  ;;  %10209 = vmatmul.mubr.msk.bf16.gmra.mxu0 %vm724_vm2, %v2837_v37  ;;  %v1119_v35 = vpop.f32.mrf.mxu1 }
 0x105   : > { %v11981_v23 = vadd.f32 %v10032_v48, %v9994_v44  ;;  %10212 = vmatprep.mubr.msk.bf16.mxu0 %vm724_vm2, %v2839_v32  ;;  %v3250_v48 = vshll.u32 %v11974_v5, 16  ;;  %v2843_v32 = vsel %vm14534_vm6, %v2840_v19, %v2842_v51 }
 0x106   : > { %v900_v12 = vpop.f32.mrf.mxu0  ;;  %v10036_v31 = vpop.f32.mrf.mxu1  ;;  %10251 = vmatmul.mubr.msk.bf16.gmra.mxu1 %vm724_vm2, %v3218_v6 }
 0x107   : > { %v11987_v10 = vadd.f32 %v1116_v49, %v900_v12  ;;  %10254 = vmatprep.mubr.msk.bf16.mxu1 %vm724_vm2, %v3227_v8  ;;  %v2841_v49 = vsel %vm14534_vm6, %v2838_v3, %v2840_v19  ;;  %v3252_v44 = vrot.slane %v3250_v48, 3  ;;  %v12002_v8 = vld [vmem:[%s11117_s21 + $0x80] sm:$0xff]   ;;  %v3258_v12 = vrot.slane %v3256_v20, 2 }
 0x108   : > { %v9995_v14 = vpop.f32.mrf.mxu0  ;;  %v1132_v62 = vpop.f32.mrf.mxu1  ;;  %v3261_v3 = vrot.slane %v3259_v22, 3  ;;  %v3265_v20 = vshrl.u32 %v12002_v8, 16 }
 0x109   : > { %v11994_v33 = vadd.f32 %v10033_v50, %v9995_v14  ;;  %v12007_v14 = vld [vmem:[%s11117_s21 + $0x88] sm:$0xff]   ;;  %v3253_v55 = vor.u32 %v3252_v44, %v3249_v60  ;;  %v2847_v60 = vsel %vm14534_vm6, %v2844_v54, %v2846_v16 }
 0x10a   : > { %v903_v37 = vpop.f32.mrf.mxu0  ;;  %v10037_v52 = vpop.f32.mrf.mxu1  ;;  %v3267_v29 = vrot.slane %v3265_v20, 2  ;;  %v2850_v20 = vrot.slane %v11979_v28, 2 }
 0x10b   : > { %14589 = vst [vmem:[#allocation16_spill] sm:$0xff] %v11994_v33  ;;  %v11998_v6 = vadd.f32 %v1119_v35, %v903_v37  ;;  %v3262_v37 = vor.u32 %v3261_v3, %v3258_v12  ;;  %v12030_v12 = vld [vmem:[%s11117_s21 + $0x90] sm:$0xff]  }
 0x10c   : > { %v9998_v13 = vpop.f32.mrf.mxu0  ;;  %10213 = vmatmul.mubr.msk.bf16.gmra.mxu0 %vm724_vm2, %v2841_v49  ;;  %v1135_v50 = vpop.f32.mrf.mxu1  ;;  %14594 = vst [vmem:[#allocation19_spill] sm:$0xff] %v12030_v12 }
 0x10d   : > { %14590 = vst [vmem:[#allocation15_spill] sm:$0xff] %v11998_v6  ;;  %v12009_v33 = vadd.f32 %v10036_v31, %v9998_v13  ;;  %10216 = vmatprep.mubr.msk.bf16.mxu0 %vm724_vm2, %v2843_v32  ;;  %v3268_v31 = vshll.u32 %v12002_v8, 16  ;;  %v3274_v32 = vshrl.u32 %v12007_v14, 16  ;;  %v3277_v13 = vshll.u32 %v12007_v14, 16 }
 0x10e   : > { %v916_v35 = vpop.f32.mrf.mxu0  ;;  %v10040_v19 = vpop.f32.mrf.mxu1  ;;  %10255 = vmatmul.mubr.msk.bf16.gmra.mxu1 %vm724_vm2, %v3236_v17 }
 0x10f   : > { %14591 = vst [vmem:[#allocation18_spill] sm:$0xff] %v12009_v33  ;;  %v12015_v48 = vadd.f32 %v1132_v62, %v916_v35  ;;  %10258 = vmatprep.mubr.msk.bf16.mxu1 %vm724_vm2, %v3245_v41  ;;  %v2845_v62 = vsel %vm14534_vm6, %v2842_v51, %v2844_v54  ;;  %v3270_v24 = vrot.slane %v3268_v31, 3  ;;  %v3279_v51 = vrot.slane %v3277_v13, 3  ;;  %v12035_v33 = vld [vmem:[%s11117_s21 + $0x98] sm:$0xff]  }
 0x110   : > { %v9999_v22 = vpop.f32.mrf.mxu0  ;;  %v1148_v49 = vpop.f32.mrf.mxu1  ;;  %14595 = vst [vmem:[#allocation22_spill] sm:$0xff] %v12035_v33 }
 0x111   : > { %14592 = vst [vmem:[#allocation17_spill] sm:$0xff] %v12015_v48  ;;  %v12022_v17 = vadd.f32 %v10037_v52, %v9999_v22  ;;  %v3254_v48 = vsel %vm14533_vm7, %v3244_v25, %v3253_v55  ;;  %v3263_v22 = vsel %vm14533_vm7, %v3253_v55, %v3262_v37  ;;  %v2848_v25 = vrot.slane %v11974_v5, 2 }
 0x112   : > { %v919_v35 = vpop.f32.mrf.mxu0  ;;  %v10041_v41 = vpop.f32.mrf.mxu1  ;;  %v3271_v55 = vor.u32 %v3270_v24, %v3267_v29 }
 0x113   : > { %14593 = vst [vmem:[#allocation20_spill] sm:$0xff] %v12022_v17  ;;  %v12026_v44 = vadd.f32 %v1135_v50, %v919_v35  ;;  %v3276_v17 = vrot.slane %v3274_v32, 2  ;;  %v3283_v32 = vshrl.u32 %v12030_v12, 16  ;;  %v2851_v24 = vsel %vm14534_vm6, %v2848_v25, %v2850_v20 }
 0x114   : > { %v10002_v3 = vpop.f32.mrf.mxu0  ;;  %10217 = vmatmul.mubr.msk.bf16.gmra.mxu0 %vm724_vm2, %v2845_v62  ;;  %v1151_v52 = vpop.f32.mrf.mxu1 }
 0x115   : > { %v12037_v6 = vadd.f32 %v10040_v19, %v10002_v3  ;;  %10220 = vmatprep.mubr.msk.bf16.mxu0 %vm724_vm2, %v2847_v60  ;;  %v3286_v19 = vshll.u32 %v12030_v12, 16  ;;  %v3280_v35 = vor.u32 %v3279_v51, %v3276_v17  ;;  %v3292_v60 = vshrl.u32 %v12035_v33, 16 }
 0x116   : > { %v932_v50 = vpop.f32.mrf.mxu0  ;;  %v10044_v54 = vpop.f32.mrf.mxu1  ;;  %10259 = vmatmul.mubr.msk.bf16.gmra.mxu1 %vm724_vm2, %v3254_v48  ;;  %v3295_v3 = vshll.u32 %v12035_v33, 16  ;;  %v3285_v28 = vrot.slane %v3283_v32, 2  ;;  %v2854_v32 = vrot.slane %v12007_v14, 2 }
 0x117   : > { %14596 = vst [vmem:[#allocation21_spill] sm:$0xff] %v12037_v6  ;;  %v12043_v31 = vadd.f32 %v1148_v49, %v932_v50  ;;  %10262 = vmatprep.mubr.msk.bf16.mxu1 %vm724_vm2, %v3263_v22  ;;  %v2849_v49 = vsel %vm14534_vm6, %v2846_v16, %v2848_v25  ;;  %v3272_v22 = vsel %vm14533_vm7, %v3262_v37, %v3271_v55  ;;  %v3288_v5 = vrot.slane %v3286_v19, 3  ;;  %v12058_v6 = vld [vmem:[%s11117_s21 + $0xa0] ss:$0 sps:$4 sm:$0x77]  }
 0x118   : > { %v10003_v13 = vpop.f32.mrf.mxu0  ;;  %v1164_v62 = vpop.f32.mrf.mxu1  ;;  %14599 = vst [vmem:[#allocation24_spill] sm:$0xff] %v12058_v6  ;;  %v3294_v16 = vrot.slane %v3292_v60, 2 }
 0x119   : > { %14597 = vst [vmem:[#allocation23_spill] sm:$0xff] %v12043_v31  ;;  %v12050_v48 = vadd.f32 %v10041_v41, %v10003_v13  ;;  %v3281_v41 = vsel %vm14533_vm7, %v3271_v55, %v3280_v35  ;;  %v3297_v13 = vrot.slane %v3295_v3, 3  ;;  %v3301_v55 = vshrl.u32 %v12058_v6, 16 }
 0x11a   : > { %v935_v50 = vpop.f32.mrf.mxu0  ;;  %v10045_v31 = vpop.f32.mrf.mxu1 }
 0x11b   : > { %14598 = vst [vmem:[#allocation25_spill] sm:$0xff] %v12050_v48  ;;  %v12054_v29 = vadd.f32 %v1151_v52, %v935_v50  ;;  %v2852_v52 = vrot.slane %v12002_v8, 2  ;;  %v3298_v50 = vor.u32 %v3297_v13, %v3294_v16 }
 0x11c   : > { %v10006_v17 = vpop.f32.mrf.mxu0  ;;  %10221 = vmatmul.mubr.msk.bf16.gmra.mxu0 %vm724_vm2, %v2849_v49  ;;  %v12061_v51 = vpop.f32.mrf.mxu1  ;;  %v3289_v49 = vor.u32 %v3288_v5, %v3285_v28 }
 0x11d   : > { %14600 = vst [vmem:[#allocation26_spill] sm:$0xff] %v12061_v51  ;;  %v12064_v48 = vadd.f32 %v10044_v54, %v10006_v17  ;;  %10224 = vmatprep.mubr.msk.bf16.mxu0 %vm724_vm2, %v2851_v24  ;;  %v3304_v54 = vshll.u32 %v12058_v6, 16  ;;  %v2853_v17 = vsel %vm14534_vm6, %v2850_v20, %v2852_v52  ;;  %v2856_v20 = vrot.slane %v12030_v12, 2 }
 0x11e   : > { %v948_v37 = vpop.f32.mrf.mxu0  ;;  %v10088_v25 = vpop.f32.mrf.mxu1  ;;  %10263 = vmatmul.mubr.msk.bf16.gmra.mxu1 %vm724_vm2, %v3272_v22 }
 0x11f   : > { %v12070_v19 = vadd.f32 %v1164_v62, %v948_v37  ;;  %10266 = vmatprep.mubr.msk.bf16.mxu1 %vm724_vm2, %v3281_v41  ;;  %v2855_v62 = vsel %vm14534_vm6, %v2852_v52, %v2854_v32  ;;  %v3290_v37 = vsel %vm14533_vm7, %v3280_v35, %v3289_v49  ;;  %v3303_v41 = vrot.slane %v3301_v55, 2 }
 0x120   : > { %v10007_v60 = vpop.f32.mrf.mxu0  ;;  %v1753_v3 = vpop.f32.mrf.mxu1  ;;  %v3306_v5 = vrot.slane %v3304_v54, 3  ;;  %v2858_v35 = vrot.slane %v12035_v33, 2 }
 0x121   : > { %v12075_v24 = vadd.f32 %v10045_v31, %v10007_v60  ;;  %v3299_v31 = vsel %vm14533_vm7, %v3289_v49, %v3298_v50  ;;  %v3579_v60 = vld [vmem:[%s11117_s21 + $0x10] sm:$0x8] }
 0x122   : > { %v12078_v51 = vpop.f32.mrf.mxu0  ;;  %v10089_v22 = vpop.f32.mrf.mxu1  ;;  %v3307_v49 = vor.u32 %v3306_v5, %v3303_v41  ;;  %v2859_v33 = vsel %vm14534_vm6, %v2856_v20, %v2858_v35 }
 0x123   : > { %14601 = vst [vmem:[#allocation27_spill] sm:$0xff] %v12078_v51  ;;  %v2857_v51 = vsel %vm14534_vm6, %v2854_v32, %v2856_v20 }
 0x124   : > { %v10050_v28 = vpop.f32.mrf.mxu0  ;;  %10225 = vmatmul.mubr.msk.bf16.gmra.mxu0 %vm724_vm2, %v2853_v17  ;;  %v12083_v6 = vpop.f32.mrf.mxu1  ;;  %v3308_v5 = vsel %vm14533_vm7, %v3298_v50, %v3307_v49  ;;  %vm4241_vm7 = vcmask 518145  }
 0x125   : > { %14602 = vst [vmem:[#allocation28_spill] sm:$0xff] %v12083_v6  ;;  %v1459_v16 = vadd.f32 %v10050_v28, %v11836_v57  ;;  %10228 = vmatprep.mubr.msk.bf16.mxu0 %vm724_vm2, %v2855_v62  ;;  %v10715_v6 = vld [vmem:[%s11117_s21 + $0xa0] ss:$0 sps:$4 sm:$0x33]  }
 0x126   : > { %v1314_v13 = vpop.f32.mrf.mxu0  ;;  %v10092_v52 = vpop.f32.mrf.mxu1  ;;  %10267 = vmatmul.mubr.msk.bf16.gmra.mxu1 %vm724_vm2, %v3290_v37 }
 0x127   : > { %v1457_v55 = vadd.f32 %v1314_v13, %v11842_v47  ;;  %v12092_v54 = vadd.f32 %v10088_v25, %v1459_v16  ;;  %10270 = vmatprep.mubr.msk.bf16.mxu1 %vm724_vm2, %v3299_v31  ;;  %v9157_v47 = vcombine.low %v3579_v60, %v11807_v45 }
 0x128   : > { %v10051_v57 = vpop.f32.mrf.mxu0  ;;  %v1769_v17 = vpop.f32.mrf.mxu1 }
 0x129   : > { %v1460_v62 = vadd.f32 %v10051_v57, %v11850_v46  ;;  %v12097_v28 = vadd.f32 %v1753_v3, %v1457_v55  ;;  %v2860_v3 = vrot.slane %v10715_v6, 2  ;;  %v3586_v45 = vrot.slane %v9157_v47, 3 }
 0x12a   : > { %v1317_v37 = vpop.f32.mrf.mxu0  ;;  %v10093_v12 = vpop.f32.mrf.mxu1 }
 0x12b   : > { %v12104_v25 = vadd.f32 %v1317_v37, %v11852_v40  ;;  %v12106_v41 = vadd.f32 %v10089_v22, %v1460_v62  ;;  %v3587_v40 = vrot.slane %v11815_v0, 3  ;;  %v3591_v37 = vrot.slane %v11834_v53, 3 }
 0x12c   : > { %v10054_v31 = vpop.f32.mrf.mxu0  ;;  %10229 = vmatmul.mubr.msk.bf16.gmra.mxu0 %vm724_vm2, %v2857_v51  ;;  %v12110_v46 = vpop.f32.mrf.mxu1 }
 0x12d   : > { %v1463_v32 = vadd.f32 %v10054_v31, %v11866_v21  ;;  %10232 = vmatprep.mubr.msk.bf16.mxu0 %vm724_vm2, %v2859_v33  ;;  %v2861_v33 = vsel %vm14534_vm6, %v2858_v35, %v2860_v3  ;;  %v3588_v60 = vsel %vm14531_vm8, %v3586_v45, %v3587_v40  ;;  %v3589_v35 = vrot.slane %v11829_v56, 3 }
 0x12e   : > { %v1330_v16 = vpop.f32.mrf.mxu0  ;;  %v10096_v20 = vpop.f32.mrf.mxu1  ;;  %10271 = vmatmul.mubr.msk.bf16.gmra.mxu1 %vm724_vm2, %v3308_v5  ;;  %vm14541_vm6 = vsmask.f32 2310 }
 0x12f   : > { %v1461_v22 = vadd.f32 %v1330_v16, %v11873_v39  ;;  %v12117_v50 = vadd.f32 %v10092_v52, %v1463_v32  ;;  %v3592_v56 = vsel %vm14531_vm8, %v3589_v35, %v3591_v37  ;;  %vm12881_vm9 = vmand %vm4241_vm7, %vm14541_vm6  ;;  %vm14546_vm6 = vsmask.f32 7950 }
 0x130   : > { %v10055_v51 = vpop.f32.mrf.mxu0  ;;  %v1785_v13 = vpop.f32.mrf.mxu1 }
 0x131   : > { %v1464_v55 = vadd.f32 %v10055_v51, %v11880_v61  ;;  %v12120_v21 = vadd.f32 %v1769_v17, %v1461_v22 }
 0x132   : > { %v1333_v6 = vpop.f32.mrf.mxu0  ;;  %v10097_v49 = vpop.f32.mrf.mxu1 }
 0x133   : > { %v12125_v57 = vadd.f32 %v1333_v6, %v11885_v18  ;;  %v12127_v0 = vadd.f32 %v10093_v12, %v1464_v55 }
 0x134   : > { %v10058_v39 = vpop.f32.mrf.mxu0  ;;  %10233 = vmatmul.mubr.msk.bf16.gmra.mxu0 %vm724_vm2, %v2861_v33  ;;  %v12130_v52 = vpop.f32.mrf.mxu1 }
 0x135   : > { %v1467_v61 = vadd.f32 %v10058_v39, %v11896_v9  ;;  %10276 = vmatprep.mubr.msk.bf16.mxu0 %vm724_vm2, %v3588_v60  ;;  %v3590_v9 = vsel %vm14531_vm8, %v3587_v40, %v3589_v35  ;;  %v3593_v40 = vrot.slane %v11858_v4, 3 }
 0x136   : > { %v1346_v17 = vpop.f32.mrf.mxu0  ;;  %v10100_v62 = vpop.f32.mrf.mxu1 }
 0x137   : > { %v1465_v18 = vadd.f32 %v1346_v17, %v11902_v59  ;;  %v12137_v47 = vadd.f32 %v10096_v20, %v1467_v61 }
 0x138   : > { %v10059_v12 = vpop.f32.mrf.mxu0  ;;  %v1801_v5 = vpop.f32.mrf.mxu1 }
 0x139   : > { %v1468_v31 = vadd.f32 %v10059_v12, %v11909_v58  ;;  %v12140_v32 = vadd.f32 %v1785_v13, %v1465_v18  ;;  %v3595_v13 = vrot.slane %v11864_v38, 3  ;;  %v3599_v12 = vrot.slane %v11894_v42, 3 }
 0x13a   : > { %v1349_v3 = vpop.f32.mrf.mxu0  ;;  %v10101_v16 = vpop.f32.mrf.mxu1 }
 0x13b   : > { %v12145_v45 = vadd.f32 %v1349_v3, %v11913_v34  ;;  %v12147_v53 = vadd.f32 %v10097_v49, %v1468_v31  ;;  %v3596_v4 = vsel %vm14531_vm8, %v3593_v40, %v3595_v13 }
 0x13c   : > { %v10062_v59 = vpop.f32.mrf.mxu0  ;;  %10277 = vmatmul.mubr.msk.bf16.vlgmr.msra.gmra.mxu0 %vm724_vm2, %v3590_v9  ;;  %v12150_v20 = vpop.f32.mrf.mxu1 }
 0x13d   : > { %v1471_v58 = vadd.f32 %v10062_v59, %v11924_v7  ;;  %10280 = vmatprep.mubr.msk.bf16.mxu0 %vm724_vm2, %v3592_v56  ;;  %v3594_v7 = vsel %vm14531_vm8, %v3591_v37, %v3593_v40 }
 0x13e   : > { %v1362_v22 = vpop.f32.mrf.mxu0  ;;  %v10104_v51 = vpop.f32.mrf.mxu1 }
 0x13f   : > { %v1469_v34 = vadd.f32 %v1362_v22, %v11931_v15  ;;  %v12157_v55 = vadd.f32 %v10100_v62, %v1471_v58  ;;  %v3597_v62 = vrot.slane %v11889_v26, 3  ;;  %v3601_v22 = vrot.slane %v11917_v43, 3 }
 0x140   : > { %v10063_v33 = vpop.f32.mrf.mxu0  ;;  %v1817_v6 = vpop.f32.mrf.mxu1 }
 0x141   : > { %v1472_v49 = vadd.f32 %v10063_v33, %v11938_v2  ;;  %v12160_v60 = vadd.f32 %v1801_v5, %v1469_v34  ;;  %v3600_v26 = vsel %vm14531_vm8, %v3597_v62, %v3599_v12  ;;  %v3603_v34 = vrot.slane %v11922_v27, 3 }
 0x142   : > { %v1365_v39 = vpop.f32.mrf.mxu0  ;;  %v10105_v61 = vpop.f32.mrf.mxu1 }
 0x143   : > { %v12165_v35 = vadd.f32 %v1365_v39, %v11942_v11  ;;  %v12167_v38 = vadd.f32 %v10101_v16, %v1472_v49  ;;  %v3604_v43 = vsel %vm14531_vm8, %v3601_v22, %v3603_v34 }
 0x144   : > { %v10066_v15 = vpop.f32.mrf.mxu0  ;;  %10281 = vmatmul.mubr.msk.bf16.gmra.mxu0 %vm724_vm2, %v3594_v7  ;;  %v12170_v17 = vpop.f32.mrf.mxu1  ;;  %v14605_v7 = vld [vmem:[#allocation16_spill] sm:$0xff] }
 0x145   : > { %14603 = vst [vmem:[#allocation29_spill] sm:$0xff] %v12170_v17  ;;  %v1475_v2 = vadd.f32 %v10066_v15, %v11953_v1  ;;  %10284 = vmatprep.mubr.msk.bf16.mxu0 %vm724_vm2, %v3596_v4  ;;  %v3598_v1 = vsel %vm14531_vm8, %v3595_v13, %v3597_v62 }
 0x146   : > { %v1378_v37 = vpop.f32.mrf.mxu0  ;;  %v10108_v18 = vpop.f32.mrf.mxu1 }
 0x147   : > { %v1473_v11 = vadd.f32 %v1378_v37, %v11959_v30  ;;  %v12177_v5 = vadd.f32 %v10104_v51, %v1475_v2  ;;  %v14606_v2 = vld [vmem:[#allocation15_spill] sm:$0xff] }
 0x148   : > { %v10067_v31 = vpop.f32.mrf.mxu0  ;;  %v1833_v9 = vpop.f32.mrf.mxu1 }
 0x149   : > { %v1476_v3 = vadd.f32 %v10067_v31, %v11966_v36  ;;  %v12180_v16 = vadd.f32 %v1817_v6, %v1473_v11  ;;  %v14610_v31 = vld [vmem:[#allocation12_spill] sm:$0xff] }
 0x14a   : > { %v1381_v56 = vpop.f32.mrf.mxu0  ;;  %v10109_v59 = vpop.f32.mrf.mxu1 }
 0x14b   : > { %v12185_v58 = vadd.f32 %v1381_v56, %v11970_v63  ;;  %v12187_v42 = vadd.f32 %v10105_v61, %v1476_v3 }
 0x14c   : > { %v10070_v30 = vpop.f32.mrf.mxu0  ;;  %10285 = vmatmul.mubr.msk.bf16.gmra.mxu0 %vm724_vm2, %v3598_v1  ;;  %v12190_v40 = vpop.f32.mrf.mxu1  ;;  %v14611_v1 = vld [vmem:[#allocation11_spill] sm:$0xff] }
 0x14d   : > { %14604 = vst [vmem:[#allocation30_spill] sm:$0xff] %v12190_v40  ;;  %v1479_v36 = vadd.f32 %v10070_v30, %v11981_v23  ;;  %10288 = vmatprep.mubr.msk.bf16.mxu0 %vm724_vm2, %v3600_v26  ;;  %v3602_v23 = vsel %vm14531_vm8, %v3599_v12, %v3601_v22  ;;  %v3605_v12 = vrot.slane %v14610_v31, 3  ;;  %v3607_v56 = vrot.slane %v14611_v1, 3  ;;  %v14612_v26 = vld [vmem:[#allocation17_spill] sm:$0xff] }
 0x14e   : > { %v1394_v51 = vpop.f32.mrf.mxu0  ;;  %v10112_v13 = vpop.f32.mrf.mxu1  ;;  %v14618_v1 = vld [vmem:[#allocation13_spill] sm:$0xff] }
 0x14f   : > { %v1477_v63 = vadd.f32 %v1394_v51, %v11987_v10  ;;  %v12197_v33 = vadd.f32 %v10108_v18, %v1479_v36  ;;  %v14609_v18 = vld [vmem:[#allocation18_spill] sm:$0xff]  ;;  %v14613_v51 = vld [vmem:[#allocation20_spill] sm:$0xff] }
 0x150   : > { %v10071_v6 = vpop.f32.mrf.mxu0  ;;  %v1849_v49 = vpop.f32.mrf.mxu1 }
 0x151   : > { %v1480_v39 = vadd.f32 %v10071_v6, %v14605_v7  ;;  %v12200_v61 = vadd.f32 %v1833_v9, %v1477_v63  ;;  %v3606_v7 = vsel %vm14531_vm8, %v3603_v34, %v3605_v12 }
 0x152   : > { %v1397_v4 = vpop.f32.mrf.mxu0  ;;  %v10113_v15 = vpop.f32.mrf.mxu1 }
 0x153   : > { %v12205_v62 = vadd.f32 %v1397_v4, %v14606_v2  ;;  %v12207_v27 = vadd.f32 %v10109_v59, %v1480_v39  ;;  %v3608_v4 = vsel %vm14531_vm8, %v3605_v12, %v3607_v56  ;;  %v3611_v12 = vrot.slane %v14618_v1, 3 }
 0x154   : > { %v10074_v10 = vpop.f32.mrf.mxu0  ;;  %10289 = vmatmul.mubr.msk.bf16.gmra.mxu0 %vm724_vm2, %v3602_v23  ;;  %v12210_v37 = vpop.f32.mrf.mxu1 }
 0x155   : > { %14607 = vst [vmem:[#allocation16_spill] sm:$0xff] %v12205_v62  ;;  %14608 = vst [vmem:[#allocation15_spill] sm:$0xff] %v12210_v37  ;;  %v1483_v11 = vadd.f32 %v10074_v10, %v14609_v18  ;;  %10292 = vmatprep.mubr.msk.bf16.mxu0 %vm724_vm2, %v3604_v43  ;;  %v14616_v18 = vld [vmem:[#allocation21_spill] sm:$0xff] }
 0x156   : > { %v1410_v9 = vpop.f32.mrf.mxu0  ;;  %v10116_v3 = vpop.f32.mrf.mxu1 }
 0x157   : > { %v1481_v30 = vadd.f32 %v1410_v9, %v14612_v26  ;;  %v12217_v36 = vadd.f32 %v10112_v13, %v1483_v11  ;;  %v14619_v26 = vld [vmem:[#allocation23_spill] sm:$0xff] }
 0x158   : > { %v10075_v59 = vpop.f32.mrf.mxu0  ;;  %v1865_v22 = vpop.f32.mrf.mxu1 }
 0x159   : > { %v1484_v63 = vadd.f32 %v10075_v59, %v14613_v51  ;;  %v12220_v6 = vadd.f32 %v1849_v49, %v1481_v30  ;;  %v14617_v49 = vld [vmem:[#allocation14_spill] sm:$0xff]  ;;  %v14620_v51 = vld [vmem:[#allocation25_spill] sm:$0xff] }
 0x15a   : > { %v1413_v39 = vpop.f32.mrf.mxu0  ;;  %v10117_v23 = vpop.f32.mrf.mxu1  ;;  %v3609_v34 = vrot.slane %v14617_v49, 3 }
 0x15b   : > { %v12225_v43 = vadd.f32 %v1413_v39, %v12026_v44  ;;  %v12227_v2 = vadd.f32 %v10113_v15, %v1484_v63 }
 0x15c   : > { %v10078_v10 = vpop.f32.mrf.mxu0  ;;  %10293 = vmatmul.mubr.msk.bf16.gmra.mxu0 %vm724_vm2, %v3606_v7  ;;  %v12230_v13 = vpop.f32.mrf.mxu1  ;;  %v3610_v39 = vsel %vm14531_vm8, %v3607_v56, %v3609_v34  ;;  %v3613_v56 = vrot.slane %v12002_v8, 3 }
 0x15d   : > { %14614 = vst [vmem:[#allocation18_spill] sm:$0xff] %v12225_v43  ;;  %14615 = vst [vmem:[#allocation12_spill] sm:$0xff] %v12230_v13  ;;  %v1487_v11 = vadd.f32 %v10078_v10, %v14616_v18  ;;  %10296 = vmatprep.mubr.msk.bf16.mxu0 %vm724_vm2, %v3608_v4  ;;  %v3612_v18 = vsel %vm14531_vm8, %v3609_v34, %v3611_v12  ;;  %v3615_v34 = vrot.slane %v12007_v14, 3 }
 0x15e   : > { %v1426_v31 = vpop.f32.mrf.mxu0  ;;  %v10120_v9 = vpop.f32.mrf.mxu1 }
 0x15f   : > { %v1485_v44 = vadd.f32 %v1426_v31, %v14619_v26  ;;  %v12237_v30 = vadd.f32 %v10116_v3, %v1487_v11  ;;  %v3616_v8 = vsel %vm14531_vm8, %v3613_v56, %v3615_v34 }
 0x160   : > { %v10079_v15 = vpop.f32.mrf.mxu0  ;;  %v1881_v59 = vpop.f32.mrf.mxu1 }
 0x161   : > { %v1488_v63 = vadd.f32 %v10079_v15, %v14620_v51  ;;  %v12240_v7 = vadd.f32 %v1865_v22, %v1485_v44 }
 0x162   : > { %v1429_v10 = vpop.f32.mrf.mxu0  ;;  %v10121_v4 = vpop.f32.mrf.mxu1 }
 0x163   : > { %v12245_v49 = vadd.f32 %v1429_v10, %v12054_v29  ;;  %v12247_v1 = vadd.f32 %v10117_v23, %v1488_v63 }
 0x164   : > { %v10082_v31 = vpop.f32.mrf.mxu0  ;;  %10297 = vmatmul.mubr.msk.bf16.gmra.mxu0 %vm724_vm2, %v3610_v39  ;;  %v12250_v3 = vpop.f32.mrf.mxu1 }
 0x165   : > { %14621 = vst [vmem:[#allocation11_spill] sm:$0xff] %v12245_v49  ;;  %14622 = vst [vmem:[#allocation17_spill] sm:$0xff] %v12250_v3  ;;  %v1491_v11 = vadd.f32 %v10082_v31, %v12064_v48  ;;  %10300 = vmatprep.mubr.msk.bf16.mxu0 %vm724_vm2, %v3612_v18  ;;  %v3614_v48 = vsel %vm14531_vm8, %v3611_v12, %v3613_v56 }
 0x166   : > { %v1442_v22 = vpop.f32.mrf.mxu0  ;;  %v10164_v26 = vpop.f32.mrf.mxu1 }
 0x167   : > { %v1489_v29 = vadd.f32 %v1442_v22, %v12070_v19  ;;  %v12257_v44 = vadd.f32 %v10120_v9, %v1491_v11  ;;  %v14624_v11 = vld [vmem:[#allocation22_spill] sm:$0xff] }
 0x168   : > { %v10083_v23 = vpop.f32.mrf.mxu0  ;;  %v2514_v15 = vpop.f32.mrf.mxu1  ;;  %v3619_v22 = vrot.slane %v14624_v11, 3 }
 0x169   : > { %v1492_v51 = vadd.f32 %v10083_v23, %v12075_v24  ;;  %v12260_v63 = vadd.f32 %v1881_v59, %v1489_v29  ;;  %v14623_v24 = vld [vmem:[#allocation19_spill] sm:$0xff] }
 0x16a   : > { %v12263_v39 = vpop.f32.mrf.mxu0  ;;  %v10165_v10 = vpop.f32.mrf.mxu1  ;;  %v3617_v59 = vrot.slane %v14623_v24, 3 }
 0x16b   : > { %v12266_v18 = vadd.f32 %v10121_v4, %v1492_v51 }
 0x16c   : > { %v10126_v14 = vpop.f32.mrf.mxu0  ;;  %10301 = vmatmul.mubr.msk.bf16.gmra.mxu0 %vm724_vm2, %v3614_v48  ;;  %v12269_v19 = vpop.f32.mrf.mxu1  ;;  %v3620_v24 = vsel %vm14531_vm8, %v3617_v59, %v3619_v22 }
 0x16d   : > { %v2345_v9 = vadd.f32 %v10126_v14, %v12092_v54  ;;  %10304 = vmatprep.mubr.msk.bf16.mxu0 %vm724_vm2, %v3616_v8  ;;  %v3618_v54 = vsel %vm14531_vm8, %v3615_v34, %v3617_v59 }
 0x16e   : > { %v2200_v31 = vpop.f32.mrf.mxu0  ;;  %v10168_v12 = vpop.f32.mrf.mxu1 }
 0x16f   : > { %v2343_v29 = vadd.f32 %v2200_v31, %v12097_v28  ;;  %v12276_v56 = vadd.f32 %v10164_v26, %v2345_v9 }
 0x170   : > { %v10127_v4 = vpop.f32.mrf.mxu0  ;;  %v2530_v23 = vpop.f32.mrf.mxu1 }
 0x171   : > { %v2346_v51 = vadd.f32 %v10127_v4, %v12106_v41  ;;  %v12279_v48 = vadd.f32 %v2514_v15, %v2343_v29  ;;  %v14625_v41 = vld [vmem:[#allocation24_spill] sm:$0xff] }
 0x172   : > { %v12282_v14 = vpop.f32.mrf.mxu0  ;;  %v10169_v8 = vpop.f32.mrf.mxu1  ;;  %v3621_v15 = vrot.slane %v14625_v41, 3 }
 0x173   : > { %v12285_v3 = vadd.f32 %v10165_v10, %v2346_v51 }
 0x174   : > { %v10130_v11 = vpop.f32.mrf.mxu0  ;;  %10305 = vmatmul.mubr.msk.bf16.gmra.mxu0 %vm724_vm2, %v3618_v54  ;;  %v12288_v28 = vpop.f32.mrf.mxu1  ;;  %v3622_v54 = vsel %vm14531_vm8, %v3619_v22, %v3621_v15  ;;  %vm4233_vm8 = vsmask.f32 7942 }
 0x175   : > { %v2349_v26 = vadd.f32 %v10130_v11, %v12117_v50  ;;  %10308 = vmatprep.mubr.msk.bf16.mxu0 %vm724_vm2, %v3620_v24  ;;  %vm12839_vm15 = vmand %vm4017_vm13, %vm4233_vm8  ;;  %vm4302_vm8 = vcmask 518144  }
 0x176   : > { %v2216_v9 = vpop.f32.mrf.mxu0  ;;  %v10172_v34 = vpop.f32.mrf.mxu1 }
 0x177   : > { %v2347_v31 = vadd.f32 %v2216_v9, %v12120_v21  ;;  %v12294_v29 = vadd.f32 %v10168_v12, %v2349_v26 }
 0x178   : > { %v10131_v59 = vpop.f32.mrf.mxu0  ;;  %v2546_v10 = vpop.f32.mrf.mxu1 }
 0x179   : > { %v2350_v4 = vadd.f32 %v10131_v59, %v12127_v0  ;;  %v12297_v51 = vadd.f32 %v2530_v23, %v2347_v31 }
 0x17a   : > { %v12300_v13 = vpop.f32.mrf.mxu0  ;;  %v10173_v50 = vpop.f32.mrf.mxu1 }
 0x17b   : > { %v12302_v24 = vadd.f32 %v10169_v8, %v2350_v4 }
 0x17c   : > { %v10134_v11 = vpop.f32.mrf.mxu0  ;;  %10309 = vmatmul.mubr.msk.bf16.gmra.mxu0 %vm724_vm2, %v3622_v54  ;;  %v12305_v41 = vpop.f32.mrf.mxu1  ;;  %vm14545_vm2 = vcmask 523264  }
 0x17d   : > { %v2353_v21 = vadd.f32 %v10134_v11, %v12137_v47 }
 0x17e   : > { %v2232_v12 = vpop.f32.mrf.mxu0  ;;  %v10176_v26 = vpop.f32.mrf.mxu1 }
 0x17f   : > { %v2351_v0 = vadd.f32 %v2232_v12, %v12140_v32  ;;  %v12309_v23 = vadd.f32 %v10172_v34, %v2353_v21 }
 0x180   : > { %v10135_v9 = vpop.f32.mrf.mxu0  ;;  %v2562_v22 = vpop.f32.mrf.mxu1 }
 0x181   : > { %v2354_v15 = vadd.f32 %v10135_v9, %v12147_v53  ;;  %v12312_v31 = vadd.f32 %v2546_v10, %v2351_v0 }
 0x182   : > { %v12314_v8 = vpop.f32.mrf.mxu0  ;;  %v10177_v59 = vpop.f32.mrf.mxu1 }
 0x183   : > { %v12316_v4 = vadd.f32 %v10173_v50, %v2354_v15 }
 0x184   : > { %v10138_v54 = vpop.f32.mrf.mxu0  ;;  %v12318_v49 = vpop.f32.mrf.mxu1 }
 0x185   : > { %14626 = vst [vmem:[#allocation20_spill] sm:$0xff] %v12318_v49  ;;  %v2357_v47 = vadd.f32 %v10138_v54, %v12157_v55 }
 0x186   : > { %v2248_v11 = vpop.f32.mrf.mxu0  ;;  %v10180_v32 = vpop.f32.mrf.mxu1 }
 0x187   : > { %v2355_v34 = vadd.f32 %v2248_v11, %v12160_v60  ;;  %v12322_v21 = vadd.f32 %v10176_v26, %v2357_v47 }
 0x188   : > { %v10139_v12 = vpop.f32.mrf.mxu0  ;;  %v2578_v53 = vpop.f32.mrf.mxu1 }
 0x189   : > { %v2358_v10 = vadd.f32 %v10139_v12, %v12167_v38  ;;  %v12325_v0 = vadd.f32 %v2562_v22, %v2355_v34 }
 0x18a   : > { %v12327_v9 = vpop.f32.mrf.mxu0  ;;  %v10181_v50 = vpop.f32.mrf.mxu1 }
 0x18b   : > { %14627 = vst [vmem:[#allocation21_spill] sm:$0xff] %v12327_v9  ;;  %v12329_v15 = vadd.f32 %v10177_v59, %v2358_v10 }
 0x18c   : > { %v10142_v49 = vpop.f32.mrf.mxu0  ;;  %v12331_v37 = vpop.f32.mrf.mxu1 }
 0x18d   : > { %14628 = vst [vmem:[#allocation14_spill] sm:$0xff] %v12331_v37  ;;  %v2361_v55 = vadd.f32 %v10142_v49, %v12177_v5 }
 0x18e   : > { %v2264_v54 = vpop.f32.mrf.mxu0  ;;  %v10184_v60 = vpop.f32.mrf.mxu1 }
 0x18f   : > { %v2359_v26 = vadd.f32 %v2264_v54, %v12180_v16  ;;  %v12335_v47 = vadd.f32 %v10180_v32, %v2361_v55 }
 0x190   : > { %v10143_v11 = vpop.f32.mrf.mxu0  ;;  %v2594_v38 = vpop.f32.mrf.mxu1 }
 0x191   : > { %v2362_v22 = vadd.f32 %v10143_v11, %v12187_v42  ;;  %v12338_v34 = vadd.f32 %v2578_v53, %v2359_v26 }
 0x192   : > { %v12340_v12 = vpop.f32.mrf.mxu0  ;;  %v10185_v59 = vpop.f32.mrf.mxu1 }
 0x193   : > { %14629 = vst [vmem:[#allocation13_spill] sm:$0xff] %v12340_v12  ;;  %v12342_v10 = vadd.f32 %v10181_v50, %v2362_v22 }
 0x194   : > { %v10146_v37 = vpop.f32.mrf.mxu0  ;;  %v12344_v9 = vpop.f32.mrf.mxu1 }
 0x195   : > { %14630 = vst [vmem:[#allocation23_spill] sm:$0xff] %v12344_v9  ;;  %v2365_v5 = vadd.f32 %v10146_v37, %v12197_v33 }
 0x196   : > { %v2280_v49 = vpop.f32.mrf.mxu0  ;;  %v10188_v16 = vpop.f32.mrf.mxu1 }
 0x197   : > { %v2363_v32 = vadd.f32 %v2280_v49, %v12200_v61  ;;  %v12348_v55 = vadd.f32 %v10184_v60, %v2365_v5 }
 0x198   : > { %v10147_v54 = vpop.f32.mrf.mxu0  ;;  %v2610_v42 = vpop.f32.mrf.mxu1 }
 0x199   : > { %v2366_v53 = vadd.f32 %v10147_v54, %v12207_v27  ;;  %v12351_v26 = vadd.f32 %v2594_v38, %v2363_v32 }
 0x19a   : > { %v12353_v11 = vpop.f32.mrf.mxu0  ;;  %v10189_v50 = vpop.f32.mrf.mxu1 }
 0x19b   : > { %14631 = vst [vmem:[#allocation25_spill] sm:$0xff] %v12353_v11  ;;  %v12355_v22 = vadd.f32 %v10185_v59, %v2366_v53 }
 0x19c   : > { %v10150_v9 = vpop.f32.mrf.mxu0  ;;  %v12357_v12 = vpop.f32.mrf.mxu1 }
 0x19d   : > { %14632 = vst [vmem:[#allocation19_spill] sm:$0xff] %v12357_v12  ;;  %v2369_v33 = vadd.f32 %v10150_v9, %v12217_v36 }
 0x19e   : > { %v2296_v37 = vpop.f32.mrf.mxu0  ;;  %v10192_v61 = vpop.f32.mrf.mxu1 }
 0x19f   : > { %v2367_v60 = vadd.f32 %v2296_v37, %v12220_v6  ;;  %v12361_v5 = vadd.f32 %v10188_v16, %v2369_v33 }
 0x1a0   : > { %v10151_v49 = vpop.f32.mrf.mxu0  ;;  %v2626_v27 = vpop.f32.mrf.mxu1 }
 0x1a1   : > { %v2370_v38 = vadd.f32 %v10151_v49, %v12227_v2  ;;  %v12364_v32 = vadd.f32 %v2610_v42, %v2367_v60 }
 0x1a2   : > { %v12366_v54 = vpop.f32.mrf.mxu0  ;;  %v10193_v59 = vpop.f32.mrf.mxu1 }
 0x1a3   : > { %14633 = vst [vmem:[#allocation22_spill] sm:$0xff] %v12366_v54  ;;  %v12368_v53 = vadd.f32 %v10189_v50, %v2370_v38  ;;  %v14635_v50 = vmov 0 }
 0x1a4   : > { %v10154_v12 = vpop.f32.mrf.mxu0  ;;  %v12370_v11 = vpop.f32.mrf.mxu1  ;;  %v14636_v50 = vsel %vm12381_vm11, 4294967295, %v14635_v50 }
 0x1a5   : > { %14634 = vst [vmem:[#allocation24_spill] sm:$0xff] %v12370_v11  ;;  %v2373_v36 = vadd.f32 %v10154_v12, %v12237_v30  ;;  %14637 = vst [vmem:[#allocation31_spill] sm:$0xff] %v14636_v50  ;;  %v4014_v30 = vld [vmem:[#allocation2 + $0x4] sm:$0x3] }
 0x1a6   : > { %v2312_v9 = vpop.f32.mrf.mxu0  ;;  %v10196_v6 = vpop.f32.mrf.mxu1 }
 0x1a7   : > { %v2371_v16 = vadd.f32 %v2312_v9, %v12240_v7  ;;  %v12374_v33 = vadd.f32 %v10192_v61, %v2373_v36  ;;  %v4015_v61 = vsel %vm12381_vm11, 0, %v4014_v30 }
 0x1a8   : > { %v10155_v37 = vpop.f32.mrf.mxu0  ;;  %v2642_v2 = vpop.f32.mrf.mxu1  ;;  %4016 = vst [vmem:[#allocation2 + $0x4] sm:$0x3] %v4015_v61 }
 0x1a9   : > { %v2374_v42 = vadd.f32 %v10155_v37, %v12247_v1  ;;  %v12377_v60 = vadd.f32 %v2626_v27, %v2371_v16 }
 0x1aa   : > { %v12385_v12 = vpop.f32.mrf.mxu0  ;;  %v10197_v7 = vpop.f32.mrf.mxu1 }
 0x1ab   : > { %14638 = vst [vmem:[#allocation32_spill] sm:$0xff] %v12385_v12  ;;  %v12389_v49 = vadd.f32 %v10193_v59, %v2374_v42 }
 0x1ac   : > { %v10158_v38 = vpop.f32.mrf.mxu0  ;;  %v12391_v1 = vpop.f32.mrf.mxu1 }
 0x1ad   : > { %14639 = vst [vmem:[#allocation33_spill] sm:$0xff] %v12391_v1  ;;  %v2377_v27 = vadd.f32 %v10158_v38, %v12257_v44 }
 0x1ae   : > { %v2328_v36 = vpop.f32.mrf.mxu0  ;;  %v12394_v9 = vpop.f32.mrf.mxu1 }
 0x1af   : > { %v2375_v16 = vadd.f32 %v2328_v36, %v12260_v63  ;;  %v12397_v37 = vadd.f32 %v10196_v6, %v2377_v27  ;;  %v14523_v63 = vmov 0   ;;  %v14525_v27 = vmov 0.0  }
 0x1b0   : > { %v10159_v11 = vpop.f32.mrf.mxu0  ;;  %v12399_v12 = vpop.f32.mrf.mxu1  ;;  %4010 = vst.msk [vmem:[#allocation2] sm:$0xf] %vm4009_vm12, %v14523_v63  ;;  %4019 = vst.msk [vmem:[#allocation2 + $0x30] sm:$0xf] %vm4009_vm12, %v14523_v63  ;;  %10312 = vmatprep.subr.bf16.mxu1 %v14525_v27  ;;  %10368 = vmatprep.subr.bf16.mxu0 %v14525_v27 }
 0x1b1   : > { %v2378_v30 = vadd.f32 %v10159_v11, %v12266_v18  ;;  %v12402_v59 = vadd.f32 %v2642_v2, %v2375_v16  ;;  %4018 = vst.msk [vmem:[#allocation2 + $0x2c] sm:$0xe] %vm4017_vm13, %v14523_v63  ;;  %v10718_v2 = vld [vmem:[%s14502_s3 + $0x38] sm:$0xff]   ;;  %vm4303_vm13 = vsmask.f32 2304 }
 0x1b2   : > { %v12404_v42 = vpop.f32.mrf.mxu0  ;;  %v12406_v61 = vpop.f32.mrf.mxu1  ;;  %10313 = vmatpush3.bf16.msra.mxu1 %v10718_v2 }
 0x1b3   : > { %14640 = vst [vmem:[#allocation34_spill] sm:$0xff] %v12404_v42  ;;  %v12408_v50 = vadd.f32 %v10197_v7, %v2378_v30  ;;  %10314 = vmatprep.subr.bf16.mxu1 %v14525_v27 }
 0x1b4   : > { %v10202_v44 = vpop.f32.mrf.mxu0  ;;  %v12410_v38 = vpop.f32.mrf.mxu1 }
 0x1b5   : > { %v12419_v18 = vadd.f32 %v10202_v44, %v12276_v56 }
 0x1b6   : > { %v2953_v11 = vpop.f32.mrf.mxu0  ;;  %v12421_v6 = vpop.f32.mrf.mxu1 }
 0x1b7   : > { %v12427_v7 = vadd.f32 %v2953_v11, %v12279_v48 }
 0x1b8   : > { %v10203_v36 = vpop.f32.mrf.mxu0  ;;  %v12431_v16 = vpop.f32.mrf.mxu1 }
 0x1b9   : > { %v12434_v56 = vadd.f32 %v10203_v36, %v12285_v3 }
 0x1ba   : > { %v12437_v30 = vpop.f32.mrf.mxu0  ;;  %v12439_v44 = vpop.f32.mrf.mxu1 }
 0x1bc   : > { %v10206_v48 = vpop.f32.mrf.mxu0  ;;  %v12447_v42 = vpop.f32.mrf.mxu1 }
 0x1bd   : > { %v12442_v11 = vadd.f32 %v10206_v48, %v12294_v29  ;;  %v10719_v29 = vld [vmem:[%s14502_s3 + $0x30] sm:$0xff]  }
 0x1be   : > { %v2969_v63 = vpop.f32.mrf.mxu0  ;;  %v12454_v27 = vpop.f32.mrf.mxu1  ;;  %10315 = vmatpush3.bf16.msra.mxu1 %v10719_v29 }
 0x1bf   : > { %v12445_v1 = vadd.f32 %v2969_v63, %v12297_v51 }
 0x1c0   : > { %v10207_v2 = vpop.f32.mrf.mxu0  ;;  %v12465_v48 = vpop.f32.mrf.mxu1 }
 0x1c1   : > { %v12450_v3 = vadd.f32 %v10207_v2, %v12302_v24  ;;  %14641 = vst [vmem:[#allocation35_spill] sm:$0xff] %v12465_v48  ;;  %v14642_v2 = vmov 0.0  }
 0x1c2   : > { %v12452_v36 = vpop.f32.mrf.mxu0  ;;  %10316 = vmatprep.subr.bf16.mxu1 %v14642_v2  ;;  %10376 = vmatprep.mubr.msk.bf16.mxu0 %vm14535_vm1, %v14642_v2 }
 0x1c3   : > { %10320 = vmatprep.mubr.msk.bf16.mxu1 %vm14535_vm1, %v14642_v2  ;;  %vm4274_vm1 = vsmask.f32 5392 }
 0x1c4   : > { %v10210_v54 = vpop.f32.mrf.mxu0  ;;  %vm12892_vm7 = vmor %vm14542_vm10, %vm4274_vm1 }
 0x1c5   : > { %v12457_v43 = vadd.f32 %v10210_v54, %v12309_v23  ;;  %v12473_v23 = vpop.f32.mrf.mxu1  ;;  %vm12902_vm1 = vmand %vm4302_vm8, %vm4303_vm13  ;;  %vm4360_vm13 = vcmask 519171  }
 0x1c6   : > { %v2985_v51 = vpop.f32.mrf.mxu0  ;;  %vm12936_vm8 = vmand %vm4296_vm3, %vm14544_vm4 }
 0x1c7   : > { %v12463_v63 = vadd.f32 %v2985_v51, %v12312_v31  ;;  %v10721_v31 = vld [vmem:[%s14502_s3 + $0x58] sm:$0xff]   ;;  %v12481_v29 = vpop.f32.mrf.mxu1  ;;  %vm12944_vm10 = vmand %vm4296_vm3, %vm14543_vm14  ;;  %vm4424_vm3 = vsmask.f32 7938  ;;  %vm14723_vm14 = vsmask.f32 3328 }
 0x1c8   : > { %v10211_v24 = vpop.f32.mrf.mxu0  ;;  %10369 = vmatpush3.bf16.msra.mxu0 %v10721_v31  ;;  %vm12964_vm4 = vmand %vm4009_vm12, %vm14723_vm14  ;;  %vm14547_vm14 = vsmask.f32 1282 }
 0x1c9   : > { %v12469_v40 = vadd.f32 %v10211_v24, %v12316_v4  ;;  %10370 = vmatprep.subr.bf16.mxu0 %v14642_v2  ;;  %v12500_v31 = vpop.f32.mrf.mxu1 }
 0x1ca   : > { %v12471_v62 = vpop.f32.mrf.mxu0 }
 0x1cc   : > { %v10214_v54 = vpop.f32.mrf.mxu0 }
 0x1cd   : > { %v12476_v17 = vadd.f32 %v10214_v54, %v12322_v21  ;;  %v10722_v21 = vld [vmem:[%s14502_s3 + $0x50] sm:$0xff]  }
 0x1ce   : > { %v3001_v51 = vpop.f32.mrf.mxu0  ;;  %10371 = vmatpush3.bf16.msra.mxu0 %v10722_v21  ;;  %v12518_v21 = vpop.f32.mrf.mxu1 }
 0x1cf   : > { %14643 = vst [vmem:[#allocation36_spill] sm:$0xff] %v12476_v17  ;;  %v12484_v48 = vadd.f32 %v3001_v51, %v12325_v0  ;;  %v14647_v17 = vmov 0  ;;  %v4377_v0 = vld [vmem:[#allocation2 + $0x14] sm:$0x1]  ;;  %10372 = vmatprep.subr.bf16.mxu0 %v14642_v2  ;;  %14651 = vst [vmem:[#allocation42_spill] sm:$0xff] %v12518_v21 }
 0x1d0   : > { %v10215_v4 = vpop.f32.mrf.mxu0  ;;  %v14648_v17 = vsel %vm12496_vm0, 4294967295, %v14647_v17 }
 0x1d1   : > { %14644 = vst [vmem:[#allocation37_spill] sm:$0xff] %v12484_v48  ;;  %v12488_v24 = vadd.f32 %v10215_v4, %v12329_v15  ;;  %14649 = vst [vmem:[#allocation40_spill] sm:$0xff] %v14648_v17  ;;  %v4378_v15 = vsel %vm12496_vm0, 0, %v4377_v0  ;;  %v10723_v48 = vld [vmem:[%s14502_s3 + $0x48] sm:$0xff]   ;;  %v10724_v0 = vld [vmem:[%s14502_s3 + $0x20] sm:$0xff]  }
 0x1d2   : > { %v12493_v54 = vpop.f32.mrf.mxu0  ;;  %4379 = vst [vmem:[#allocation2 + $0x14] sm:$0x1] %v4378_v15  ;;  %10373 = vmatpush3.bf16.msra.mxu0 %v10723_v48  ;;  %v10725_v15 = vld [vmem:[%s14502_s3 + $0x40] sm:$0xff]  }
 0x1d3   : > { %14645 = vst [vmem:[#allocation38_spill] sm:$0xff] %v12488_v24  ;;  %14646 = vst [vmem:[#allocation39_spill] sm:$0xff] %v12493_v54  ;;  %v10720_v24 = vld [vmem:[%s14502_s3 + $0x28] sm:$0xff]   ;;  %10374 = vmatprep.subr.bf16.mxu0 %v14642_v2 }
 0x1d4   : > { %v10218_v51 = vpop.f32.mrf.mxu0  ;;  %10317 = vmatpush3.bf16.msra.mxu1 %v10720_v24  ;;  %v12536_v24 = vpop.f32.mrf.mxu1 }
 0x1d5   : > { %v12506_v4 = vadd.f32 %v10218_v51, %v12335_v47  ;;  %10318 = vmatprep.subr.bf16.mxu1 %v14642_v2  ;;  %14654 = vst [vmem:[#allocation45_spill] sm:$0xff] %v12536_v24 }
 0x1d6   : > { %v3017_v54 = vpop.f32.mrf.mxu0  ;;  %10375 = vmatpush3.bf16.msra.mxu0 %v10725_v15  ;;  %v12543_v21 = vpop.f32.mrf.mxu1 }
 0x1d7   : > { %14650 = vst [vmem:[#allocation41_spill] sm:$0xff] %v12506_v4  ;;  %v12521_v47 = vadd.f32 %v3017_v54, %v12338_v34  ;;  %10424 = vmatprep.subr.bf16.mxu0 %v14642_v2 }
 0x1d8   : > { %v10219_v51 = vpop.f32.mrf.mxu0  ;;  %10319 = vmatpush3.bf16.msra.mxu1 %v10724_v0  ;;  %v12553_v15 = vpop.f32.mrf.mxu1 }
 0x1d9   : > { %14652 = vst [vmem:[#allocation43_spill] sm:$0xff] %v12521_v47  ;;  %v12532_v4 = vadd.f32 %v10219_v51, %v12342_v10  ;;  %10340 = vmatprep.subr.bf16.mxu1 %v14642_v2 }
 0x1da   : > { %v12534_v34 = vpop.f32.mrf.mxu0 }
 0x1db   : > { %14653 = vst [vmem:[#allocation44_spill] sm:$0xff] %v12532_v4 }
 0x1dc   : > { %v10222_v48 = vpop.f32.mrf.mxu0 }
 0x1dd   : > { %v12541_v54 = vadd.f32 %v10222_v48, %v12348_v55  ;;  %v12558_v48 = vpop.f32.mrf.mxu1 }
 0x1de   : > { %v3033_v47 = vpop.f32.mrf.mxu0 }
 0x1df   : > { %14655 = vst [vmem:[#allocation46_spill] sm:$0xff] %v12541_v54  ;;  %v12546_v10 = vadd.f32 %v3033_v47, %v12351_v26 }
 0x1e0   : > { %v10223_v51 = vpop.f32.mrf.mxu0 }
 0x1e1   : > { %14656 = vst [vmem:[#allocation47_spill] sm:$0xff] %v12546_v10  ;;  %v12549_v4 = vadd.f32 %v10223_v51, %v12355_v22  ;;  %v12568_v51 = vpop.f32.mrf.mxu1 }
 0x1e2   : > { %v12551_v0 = vpop.f32.mrf.mxu0 }
 0x1e3   : > { %14657 = vst [vmem:[#allocation48_spill] sm:$0xff] %v12549_v4 }
 0x1e4   : > { %v10226_v24 = vpop.f32.mrf.mxu0 }
 0x1e5   : > { %v12556_v2 = vadd.f32 %v10226_v24, %v12361_v5  ;;  %v12573_v24 = vpop.f32.mrf.mxu1 }
 0x1e6   : > { %v3049_v55 = vpop.f32.mrf.mxu0 }
 0x1e7   : > { %14658 = vst [vmem:[#allocation49_spill] sm:$0xff] %v12556_v2  ;;  %v12561_v54 = vadd.f32 %v3049_v55, %v12364_v32 }
 0x1e8   : > { %v10227_v26 = vpop.f32.mrf.mxu0 }
 0x1e9   : > { %14659 = vst [vmem:[#allocation50_spill] sm:$0xff] %v12561_v54  ;;  %v12564_v47 = vadd.f32 %v10227_v26, %v12368_v53  ;;  %v12583_v26 = vpop.f32.mrf.mxu1  ;;  %v4588_v54 = vld [vmem:[#allocation2 + $0x28] sm:$0x1] }
 0x1ea   : > { %v12566_v22 = vpop.f32.mrf.mxu0 }
 0x1eb   : > { %14660 = vst [vmem:[#allocation51_spill] sm:$0xff] %v12564_v47  ;;  %14661 = vst [vmem:[#allocation52_spill] sm:$0xff] %v12566_v22  ;;  %v14665_v22 = vld [vmem:[#allocation28_spill] sm:$0xff] }
 0x1ec   : > { %v10230_v4 = vpop.f32.mrf.mxu0 }
 0x1ed   : > { %v12571_v10 = vadd.f32 %v10230_v4, %v12374_v33  ;;  %v1897_v33 = vadd.f32 %v14665_v22, %v12104_v25 }
 0x1ee   : > { %v3065_v5 = vpop.f32.mrf.mxu0 }
 0x1ef   : > { %v12576_v2 = vadd.f32 %v3065_v5, %v12377_v60  ;;  %v4589_v60 = vsel %vm12496_vm0, 0, %v4588_v54  ;;  %v3545_v54 = vadd.f32 %v12394_v9, %v12419_v18  ;;  %v3546_v18 = vadd.f32 %v12406_v61, %v12434_v56 }
 0x1f0   : > { %v10231_v32 = vpop.f32.mrf.mxu0  ;;  %4590 = vst [vmem:[#allocation2 + $0x28] sm:$0x1] %v4589_v60 }
 0x1f1   : > { %14662 = vst [vmem:[#allocation53_spill] sm:$0xff] %v12576_v2  ;;  %v12579_v55 = vadd.f32 %v10231_v32, %v12389_v49  ;;  %v2344_v49 = vadd.f32 %v12282_v14, %v1897_v33  ;;  %v12593_v32 = vpop.f32.mrf.mxu1  ;;  %v1901_v14 = vadd.f32 %v12110_v46, %v12125_v57 }
 0x1f2   : > { %v12581_v53 = vpop.f32.mrf.mxu0 }
 0x1f3   : > { %14663 = vst [vmem:[#allocation54_spill] sm:$0xff] %v12579_v55  ;;  %14664 = vst [vmem:[#allocation55_spill] sm:$0xff] %v12581_v53  ;;  %v2348_v33 = vadd.f32 %v12300_v13, %v1901_v14 }
 0x1f4   : > { %v10234_v47 = vpop.f32.mrf.mxu0 }
 0x1f5   : > { %v12588_v4 = vadd.f32 %v10234_v47, %v12397_v37  ;;  %v2658_v37 = vadd.f32 %v12269_v19, %v2344_v49  ;;  %v12606_v47 = vpop.f32.mrf.mxu1 }
 0x1f6   : > { %v3081_v5 = vpop.f32.mrf.mxu0 }
 0x1f7   : > { %v12596_v55 = vadd.f32 %v3081_v5, %v12402_v59  ;;  %v12613_v59 = vld [vmem:[%s14501_s2] ss:$0 sm:$0xff]  ;;  %v12621_v60 = vpop.f32.mrf.mxu1 }
 0x1f8   : > { %v10235_v2 = vpop.f32.mrf.mxu0 }
 0x1f9   : > { %v12599_v53 = vadd.f32 %v10235_v2, %v12408_v50  ;;  %v3543_v50 = vadd.f32 %v12399_v12, %v12427_v7  ;;  %v3097_v2 = vadd.f32 %v12437_v30, %v2658_v37  ;;  %v2662_v30 = vadd.f32 %v12288_v28, %v2348_v33  ;;  %v12629_v61 = vpop.f32.mrf.mxu1 }
 0x1fa   : > { %v12601_v25 = vpop.f32.mrf.mxu0  ;;  %v3549_v37 = vadd.f32 %v12421_v6, %v12442_v11  ;;  %v3550_v33 = vadd.f32 %v12439_v44, %v12450_v3 }
 0x1fb   : > { %v3544_v49 = vadd.f32 %v12410_v38, %v3097_v2  ;;  %v1905_v38 = vadd.f32 %v12130_v52, %v12145_v45  ;;  %v3101_v28 = vadd.f32 %v12452_v36, %v2662_v30  ;;  %v14667_v36 = vld [vmem:[#allocation26_spill] sm:$0xff] }
 0x1fc   : > { %v10278_v22 = vpop.f32.mrf.mxu0 }
 0x1fd   : > { %v3859_v19 = vadd.f32 %v10278_v22, %v3545_v54  ;;  %v3547_v22 = vadd.f32 %v12431_v16, %v12445_v1  ;;  %v14666_v16 = vld [vmem:[#allocation27_spill] sm:$0xff] }
 0x1fe   : > { %v3714_v9 = vpop.f32.mrf.mxu0 }
 0x1ff   : > { %v3902_v46 = vadd.f32 %v12613_v59, %v3859_v19  ;;  %v3857_v57 = vadd.f32 %v3714_v9, %v3543_v50  ;;  %v12643_v9 = vpop.f32.mrf.mxu1 }
 0x200   : > { %v10279_v5 = vpop.f32.mrf.mxu0 }
 0x201   : > { %v3938_v17 = vmax.f32 %v3902_v46, 0.0  ;;  %v3900_v12 = vadd.f32 %v12613_v59, %v3857_v57  ;;  %v3860_v7 = vadd.f32 %v10279_v5, %v3546_v18  ;;  %v1168_v18 = vadd.f32 %v14667_v36, %v14666_v16  ;;  %v12656_v30 = vpop.f32.mrf.mxu1 }
 0x202   : > { %v3717_v13 = vpop.f32.mrf.mxu0  ;;  %v3548_v57 = vadd.f32 %v12447_v42, %v3101_v28 }
 0x203   : > { %3975 = vst.msk [vmem:[#allocation4 + $0x10] sm:$0xff] %vm14545_vm2, %v3938_v17  ;;  %v3936_v56 = vmax.f32 %v3900_v12, 0.0  ;;  %v3903_v54 = vadd.f32 %v12613_v59, %v3860_v7  ;;  %v3858_v14 = vadd.f32 %v3717_v13, %v3544_v49  ;;  %v2352_v17 = vadd.f32 %v12314_v8, %v1905_v38 }
 0x204   : > { %v10282_v50 = vpop.f32.mrf.mxu0  ;;  %v1490_v3 = vadd.f32 %v12263_v39, %v1168_v18  ;;  %v3553_v7 = vadd.f32 %v12454_v27, %v12457_v43  ;;  %v14671_v27 = vld [vmem:[#allocation35_spill] sm:$0xff] }
 0x205   : > { %3973 = vst.msk [vmem:[#allocation4] sm:$0xff] %vm14545_vm2, %v3936_v56  ;;  %v3939_v6 = vmax.f32 %v3903_v54, 0.0  ;;  %v3901_v11 = vadd.f32 %v12613_v59, %v3858_v14  ;;  %v3863_v2 = vadd.f32 %v10282_v50, %v3549_v37  ;;  %v2666_v49 = vadd.f32 %v12305_v41, %v2352_v17  ;;  %v14668_v54 = vld [vmem:[#allocation29_spill] sm:$0xff]  ;;  %v14669_v14 = vld [vmem:[#allocation16_spill] sm:$0xff]  ;;  %v14670_v41 = vld [vmem:[#allocation30_spill] sm:$0xff] }
 0x206   : > { %v3730_v19 = vpop.f32.mrf.mxu0  ;;  %v1909_v56 = vadd.f32 %v12150_v20, %v12165_v35  ;;  %v1913_v39 = vadd.f32 %v14668_v54, %v12185_v58  ;;  %v1917_v38 = vadd.f32 %v14670_v41, %v14669_v14  ;;  %v3551_v50 = vadd.f32 %v14671_v27, %v12463_v63  ;;  %v14673_v20 = vld [vmem:[#allocation15_spill] sm:$0xff]  ;;  %v14675_v58 = vld [vmem:[#allocation12_spill] sm:$0xff]  ;;  %v12677_v63 = vpop.f32.mrf.mxu1 }
 0x207   : > { %3976 = vst.msk [vmem:[#allocation4 + $0x18] sm:$0xff] %vm14545_vm2, %v3939_v6  ;;  %v3937_v52 = vmax.f32 %v3901_v11, 0.0  ;;  %v3906_v45 = vadd.f32 %v12613_v59, %v3863_v2  ;;  %v3861_v1 = vadd.f32 %v3730_v19, %v3547_v22  ;;  %v3105_v22 = vadd.f32 %v12471_v62, %v2666_v49  ;;  %v14672_v2 = vld [vmem:[#allocation18_spill] sm:$0xff]  ;;  %v14674_v17 = vld [vmem:[#allocation11_spill] sm:$0xff]  ;;  %v14679_v49 = vld [vmem:[#allocation25_spill] sm:$0xff] }
 0x208   : > { %v10283_v46 = vpop.f32.mrf.mxu0  ;;  %v1921_v35 = vadd.f32 %v14673_v20, %v14672_v2  ;;  %v1925_v19 = vadd.f32 %v14675_v58, %v14674_v17  ;;  %v14684_v17 = vld [vmem:[#allocation14_spill] sm:$0xff] }
 0x209   : > { %3974 = vst.msk [vmem:[#allocation4 + $0x8] sm:$0xff] %vm14545_vm2, %v3937_v52  ;;  %v3942_v8 = vmax.f32 %v3906_v45, 0.0  ;;  %v3904_v5 = vadd.f32 %v12613_v59, %v3861_v1  ;;  %v3864_v44 = vadd.f32 %v10283_v46, %v3550_v33  ;;  %v14676_v33 = vld [vmem:[#allocation17_spill] sm:$0xff] }
 0x20a   : > { %v3733_v12 = vpop.f32.mrf.mxu0  ;;  %v1929_v52 = vadd.f32 %v14676_v33, %v1490_v3  ;;  %v14677_v45 = vld [vmem:[#allocation21_spill] sm:$0xff]  ;;  %v3554_v3 = vadd.f32 %v12473_v23, %v12469_v40  ;;  %v14683_v23 = vld [vmem:[#allocation36_spill] sm:$0xff]  ;;  %v14685_v33 = vld [vmem:[#allocation34_spill] sm:$0xff] }
 0x20b   : > { %3979 = vst.msk [vmem:[#allocation4 + $0x30] sm:$0xff] %vm14545_vm2, %v3942_v8  ;;  %v3940_v13 = vmax.f32 %v3904_v5, 0.0  ;;  %v3907_v42 = vadd.f32 %v12613_v59, %v3864_v44  ;;  %v3862_v37 = vadd.f32 %v3733_v12, %v3548_v57  ;;  %v2356_v62 = vadd.f32 %v14677_v45, %v1909_v56  ;;  %v14678_v5 = vld [vmem:[#allocation13_spill] sm:$0xff]  ;;  %v14686_v45 = vld [vmem:[#allocation39_spill] sm:$0xff] }
 0x20c   : > { %v10286_v43 = vpop.f32.mrf.mxu0  ;;  %v2360_v44 = vadd.f32 %v14678_v5, %v1913_v39  ;;  %v2364_v12 = vadd.f32 %v14679_v49, %v1917_v38  ;;  %v14681_v39 = vld [vmem:[#allocation22_spill] sm:$0xff]  ;;  %v14682_v38 = vld [vmem:[#allocation32_spill] sm:$0xff]  ;;  %v14690_v5 = vld [vmem:[#allocation19_spill] sm:$0xff] }
 0x20d   : > { %3977 = vst.msk [vmem:[#allocation4 + $0x20] sm:$0xff] %vm14545_vm2, %v3940_v13  ;;  %v3943_v28 = vmax.f32 %v3907_v42, 0.0  ;;  %v3905_v6 = vadd.f32 %v12613_v59, %v3862_v37  ;;  %v3867_v11 = vadd.f32 %v10286_v43, %v3553_v7  ;;  %v3552_v7 = vadd.f32 %v12481_v29, %v3105_v22  ;;  %v14680_v43 = vld [vmem:[#allocation20_spill] sm:$0xff]  ;;  %v12693_v22 = vpop.f32.mrf.mxu1 }
 0x20e   : > { %v4022_v1 = vld [vmem:[#allocation4 + $0x10] ss:$2 sm:$0xff]  ;;  %v4058_v16 = vld [vmem:[#allocation4 + $0x11] ss:$2 sm:$0xff]  ;;  %v3746_v36 = vpop.f32.mrf.mxu0  ;;  %v2670_v27 = vadd.f32 %v14680_v43, %v2356_v62  ;;  %v3557_v29 = vadd.f32 %v12500_v31, %v14683_v23  ;;  %v2674_v58 = vadd.f32 %v14684_v17, %v2360_v44 }
 0x20f   : > { %v4092_v18 = vmax.f32 %v4022_v1, %v4058_v16  ;;  %3980 = vst.msk [vmem:[#allocation4 + $0x38] sm:$0xff] %vm14545_vm2, %v3943_v28  ;;  %v3941_v46 = vmax.f32 %v3905_v6, 0.0  ;;  %v3910_v57 = vadd.f32 %v12613_v59, %v3867_v11  ;;  %v3865_v8 = vadd.f32 %v3746_v36, %v3551_v50  ;;  %v14687_v16 = vld [vmem:[#allocation23_spill] sm:$0xff]  ;;  %v14688_v36 = vld [vmem:[#allocation37_spill] sm:$0xff] }
 0x210   : > { %v4020_v13 = vld [vmem:[#allocation4] ss:$2 sm:$0xff]  ;;  %v4056_v42 = vld [vmem:[#allocation4 + $0x1] ss:$2 sm:$0xff]  ;;  %v10287_v37 = vpop.f32.mrf.mxu0  ;;  %v2368_v50 = vadd.f32 %v14681_v39, %v1921_v35  ;;  %v2372_v28 = vadd.f32 %v14682_v38, %v1925_v19  ;;  %v2376_v35 = vadd.f32 %v14685_v33, %v1929_v52  ;;  %v3109_v19 = vadd.f32 %v14686_v45, %v2670_v27  ;;  %v14691_v52 = vld [vmem:[#allocation24_spill] sm:$0xff] }
 0x211   : > { %v9656_v56 = vpack.c.bf16 %v4092_v18, %v4092_v18  ;;  %v4091_v54 = vmax.f32 %v4020_v13, %v4056_v42  ;;  %3978 = vst.msk [vmem:[#allocation4 + $0x28] sm:$0xff] %vm14545_vm2, %v3941_v46  ;;  %v3946_v14 = vmax.f32 %v3910_v57, 0.0  ;;  %v3908_v41 = vadd.f32 %v12613_v59, %v3865_v8  ;;  %v14689_v18 = vld [vmem:[#allocation42_spill] sm:$0xff]  ;;  %v14692_v43 = vld [vmem:[#allocation33_spill] sm:$0xff] }
 0x212   : > { %v3868_v6 = vadd.f32 %v10287_v37, %v3554_v3  ;;  %v3749_v40 = vpop.f32.mrf.mxu0  ;;  %v2678_v31 = vadd.f32 %v14687_v16, %v2364_v12  ;;  %v3555_v46 = vadd.f32 %v14689_v18, %v14688_v36  ;;  %v2682_v44 = vadd.f32 %v14690_v5, %v2368_v50  ;;  %v12712_v37 = vpop.f32.mrf.mxu1  ;;  %v14693_v39 = vld [vmem:[#allocation38_spill] sm:$0xff]  ;;  %v14694_v50 = vld [vmem:[#allocation45_spill] sm:$0xff] }
 0x213   : > { %4182 = vst.msk [vmem:[#allocation7 + $0x4] sm:$0xf] %vm4009_vm12, %v9656_v56  ;;  %v9655_v11 = vpack.c.bf16 %v4091_v54, %v4091_v54  ;;  %v3944_v2 = vmax.f32 %v3908_v41, 0.0  ;;  %v3866_v20 = vadd.f32 %v3749_v40, %v3552_v7  ;;  %v12709_v49 = vadd.f32 %v14691_v52, %v2372_v28  ;;  %v14700_v52 = vld [vmem:[#allocation48_spill] sm:$0xff] }
 0x214   : > { %3983 = vst.msk [vmem:[#allocation4 + $0x50] sm:$0xff] %vm14545_vm2, %v3946_v14  ;;  %v3911_v62 = vadd.f32 %v12613_v59, %v3868_v6  ;;  %v10290_v1 = vpop.f32.mrf.mxu0  ;;  %v3113_v3 = vadd.f32 %v12534_v34, %v2674_v58  ;;  %v12716_v27 = vadd.f32 %v14692_v43, %v2376_v35  ;;  %v3558_v38 = vadd.f32 %v14694_v50, %v14693_v39  ;;  %v14695_v34 = vld [vmem:[#allocation41_spill] sm:$0xff]  ;;  %v14696_v58 = vld [vmem:[#allocation43_spill] sm:$0xff]  ;;  %v14697_v35 = vld [vmem:[#allocation44_spill] sm:$0xff]  ;;  %v12732_v16 = vpop.f32.mrf.mxu1 }
 0x215   : > { %4181 = vst.msk [vmem:[#allocation7] sm:$0xf] %vm4009_vm12, %v9655_v11  ;;  %v3909_v57 = vadd.f32 %v12613_v59, %v3866_v20  ;;  %v3871_v8 = vadd.f32 %v10290_v1, %v3557_v29  ;;  %v3556_v28 = vadd.f32 %v12543_v21, %v3109_v19  ;;  %v3561_v6 = vadd.f32 %v12553_v15, %v14695_v34  ;;  %v14704_v34 = vld [vmem:[#allocation51_spill] sm:$0xff] }
 0x216   : > { %3981 = vst.msk [vmem:[#allocation4 + $0x40] sm:$0xff] %vm14545_vm2, %v3944_v2  ;;  %v4026_v7 = vld [vmem:[#allocation4 + $0x30] ss:$2 sm:$0xff]  ;;  %v4062_v13 = vld [vmem:[#allocation4 + $0x31] ss:$2 sm:$0xff]  ;;  %v3947_v12 = vmax.f32 %v3911_v62, 0.0  ;;  %v3762_v42 = vpop.f32.mrf.mxu0  ;;  %v3559_v33 = vadd.f32 %v12558_v48, %v14696_v58  ;;  %v3562_v21 = vadd.f32 %v12568_v51, %v14697_v35  ;;  %v3117_v15 = vadd.f32 %v12551_v0, %v2678_v31  ;;  %v3515_v43 = vpop.f32.mrf.mxu1 }
 0x217   : > { %v4094_v56 = vmax.f32 %v4026_v7, %v4062_v13  ;;  %v3945_v54 = vmax.f32 %v3909_v57, 0.0  ;;  %v3914_v14 = vadd.f32 %v12613_v59, %v3871_v8  ;;  %v3869_v41 = vadd.f32 %v3762_v42, %v3555_v46  ;;  %v14698_v48 = vld [vmem:[#allocation46_spill] sm:$0xff] }
 0x218   : > { %v4024_v40 = vld [vmem:[#allocation4 + $0x20] ss:$2 sm:$0xff]  ;;  %v4060_v23 = vld [vmem:[#allocation4 + $0x21] ss:$2 sm:$0xff]  ;;  %3984 = vst.msk [vmem:[#allocation4 + $0x58] sm:$0xff] %vm14545_vm2, %v3947_v12  ;;  %v10291_v29 = vpop.f32.mrf.mxu0  ;;  %v3560_v1 = vadd.f32 %v12573_v24, %v3113_v3  ;;  %v3565_v57 = vadd.f32 %v12583_v26, %v14698_v48  ;;  %v12745_v3 = vadd.f32 %v12606_v47, %v14700_v52  ;;  %v12751_v13 = vadd.f32 %v12621_v60, %v3117_v15 }
 0x219   : > { %v9658_v11 = vpack.c.bf16 %v4094_v56, %v4094_v56  ;;  %v4093_v2 = vmax.f32 %v4024_v40, %v4060_v23  ;;  %3982 = vst.msk [vmem:[#allocation4 + $0x48] sm:$0xff] %vm14545_vm2, %v3945_v54  ;;  %v3950_v20 = vmax.f32 %v3914_v14, 0.0  ;;  %v3912_v17 = vadd.f32 %v12613_v59, %v3869_v41  ;;  %v14699_v24 = vld [vmem:[#allocation47_spill] sm:$0xff]  ;;  %v14701_v12 = vld [vmem:[#allocation49_spill] sm:$0xff]  ;;  %v14703_v47 = vld [vmem:[#allocation50_spill] sm:$0xff] }
 0x21a   : > { %v3872_v45 = vadd.f32 %v10291_v29, %v3558_v38  ;;  %v3765_v19 = vpop.f32.mrf.mxu0  ;;  %v4200_v62 = vld [vmem:[#allocation7 + $0x4] sm:$0xf]  ;;  %v12741_v5 = vadd.f32 %v12593_v32, %v14699_v24  ;;  %v12755_v42 = vadd.f32 %v12629_v61, %v14701_v12  ;;  %v14702_v32 = vld [vmem:[#allocation52_spill] sm:$0xff]  ;;  %v12760_v41 = vadd.f32 %v12643_v9, %v14703_v47  ;;  %v14706_v48 = vld [vmem:[#allocation53_spill] sm:$0xff] }
 0x21b   : > { %4184 = vst.msk [vmem:[#allocation7 + $0xc] sm:$0xf] %vm4009_vm12, %v9658_v11  ;;  %v9657_v36 = vpack.c.bf16 %v4093_v2, %v4093_v2  ;;  %v3948_v18 = vmax.f32 %v3912_v17, 0.0  ;;  %v3870_v46 = vadd.f32 %v3765_v19, %v3556_v28  ;;  %v4206_v31 = vshrl.u32 %v4200_v62, 16 }
 0x21c   : > { %3987 = vst.msk [vmem:[#allocation4 + $0x70] sm:$0xff] %vm14545_vm2, %v3950_v20  ;;  %v3915_v51 = vadd.f32 %v12613_v59, %v3872_v45  ;;  %v10294_v0 = vpop.f32.mrf.mxu0  ;;  %v4209_v8 = vshll.u32 %v4200_v62, 16  ;;  %v3121_v56 = vadd.f32 %v14702_v32, %v2682_v44  ;;  %v10272_v62 = vpop.f32.mrf.mxu1 }
 0x21d   : > { %4183 = vst.msk [vmem:[#allocation7 + $0x8] sm:$0xf] %vm4009_vm12, %v9657_v36  ;;  %v3913_v26 = vadd.f32 %v12613_v59, %v3870_v46  ;;  %v3875_v7 = vadd.f32 %v10294_v0, %v3561_v6  ;;  %v12765_v6 = vadd.f32 %v12656_v30, %v14704_v34  ;;  %v4208_v29 = vrot.slane %v4206_v31, 4 }
 0x21e   : > { %3985 = vst.msk [vmem:[#allocation4 + $0x60] sm:$0xff] %vm14545_vm2, %v3948_v18  ;;  %v3951_v54 = vmax.f32 %v3915_v51, 0.0  ;;  %v3778_v14 = vpop.f32.mrf.mxu0  ;;  %v4211_v9 = vrot.slane %v4209_v8, 5  ;;  %v12771_v58 = vadd.f32 %v12677_v63, %v3121_v56  ;;  %v12775_v30 = vadd.f32 %v12693_v22, %v12571_v10 }
 0x21f   : > { %v4030_v39 = vld [vmem:[#allocation4 + $0x50] ss:$2 sm:$0xff]  ;;  %v4066_v50 = vld [vmem:[#allocation4 + $0x51] ss:$2 sm:$0xff]  ;;  %v3949_v38 = vmax.f32 %v3913_v26, 0.0  ;;  %v3918_v28 = vadd.f32 %v12613_v59, %v3875_v7  ;;  %v3873_v60 = vadd.f32 %v3778_v14, %v3559_v33  ;;  %v12782_v63 = vadd.f32 %v12712_v37, %v14706_v48  ;;  %v14707_v26 = vld [vmem:[#allocation54_spill] sm:$0xff] }
 0x220   : > { %v4096_v61 = vmax.f32 %v4030_v39, %v4066_v50  ;;  %v4028_v40 = vld [vmem:[#allocation4 + $0x40] ss:$2 sm:$0xff]  ;;  %v4064_v44 = vld [vmem:[#allocation4 + $0x41] ss:$2 sm:$0xff]  ;;  %3988 = vst.msk [vmem:[#allocation4 + $0x78] sm:$0xff] %vm14545_vm2, %v3951_v54  ;;  %v10295_v23 = vpop.f32.mrf.mxu0  ;;  %v4212_v0 = vor.u32 %v4211_v9, %v4208_v29  ;;  %v12790_v37 = vadd.f32 %v12732_v16, %v14707_v26  ;;  %v12796_v56 = vadd.f32 %v10272_v62, %v12588_v4  ;;  %v3528_v54 = vpop.f32.mrf.mxu1  ;;  %v10737_v16 = vld [vmem:[%s14502_s3] sm:$0xff]  }
 0x221   : > { %v4095_v11 = vmax.f32 %v4028_v40, %v4064_v44  ;;  %3986 = vst.msk [vmem:[#allocation4 + $0x68] sm:$0xff] %vm14545_vm2, %v3949_v38  ;;  %v3954_v2 = vmax.f32 %v3918_v28, 0.0  ;;  %v3916_v20 = vadd.f32 %v12613_v59, %v3873_v60  ;;  %v3876_v17 = vadd.f32 %v10295_v23, %v3562_v21  ;;  %v14705_v33 = vld [vmem:[#allocation55_spill] sm:$0xff] }
 0x222   : > { %v3125_v35 = vadd.f32 %v14705_v33, %v12709_v49  ;;  %v4249_v15 = vld [vmem:[#allocation7 + $0xc] sm:$0xe]  ;;  %v9660_v45 = vpack.c.bf16 %v4096_v61, %v4096_v61  ;;  %v3781_v19 = vpop.f32.mrf.mxu0  ;;  %v4213_v61 = vrot.slane %v4212_v0, 4  ;;  %v12810_v29 = vadd.f32 %v3528_v54, %v12596_v55  ;;  %v4235_v54 = vld [vmem:[#allocation2 + $0x4] sm:$0xe] }
 0x223   : > { %v4252_v36 = vshrl.u32 %v4249_v15, 16  ;;  %v4255_v18 = vshll.u32 %v4249_v15, 16  ;;  %v9659_v46 = vpack.c.bf16 %v4095_v11, %v4095_v11  ;;  %3991 = vst.msk [vmem:[#allocation4 + $0x90] sm:$0xff] %vm14545_vm2, %v3954_v2  ;;  %v3952_v21 = vmax.f32 %v3916_v20, 0.0  ;;  %v4199_v15 = vld [vmem:[#allocation7] sm:$0xf] }
 0x224   : > { %4186 = vst.msk [vmem:[#allocation7 + $0x14] sm:$0xf] %vm4009_vm12, %v9660_v45  ;;  %v3919_v10 = vadd.f32 %v12613_v59, %v3876_v17  ;;  %v3874_v22 = vadd.f32 %v3781_v19, %v3560_v1  ;;  %v10298_v49 = vpop.f32.mrf.mxu0  ;;  %v4201_v51 = vld [vmem:[#allocation7 + $0x8] sm:$0x1]  ;;  %v12792_v7 = vadd.f32 %v3515_v43, %v3125_v35  ;;  %v12814_v9 = vadd.f32 %v12601_v25, %v12716_v27 }
 0x225   : > { %v4254_v31 = vrot.slane %v4252_v36, 4  ;;  %v4257_v8 = vrot.slane %v4255_v18, 5  ;;  %4185 = vst.msk [vmem:[#allocation7 + $0x10] sm:$0xf] %vm4009_vm12, %v9659_v46  ;;  %v3879_v24 = vadd.f32 %v10298_v49, %v3565_v57  ;;  %v4215_v52 = vshll.u32 %v4201_v51, 16 }
 0x226   : > { %3989 = vst.msk [vmem:[#allocation4 + $0x80] sm:$0xff] %vm14545_vm2, %v3952_v21  ;;  %v3955_v12 = vmax.f32 %v3919_v10, 0.0  ;;  %v3917_v1 = vadd.f32 %v12613_v59, %v3874_v22  ;;  %v3794_v32 = vpop.f32.mrf.mxu0 }
 0x227   : > { %v4034_v14 = vld [vmem:[#allocation4 + $0x70] ss:$2 sm:$0xff]  ;;  %v4070_v47 = vld [vmem:[#allocation4 + $0x71] ss:$2 sm:$0xff]  ;;  %v3922_v57 = vadd.f32 %v12613_v59, %v3879_v24  ;;  %v3877_v39 = vadd.f32 %v3794_v32, %v12741_v5  ;;  %v4217_v43 = vrot.slane %v4215_v52, 5  ;;  %v4258_v50 = vor.u32 %v4257_v8, %v4254_v31 }
 0x228   : > { %v4098_v38 = vmax.f32 %v4034_v14, %v4070_v47  ;;  %v4032_v28 = vld [vmem:[#allocation4 + $0x60] ss:$2 sm:$0xff]  ;;  %v4068_v60 = vld [vmem:[#allocation4 + $0x61] ss:$2 sm:$0xff]  ;;  %3992 = vst.msk [vmem:[#allocation4 + $0x98] sm:$0xff] %vm14545_vm2, %v3955_v12  ;;  %v3953_v4 = vmax.f32 %v3917_v1, 0.0  ;;  %v10299_v34 = vpop.f32.mrf.mxu0 }
 0x229   : > { %v4097_v40 = vmax.f32 %v4032_v28, %v4068_v60  ;;  %v3958_v44 = vmax.f32 %v3922_v57, 0.0  ;;  %v3920_v5 = vadd.f32 %v12613_v59, %v3877_v39  ;;  %v3880_v23 = vadd.f32 %v10299_v34, %v12745_v3 }
 0x22a   : > { %v9662_v11 = vpack.c.bf16 %v4098_v38, %v4098_v38  ;;  %3990 = vst.msk [vmem:[#allocation4 + $0x88] sm:$0xff] %vm14545_vm2, %v3953_v4  ;;  %v3797_v2 = vpop.f32.mrf.mxu0  ;;  %v4218_v20 = vsel %vm12802_vm5, %v4213_v61, %v4217_v43  ;;  %v4259_v36 = vrot.slane %v4258_v50, 4  ;;  %v4247_v61 = vld [vmem:[#allocation7 + $0x8] sm:$0xe] }
 0x22b   : > { %v4315_v17 = vld [vmem:[#allocation7 + $0x14] sm:$0xc]  ;;  %v9661_v33 = vpack.c.bf16 %v4097_v40, %v4097_v40  ;;  %3995 = vst.msk [vmem:[#allocation4 + $0xb0] sm:$0xff] %vm14545_vm2, %v3958_v44  ;;  %v3956_v35 = vmax.f32 %v3920_v5, 0.0  ;;  %v3923_v3 = vadd.f32 %v12613_v59, %v3880_v23  ;;  %v3878_v55 = vadd.f32 %v3797_v2, %v12751_v13  ;;  %v10273_v44 = vpop.f32.mrf.mxu1 }
 0x22c   : > { %v4318_v45 = vshrl.u32 %v4315_v17, 16  ;;  %v4321_v25 = vshll.u32 %v4315_v17, 16  ;;  %v4250_v27 = vld [vmem:[#allocation7 + $0x10] sm:$0x3]  ;;  %4188 = vst.msk [vmem:[#allocation7 + $0x1c] sm:$0xf] %vm4009_vm12, %v9662_v11  ;;  %v10302_v19 = vpop.f32.mrf.mxu0  ;;  %v4220_v62 = vmax.bf16 %v4218_v20, %v4199_v15 }
 0x22d   : > { %4187 = vst.msk [vmem:[#allocation7 + $0x18] sm:$0xf] %vm4009_vm12, %v9661_v33  ;;  %v3959_v18 = vmax.f32 %v3923_v3, 0.0  ;;  %v3921_v46 = vadd.f32 %v12613_v59, %v3878_v55  ;;  %v3883_v21 = vadd.f32 %v10302_v19, %v12755_v42  ;;  %v4261_v48 = vshll.u32 %v4250_v27, 16  ;;  %v4238_v11 = vld [vmem:[#allocation2 + $0x8] sm:$0x3] }
 0x22e   : > { %3993 = vst.msk [vmem:[#allocation4 + $0xa0] sm:$0xff] %vm14545_vm2, %v3956_v35  ;;  %v12827_v13 = vrot.slane %v4318_v45, 4  ;;  %v12829_v10 = vrot.slane %v4321_v25, 5  ;;  %v3810_v22 = vpop.f32.mrf.mxu0  ;;  %v4222_v49 = vshrl.u32 %v4220_v62, 16  ;;  %v4225_v51 = vshll.u32 %v4220_v62, 16 }
 0x22f   : > { %v4038_v0 = vld [vmem:[#allocation4 + $0x90] ss:$2 sm:$0xff]  ;;  %v4074_v31 = vld [vmem:[#allocation4 + $0x91] ss:$2 sm:$0xff]  ;;  %3996 = vst.msk [vmem:[#allocation4 + $0xb8] sm:$0xff] %vm14545_vm2, %v3959_v18  ;;  %v3957_v8 = vmax.f32 %v3921_v46, 0.0  ;;  %v3926_v24 = vadd.f32 %v12613_v59, %v3883_v21  ;;  %v3881_v52 = vadd.f32 %v3810_v22, %v12760_v41  ;;  %v12855_v25 = vadd.f32 %v10273_v44, %v12599_v53 }
 0x230   : > { %v4263_v26 = vrot.slane %v4261_v48, 5  ;;  %v4100_v12 = vmax.f32 %v4038_v0, %v4074_v31  ;;  %v10303_v42 = vpop.f32.mrf.mxu0  ;;  %v4224_v1 = vrot.slane %v4222_v49, 6  ;;  %v4227_v32 = vrot.slane %v4225_v51, 7  ;;  %v4248_v53 = vld [vmem:[#allocation7 + $0xc] sm:$0x1]  ;;  %v3531_v51 = vpop.f32.mrf.mxu1 }
 0x231   : > { %v4265_v14 = vshrl.u32 %v4250_v27, 16  ;;  %v4036_v47 = vld [vmem:[#allocation4 + $0x80] ss:$2 sm:$0xff]  ;;  %v4072_v57 = vld [vmem:[#allocation4 + $0x81] ss:$2 sm:$0xff]  ;;  %3994 = vst.msk [vmem:[#allocation4 + $0xa8] sm:$0xff] %vm14545_vm2, %v3957_v8  ;;  %v3924_v43 = vadd.f32 %v12613_v59, %v3881_v52  ;;  %v3884_v50 = vadd.f32 %v10303_v42, %v12765_v6 }
 0x232   : > { %v3962_v39 = vmax.f32 %v3926_v24, 0.0  ;;  %v4264_v38 = vsel %vm12802_vm5, %v4259_v36, %v4263_v26  ;;  %v9664_v28 = vpack.c.bf16 %v4100_v12, %v4100_v12  ;;  %v4099_v60 = vmax.f32 %v4036_v47, %v4072_v57  ;;  %v3813_v4 = vpop.f32.mrf.mxu0  ;;  %v4582_v41 = vld [vmem:[#allocation2 + $0x24] sm:$0xf] }
 0x233   : > { %v4228_v34 = vor.u32 %v4227_v32, %v4224_v1  ;;  %v4267_v40 = vrot.slane %v4265_v14, 4  ;;  %v3960_v6 = vmax.f32 %v3924_v43, 0.0  ;;  %v3927_v5 = vadd.f32 %v12613_v59, %v3884_v50 }
 0x234   : > { %3999 = vst.msk [vmem:[#allocation4 + $0xd0] sm:$0xff] %vm14545_vm2, %v3962_v39  ;;  %v3882_v23 = vadd.f32 %v3813_v4, %v12771_v58  ;;  %v4272_v2 = vmax.bf16 %v4264_v38, %v4247_v61  ;;  %v9663_v20 = vpack.c.bf16 %v4099_v60, %v4099_v60  ;;  %v10306_v17 = vpop.f32.mrf.mxu0  ;;  %v4324_v12 = vor.u32 %v12829_v10, %v12827_v13 }
 0x235   : > { %4190 = vst.msk [vmem:[#allocation7 + $0x24] sm:$0xf] %vm4009_vm12, %v9664_v28  ;;  %v4229_v33 = vrot.slane %v4228_v34, 4  ;;  %v4236_v35 = vsel %vm12839_vm15, %v4228_v34, %v4235_v54  ;;  %v4268_v3 = vor.u32 %v4267_v40, %v4263_v26  ;;  %v3963_v55 = vmax.f32 %v3927_v5, 0.0  ;;  %v4963_v28 = vld [vmem:[#allocation2] sm:$0xe] }
 0x236   : > { %3997 = vst.msk [vmem:[#allocation4 + $0xc0] sm:$0xff] %vm14545_vm2, %v3960_v6  ;;  %v3925_v15 = vadd.f32 %v12613_v59, %v3882_v23  ;;  %v3887_v58 = vadd.f32 %v10306_v17, %v12775_v30  ;;  %4237 = vst [vmem:[#allocation2 + $0x4] sm:$0xe] %v4236_v35  ;;  %v4277_v45 = vshrl.u32 %v4272_v2, 16  ;;  %v4042_v27 = vld [vmem:[#allocation4 + $0xb0] ss:$2 sm:$0xff]  ;;  %v3826_v62 = vpop.f32.mrf.mxu0  ;;  %v12873_v50 = vadd.f32 %v3531_v51, %v12814_v9 }
 0x237   : > { %4189 = vst.msk [vmem:[#allocation7 + $0x20] sm:$0xf] %vm4009_vm12, %v9663_v20  ;;  %v4078_v19 = vld [vmem:[#allocation4 + $0xb1] ss:$2 sm:$0xff]  ;;  %v4239_v18 = vsel %vm12381_vm11, %v4229_v33, %v4238_v11  ;;  %v4269_v46 = vrot.slane %v4268_v3, 4  ;;  %v4280_v21 = vshll.u32 %v4272_v2, 16  ;;  %v3885_v49 = vadd.f32 %v3826_v62, %v12782_v63 }
 0x238   : > { %v4102_v48 = vmax.f32 %v4042_v27, %v4078_v19  ;;  %4000 = vst.msk [vmem:[#allocation4 + $0xd8] sm:$0xff] %vm14545_vm2, %v3963_v55  ;;  %v3961_v22 = vmax.f32 %v3925_v15, 0.0  ;;  %v3930_v30 = vadd.f32 %v12613_v59, %v3887_v58  ;;  %4240 = vst [vmem:[#allocation2 + $0x8] sm:$0x3] %v4239_v18  ;;  %v4040_v0 = vld [vmem:[#allocation4 + $0xa0] ss:$2 sm:$0xff]  ;;  %v10307_v8 = vpop.f32.mrf.mxu0 }
 0x239   : > { %v4076_v31 = vld [vmem:[#allocation4 + $0xa1] ss:$2 sm:$0xff]  ;;  %v4273_v24 = vmax.bf16 %v4269_v46, %v4248_v53  ;;  %v4279_v52 = vrot.slane %v4277_v45, 6  ;;  %v4282_v26 = vrot.slane %v4280_v21, 7  ;;  %v3928_v54 = vadd.f32 %v12613_v59, %v3885_v49  ;;  %v4644_v11 = vld [vmem:[#allocation2] sm:$0xf] }
 0x23a   : > { %v9666_v42 = vpack.c.bf16 %v4102_v48, %v4102_v48  ;;  %v4101_v1 = vmax.f32 %v4040_v0, %v4076_v31  ;;  %3998 = vst.msk [vmem:[#allocation4 + $0xc8] sm:$0xff] %vm14545_vm2, %v3961_v22  ;;  %v3966_v32 = vmax.f32 %v3930_v30, 0.0  ;;  %v12867_v63 = vld [vmem:[#allocation7 + $0x18] sm:$0x7]  ;;  %v3888_v14 = vadd.f32 %v10307_v8, %v12790_v37  ;;  %v3829_v47 = vpop.f32.mrf.mxu0  ;;  %v4305_v62 = vld [vmem:[#allocation2 + $0xc] sm:$0x7] }
 0x23b   : > { %v12870_v57 = vor.u32 %v4282_v26, %v4279_v52  ;;  %v4286_v39 = vshrl.u32 %v4273_v24, 16  ;;  %v4289_v43 = vshll.u32 %v4273_v24, 16  ;;  %v3964_v10 = vmax.f32 %v3928_v54, 0.0  ;;  %v12915_v31 = vld [vmem:[#allocation7 + $0x1c] sm:$0x8]  ;;  %v10740_v19 = vld [vmem:[%s14502_s3 + $0x80] sm:$0xff]  }
 0x23c   : > { %4192 = vst.msk [vmem:[#allocation7 + $0x2c] sm:$0xf] %vm4009_vm12, %v9666_v42  ;;  %v9665_v13 = vpack.c.bf16 %v4101_v1, %v4101_v1  ;;  %v3886_v38 = vadd.f32 %v3829_v47, %v12792_v7  ;;  %v3931_v37 = vadd.f32 %v12613_v59, %v3888_v14  ;;  %v10310_v60 = vpop.f32.mrf.mxu0  ;;  %v4325_v5 = vrot.slane %v4324_v12, 4  ;;  %v4313_v26 = vld [vmem:[#allocation7 + $0x10] sm:$0xc] }
 0x23d   : > { %4003 = vst.msk [vmem:[#allocation4 + $0xf0] sm:$0xff] %vm14545_vm2, %v3966_v32  ;;  %v4284_v9 = vrot.slane %v12870_v57, 4  ;;  %v4288_v34 = vrot.slane %v4286_v39, 6  ;;  %v4291_v61 = vrot.slane %v4289_v43, 7  ;;  %v4645_v40 = vld [vmem:[#allocation2 + $0x4] sm:$0xf]  ;;  %v3891_v44 = vadd.f32 %v10310_v60, %v12796_v56 }
 0x23e   : > { %4191 = vst.msk [vmem:[#allocation7 + $0x28] sm:$0xf] %vm4009_vm12, %v9665_v13  ;;  %v3929_v7 = vadd.f32 %v12613_v59, %v3886_v38  ;;  %v4327_v23 = vshll.u32 %v12867_v63, 16  ;;  %v3967_v17 = vmax.f32 %v3931_v37, 0.0  ;;  %v3842_v33 = vpop.f32.mrf.mxu0  ;;  %v9237_v3 = vcombine.low %v4963_v28, %v4645_v40 }
 0x23f   : > { %4001 = vst.msk [vmem:[#allocation4 + $0xe0] sm:$0xff] %vm14545_vm2, %v3964_v10  ;;  %v4046_v2 = vld [vmem:[#allocation4 + $0xd0] ss:$2 sm:$0xff]  ;;  %v4082_v20 = vld [vmem:[#allocation4 + $0xd1] ss:$2 sm:$0xff]  ;;  %v4292_v35 = vor.u32 %v4291_v61, %v4288_v34  ;;  %v4331_v55 = vshrl.u32 %v12867_v63, 16  ;;  %v3934_v58 = vadd.f32 %v12613_v59, %v3891_v44  ;;  %v3889_v45 = vadd.f32 %v3842_v33, %v12810_v29 }
 0x240   : > { %v4104_v15 = vmax.f32 %v4046_v2, %v4082_v20  ;;  %v3965_v56 = vmax.f32 %v3929_v7, 0.0  ;;  %v4244_v27 = vld [vmem:[#allocation2 + $0x8] sm:$0x6]  ;;  %4004 = vst.msk [vmem:[#allocation4 + $0xf8] sm:$0xff] %vm14545_vm2, %v3967_v17  ;;  %v10311_v21 = vpop.f32.mrf.mxu0  ;;  %v4329_v29 = vrot.slane %v4327_v23, 5  ;;  %v12911_v30 = vcombine.low %v4644_v11, %v4645_v40 }
 0x241   : > { %v4044_v18 = vld [vmem:[#allocation4 + $0xc0] ss:$2 sm:$0xff]  ;;  %v4080_v46 = vld [vmem:[#allocation4 + $0xc1] ss:$2 sm:$0xff]  ;;  %v4245_v48 = vsel %vm12881_vm9, 0, %v4244_v27  ;;  %v4293_v22 = vsel %vm12892_vm7, %v4284_v9, %v4292_v35  ;;  %v3970_v51 = vmax.f32 %v3934_v58, 0.0  ;;  %v3932_v0 = vadd.f32 %v12613_v59, %v3889_v45 }
 0x242   : > { %v9668_v49 = vpack.c.bf16 %v4104_v15, %v4104_v15  ;;  %v4103_v53 = vmax.f32 %v4044_v18, %v4080_v46  ;;  %4002 = vst.msk [vmem:[#allocation4 + $0xe8] sm:$0xff] %vm14545_vm2, %v3965_v56  ;;  %4246 = vst [vmem:[#allocation2 + $0x8] sm:$0x6] %v4245_v48  ;;  %v3892_v8 = vadd.f32 %v10311_v21, %v12855_v25  ;;  %v3845_v24 = vpop.f32.mrf.mxu0  ;;  %v12922_v42 = vrot.slane %v9237_v3, 1  ;;  %v4383_v63 = vld [vmem:[#allocation7 + $0x20] sm:$0xf] }
 0x243   : > { %v4306_v52 = vsel %vm12902_vm1, %v4293_v22, %v4305_v62  ;;  %v4330_v12 = vsel %vm12802_vm5, %v4325_v5, %v4329_v29  ;;  %4007 = vst.msk [vmem:[#allocation4 + $0x110] sm:$0xff] %vm14545_vm2, %v3970_v51  ;;  %v3968_v32 = vmax.f32 %v3932_v0, 0.0  ;;  %v3890_v54 = vadd.f32 %v3845_v24, %v12873_v50  ;;  %v4314_v35 = vld [vmem:[#allocation7 + $0x14] sm:$0x3]  ;;  %v4380_v48 = vld [vmem:[#allocation7 + $0x18] sm:$0x8] }
 0x244   : > { %4194 = vst.msk [vmem:[#allocation7 + $0x34] sm:$0xf] %vm4009_vm12, %v9668_v49  ;;  %v9667_v1 = vpack.c.bf16 %v4103_v53, %v4103_v53  ;;  %4307 = vst [vmem:[#allocation2 + $0xc] sm:$0x7] %v4306_v52  ;;  %v4338_v25 = vmax.bf16 %v4330_v12, %v4313_v26  ;;  %v3935_v14 = vadd.f32 %v12613_v59, %v3892_v8  ;;  %v4701_v47 = vshrl.u32 %v12911_v30, 16 }
 0x245   : > { %v4703_v39 = vshll.u32 %v12911_v30, 16  ;;  %v4333_v43 = vrot.slane %v4331_v55, 4  ;;  %4005 = vst.msk [vmem:[#allocation4 + $0x100] sm:$0xff] %vm14545_vm2, %v3968_v32  ;;  %v3933_v13 = vadd.f32 %v12613_v59, %v3890_v54  ;;  %v4385_v50 = vshrl.u32 %v12915_v31, 16  ;;  %v4438_v61 = vld [vmem:[#allocation7 + $0x28] sm:$0xf] }
 0x246   : > { %4193 = vst.msk [vmem:[#allocation7 + $0x30] sm:$0xf] %vm4009_vm12, %v9667_v1  ;;  %v4341_v10 = vshll.u32 %v4338_v25, 16  ;;  %v4344_v38 = vshrl.u32 %v4338_v25, 16  ;;  %v3971_v28 = vmax.f32 %v3935_v14, 0.0  ;;  %v4390_v34 = vshll.u32 %v4383_v63, 16 }
 0x247   : > { %v12940_v60 = vrot.slane %v4703_v39, 1  ;;  %v4334_v9 = vor.u32 %v4333_v43, %v4329_v29  ;;  %v4050_v40 = vld [vmem:[#allocation4 + $0xf0] ss:$2 sm:$0xff]  ;;  %v4086_v59 = vld [vmem:[#allocation4 + $0xf1] ss:$2 sm:$0xff]  ;;  %v3969_v7 = vmax.f32 %v3933_v13, 0.0 }
 0x248   : > { %v12948_v5 = vrot.slane %v4341_v10, 7  ;;  %v4106_v23 = vmax.f32 %v4050_v40, %v4086_v59  ;;  %4008 = vst.msk [vmem:[#allocation4 + $0x118] sm:$0xff] %vm14545_vm2, %v3971_v28  ;;  %v4346_v55 = vrot.slane %v4344_v38, 6  ;;  %v4392_v58 = vrot.slane %v4390_v34, 5  ;;  %v4439_v22 = vld [vmem:[#allocation7 + $0x2c] sm:$0x1] }
 0x249   : > { %v4048_v11 = vld [vmem:[#allocation4 + $0xe0] ss:$2 sm:$0xff]  ;;  %v4084_v2 = vld [vmem:[#allocation4 + $0xe1] ss:$2 sm:$0xff]  ;;  %4006 = vst.msk [vmem:[#allocation4 + $0x108] sm:$0xff] %vm14545_vm2, %v3969_v7  ;;  %v4335_v3 = vrot.slane %v4334_v9, 4  ;;  %vm12970_vm2 = vmand %vm4360_vm13, %vm14546_vm6 }
 0x24a   : > { %v4299_v20 = vld [vmem:[#allocation2 + $0x8] sm:$0xc]  ;;  %v4105_v17 = vmax.f32 %v4048_v11, %v4084_v2  ;;  %v9670_v15 = vpack.c.bf16 %v4106_v23, %v4106_v23  ;;  %v4394_v45 = vshrl.u32 %v4383_v63, 16  ;;  %v4441_v27 = vshrl.u32 %v4438_v61, 16  ;;  %v4368_v14 = vld [vmem:[#allocation2 + $0x10] sm:$0xf]  ;;  %vm12987_vm13 = vmand %vm4009_vm12, %vm4424_vm3 }
 0x24b   : > { %v4300_v33 = vsel %vm12936_vm8, %v12870_v57, %v4299_v20  ;;  %v4310_v56 = vld [vmem:[#allocation2 + $0xc] sm:$0xc]  ;;  %v4339_v46 = vmax.bf16 %v4335_v3, %v4314_v35  ;;  %v4347_v21 = vor.u32 %v4346_v55, %v12948_v5  ;;  %v4393_v57 = vsel %vm12802_vm5, %v4385_v50, %v4392_v58 }
 0x24c   : > { %4301 = vst [vmem:[#allocation2 + $0x8] sm:$0xc] %v4300_v33  ;;  %v9669_v62 = vpack.c.bf16 %v4105_v17, %v4105_v17  ;;  %v4311_v18 = vsel %vm12944_vm10, 0, %v4310_v56  ;;  %4196 = vst.msk [vmem:[#allocation7 + $0x3c] sm:$0xf] %vm4009_vm12, %v9670_v15  ;;  %v4396_v29 = vrot.slane %v4394_v45, 4  ;;  %v4401_v24 = vmax.bf16 %v4393_v57, %v4380_v48 }
 0x24d   : > { %4312 = vst [vmem:[#allocation2 + $0xc] sm:$0xc] %v4311_v18  ;;  %v4443_v49 = vrot.slane %v4441_v27, 4  ;;  %v4444_v53 = vshll.u32 %v4438_v61, 16  ;;  %v4478_v51 = vld [vmem:[#allocation7 + $0x30] sm:$0xe] }
 0x24e   : > { %4195 = vst.msk [vmem:[#allocation7 + $0x38] sm:$0xf] %vm4009_vm12, %v9669_v62  ;;  %v4348_v0 = vrot.slane %v4347_v21, 4  ;;  %v4350_v31 = vshrl.u32 %v4339_v46, 16  ;;  %v4353_v8 = vshll.u32 %v4339_v46, 16  ;;  %v4397_v52 = vor.u32 %v4396_v29, %v4392_v58 }
 0x24f   : > { %v4446_v26 = vrot.slane %v4444_v53, 5  ;;  %v4450_v12 = vshll.u32 %v4439_v22, 16  ;;  %v4481_v1 = vshrl.u32 %v4478_v51, 16  ;;  %v4054_v32 = vld [vmem:[#allocation4 + $0x110] ss:$2 sm:$0xff]  ;;  %v4404_v50 = vshrl.u32 %v4401_v24, 16 }
 0x250   : > { %v4090_v54 = vld [vmem:[#allocation4 + $0x111] ss:$2 sm:$0xff]  ;;  %v4352_v25 = vrot.slane %v4350_v31, 6  ;;  %v4355_v63 = vrot.slane %v4353_v8, 7  ;;  %v4052_v43 = vld [vmem:[#allocation4 + $0x100] ss:$2 sm:$0xff] }
 0x251   : > { %v4108_v39 = vmax.f32 %v4054_v32, %v4090_v54  ;;  %v4088_v13 = vld [vmem:[#allocation4 + $0x101] ss:$2 sm:$0xff]  ;;  %v4398_v38 = vrot.slane %v4397_v52, 4  ;;  %v4447_v28 = vor.u32 %v4446_v26, %v4443_v49  ;;  %v4407_v59 = vshll.u32 %v4401_v24, 16  ;;  %v4479_v17 = vld [vmem:[#allocation7 + $0x34] sm:$0x3] }
 0x252   : > { %v4107_v9 = vmax.f32 %v4052_v43, %v4088_v13  ;;  %v4356_v61 = vor.u32 %v4355_v63, %v4352_v25  ;;  %v4381_v40 = vld [vmem:[#allocation7 + $0x1c] sm:$0x7]  ;;  %v4452_v7 = vrot.slane %v4450_v12, 5  ;;  %v4406_v2 = vrot.slane %v4404_v50, 6  ;;  %v4437_v46 = vld [vmem:[#allocation7 + $0x24] sm:$0xf] }
 0x253   : > { %v9672_v23 = vpack.c.bf16 %v4108_v39, %v4108_v39  ;;  %v4402_v11 = vmax.bf16 %v4398_v38, %v4381_v40  ;;  %v4448_v20 = vrot.slane %v4447_v28, 4  ;;  %v4409_v55 = vrot.slane %v4407_v59, 7  ;;  %v4426_v12 = vld [vmem:[#allocation2 + $0x14] sm:$0xf]  ;;  %v4535_v63 = vld [vmem:[#allocation7 + $0x3c] sm:$0x7] }
 0x254   : > { %v9671_v33 = vpack.c.bf16 %v4107_v9, %v4107_v9  ;;  %v4363_v35 = vld [vmem:[#allocation2 + $0xc] sm:$0x8]  ;;  %v4357_v3 = vsel %vm12892_vm7, %v4348_v0, %v4356_v61  ;;  %v4483_v15 = vrot.slane %v4481_v1, 4  ;;  %v4484_v48 = vshll.u32 %v4478_v51, 16  ;;  %v4429_v0 = vld [vmem:[#allocation2 + $0x18] sm:$0x1] }
 0x255   : > { %4198 = vst.msk [vmem:[#allocation7 + $0x44] sm:$0xf] %vm4009_vm12, %v9672_v23  ;;  %v4364_v56 = vsel %vm12970_vm2, %v12948_v5, %v4363_v35  ;;  %v4369_v58 = vsel %vm12964_vm4, %v4357_v3, %v4368_v14  ;;  %v4413_v45 = vshrl.u32 %v4402_v11, 16  ;;  %v4416_v27 = vshll.u32 %v4402_v11, 16  ;;  %v4534_v62 = vld [vmem:[#allocation7 + $0x38] sm:$0xc] }
 0x256   : > { %4197 = vst.msk [vmem:[#allocation7 + $0x40] sm:$0xf] %vm4009_vm12, %v9671_v33  ;;  %4365 = vst [vmem:[#allocation2 + $0xc] sm:$0x8] %v4364_v56  ;;  %v4410_v18 = vor.u32 %v4409_v55, %v4406_v2  ;;  %v4453_v21 = vsel %vm12802_vm5, %v4448_v20, %v4452_v7  ;;  %v4490_v22 = vshll.u32 %v4479_v17, 16  ;;  %v4494_v49 = vshrl.u32 %v4479_v17, 16 }
 0x257   : > { %4370 = vst [vmem:[#allocation2 + $0x10] sm:$0xf] %v4369_v58  ;;  %v4415_v57 = vrot.slane %v4413_v45, 6  ;;  %v4418_v5 = vrot.slane %v4416_v27, 7  ;;  %v4455_v29 = vmax.bf16 %v4453_v21, %v4437_v46  ;;  %v4486_v31 = vrot.slane %v4484_v48, 5 }
 0x258   : > { %v4411_v53 = vrot.slane %v4410_v18, 4  ;;  %v4492_v8 = vrot.slane %v4490_v22, 5  ;;  %v4537_v24 = vshrl.u32 %v4534_v62, 16  ;;  %v4496_v25 = vrot.slane %v4494_v49, 4  ;;  %v4470_v61 = vld [vmem:[#allocation2 + $0x1c] sm:$0x3] }
 0x259   : > { %v4419_v52 = vor.u32 %v4418_v5, %v4415_v57  ;;  %v4421_v1 = vrot.slane %v4415_v57, 4  ;;  %v4457_v51 = vshrl.u32 %v4455_v29, 16  ;;  %v4460_v32 = vshll.u32 %v4455_v29, 16  ;;  %v4476_v33 = vld [vmem:[#allocation7 + $0x2c] sm:$0xe]  ;;  %v10736_v49 = vld [vmem:[%s14502_s3 + $0x90] sm:$0xff]  }
 0x25a   : > { %v4487_v54 = vor.u32 %v4486_v31, %v4483_v15  ;;  %v4539_v14 = vrot.slane %v4537_v24, 4  ;;  %v4540_v39 = vshll.u32 %v4534_v62, 16  ;;  %v4497_v59 = vor.u32 %v4496_v25, %v4492_v8  ;;  %v4477_v3 = vld [vmem:[#allocation7 + $0x30] sm:$0x1]  ;;  %v10735_v62 = vld [vmem:[%s14502_s3 + $0x98] sm:$0xff]  }
 0x25b   : > { %v4420_v43 = vsel %vm12892_vm7, %v4411_v53, %v4419_v52  ;;  %v4430_v38 = vsel %vm12496_vm0, %v4421_v1, %v4429_v0  ;;  %v4459_v50 = vrot.slane %v4457_v51, 6  ;;  %v4462_v28 = vrot.slane %v4460_v32, 7  ;;  %v10730_v57 = vld [vmem:[%s14502_s3 + $0x18] sm:$0xff]  }
 0x25c   : > { %v4427_v9 = vsel %vm12987_vm13, %v4420_v43, %v4426_v12  ;;  %4431 = vst [vmem:[#allocation2 + $0x18] sm:$0x1] %v4430_v38  ;;  %v4488_v40 = vrot.slane %v4487_v54, 4  ;;  %v4542_v7 = vrot.slane %v4540_v39, 5  ;;  %v4546_v20 = vshll.u32 %v4535_v63, 16  ;;  %v10731_v43 = vld [vmem:[%s14502_s3 + $0x10] sm:$0xff]  }
 0x25d   : > { %v12997_v23 = vld [vmem:[#allocation2 + $0x8] sm:$0xff]   ;;  %4428 = vst [vmem:[#allocation2 + $0x14] sm:$0xf] %v4427_v9  ;;  %v12999_v2 = vor.u32 %v4462_v28, %v4459_v50  ;;  %v4498_v55 = vrot.slane %v4497_v59, 4  ;;  %v4706_v58 = vor.u32 %v12940_v60, %v4701_v47  ;;  %vm14731_vm12 = vcmask 517120  }
 0x25e   : > { %v4371_v11 = vld [vmem:[#allocation2 + $0x10] sm:$0x8]  ;;  %v4493_v35 = vsel %vm12802_vm5, %v4488_v40, %v4492_v8  ;;  %v4543_v15 = vor.u32 %v4542_v7, %v4539_v14  ;;  %v4977_v56 = vrot.slane %v12997_v23, 1  ;;  %v4708_v45 = vshll.u32 %v12997_v23, 16  ;;  %vm13016_vm3 = vmand %vm14731_vm12, %vm14547_vm14  ;;  %v4532_v8 = vld [vmem:[#allocation7 + $0x34] sm:$0xc] }
 0x25f   : > { %v4372_v17 = vsel %vm12970_vm2, 0, %v4371_v11  ;;  %v4464_v27 = vrot.slane %v12999_v2, 4  ;;  %v4501_v18 = vmax.bf16 %v4493_v35, %v4476_v33  ;;  %v4502_v46 = vmax.bf16 %v4498_v55, %v4477_v3  ;;  %v13033_v24 = vld [vmem:[#allocation7 + $0x44] sm:$0xf]  ;;  %v4593_v54 = vld [vmem:[#allocation7 + $0x40] sm:$0x8] }
 0x260   : > { %4373 = vst [vmem:[#allocation2 + $0x10] sm:$0x8] %v4372_v17  ;;  %v4544_v21 = vrot.slane %v4543_v15, 4  ;;  %v4548_v48 = vrot.slane %v4546_v20, 5  ;;  %vm14734_vm6 = vcmask 1046528   ;;  %v4710_v60 = vrot.slane %v4708_v45, 1 }
 0x261   : > { %v4978_v47 = vsel %vm14734_vm6, %v12922_v42, %v4977_v56  ;;  %v4471_v5 = vsel %vm12381_vm11, %v4464_v27, %v4470_v61  ;;  %v4550_v29 = vshrl.u32 %v4535_v63, 16  ;;  %vm14735_vm12 = vcmask 523264   ;;  %v4526_v59 = vld [vmem:[#allocation2 + $0x20] sm:$0x7]  ;;  %v4533_v7 = vld [vmem:[#allocation7 + $0x38] sm:$0x3] }
 0x262   : > { %10377 = vmatmul.mubr.msk.bf16.vlgmr.msra.gmra.mxu0 %vm14735_vm12, %v4978_v47  ;;  %4472 = vst [vmem:[#allocation2 + $0x1c] sm:$0x3] %v4471_v5  ;;  %v4504_v53 = vshrl.u32 %v4501_v18, 16  ;;  %v4507_v0 = vshll.u32 %v4501_v18, 16  ;;  %v4513_v31 = vshrl.u32 %v4502_v46, 16  ;;  %v4516_v42 = vshll.u32 %v4502_v46, 16  ;;  %vm14739_vm11 = vmmov %vm14735_vm12 }
 0x263   : > { %vm14736_vm6 = vsmask.f32 7424  ;;  %v14737_v12 = vmov 0.0   ;;  %vm14738_vm14 = vmmov 0   ;;  %v4712_v36 = vshrl.u32 %v12997_v23, 16  ;;  %10425 = vmatpush3.bf16.msra.mxu0 %v10735_v62  ;;  %v10739_v27 = vld [vmem:[%s14502_s3 + $0x88] sm:$0xff]  }
 0x264   : > { %v4711_v52 = vsel %vm14736_vm6, %v4706_v58, %v4710_v60  ;;  %10380 = vmatprep.mubr.msk.bf16.mxu0 %vm14738_vm14, %v14737_v12  ;;  %v4434_v1 = vld [vmem:[#allocation2 + $0x18] sm:$0x3]  ;;  %v4549_v51 = vsel %vm12802_vm5, %v4544_v21, %v4548_v48  ;;  %v4552_v32 = vrot.slane %v4550_v29, 4  ;;  %v4506_v63 = vrot.slane %v4504_v53, 6  ;;  %10426 = vmatprep.subr.bf16.mxu0 %v14737_v12  ;;  %v10733_v5 = vld [vmem:[%s14502_s3 + $0x8] sm:$0xff]   ;;  %vm14741_vm6 = vmmov %vm14739_vm11 }
 0x265   : > { %10321 = vmatmul.mubr.msk.bf16.vlgmr.msra.gmra.mxu1 %vm14739_vm11, %v4711_v52  ;;  %v4435_v25 = vsel %vm13016_vm3, 0, %v4434_v1  ;;  %v4509_v14 = vrot.slane %v4507_v0, 7  ;;  %v4515_v39 = vrot.slane %v4513_v31, 6  ;;  %v4518_v38 = vrot.slane %v4516_v42, 7 }
 0x266   : > { %10324 = vmatprep.mubr.msk.bf16.mxu1 %vm14738_vm14, %v14737_v12  ;;  %10341 = vmatpush3.bf16.msra.mxu1 %v10730_v57  ;;  %4436 = vst [vmem:[#allocation2 + $0x18] sm:$0x3] %v4435_v25  ;;  %v4553_v50 = vor.u32 %v4552_v32, %v4548_v48  ;;  %v4557_v28 = vmax.bf16 %v4549_v51, %v4532_v8  ;;  %v4596_v11 = vshrl.u32 %v4593_v54, 16  ;;  %v4601_v20 = vshll.u32 %v13033_v24, 16  ;;  %v4591_v51 = vld [vmem:[#allocation7 + $0x3c] sm:$0x8] }
 0x267   : > { %v13050_v9 = vld [vmem:[#allocation2 + $0x10] sm:$0xff]   ;;  %v4714_v61 = vor.u32 %v4712_v36, %v4710_v60  ;;  %10342 = vmatprep.subr.bf16.mxu1 %v14737_v12  ;;  %v13053_v40 = vor.u32 %v4509_v14, %v4506_v63  ;;  %10427 = vmatpush3.bf16.msra.mxu0 %v10736_v49  ;;  %v4605_v3 = vshrl.u32 %v13033_v24, 16  ;;  %v4519_v45 = vor.u32 %v4518_v38, %v4515_v39 }
 0x268   : > { %v4554_v17 = vrot.slane %v4553_v50, 4  ;;  %v4560_v33 = vshll.u32 %v4557_v28, 16  ;;  %v4563_v35 = vshrl.u32 %v4557_v28, 16  ;;  %v4979_v55 = vrot.slane %v13050_v9, 1  ;;  %10428 = vmatprep.subr.bf16.mxu0 %v14737_v12 }
 0x269   : > { %v4716_v15 = vshll.u32 %v13050_v9, 16  ;;  %v4511_v58 = vrot.slane %v13053_v40, 4  ;;  %v4473_v62 = vld [vmem:[#allocation2 + $0x1c] sm:$0x6]  ;;  %v4603_v48 = vrot.slane %v4601_v20, 5  ;;  %vm14740_vm12 = vcmask 1046528  }
 0x26a   : > { %10343 = vmatpush3.bf16.msra.mxu1 %v10731_v43  ;;  %v4558_v18 = vmax.bf16 %v4554_v17, %v4533_v7  ;;  %v13064_v46 = vrot.slane %v4560_v33, 7  ;;  %v4565_v21 = vrot.slane %v4563_v35, 6  ;;  %v4980_v47 = vsel %vm14740_vm12, %v4977_v56, %v4979_v55  ;;  %v4592_v43 = vld [vmem:[#allocation7 + $0x40] sm:$0x7]  ;;  %v5110_v20 = vld [vmem:[#allocation2 + $0x8] sm:$0xf] }
 0x26b   : > { %v13071_v60 = vrot.slane %v4716_v15, 1  ;;  %v4474_v57 = vsel %vm12881_vm9, 0, %v4473_v62  ;;  %10344 = vmatprep.subr.bf16.mxu1 %v14737_v12  ;;  %v4520_v29 = vsel %vm12892_vm7, %v4511_v58, %v4519_v45  ;;  %10381 = vmatmul.mubr.msk.bf16.gmra.mxu0 %vm14741_vm6, %v4980_v47  ;;  %vm14742_vm9 = vsmask.f32 7424  ;;  %v13120_v47 = vld [vmem:[#allocation2 + $0xc] sm:$0xf] }
 0x26c   : > { %4475 = vst [vmem:[#allocation2 + $0x1c] sm:$0x6] %v4474_v57  ;;  %v4527_v56 = vsel %vm12902_vm1, %v4520_v29, %v4526_v59  ;;  %v4566_v49 = vor.u32 %v4565_v21, %v13064_v46  ;;  %v4569_v53 = vshrl.u32 %v4558_v18, 16  ;;  %v4572_v4 = vshll.u32 %v4558_v18, 16  ;;  %10384 = vmatprep.mubr.msk.bf16.mxu0 %vm14738_vm14, %v14737_v12  ;;  %10429 = vmatpush3.bf16.msra.mxu0 %v10739_v27  ;;  %vm14743_vm1 = vmmov %vm14741_vm6  ;;  %v13116_v27 = vld [vmem:[#allocation2 + $0xc] sm:$0xff]  }
 0x26d   : > { %v4719_v0 = vsel %vm14742_vm9, %v4714_v61, %v13071_v60  ;;  %v4467_v31 = vld [vmem:[#allocation2 + $0x18] sm:$0xe]  ;;  %4528 = vst [vmem:[#allocation2 + $0x20] sm:$0x7] %v4527_v56  ;;  %v4604_v42 = vsel %vm12802_vm5, %v4596_v11, %v4603_v48  ;;  %v4607_v8 = vrot.slane %v4605_v3, 4  ;;  %10430 = vmatprep.subr.bf16.mxu0 %v14737_v12 }
 0x26e   : > { %10325 = vmatmul.mubr.msk.bf16.gmra.mxu1 %vm14743_vm1, %v4719_v0  ;;  %v4468_v24 = vsel %vm12839_vm15, %v12999_v2, %v4467_v31  ;;  %v4567_v52 = vrot.slane %v4566_v49, 4  ;;  %v4571_v36 = vrot.slane %v4569_v53, 6  ;;  %v4574_v1 = vrot.slane %v4572_v4, 7  ;;  %v5478_v3 = vld [vmem:[#allocation2 + $0x4] sm:$0xc] }
 0x26f   : > { %4469 = vst [vmem:[#allocation2 + $0x18] sm:$0xe] %v4468_v24  ;;  %10328 = vmatprep.mubr.msk.bf16.mxu1 %vm14738_vm14, %v14737_v12  ;;  %10345 = vmatpush3.bf16.msra.mxu1 %v10733_v5  ;;  %v4608_v32 = vor.u32 %v4607_v8, %v4603_v48  ;;  %v4612_v54 = vmax.bf16 %v4604_v42, %v4591_v51  ;;  %v4635_v21 = vld [vmem:[#allocation2 + $0x28] sm:$0xf]  ;;  %v5492_v49 = vrot.slane %v13116_v27, 2  ;;  %v4720_v24 = vshrl.u32 %v13050_v9, 16 }
 0x270   : > { %v4575_v25 = vor.u32 %v4574_v1, %v4571_v36  ;;  %10346 = vmatprep.subr.bf16.mxu1 %v14737_v12  ;;  %10431 = vmatpush3.bf16.msra.mxu0 %v10740_v19  ;;  %v9296_v37 = vcombine.low %v5478_v3, %v5110_v20  ;;  %v5624_v29 = vld [vmem:[#allocation2 + $0x8] sm:$0xc]  ;;  %v13146_v36 = vld [vmem:[#allocation2 + $0x10] sm:$0xff]  }
 0x271   : > { %v4609_v2 = vrot.slane %v4608_v32, 4  ;;  %v4615_v63 = vshrl.u32 %v4612_v54, 16  ;;  %v4618_v14 = vshll.u32 %v4612_v54, 16  ;;  %10480 = vmatprep.subr.bf16.mxu0 %v14737_v12  ;;  %v13134_v42 = vcombine.low %v5624_v29, %v13120_v47 }
 0x272   : > { %v4576_v39 = vsel %vm12892_vm7, %v4567_v52, %v4575_v25  ;;  %v5491_v56 = vrot.slane %v9296_v37, 2 }
 0x273   : > { %v4523_v38 = vld [vmem:[#allocation2 + $0x1c] sm:$0xc]  ;;  %v4583_v50 = vsel %vm12964_vm4, %v4576_v39, %v4582_v41  ;;  %10347 = vmatpush3.bf16.msra.mxu1 %v10737_v16  ;;  %v4613_v28 = vmax.bf16 %v4609_v2, %v4592_v43  ;;  %v4617_v61 = vrot.slane %v4615_v63, 6  ;;  %v4620_v59 = vrot.slane %v4618_v14, 7 }
 0x274   : > { %v4524_v7 = vsel %vm12936_vm8, %v13053_v40, %v4523_v38  ;;  %v4529_v11 = vld [vmem:[#allocation2 + $0x20] sm:$0xc]  ;;  %4584 = vst [vmem:[#allocation2 + $0x24] sm:$0xf] %v4583_v50  ;;  %10396 = vmatprep.subr.bf16.mxu1 %v14737_v12  ;;  %v4638_v40 = vld [vmem:[#allocation2 + $0x2c] sm:$0x1]  ;;  %v4722_v16 = vor.u32 %v4720_v24, %v13071_v60 }
 0x275   : > { %4525 = vst [vmem:[#allocation2 + $0x1c] sm:$0xc] %v4524_v7  ;;  %v4530_v17 = vsel %vm12944_vm10, 0, %v4529_v11  ;;  %v4621_v33 = vor.u32 %v4620_v59, %v4617_v61  ;;  %v4624_v10 = vshrl.u32 %v4613_v28, 16  ;;  %v4627_v35 = vshll.u32 %v4613_v28, 16  ;;  %vm14746_vm10 = vmmov %vm14740_vm12 }
 0x276   : > { %4531 = vst [vmem:[#allocation2 + $0x20] sm:$0xc] %v4530_v17  ;;  %v13118_v48 = vld [vmem:[#allocation2 + $0x14] sm:$0xff]   ;;  %vm14744_vm4 = vcmask 1045504   ;;  %v5819_v34 = vshrl.u32 %v13134_v42, 16  ;;  %v5827_v41 = vshrl.u32 %v13146_v36, 16  ;;  %vm14750_vm8 = vmmov %vm14746_vm10 }
 0x277   : > { %v4622_v15 = vrot.slane %v4621_v33, 4  ;;  %v4626_v58 = vrot.slane %v4624_v10, 6  ;;  %v4629_v45 = vrot.slane %v4627_v35, 7  ;;  %v13137_v13 = vsel %vm14744_vm4, %v5491_v56, %v5492_v49  ;;  %vm14745_vm5 = vmmov %vm14744_vm4  ;;  %v5109_v60 = vld [vmem:[#allocation2 + $0x4] sm:$0xe] }
 0x278   : > { %v5494_v8 = vrot.slane %v13118_v48, 2  ;;  %v5821_v2 = vrot.slane %v5819_v34, 2  ;;  %v13173_v38 = vcombine.low %v5109_v60, %v5110_v20  ;;  %v5829_v61 = vrot.slane %v5827_v41, 2  ;;  %vm14755_vm6 = vmmov %vm14744_vm4 }
 0x279   : > { %v4630_v62 = vor.u32 %v4629_v45, %v4626_v58  ;;  %v4632_v18 = vrot.slane %v4626_v58, 4  ;;  %v5312_v11 = vshrl.u32 %v13116_v27, 16  ;;  %vm14754_vm12 = vsmask.f32 5376 }
 0x27a   : > { %v13151_v1 = vsel %vm14745_vm5, %v5492_v49, %v5494_v8 }
 0x27b   : > { %v4585_v44 = vld [vmem:[#allocation2 + $0x24] sm:$0x8]  ;;  %v4631_v57 = vsel %vm12892_vm7, %v4622_v15, %v4630_v62  ;;  %v4639_v5 = vsel %vm12496_vm0, %v4632_v18, %v4638_v40  ;;  %vm14747_vm0 = vmmov %vm14743_vm1  ;;  %v5304_v15 = vshrl.u32 %v13173_v38, 16  ;;  %v5307_v40 = vshll.u32 %v13173_v38, 16 }
 0x27c   : > { %v13127_v53 = vld [vmem:[#allocation2 + $0x18] sm:$0xff]   ;;  %v4586_v4 = vsel %vm12970_vm2, 0, %v4585_v44  ;;  %v4636_v0 = vsel %vm12987_vm13, %v4631_v57, %v4635_v21  ;;  %4640 = vst [vmem:[#allocation2 + $0x2c] sm:$0x1] %v4639_v5  ;;  %vm14749_vm15 = vmmov %vm14747_vm0  ;;  %v5314_v62 = vrot.slane %v5312_v11, 1  ;;  %v5315_v18 = vshll.u32 %v13116_v27, 16 }
 0x27d   : > { %v4579_v31 = vld [vmem:[#allocation2 + $0x20] sm:$0x8]  ;;  %4587 = vst [vmem:[#allocation2 + $0x24] sm:$0x8] %v4586_v4  ;;  %4637 = vst [vmem:[#allocation2 + $0x28] sm:$0xf] %v4636_v0 }
 0x27e   : > { %v4981_v19 = vrot.slane %v13127_v53, 1  ;;  %v4724_v52 = vshll.u32 %v13127_v53, 16  ;;  %v4580_v26 = vsel %vm12970_vm2, %v13064_v46, %v4579_v31  ;;  %v5822_v46 = vshll.u32 %v13134_v42, 16  ;;  %vm14748_vm2 = vmmov %vm14742_vm9  ;;  %v13188_v58 = vld [vmem:[#allocation2 + $0x18] sm:$0xff]  }
 0x27f   : > { %4581 = vst [vmem:[#allocation2 + $0x20] sm:$0x8] %v4580_v26  ;;  %v4728_v43 = vshrl.u32 %v13127_v53, 16  ;;  %vm14751_vm13 = vmmov %vm14747_vm0  ;;  %v5836_v0 = vshrl.u32 %v13188_v58, 16  ;;  %v5839_v31 = vshll.u32 %v13188_v58, 16  ;;  %v5306_v34 = vrot.slane %v5304_v15, 1 }
 0x280   : > { %v4982_v51 = vsel %vm14746_vm10, %v4979_v55, %v4981_v19  ;;  %v4726_v32 = vrot.slane %v4724_v52, 1  ;;  %v5830_v55 = vshll.u32 %v13146_v36, 16  ;;  %v5824_v63 = vrot.slane %v5822_v46, 3  ;;  %vm14753_vm11 = vmmov %vm14747_vm0 }
 0x281   : > { %10385 = vmatmul.mubr.msk.bf16.gmra.mxu0 %vm14747_vm0, %v4982_v51  ;;  %vm14756_vm9 = vmmov %vm14744_vm4  ;;  %v5309_v46 = vrot.slane %v5307_v40, 2  ;;  %v5841_v41 = vrot.slane %v5839_v31, 3 }
 0x282   : > { %v4727_v54 = vsel %vm14748_vm2, %v4722_v16, %v4726_v32  ;;  %10388 = vmatprep.mubr.msk.bf16.mxu0 %vm14738_vm14, %v14737_v12  ;;  %v5832_v59 = vrot.slane %v5830_v55, 3  ;;  %v4730_v33 = vor.u32 %v4728_v43, %v4726_v32  ;;  %v5825_v22 = vor.u32 %v5824_v63, %v5821_v2  ;;  %vm14757_vm1 = vmmov %vm14750_vm8 }
 0x283   : > { %10329 = vmatmul.mubr.msk.bf16.gmra.mxu1 %vm14749_vm15, %v4727_v54  ;;  %v4641_v25 = vld [vmem:[#allocation2 + $0x2c] sm:$0x3]  ;;  %vm14758_vm4 = vmmov %vm14747_vm0  ;;  %v5321_v43 = vshrl.u32 %v13118_v48, 16  ;;  %vm14761_vm15 = vsmask.f32 6400 }
 0x284   : > { %10332 = vmatprep.mubr.msk.bf16.mxu1 %vm14738_vm14, %v14737_v12  ;;  %v4642_v39 = vsel %vm13016_vm3, 0, %v4641_v25  ;;  %v10738_v7 = vld [vmem:[#allocation2 + $0x28] ss:$0 sps:$4 sm:$0x11]   ;;  %vm14752_vm3 = vmmov %vm14748_vm2  ;;  %v5833_v45 = vor.u32 %v5832_v59, %v5829_v61 }
 0x285   : > { %4643 = vst [vmem:[#allocation2 + $0x2c] sm:$0x3] %v4642_v39  ;;  %v13182_v20 = vld [vmem:[#allocation2 + $0x24] sm:$0xff]   ;;  %v4740_v37 = vshll.u32 %v10738_v7, 16  ;;  %v4985_v56 = vrot.slane %v10738_v7, 1  ;;  %vm14759_vm10 = vmmov %vm14748_vm2  ;;  %v5323_v40 = vrot.slane %v5321_v43, 1 }
 0x286   : > { %v13168_v14 = vld [vmem:[#allocation2 + $0x20] sm:$0xff]   ;;  %v13199_v57 = vsel %vm14754_vm12, %v5825_v22, %v5833_v45  ;;  %v5498_v29 = vrot.slane %v13182_v20, 2  ;;  %vm14760_vm2 = vmmov %vm14754_vm12 }
 0x287   : > { %v4983_v50 = vrot.slane %v13168_v14, 1  ;;  %v4732_v28 = vshll.u32 %v13168_v14, 16  ;;  %v13180_v35 = vld [vmem:[#allocation2 + $0x1c] sm:$0xff]   ;;  %v4736_v21 = vshrl.u32 %v13168_v14, 16  ;;  %v4742_v32 = vrot.slane %v4740_v37, 1  ;;  %vm14766_vm12 = vmmov %vm14761_vm15 }
 0x288   : > { %v5496_v5 = vrot.slane %v13180_v35, 2  ;;  %v13203_v4 = vld [vmem:[#allocation2 + $0x20] sm:$0xff]   ;;  %v10743_v37 = vld [vmem:[%s14502_s3 + $0x78] sm:$0xff]  }
 0x289   : > { %v4984_v17 = vsel %vm14750_vm8, %v4981_v19, %v4983_v50  ;;  %v4734_v10 = vrot.slane %v4732_v28, 1  ;;  %v5317_v19 = vrot.slane %v5315_v18, 2  ;;  %v4986_v16 = vsel %vm14757_vm1, %v4983_v50, %v4985_v56  ;;  %vm14762_vm8 = vmmov %vm14747_vm0 }
 0x28a   : > { %10389 = vmatmul.mubr.msk.bf16.gmra.mxu0 %vm14751_vm13, %v4984_v17  ;;  %v13212_v52 = vsel %vm14755_vm6, %v5494_v8, %v5496_v5  ;;  %v13215_v26 = vsel %vm14756_vm9, %v5496_v5, %v5498_v29  ;;  %v5838_v8 = vrot.slane %v5836_v0, 2  ;;  %v5845_v55 = vshrl.u32 %v13203_v4, 16  ;;  %vm14763_vm13 = vmmov %vm14760_vm2 }
 0x28b   : > { %v4735_v3 = vsel %vm14752_vm3, %v4730_v33, %v4734_v10  ;;  %10392 = vmatprep.mubr.msk.bf16.mxu0 %vm14738_vm14, %v14737_v12  ;;  %v4738_v49 = vor.u32 %v4736_v21, %v4734_v10  ;;  %v5318_v60 = vor.u32 %v5317_v19, %v5314_v62  ;;  %v5848_v2 = vshll.u32 %v13203_v4, 16  ;;  %v10749_v33 = vld [vmem:[%s14502_s3 + $0xd8] sm:$0xff]   ;;  %vm14764_vm3 = vmmov %vm14760_vm2  ;;  %v10750_v21 = vld [vmem:[%s14502_s3 + $0xd0] sm:$0xff]  }
 0x28c   : > { %10333 = vmatmul.mubr.msk.bf16.gmra.mxu1 %vm14753_vm11, %v4735_v3  ;;  %v13196_v44 = vld [vmem:[#allocation2 + $0x2c] ss:$0 sps:$4 sm:$0x33]   ;;  %v5324_v50 = vshll.u32 %v13118_v48, 16  ;;  %v5842_v28 = vor.u32 %v5841_v41, %v5838_v8  ;;  %v5847_v61 = vrot.slane %v5845_v55, 2  ;;  %v5310_v17 = vor.u32 %v5309_v46, %v5306_v34  ;;  %vm14765_vm11 = vmmov %vm14747_vm0 }
 0x28d   : > { %10336 = vmatprep.mubr.msk.bf16.mxu1 %vm14738_vm14, %v14737_v12  ;;  %v13207_v24 = vld [vmem:[#allocation2 + $0x28] sm:$0xff]   ;;  %v5500_v51 = vrot.slane %v13196_v44, 2  ;;  %v4743_v25 = vsel %vm14759_vm10, %v4738_v49, %v4742_v32  ;;  %v5850_v59 = vrot.slane %v5848_v2, 3  ;;  %v5330_v56 = vshrl.u32 %v13180_v35, 16  ;;  %vm14767_vm6 = vmmov %vm14747_vm0 }
 0x28e   : > { %v5854_v63 = vshrl.u32 %v13207_v24, 16  ;;  %v5857_v39 = vshll.u32 %v13207_v24, 16  ;;  %v13239_v10 = vsel %vm14760_vm2, %v5833_v45, %v5842_v28  ;;  %v5319_v15 = vsel %vm14761_vm15, %v5310_v17, %v5318_v60  ;;  %vm14768_vm9 = vmmov %vm14747_vm0 }
 0x28f   : > { %v13221_v54 = vsel %vm14745_vm5, %v5498_v29, %v5500_v51  ;;  %v5851_v22 = vor.u32 %v5850_v59, %v5847_v61  ;;  %v5326_v62 = vrot.slane %v5324_v50, 2  ;;  %v10745_v29 = vld [vmem:[%s14502_s3 + $0x70] sm:$0xff]   ;;  %v5333_v49 = vshll.u32 %v13180_v35, 16  ;;  %v10747_v51 = vld [vmem:[%s14502_s3 + $0x68] sm:$0xff]   ;;  %vm14769_vm1 = vmmov %vm14766_vm12 }
 0x290   : > { %v5856_v7 = vrot.slane %v5854_v63, 2  ;;  %v5859_v11 = vrot.slane %v5857_v39, 3  ;;  %v5332_v31 = vrot.slane %v5330_v56, 1  ;;  %v5339_v34 = vshrl.u32 %v13182_v20, 16  ;;  %vm14771_vm5 = vmmov %vm14747_vm0  ;;  %v10763_v61 = vld [vmem:[%s14502_s3 + $0x118] sm:$0xff]  }
 0x291   : > { %v13249_v18 = vsel %vm14763_vm13, %v5842_v28, %v5851_v22  ;;  %v5327_v5 = vor.u32 %v5326_v62, %v5323_v40  ;;  %v5335_v19 = vrot.slane %v5333_v49, 2  ;;  %v5342_v46 = vshll.u32 %v13182_v20, 16  ;;  %vm14772_vm10 = vmmov %vm14769_vm1  ;;  %v10765_v62 = vld [vmem:[%s14502_s3 + $0xa0] sm:$0xff]  }
 0x292   : > { %10393 = vmatmul.mubr.msk.bf16.gmra.mxu0 %vm14758_vm4, %v4986_v16  ;;  %v13241_v3 = vor.u32 %v5859_v11, %v5856_v7  ;;  %v10754_v16 = vld [vmem:[%s14502_s3 + $0xc0] sm:$0xff]   ;;  %v5341_v8 = vrot.slane %v5339_v34, 1  ;;  %vm14770_vm4 = vmmov %vm14747_vm0  ;;  %v5351_v2 = vshll.u32 %v13196_v44, 16  ;;  %v5158_v28 = vrot.slane %v13116_v27, 1  ;;  %v10764_v27 = vld [vmem:[%s14502_s3 + $0x110] sm:$0xff]  }
 0x293   : > { %10432 = vmatprep.mubr.msk.bf16.mxu0 %vm14738_vm14, %v14737_v12  ;;  %v5328_v0 = vsel %vm14766_vm12, %v5318_v60, %v5327_v5  ;;  %v5336_v32 = vor.u32 %v5335_v19, %v5332_v31  ;;  %v5344_v41 = vrot.slane %v5342_v46, 2  ;;  %v5348_v60 = vshrl.u32 %v13196_v44, 16  ;;  %vm14773_vm2 = vmmov %vm14747_vm0  ;;  %v10759_v11 = vld [vmem:[%s14502_s3 + $0xb0] sm:$0xff]   ;;  %v10768_v31 = vld [vmem:[#allocation2 + $0x2c] ss:$0 sps:$4 sm:$0x11]  }
 0x294   : > { %10337 = vmatmul.mubr.msk.bf16.gmra.mxu1 %vm14747_vm0, %v4743_v25  ;;  %v13253_v45 = vsel %vm14764_vm3, %v5851_v22, %v13241_v3  ;;  %v10751_v25 = vld [vmem:[%s14502_s3 + $0x60] sm:$0xff]   ;;  %v5353_v43 = vrot.slane %v5351_v2, 2  ;;  %vm14774_vm15 = vmmov %vm14769_vm1  ;;  %v5672_v44 = vrot.slane %v13134_v42, 2  ;;  %vm14777_vm3 = vcmask 1045504  }
 0x295   : > { %10348 = vmatprep.mubr.msk.bf16.mxu1 %vm14738_vm14, %v14737_v12  ;;  %v5345_v55 = vor.u32 %v5344_v41, %v5341_v8  ;;  %v5350_v39 = vrot.slane %v5348_v60, 1  ;;  %vm14776_vm13 = vmmov %vm14747_vm0  ;;  %v5157_v7 = vrot.slane %v13173_v38, 1  ;;  %vm14779_vm12 = vcmask 1046528   ;;  %v10776_v2 = vld [vmem:[#allocation2 + $0x30] ss:$0 sps:$4 sm:$0x77]  }
 0x296   : > { %v5675_v38 = vrot.slane %v13188_v58, 2  ;;  %v5160_v17 = vrot.slane %v13118_v48, 1  ;;  %v5677_v40 = vrot.slane %v13203_v4, 2  ;;  %v5679_v56 = vrot.slane %v13207_v24, 2 }
 0x297   : > { %v5346_v63 = vsel %vm14772_vm10, %v5336_v32, %v5345_v55  ;;  %v5159_v42 = vsel %vm14779_vm12, %v5157_v7, %v5158_v28  ;;  %vm14785_vm10 = vmmov %vm14777_vm3  ;;  %v6009_v8 = vrot.slane %v13188_v58, 3  ;;  %v10775_v58 = vld [vmem:[%s14502_s3 + $0xe0] sm:$0xff]  }
 0x29a   : > { %10433 = vmatmul.mubr.msk.bf16.vlgmr.msra.gmra.mxu0 %vm14762_vm8, %v5319_v15  ;;  %vm14775_vm8 = vmmov %vm14747_vm0  ;;  %v10761_v15 = vld [vmem:[%s14502_s3 + $0xa8] sm:$0xff]  }
 0x29b   : > { %10436 = vmatprep.mubr.msk.bf16.mxu0 %vm14738_vm14, %v14737_v12  ;;  %10481 = vmatpush3.bf16.msra.mxu0 %v10749_v33  ;;  %v10767_v33 = vld [vmem:[%s14502_s3 + $0x108] sm:$0xff]  }
 0x29c   : > { %10349 = vmatmul.mubr.msk.bf16.vlgmr.msra.gmra.mxu1 %vm14765_vm11, %v12911_v30  ;;  %10482 = vmatprep.subr.bf16.mxu0 %v14737_v12  ;;  %v10753_v30 = vld [vmem:[%s14502_s3 + $0xc8] sm:$0xff]   ;;  %vm14778_vm11 = vmmov %vm14747_vm0 }
 0x29d   : > { %10397 = vmatpush3.bf16.msra.mxu1 %v10743_v37  ;;  %10352 = vmatprep.mubr.msk.bf16.mxu1 %vm14738_vm14, %v14737_v12  ;;  %v10769_v37 = vld [vmem:[%s14502_s3 + $0x100] sm:$0xff]  }
 0x29e   : > { %10398 = vmatprep.subr.bf16.mxu1 %v14737_v12 }
 0x29f   : > { %10483 = vmatpush3.bf16.msra.mxu0 %v10750_v21  ;;  %v5162_v21 = vrot.slane %v13180_v35, 1  ;;  %v5164_v35 = vrot.slane %v13182_v20, 1 }
 0x2a0   : > { %10484 = vmatprep.subr.bf16.mxu0 %v14737_v12 }
 0x2a1   : > { %10399 = vmatpush3.bf16.msra.mxu1 %v10745_v29 }
 0x2a2   : > { %10437 = vmatmul.mubr.msk.bf16.gmra.mxu0 %vm14767_vm6, %v5328_v0  ;;  %10400 = vmatprep.subr.bf16.mxu1 %v14737_v12  ;;  %vm14780_vm6 = vmmov %vm14747_vm0 }
 0x2a3   : > { %10440 = vmatprep.mubr.msk.bf16.mxu0 %vm14738_vm14, %v14737_v12  ;;  %10485 = vmatpush3.bf16.msra.mxu0 %v10753_v30  ;;  %v10766_v30 = vld [vmem:[#allocation2 + $0x30] ss:$0 sps:$4 sm:$0x33]  }
 0x2a4   : > { %10353 = vmatmul.mubr.msk.bf16.gmra.mxu1 %vm14768_vm9, %v12997_v23  ;;  %10486 = vmatprep.subr.bf16.mxu0 %v14737_v12  ;;  %v5337_v23 = vsel %vm14769_vm1, %v5327_v5, %v5336_v32  ;;  %vm14781_vm9 = vmmov %vm14777_vm3  ;;  %v5678_v5 = vsel %vm14785_vm10, %v5675_v38, %v5677_v40  ;;  %v5681_v19 = vrot.slane %v10766_v30, 2 }
 0x2a5   : > { %10356 = vmatprep.mubr.msk.bf16.mxu1 %vm14738_vm14, %v14737_v12  ;;  %10401 = vmatpush3.bf16.msra.mxu1 %v10747_v51  ;;  %vm14782_vm1 = vmmov %vm14747_vm0  ;;  %v5166_v51 = vrot.slane %v10768_v31, 1 }
 0x2a6   : > { %10402 = vmatprep.subr.bf16.mxu1 %v14737_v12  ;;  %vm14798_vm10 = vmmov %vm14747_vm0 }
 0x2a7   : > { %10487 = vmatpush3.bf16.msra.mxu0 %v10754_v16  ;;  %v5993_v16 = vld [vmem:[#allocation2 + $0x8] sm:$0x8] }
 0x2a8   : > { %10536 = vmatprep.subr.bf16.mxu0 %v14737_v12  ;;  %v9355_v32 = vcombine.low %v5993_v16, %v13120_v47  ;;  %v10772_v47 = vld [vmem:[%s14502_s3 + $0xf8] sm:$0xff]  }
 0x2a9   : > { %10403 = vmatpush3.bf16.msra.mxu1 %v10751_v25  ;;  %v6007_v25 = vrot.slane %v13146_v36, 3 }
 0x2aa   : > { %10441 = vmatmul.mubr.msk.bf16.gmra.mxu0 %vm14770_vm4, %v5337_v23  ;;  %10452 = vmatprep.subr.bf16.mxu1 %v14737_v12  ;;  %vm14783_vm4 = vmmov %vm14779_vm12  ;;  %v6006_v46 = vrot.slane %v9355_v32, 3 }
 0x2ab   : > { %10444 = vmatprep.mubr.msk.bf16.mxu0 %vm14738_vm14, %v14737_v12  ;;  %v5161_v48 = vsel %vm14783_vm4, %v5158_v28, %v5160_v17 }
 0x2ac   : > { %10357 = vmatmul.mubr.msk.bf16.gmra.mxu1 %vm14771_vm5, %v13050_v9  ;;  %v5354_v9 = vor.u32 %v5353_v43, %v5350_v39  ;;  %vm14784_vm5 = vmmov %vm14747_vm0  ;;  %v5863_v43 = vshrl.u32 %v10776_v2, 16 }
 0x2ad   : > { %10360 = vmatprep.mubr.msk.bf16.mxu1 %vm14738_vm14, %v14737_v12 }
 0x2ae   : > { %v5355_v50 = vsel %vm14774_vm15, %v5345_v55, %v5354_v9  ;;  %vm14787_vm15 = vmmov %vm14747_vm0  ;;  %v10774_v55 = vld [vmem:[%s14502_s3 + $0xe8] sm:$0xff]   ;;  %v5866_v9 = vshll.u32 %v10776_v2, 16  ;;  %v5865_v28 = vrot.slane %v5863_v43, 2 }
 0x2b2   : > { %10445 = vmatmul.mubr.msk.bf16.gmra.mxu0 %vm14747_vm0, %v5346_v63  ;;  %v6015_v63 = vrot.slane %v10776_v2, 3 }
 0x2b3   : > { %10448 = vmatprep.mubr.msk.bf16.mxu0 %vm14738_vm14, %v14737_v12 }
 0x2b4   : > { %10361 = vmatmul.mubr.msk.bf16.gmra.mxu1 %vm14773_vm2, %v13127_v53  ;;  %v5673_v53 = vrot.slane %v13146_v36, 2  ;;  %vm14786_vm2 = vmmov %vm14783_vm4  ;;  %vm14796_vm4 = vcmask 1044480   ;;  %v10773_v36 = vld [vmem:[%s14502_s3 + $0xf0] sm:$0xff]  }
 0x2b5   : > { %10364 = vmatprep.mubr.msk.bf16.mxu1 %vm14738_vm14, %v14737_v12  ;;  %v5163_v29 = vsel %vm14786_vm2, %v5160_v17, %v5162_v21  ;;  %v6008_v23 = vsel %vm14796_vm4, %v6006_v46, %v6007_v25 }
 0x2b6   : > { %v5674_v59 = vsel %vm14777_vm3, %v5672_v44, %v5673_v53  ;;  %v5676_v22 = vsel %vm14781_vm9, %v5673_v53, %v5675_v38  ;;  %vm14794_vm9 = vmmov %vm14786_vm2 }
 0x2b7   : > { %v5167_v34 = vsel %vm14794_vm9, %v5164_v35, %v5166_v51 }
 0x2ba   : > { %10449 = vmatmul.mubr.msk.bf16.gmra.mxu0 %vm14775_vm8, %v5355_v50  ;;  %vm14788_vm8 = vmmov %vm14777_vm3 }
 0x2bb   : > { %10488 = vmatprep.mubr.msk.bf16.mxu0 %vm14738_vm14, %v14737_v12  ;;  %v5680_v49 = vsel %vm14788_vm8, %v5677_v40, %v5679_v56  ;;  %vm14790_vm3 = vmmov %vm14786_vm2 }
 0x2bc   : > { %10365 = vmatmul.mubr.msk.bf16.gmra.mxu1 %vm14776_vm13, %v13168_v14  ;;  %v10757_v14 = vld [vmem:[%s14502_s3 + $0xb8] sm:$0xff]   ;;  %vm14789_vm13 = vmmov %vm14747_vm0  ;;  %v5165_v0 = vsel %vm14790_vm3, %v5162_v21, %v5164_v35 }
 0x2bd   : > { %10404 = vmatprep.mubr.msk.bf16.mxu1 %vm14738_vm14, %v14737_v12  ;;  %vm14792_vm12 = vmmov %vm14788_vm8 }
 0x2be   : > { %v5682_v20 = vsel %vm14792_vm12, %v5679_v56, %v5681_v19 }
 0x2c2   : > { %10489 = vmatmul.mubr.msk.bf16.vlgmr.msra.gmra.mxu0 %vm14778_vm11, %v5674_v59  ;;  %vm14791_vm11 = vmmov %vm14747_vm0 }
 0x2c3   : > { %10492 = vmatprep.mubr.msk.bf16.mxu0 %vm14738_vm14, %v14737_v12  ;;  %10537 = vmatpush3.bf16.msra.mxu0 %v10763_v61  ;;  %v5868_v61 = vrot.slane %v5866_v9, 3 }
 0x2c4   : > { %10405 = vmatmul.mubr.msk.bf16.vlgmr.msra.gmra.mxu1 %vm14780_vm6, %v5159_v42  ;;  %10538 = vmatprep.subr.bf16.mxu0 %v14737_v12  ;;  %vm14793_vm6 = vmmov %vm14747_vm0 }
 0x2c5   : > { %10453 = vmatpush3.bf16.msra.mxu1 %v10757_v14  ;;  %10408 = vmatprep.mubr.msk.bf16.mxu1 %vm14738_vm14, %v14737_v12  ;;  %v5869_v42 = vor.u32 %v5868_v61, %v5865_v28 }
 0x2c6   : > { %10454 = vmatprep.subr.bf16.mxu1 %v14737_v12 }
 0x2c7   : > { %10539 = vmatpush3.bf16.msra.mxu0 %v10764_v27 }
 0x2c8   : > { %10540 = vmatprep.subr.bf16.mxu0 %v14737_v12 }
 0x2c9   : > { %10455 = vmatpush3.bf16.msra.mxu1 %v10759_v11 }
 0x2ca   : > { %10493 = vmatmul.mubr.msk.bf16.gmra.mxu0 %vm14782_vm1, %v5676_v22  ;;  %10456 = vmatprep.subr.bf16.mxu1 %v14737_v12  ;;  %vm14795_vm1 = vmmov %vm14747_vm0 }
 0x2cb   : > { %10496 = vmatprep.mubr.msk.bf16.mxu0 %vm14738_vm14, %v14737_v12  ;;  %10541 = vmatpush3.bf16.msra.mxu0 %v10767_v33  ;;  %vm14800_vm2 = vmmov %vm14795_vm1 }
 0x2cc   : > { %10409 = vmatmul.mubr.msk.bf16.gmra.mxu1 %vm14784_vm5, %v5161_v48  ;;  %10542 = vmatprep.subr.bf16.mxu0 %v14737_v12  ;;  %vm14797_vm5 = vmmov %vm14747_vm0 }
 0x2cd   : > { %10412 = vmatprep.mubr.msk.bf16.mxu1 %vm14738_vm14, %v14737_v12  ;;  %10457 = vmatpush3.bf16.msra.mxu1 %v10761_v15  ;;  %vm14804_vm3 = vmmov %vm14795_vm1 }
 0x2ce   : > { %10458 = vmatprep.subr.bf16.mxu1 %v14737_v12  ;;  %vm14806_vm12 = vmmov %vm14795_vm1 }
 0x2cf   : > { %10543 = vmatpush3.bf16.msra.mxu0 %v10769_v37 }
 0x2d1   : > { %10459 = vmatpush3.bf16.msra.mxu1 %v10765_v62 }
 0x2d2   : > { %10497 = vmatmul.mubr.msk.bf16.gmra.mxu0 %vm14747_vm0, %v5678_v5  ;;  %10508 = vmatprep.subr.bf16.mxu1 %v14737_v12  ;;  %vm14799_vm0 = vmmov %vm14796_vm4 }
 0x2d3   : > { %10500 = vmatprep.mubr.msk.bf16.mxu0 %vm14738_vm14, %v14737_v12  ;;  %v6010_v41 = vsel %vm14799_vm0, %v6007_v25, %v6009_v8  ;;  %vm14802_vm8 = vmmov %vm14799_vm0 }
 0x2d4   : > { %10413 = vmatmul.mubr.msk.bf16.gmra.mxu1 %vm14787_vm15, %v5163_v29  ;;  %vm14801_vm15 = vmmov %vm14795_vm1 }
 0x2d5   : > { %10416 = vmatprep.mubr.msk.bf16.mxu1 %vm14738_vm14, %v14737_v12  ;;  %vm14808_vm9 = vmmov %vm14799_vm0 }
 0x2d6   : > { %vm14809_vm4 = vmmov %vm14795_vm1 }
 0x2da   : > { %10501 = vmatmul.mubr.msk.bf16.gmra.mxu0 %vm14789_vm13, %v5680_v49  ;;  %vm14803_vm13 = vmmov %vm14795_vm1 }
 0x2db   : > { %10504 = vmatprep.mubr.msk.bf16.mxu0 %vm14738_vm14, %v14737_v12 }
 0x2dc   : > { %10417 = vmatmul.mubr.msk.bf16.gmra.mxu1 %vm14791_vm11, %v5165_v0  ;;  %vm14805_vm11 = vmmov %vm14799_vm0 }
 0x2dd   : > { %10420 = vmatprep.mubr.msk.bf16.mxu1 %vm14738_vm14, %v14737_v12  ;;  %vm14812_vm0 = vmmov %vm14795_vm1 }
 0x2e2   : > { %10505 = vmatmul.mubr.msk.bf16.gmra.mxu0 %vm14793_vm6, %v5682_v20  ;;  %vm14807_vm6 = vmmov %vm14795_vm1 }
 0x2e3   : > { %10544 = vmatprep.mubr.msk.bf16.mxu0 %vm14738_vm14, %v14737_v12 }
 0x2e4   : > { %10421 = vmatmul.mubr.msk.bf16.gmra.mxu1 %vm14795_vm1, %v5167_v34 }
 0x2e5   : > { %10460 = vmatprep.mubr.msk.bf16.mxu1 %vm14738_vm14, %v14737_v12 }
 0x2ea   : > { %10545 = vmatmul.mubr.msk.bf16.vlgmr.msra.gmra.mxu0 %vm14797_vm5, %v6008_v23  ;;  %vm14810_vm5 = vmmov %vm14795_vm1 }
 0x2eb   : > { %10548 = vmatprep.mubr.msk.bf16.mxu0 %vm14738_vm14, %v14737_v12 }
 0x2ec   : > { %10461 = vmatmul.mubr.msk.bf16.vlgmr.msra.gmra.mxu1 %vm14798_vm10, %v13137_v13  ;;  %v6011_v13 = vrot.slane %v13203_v4, 3  ;;  %vm14811_vm10 = vmmov %vm14795_vm1 }
 0x2ed   : > { %10509 = vmatpush3.bf16.msra.mxu1 %v10772_v47  ;;  %10464 = vmatprep.mubr.msk.bf16.mxu1 %vm14738_vm14, %v14737_v12 }
 0x2ee   : > { %10510 = vmatprep.subr.bf16.mxu1 %v14737_v12  ;;  %v6012_v60 = vsel %vm14802_vm8, %v6009_v8, %v6011_v13  ;;  %vm14815_vm8 = vmmov %vm14812_vm0 }
 0x2f1   : > { %10511 = vmatpush3.bf16.msra.mxu1 %v10773_v36 }
 0x2f2   : > { %10549 = vmatmul.mubr.msk.bf16.gmra.mxu0 %vm14800_vm2, %v6010_v41  ;;  %10512 = vmatprep.subr.bf16.mxu1 %v14737_v12  ;;  %vm14813_vm2 = vmmov %vm14812_vm0 }
 0x2f3   : > { %10552 = vmatprep.mubr.msk.bf16.mxu0 %vm14738_vm14, %v14737_v12 }
 0x2f4   : > { %10465 = vmatmul.mubr.msk.bf16.gmra.mxu1 %vm14801_vm15, %v13151_v1  ;;  %v6013_v1 = vrot.slane %v13207_v24, 3  ;;  %vm14814_vm15 = vsmask.f32 5376 }
 0x2f5   : > { %10468 = vmatprep.mubr.msk.bf16.mxu1 %vm14738_vm14, %v14737_v12  ;;  %10513 = vmatpush3.bf16.msra.mxu1 %v10774_v55  ;;  %v5870_v11 = vsel %vm14814_vm15, %v13241_v3, %v5869_v42 }
 0x2f6   : > { %10514 = vmatprep.subr.bf16.mxu1 %v14737_v12  ;;  %v6014_v4 = vsel %vm14805_vm11, %v6011_v13, %v6013_v1  ;;  %v6016_v24 = vsel %vm14808_vm9, %v6013_v1, %v6015_v63  ;;  %vm14817_vm11 = vsmask.f32 3328  ;;  %vm14818_vm9 = vsmask.f32 256 }
 0x2f9   : > { %10515 = vmatpush3.bf16.msra.mxu1 %v10775_v58 }
 0x2fa   : > { %10553 = vmatmul.mubr.msk.bf16.gmra.mxu0 %vm14803_vm13, %v6012_v60  ;;  %vm6177_vm13 = vcmask 257024  }
 0x2fb   : > { %10556 = vmatprep.mubr.msk.bf16.mxu0 %vm14738_vm14, %v14737_v12 }
 0x2fc   : > { %10469 = vmatmul.mubr.msk.bf16.gmra.mxu1 %vm14804_vm3, %v13212_v52  ;;  %vm6182_vm3 = vcmask 257027  }
 0x2fd   : > { %10472 = vmatprep.mubr.msk.bf16.mxu1 %vm14738_vm14, %v14737_v12 }
 0x302   : > { %10557 = vmatmul.mubr.msk.bf16.gmra.mxu0 %vm14806_vm12, %v6014_v4  ;;  %v14816_v4 = vmov 0   ;;  %vm6178_vm12 = vmand %vm6177_vm13, %vm14817_vm11 }
 0x303   : > { %10560 = vmatprep.mubr.msk.bf16.mxu0 %vm14738_vm14, %v14737_v12  ;;  %6185 = vst.msk [vmem:[#allocation3 + $0x10] sm:$0xf] %vm6177_vm13, %v14816_v4 }
 0x304   : > { %10473 = vmatmul.mubr.msk.bf16.gmra.mxu1 %vm14807_vm6, %v13215_v26  ;;  %6183 = vst.msk [vmem:[#allocation3 + $0xc] sm:$0x8] %vm6182_vm3, %v14816_v4  ;;  %vm6316_vm6 = vcmask 253952  }
 0x305   : > { %10476 = vmatprep.mubr.msk.bf16.mxu1 %vm14738_vm14, %v14737_v12 }
 0x30a   : > { %10561 = vmatmul.mubr.msk.bf16.gmra.mxu0 %vm14795_vm1, %v6016_v24  ;;  %vm13605_vm1 = vmand %vm6316_vm6, %vm14818_vm9  ;;  %vm14827_vm9 = vsmask.f32 7946 }
 0x30c   : > { %10477 = vmatmul.mubr.msk.bf16.gmra.mxu1 %vm14809_vm4, %v13221_v54  ;;  %vm6166_vm4 = vcmask 261120  }
 0x30d   : > { %10516 = vmatprep.mubr.msk.bf16.mxu1 %vm14738_vm14, %v14737_v12 }
 0x314   : > { %10517 = vmatmul.mubr.msk.bf16.vlgmr.msra.gmra.mxu1 %vm14810_vm5, %v13199_v57  ;;  %vm14821_vm5 = vsmask.f32 7950 }
 0x315   : > { %10520 = vmatprep.mubr.msk.bf16.mxu1 %vm14738_vm14, %v14737_v12 }
 0x31c   : > { %10521 = vmatmul.mubr.msk.bf16.gmra.mxu1 %vm14811_vm10, %v13239_v10  ;;  %vm13718_vm10 = vmand %vm6182_vm3, %vm14821_vm5  ;;  %vm14825_vm3 = vsmask.f32 2310 }
 0x31d   : > { %10524 = vmatprep.mubr.msk.bf16.mxu1 %vm14738_vm14, %v14737_v12 }
 0x322   : > { %v5060_v52 = vpop.f32.mrf.mxu0 }
 0x324   : > { %10525 = vmatmul.mubr.msk.bf16.gmra.mxu1 %vm14812_vm0, %v13249_v18  ;;  %v10378_v54 = vpop.f32.mrf.mxu0  ;;  %vm6271_vm0 = vcmask 254976  }
 0x325   : > { %v4817_v26 = vpop.f32.mrf.mxu1  ;;  %10528 = vmatprep.mubr.msk.bf16.mxu1 %vm14738_vm14, %v14737_v12 }
 0x326   : > { %v5063_v57 = vpop.f32.mrf.mxu0 }
 0x327   : > { %v10322_v39 = vpop.f32.mrf.mxu1 }
 0x328   : > { %v10379_v44 = vpop.f32.mrf.mxu0 }
 0x329   : > { %v4820_v50 = vpop.f32.mrf.mxu1 }
 0x32b   : > { %v10323_v53 = vpop.f32.mrf.mxu1  ;;  %v5068_v10 = vpop.f32.mrf.mxu0 }
 0x32c   : > { %10529 = vmatmul.mubr.msk.bf16.gmra.mxu1 %vm14813_vm2, %v13253_v45  ;;  %vm14824_vm2 = vsmask.f32 1280 }
 0x32d   : > { %v10382_v18 = vpop.f32.mrf.mxu0  ;;  %10532 = vmatprep.mubr.msk.bf16.mxu1 %vm14738_vm14, %v14737_v12  ;;  %vm6272_vm15 = vmand %vm6271_vm0, %vm14824_vm2  ;;  %vm6394_vm2 = vcmask 256000  }
 0x32e   : > { %v4825_v59 = vpop.f32.mrf.mxu1 }
 0x32f   : > { %v5071_v14 = vpop.f32.mrf.mxu0 }
 0x330   : > { %v10326_v7 = vpop.f32.mrf.mxu1 }
 0x331   : > { %v10383_v38 = vpop.f32.mrf.mxu0 }
 0x332   : > { %v4828_v27 = vpop.f32.mrf.mxu1 }
 0x334   : > { %v10327_v17 = vpop.f32.mrf.mxu1  ;;  %10533 = vmatmul.mubr.msk.bf16.gmra.mxu1 %vm14815_vm8, %v5870_v11  ;;  %vm6276_vm8 = vcmask 256001  }
 0x335   : > { %vm6277_vm11 = vmand %vm6276_vm8, %vm14825_vm3 }
 0x341   : > { %v5076_v33 = vpop.f32.mrf.mxu0 }
 0x343   : > { %v4833_v22 = vpop.f32.mrf.mxu1  ;;  %v10386_v15 = vpop.f32.mrf.mxu0 }
 0x345   : > { %v10330_v45 = vpop.f32.mrf.mxu1  ;;  %v5079_v48 = vpop.f32.mrf.mxu0 }
 0x347   : > { %v4836_v37 = vpop.f32.mrf.mxu1  ;;  %v10387_v40 = vpop.f32.mrf.mxu0 }
 0x349   : > { %v10331_v62 = vpop.f32.mrf.mxu1 }
 0x34a   : > { %v5084_v21 = vpop.f32.mrf.mxu0 }
 0x34c   : > { %v4841_v5 = vpop.f32.mrf.mxu1  ;;  %v10390_v29 = vpop.f32.mrf.mxu0 }
 0x34e   : > { %v10334_v56 = vpop.f32.mrf.mxu1  ;;  %v5087_v35 = vpop.f32.mrf.mxu0 }
 0x350   : > { %v4844_v49 = vpop.f32.mrf.mxu1  ;;  %v10391_v30 = vpop.f32.mrf.mxu0 }
 0x352   : > { %v10335_v0 = vpop.f32.mrf.mxu1  ;;  %v13483_v3 = vpop.f32.mrf.mxu0 }
 0x354   : > { %v4849_v31 = vpop.f32.mrf.mxu1  ;;  %v10394_v19 = vpop.f32.mrf.mxu0 }
 0x356   : > { %v10338_v51 = vpop.f32.mrf.mxu1  ;;  %v13485_v16 = vpop.f32.mrf.mxu0 }
 0x358   : > { %v4852_v20 = vpop.f32.mrf.mxu1  ;;  %v10395_v32 = vpop.f32.mrf.mxu0 }
 0x35a   : > { %v10339_v34 = vpop.f32.mrf.mxu1  ;;  %v13487_v46 = vpop.f32.mrf.mxu0 }
 0x35c   : > { %v4924_v25 = vpop.f32.mrf.mxu1  ;;  %v10434_v23 = vpop.f32.mrf.mxu0 }
 0x35d   : > { %v4925_v47 = vadd.f32 %v4924_v25, %v4817_v26 }
 0x35e   : > { %v10350_v8 = vpop.f32.mrf.mxu1  ;;  %v13489_v36 = vpop.f32.mrf.mxu0 }
 0x35f   : > { %v5099_v41 = vadd.f32 %v5060_v52, %v4925_v47 }
 0x360   : > { %v4927_v55 = vpop.f32.mrf.mxu1  ;;  %v10435_v13 = vpop.f32.mrf.mxu0 }
 0x361   : > { %v4928_v58 = vadd.f32 %v4927_v55, %v4820_v50 }
 0x362   : > { %v10351_v60 = vpop.f32.mrf.mxu1  ;;  %v13491_v1 = vpop.f32.mrf.mxu0 }
 0x363   : > { %v5100_v2 = vadd.f32 %v5063_v57, %v4928_v58 }
 0x364   : > { %v4932_v63 = vpop.f32.mrf.mxu1  ;;  %v10438_v24 = vpop.f32.mrf.mxu0 }
 0x365   : > { %v4933_v54 = vadd.f32 %v4932_v63, %v4825_v59 }
 0x366   : > { %v10354_v39 = vpop.f32.mrf.mxu1  ;;  %v13495_v26 = vpop.f32.mrf.mxu0 }
 0x367   : > { %v5101_v43 = vadd.f32 %v5068_v10, %v4933_v54 }
 0x368   : > { %v4935_v9 = vpop.f32.mrf.mxu1  ;;  %v10439_v52 = vpop.f32.mrf.mxu0 }
 0x369   : > { %v4936_v44 = vadd.f32 %v4935_v9, %v4828_v27 }
 0x36a   : > { %v10355_v53 = vpop.f32.mrf.mxu1  ;;  %v13497_v50 = vpop.f32.mrf.mxu0 }
 0x36b   : > { %v13499_v28 = vadd.f32 %v5071_v14, %v4936_v44 }
 0x36c   : > { %v4940_v61 = vpop.f32.mrf.mxu1  ;;  %v10442_v18 = vpop.f32.mrf.mxu0 }
 0x36d   : > { %v4941_v7 = vadd.f32 %v4940_v61, %v4833_v22 }
 0x36e   : > { %v10358_v42 = vpop.f32.mrf.mxu1  ;;  %v13501_v57 = vpop.f32.mrf.mxu0 }
 0x36f   : > { %v13503_v38 = vadd.f32 %v5076_v33, %v4941_v7 }
 0x370   : > { %v4943_v59 = vpop.f32.mrf.mxu1  ;;  %v10443_v11 = vpop.f32.mrf.mxu0 }
 0x371   : > { %v4944_v17 = vadd.f32 %v4943_v59, %v4836_v37 }
 0x372   : > { %v10359_v10 = vpop.f32.mrf.mxu1  ;;  %v13505_v15 = vpop.f32.mrf.mxu0 }
 0x373   : > { %v13507_v27 = vadd.f32 %v5079_v48, %v4944_v17 }
 0x374   : > { %v4948_v45 = vpop.f32.mrf.mxu1  ;;  %v10446_v40 = vpop.f32.mrf.mxu0 }
 0x375   : > { %v4949_v14 = vadd.f32 %v4948_v45, %v4841_v5 }
 0x376   : > { %v10362_v62 = vpop.f32.mrf.mxu1  ;;  %v13509_v29 = vpop.f32.mrf.mxu0 }
 0x377   : > { %v13511_v22 = vadd.f32 %v5084_v21, %v4949_v14 }
 0x378   : > { %v4951_v56 = vpop.f32.mrf.mxu1  ;;  %v10447_v30 = vpop.f32.mrf.mxu0 }
 0x379   : > { %v4952_v33 = vadd.f32 %v4951_v56, %v4844_v49 }
 0x37a   : > { %v10363_v0 = vpop.f32.mrf.mxu1  ;;  %v13513_v19 = vpop.f32.mrf.mxu0 }
 0x37b   : > { %v13515_v37 = vadd.f32 %v5087_v35, %v4952_v33 }
 0x37c   : > { %v4956_v51 = vpop.f32.mrf.mxu1  ;;  %v10450_v32 = vpop.f32.mrf.mxu0 }
 0x37d   : > { %v4957_v48 = vadd.f32 %v4956_v51, %v4849_v31 }
 0x37e   : > { %v10366_v34 = vpop.f32.mrf.mxu1  ;;  %v13517_v25 = vpop.f32.mrf.mxu0 }
 0x37f   : > { %v13520_v5 = vadd.f32 %v13483_v3, %v4957_v48 }
 0x380   : > { %v4959_v23 = vpop.f32.mrf.mxu1  ;;  %v10451_v21 = vpop.f32.mrf.mxu0 }
 0x381   : > { %v4960_v47 = vadd.f32 %v4959_v23, %v4852_v20 }
 0x382   : > { %v10367_v8 = vpop.f32.mrf.mxu1  ;;  %v13522_v55 = vpop.f32.mrf.mxu0 }
 0x383   : > { %v13525_v49 = vadd.f32 %v13485_v16, %v4960_v47 }
 0x384   : > { %v5241_v35 = vpop.f32.mrf.mxu1  ;;  %v10490_v13 = vpop.f32.mrf.mxu0 }
 0x385   : > { %v5280_v58 = vadd.f32 %v5241_v35, %v5099_v41  ;;  %v10777_v41 = vld [vmem:[%s14504_s5 + $0x18] sm:$0xff]  }
 0x386   : > { %v10406_v60 = vpop.f32.mrf.mxu1  ;;  %v13527_v31 = vpop.f32.mrf.mxu0  ;;  %10564 = vmatprep.subr.bf16.mxu1 %v10777_v41 }
 0x387   : > { %v13530_v63 = vadd.f32 %v13487_v46, %v5280_v58  ;;  %v10778_v46 = vld [vmem:[%s14504_s5 + $0x10] sm:$0xff]   ;;  %10565 = vmatpush3.bf16.msra.mxu1 %v10777_v41 }
 0x388   : > { %v5244_v3 = vpop.f32.mrf.mxu1  ;;  %v10491_v24 = vpop.f32.mrf.mxu0  ;;  %10566 = vmatprep.subr.bf16.mxu1 %v10778_v46 }
 0x389   : > { %v5281_v54 = vadd.f32 %v5244_v3, %v5100_v2  ;;  %v10779_v2 = vld [vmem:[%s14504_s5 + $0x48] sm:$0xff]  }
 0x38a   : > { %v10407_v39 = vpop.f32.mrf.mxu1  ;;  %v13532_v20 = vpop.f32.mrf.mxu0  ;;  %10596 = vmatprep.subr.bf16.mxu0 %v10779_v2 }
 0x38b   : > { %v13535_v9 = vadd.f32 %v13489_v36, %v5281_v54  ;;  %v10780_v36 = vld [vmem:[%s14504_s5 + $0x40] sm:$0xff]   ;;  %10597 = vmatpush3.bf16.msra.mxu0 %v10779_v2  ;;  %10567 = vmatpush3.bf16.msra.mxu1 %v10778_v46 }
 0x38c   : > { %v5249_v16 = vpop.f32.mrf.mxu1  ;;  %v10494_v52 = vpop.f32.mrf.mxu0  ;;  %10598 = vmatprep.subr.bf16.mxu0 %v10780_v36 }
 0x38d   : > { %v5282_v44 = vadd.f32 %v5249_v16, %v5101_v43  ;;  %v6179_v43 = vld [vmem:[#allocation3] sm:$0xf] }
 0x38e   : > { %v10410_v53 = vpop.f32.mrf.mxu1  ;;  %v13546_v61 = vpop.f32.mrf.mxu0  ;;  %v6180_v7 = vsel %vm6178_vm12, 0, %v6179_v43  ;;  %vm14826_vm12 = vsmask.f32 1282 }
 0x38f   : > { %v13556_v18 = vadd.f32 %v13491_v1, %v5282_v44  ;;  %6181 = vst [vmem:[#allocation3] sm:$0xf] %v6180_v7  ;;  %10599 = vmatpush3.bf16.msra.mxu0 %v10780_v36  ;;  %vm6321_vm6 = vmand %vm6271_vm0, %vm14826_vm12  ;;  %vm6348_vm0 = vsmask.f32 3334 }
 0x390   : > { %v5252_v42 = vpop.f32.mrf.mxu1  ;;  %v10495_v59 = vpop.f32.mrf.mxu0 }
 0x391   : > { %v5283_v11 = vadd.f32 %v5252_v42, %v13499_v28 }
 0x392   : > { %v10411_v17 = vpop.f32.mrf.mxu1  ;;  %v13559_v10 = vpop.f32.mrf.mxu0 }
 0x393   : > { %v13562_v45 = vadd.f32 %v13495_v26, %v5283_v11 }
 0x394   : > { %v5257_v1 = vpop.f32.mrf.mxu1  ;;  %v10498_v40 = vpop.f32.mrf.mxu0 }
 0x395   : > { %v5284_v14 = vadd.f32 %v5257_v1, %v13503_v38 }
 0x396   : > { %v10414_v62 = vpop.f32.mrf.mxu1  ;;  %v13565_v56 = vpop.f32.mrf.mxu0 }
 0x397   : > { %v5472_v30 = vadd.f32 %v13497_v50, %v5284_v14 }
 0x398   : > { %v5260_v28 = vpop.f32.mrf.mxu1  ;;  %v10499_v33 = vpop.f32.mrf.mxu0 }
 0x399   : > { %v5285_v0 = vadd.f32 %v5260_v28, %v13507_v27 }
 0x39a   : > { %v10415_v51 = vpop.f32.mrf.mxu1  ;;  %v13569_v32 = vpop.f32.mrf.mxu0 }
 0x39b   : > { %v13572_v26 = vadd.f32 %v13501_v57, %v5285_v0 }
 0x39c   : > { %v5265_v48 = vpop.f32.mrf.mxu1  ;;  %v10502_v34 = vpop.f32.mrf.mxu0 }
 0x39d   : > { %v5286_v23 = vadd.f32 %v5265_v48, %v13511_v22 }
 0x39e   : > { %v10418_v38 = vpop.f32.mrf.mxu1  ;;  %v13575_v21 = vpop.f32.mrf.mxu0 }
 0x39f   : > { %v13578_v47 = vadd.f32 %v13505_v15, %v5286_v23 }
 0x3a0   : > { %v5268_v50 = vpop.f32.mrf.mxu1  ;;  %v10503_v8 = vpop.f32.mrf.mxu0 }
 0x3a1   : > { %v5287_v27 = vadd.f32 %v5268_v50, %v13515_v37 }
 0x3a2   : > { %v10419_v35 = vpop.f32.mrf.mxu1  ;;  %v13581_v13 = vpop.f32.mrf.mxu0 }
 0x3a3   : > { %v13584_v57 = vadd.f32 %v13509_v29, %v5287_v27 }
 0x3a4   : > { %v5273_v58 = vpop.f32.mrf.mxu1  ;;  %v10506_v60 = vpop.f32.mrf.mxu0 }
 0x3a5   : > { %v5288_v22 = vadd.f32 %v5273_v58, %v13520_v5 }
 0x3a6   : > { %v10422_v3 = vpop.f32.mrf.mxu1  ;;  %v13587_v24 = vpop.f32.mrf.mxu0 }
 0x3a7   : > { %v13590_v15 = vadd.f32 %v13513_v19, %v5288_v22 }
 0x3a8   : > { %v5276_v54 = vpop.f32.mrf.mxu1  ;;  %v10507_v39 = vpop.f32.mrf.mxu0 }
 0x3a9   : > { %v5289_v37 = vadd.f32 %v5276_v54, %v13525_v49 }
 0x3aa   : > { %v10423_v16 = vpop.f32.mrf.mxu1  ;;  %v13593_v52 = vpop.f32.mrf.mxu0 }
 0x3ab   : > { %v13596_v29 = vadd.f32 %v13517_v25, %v5289_v37  ;;  %v6356_v25 = vld [vmem:[#allocation3 + $0xc] sm:$0x1] }
 0x3ac   : > { %v5575_v44 = vpop.f32.mrf.mxu1  ;;  %v10546_v41 = vpop.f32.mrf.mxu0 }
 0x3ad   : > { %v5614_v5 = vadd.f32 %v5575_v44, %v13530_v63  ;;  %v6357_v63 = vsel %vm13605_vm1, 0, %v6356_v25 }
 0x3ae   : > { %v10462_v46 = vpop.f32.mrf.mxu1  ;;  %v13599_v2 = vpop.f32.mrf.mxu0  ;;  %6358 = vst [vmem:[#allocation3 + $0xc] sm:$0x1] %v6357_v63 }
 0x3af   : > { %v13602_v19 = vadd.f32 %v13522_v55, %v5614_v5 }
 0x3b0   : > { %v5578_v53 = vpop.f32.mrf.mxu1  ;;  %v10547_v36 = vpop.f32.mrf.mxu0 }
 0x3b1   : > { %v5615_v43 = vadd.f32 %v5578_v53, %v13535_v9 }
 0x3b2   : > { %v10463_v7 = vpop.f32.mrf.mxu1  ;;  %v13612_v42 = vpop.f32.mrf.mxu0 }
 0x3b3   : > { %v5796_v55 = vadd.f32 %v13527_v31, %v5615_v43 }
 0x3b4   : > { %v5583_v59 = vpop.f32.mrf.mxu1  ;;  %v10550_v11 = vpop.f32.mrf.mxu0 }
 0x3b5   : > { %v5616_v17 = vadd.f32 %v5583_v59, %v13556_v18 }
 0x3b6   : > { %v10466_v1 = vpop.f32.mrf.mxu1  ;;  %v13616_v40 = vpop.f32.mrf.mxu0 }
 0x3b7   : > { %v5797_v14 = vadd.f32 %v13532_v20, %v5616_v17  ;;  %v13631_v20 = vld [vmem:[%s14504_s5 + $0x8] sm:$0xff]  }
 0x3b8   : > { %v5586_v62 = vpop.f32.mrf.mxu1  ;;  %v10551_v9 = vpop.f32.mrf.mxu0  ;;  %10572 = vmatprep.subr.bf16.mxu1 %v13631_v20 }
 0x3b9   : > { %v5617_v28 = vadd.f32 %v5586_v62, %v13562_v45 }
 0x3ba   : > { %v10467_v33 = vpop.f32.mrf.mxu1  ;;  %v13620_v0 = vpop.f32.mrf.mxu0 }
 0x3bb   : > { %v5798_v51 = vadd.f32 %v13546_v61, %v5617_v28 }
 0x3bc   : > { %v5591_v48 = vpop.f32.mrf.mxu1  ;;  %v10554_v31 = vpop.f32.mrf.mxu0 }
 0x3bd   : > { %v5618_v34 = vadd.f32 %v5591_v48, %v5472_v30 }
 0x3be   : > { %v10470_v23 = vpop.f32.mrf.mxu1  ;;  %v13623_v38 = vpop.f32.mrf.mxu0 }
 0x3bf   : > { %v13626_v18 = vadd.f32 %v13559_v10, %v5618_v34  ;;  %v13643_v10 = vld [vmem:[%s14504_s5 + $0x68] sm:$0xff]  }
 0x3c0   : > { %v5594_v45 = vpop.f32.mrf.mxu1  ;;  %v10555_v50 = vpop.f32.mrf.mxu0  ;;  %10612 = vmatprep.subr.bf16.mxu0 %v13643_v10 }
 0x3c1   : > { %v5619_v8 = vadd.f32 %v5594_v45, %v13572_v26 }
 0x3c2   : > { %v10471_v61 = vpop.f32.mrf.mxu1  ;;  %v13635_v27 = vpop.f32.mrf.mxu0 }
 0x3c3   : > { %v13638_v30 = vadd.f32 %v13565_v56, %v5619_v8 }
 0x3c4   : > { %v5599_v35 = vpop.f32.mrf.mxu1  ;;  %v10558_v58 = vpop.f32.mrf.mxu0 }
 0x3c5   : > { %v5620_v60 = vadd.f32 %v5599_v35, %v13578_v47 }
 0x3c6   : > { %v10474_v26 = vpop.f32.mrf.mxu1  ;;  %v13647_v22 = vpop.f32.mrf.mxu0 }
 0x3c7   : > { %v13650_v3 = vadd.f32 %v13569_v32, %v5620_v60 }
 0x3c8   : > { %v5602_v54 = vpop.f32.mrf.mxu1  ;;  %v10559_v56 = vpop.f32.mrf.mxu0 }
 0x3c9   : > { %v5621_v39 = vadd.f32 %v5602_v54, %v13584_v57 }
 0x3ca   : > { %v10475_v37 = vpop.f32.mrf.mxu1  ;;  %v13653_v16 = vpop.f32.mrf.mxu0 }
 0x3cb   : > { %v13656_v44 = vadd.f32 %v13575_v21, %v5621_v39 }
 0x3cc   : > { %v5607_v41 = vpop.f32.mrf.mxu1  ;;  %v10562_v47 = vpop.f32.mrf.mxu0 }
 0x3cd   : > { %v5622_v5 = vadd.f32 %v5607_v41, %v13590_v15  ;;  %v13672_v15 = vld [vmem:[%s14503_s4] ss:$0 sm:$0xff] }
 0x3ce   : > { %v10478_v46 = vpop.f32.mrf.mxu1  ;;  %v13659_v53 = vpop.f32.mrf.mxu0 }
 0x3cf   : > { %v13662_v32 = vadd.f32 %v13581_v13, %v5622_v5 }
 0x3d0   : > { %v5610_v36 = vpop.f32.mrf.mxu1  ;;  %v10563_v25 = vpop.f32.mrf.mxu0 }
 0x3d1   : > { %v5623_v57 = vadd.f32 %v5610_v36, %v13596_v29 }
 0x3d2   : > { %v10479_v43 = vpop.f32.mrf.mxu1 }
 0x3d3   : > { %v13666_v63 = vadd.f32 %v13587_v24, %v5623_v57 }
 0x3d4   : > { %v5944_v21 = vpop.f32.mrf.mxu1 }
 0x3d5   : > { %v5983_v7 = vadd.f32 %v5944_v21, %v13602_v19 }
 0x3d6   : > { %v10518_v59 = vpop.f32.mrf.mxu1 }
 0x3d7   : > { %v6129_v13 = vadd.f32 %v13593_v52, %v5983_v7 }
 0x3d8   : > { %v5947_v11 = vpop.f32.mrf.mxu1 }
 0x3d9   : > { %v6146_v17 = vadd.f32 %v13672_v15, %v6129_v13  ;;  %v5984_v1 = vadd.f32 %v5947_v11, %v5796_v55 }
 0x3da   : > { %v10519_v29 = vpop.f32.mrf.mxu1 }
 0x3db   : > { %v6156_v62 = vmax.f32 %v6146_v17, 0.0  ;;  %v6130_v24 = vadd.f32 %v13599_v2, %v5984_v1 }
 0x3dc   : > { %v5952_v9 = vpop.f32.mrf.mxu1 }
 0x3dd   : > { %6167 = vst.msk [vmem:[#allocation5] sm:$0xff] %vm6166_vm4, %v6156_v62  ;;  %v6147_v19 = vadd.f32 %v13672_v15, %v6130_v24  ;;  %v5985_v28 = vadd.f32 %v5952_v9, %v5797_v14 }
 0x3de   : > { %v10522_v33 = vpop.f32.mrf.mxu1 }
 0x3df   : > { %v6157_v48 = vmax.f32 %v6147_v19, 0.0  ;;  %v6131_v31 = vadd.f32 %v13612_v42, %v5985_v28 }
 0x3e0   : > { %v5955_v52 = vpop.f32.mrf.mxu1 }
 0x3e1   : > { %6168 = vst.msk [vmem:[#allocation5 + $0x8] sm:$0xff] %vm6166_vm4, %v6157_v48  ;;  %v6148_v55 = vadd.f32 %v13672_v15, %v6131_v31  ;;  %v5986_v34 = vadd.f32 %v5955_v52, %v5798_v51 }
 0x3e2   : > { %v10523_v23 = vpop.f32.mrf.mxu1 }
 0x3e3   : > { %v6158_v45 = vmax.f32 %v6148_v55, 0.0  ;;  %v6132_v2 = vadd.f32 %v13616_v40, %v5986_v34 }
 0x3e4   : > { %v5960_v50 = vpop.f32.mrf.mxu1 }
 0x3e5   : > { %6169 = vst.msk [vmem:[#allocation5 + $0x10] sm:$0xff] %vm6166_vm4, %v6158_v45  ;;  %v6149_v8 = vadd.f32 %v13672_v15, %v6132_v2  ;;  %v5987_v14 = vadd.f32 %v5960_v50, %v13626_v18 }
 0x3e6   : > { %v10526_v61 = vpop.f32.mrf.mxu1 }
 0x3e7   : > { %v6159_v35 = vmax.f32 %v6149_v8, 0.0  ;;  %v6133_v42 = vadd.f32 %v13620_v0, %v5987_v14 }
 0x3e8   : > { %v6186_v58 = vld [vmem:[#allocation5] ss:$2 sm:$0xff]  ;;  %v6196_v60 = vld [vmem:[#allocation5 + $0x1] ss:$2 sm:$0xff]  ;;  %v5963_v26 = vpop.f32.mrf.mxu1 }
 0x3e9   : > { %v6205_v54 = vmax.f32 %v6186_v58, %v6196_v60  ;;  %6170 = vst.msk [vmem:[#allocation5 + $0x18] sm:$0xff] %vm6166_vm4, %v6159_v35  ;;  %v6150_v51 = vadd.f32 %v13672_v15, %v6133_v42  ;;  %v5988_v40 = vadd.f32 %v5963_v26, %v13638_v30 }
 0x3ea   : > { %v10527_v56 = vpop.f32.mrf.mxu1 }
 0x3eb   : > { %v9673_v39 = vpack.c.bf16 %v6205_v54, %v6205_v54  ;;  %v6160_v37 = vmax.f32 %v6150_v51, 0.0  ;;  %v6134_v41 = vadd.f32 %v13623_v38, %v5988_v40 }
 0x3ec   : > { %v5968_v18 = vpop.f32.mrf.mxu1 }
 0x3ed   : > { %6231 = vst.msk [vmem:[#allocation8] sm:$0xf] %vm6177_vm13, %v9673_v39  ;;  %v6151_v0 = vadd.f32 %v13672_v15, %v6134_v41  ;;  %v5989_v47 = vadd.f32 %v5968_v18, %v13650_v3 }
 0x3ee   : > { %6171 = vst.msk [vmem:[#allocation5 + $0x20] sm:$0xff] %vm6166_vm4, %v6160_v37  ;;  %v10530_v5 = vpop.f32.mrf.mxu1  ;;  %v6268_v37 = vld [vmem:[#allocation3] sm:$0x8] }
 0x3ef   : > { %v6161_v46 = vmax.f32 %v6151_v0, 0.0  ;;  %v6135_v36 = vadd.f32 %v13635_v27, %v5989_v47 }
 0x3f0   : > { %v6188_v25 = vld [vmem:[#allocation5 + $0x10] ss:$2 sm:$0xff]  ;;  %v6198_v30 = vld [vmem:[#allocation5 + $0x11] ss:$2 sm:$0xff]  ;;  %v5971_v57 = vpop.f32.mrf.mxu1 }
 0x3f1   : > { %v6206_v43 = vmax.f32 %v6188_v25, %v6198_v30  ;;  %6172 = vst.msk [vmem:[#allocation5 + $0x28] sm:$0xff] %vm6166_vm4, %v6161_v46  ;;  %v6152_v38 = vadd.f32 %v13672_v15, %v6135_v36  ;;  %v5990_v21 = vadd.f32 %v5971_v57, %v13656_v44 }
 0x3f2   : > { %v10531_v7 = vpop.f32.mrf.mxu1 }
 0x3f3   : > { %v9674_v59 = vpack.c.bf16 %v6206_v43, %v6206_v43  ;;  %v6162_v13 = vmax.f32 %v6152_v38, 0.0  ;;  %v6136_v11 = vadd.f32 %v13647_v22, %v5990_v21  ;;  %v6273_v21 = vld [vmem:[#allocation3 + $0x4] sm:$0x3] }
 0x3f4   : > { %v5976_v3 = vpop.f32.mrf.mxu1  ;;  %v6237_v17 = vld [vmem:[#allocation8] sm:$0xc]  ;;  %v6236_v60 = vld [vmem:[#allocation8] sm:$0x3] }
 0x3f5   : > { %6232 = vst.msk [vmem:[#allocation8 + $0x4] sm:$0xf] %vm6177_vm13, %v9674_v59  ;;  %v6153_v27 = vadd.f32 %v13672_v15, %v6136_v11  ;;  %v5991_v1 = vadd.f32 %v5976_v3, %v13662_v32  ;;  %v6240_v29 = vshrl.u32 %v6237_v17, 16  ;;  %v6243_v62 = vshll.u32 %v6237_v17, 16 }
 0x3f6   : > { %6173 = vst.msk [vmem:[#allocation5 + $0x30] sm:$0xff] %vm6166_vm4, %v6162_v13  ;;  %v10534_v24 = vpop.f32.mrf.mxu1 }
 0x3f7   : > { %v6163_v9 = vmax.f32 %v6153_v27, 0.0  ;;  %v6137_v44 = vadd.f32 %v13653_v16, %v5991_v1  ;;  %v6242_v19 = vrot.slane %v6240_v29, 6  ;;  %v6245_v28 = vrot.slane %v6243_v62, 7 }
 0x3f8   : > { %v6190_v33 = vld [vmem:[#allocation5 + $0x20] ss:$2 sm:$0xff]  ;;  %v6200_v22 = vld [vmem:[#allocation5 + $0x21] ss:$2 sm:$0xff]  ;;  %v5979_v48 = vpop.f32.mrf.mxu1 }
 0x3f9   : > { %v6207_v31 = vmax.f32 %v6190_v33, %v6200_v22  ;;  %6174 = vst.msk [vmem:[#allocation5 + $0x38] sm:$0xff] %vm6166_vm4, %v6163_v9  ;;  %v6154_v52 = vadd.f32 %v13672_v15, %v6137_v44  ;;  %v5992_v55 = vadd.f32 %v5979_v48, %v13666_v63  ;;  %v6246_v2 = vor.u32 %v6245_v28, %v6242_v19  ;;  %v6318_v33 = vld [vmem:[#allocation3 + $0x8] sm:$0x1] }
 0x3fa   : > { %v10535_v34 = vpop.f32.mrf.mxu1 }
 0x3fb   : > { %v9675_v32 = vpack.c.bf16 %v6207_v31, %v6207_v31  ;;  %v6164_v23 = vmax.f32 %v6154_v52, 0.0  ;;  %v6138_v45 = vadd.f32 %v13659_v53, %v5992_v55  ;;  %v6247_v61 = vrot.slane %v6246_v2, 4 }
 0x3fc   : > { %v6238_v50 = vld [vmem:[#allocation8 + $0x4] sm:$0x1]  ;;  %v6282_v54 = vld [vmem:[#allocation8 + $0x4] sm:$0x8]  ;;  %v6281_v3 = vld [vmem:[#allocation8 + $0x4] sm:$0x6] }
 0x3fd   : > { %6233 = vst.msk [vmem:[#allocation8 + $0x8] sm:$0xf] %vm6177_vm13, %v9675_v32  ;;  %v6155_v16 = vadd.f32 %v13672_v15, %v6138_v45  ;;  %v6249_v8 = vshll.u32 %v6238_v50, 16  ;;  %v6285_v41 = vshrl.u32 %v6282_v54, 16 }
 0x3fe   : > { %6175 = vst.msk [vmem:[#allocation5 + $0x40] sm:$0xff] %vm6166_vm4, %v6164_v23 }
 0x3ff   : > { %v6165_v14 = vmax.f32 %v6155_v16, 0.0  ;;  %v6251_v35 = vrot.slane %v6249_v8, 7  ;;  %v9371_v7 = vrot.slane %v6285_v41, 10 }
 0x400   : > { %v6192_v42 = vld [vmem:[#allocation5 + $0x30] ss:$2 sm:$0xff]  ;;  %v6202_v58 = vld [vmem:[#allocation5 + $0x31] ss:$2 sm:$0xff] }
 0x401   : > { %v6208_v63 = vmax.f32 %v6192_v42, %v6202_v58  ;;  %6176 = vst.msk [vmem:[#allocation5 + $0x48] sm:$0xff] %vm6166_vm4, %v6165_v14  ;;  %v6252_v53 = vsel %vm12892_vm7, %v6247_v61, %v6251_v35 }
 0x402   : > { %v6254_v26 = vmax.bf16 %v6252_v53, %v6236_v60 }
 0x403   : > { %v9676_v51 = vpack.c.bf16 %v6208_v63, %v6208_v63 }
 0x404   : > { %v6256_v40 = vshll.u32 %v6254_v26, 16  ;;  %v6259_v56 = vshrl.u32 %v6254_v26, 16  ;;  %v6283_v39 = vld [vmem:[#allocation8 + $0x8] sm:$0x3]  ;;  %v6325_v31 = vld [vmem:[#allocation8 + $0x8] sm:$0xc] }
 0x405   : > { %6234 = vst.msk [vmem:[#allocation8 + $0xc] sm:$0xf] %vm6177_vm13, %v9676_v51  ;;  %v6290_v18 = vshrl.u32 %v6283_v39, 16  ;;  %v6293_v0 = vshll.u32 %v6283_v39, 16 }
 0x406   : > { %v6258_v47 = vrot.slane %v6256_v40, 5  ;;  %v6261_v5 = vrot.slane %v6259_v56, 4 }
 0x407   : > { %v6292_v46 = vrot.slane %v6290_v18, 6  ;;  %v6295_v36 = vrot.slane %v6293_v0, 7 }
 0x408   : > { %v6194_v25 = vld [vmem:[#allocation5 + $0x40] ss:$2 sm:$0xff]  ;;  %v6204_v30 = vld [vmem:[#allocation5 + $0x41] ss:$2 sm:$0xff]  ;;  %v6262_v57 = vor.u32 %v6261_v5, %v6258_v47  ;;  %v6269_v43 = vsel %vm13718_vm10, %v6258_v47, %v6268_v37 }
 0x409   : > { %v6209_v38 = vmax.f32 %v6194_v25, %v6204_v30  ;;  %6270 = vst [vmem:[#allocation3] sm:$0x8] %v6269_v43  ;;  %v6296_v59 = vor.u32 %v6295_v36, %v6292_v46 }
 0x40a   : > { %v6263_v13 = vrot.slane %v6262_v57, 4 }
 0x40b   : > { %v9677_v11 = vpack.c.bf16 %v6209_v38, %v6209_v38  ;;  %v6297_v17 = vsel %vm12892_vm7, %v9371_v7, %v6296_v59  ;;  %v6397_v7 = vld [vmem:[#allocation3 + $0xc] sm:$0x7] }
 0x40c   : > { %v6274_v27 = vsel %vm6272_vm15, %v6263_v13, %v6273_v21  ;;  %v6299_v1 = vmax.bf16 %v6297_v17, %v6281_v3  ;;  %v6326_v29 = vld [vmem:[#allocation8 + $0xc] sm:$0x7]  ;;  %v6359_v63 = vld [vmem:[#allocation8 + $0xc] sm:$0x8]  ;;  %vm6395_vm15 = vsmask.f32 2306 }
 0x40d   : > { %6235 = vst.msk [vmem:[#allocation8 + $0x10] sm:$0xf] %vm6177_vm13, %v9677_v11  ;;  %6275 = vst [vmem:[#allocation3 + $0x4] sm:$0x3] %v6274_v27  ;;  %v6328_v62 = vshrl.u32 %v6326_v29, 16  ;;  %v6331_v24 = vshll.u32 %v6326_v29, 16 }
 0x40e   : > { %v6301_v9 = vshrl.u32 %v6299_v1, 16  ;;  %v6304_v34 = vshll.u32 %v6299_v1, 16  ;;  %vm6311_vm13 = vcmask 257026   ;;  %vm6396_vm3 = vmand %vm6394_vm2, %vm6395_vm15  ;;  %vm7213_vm2 = vcmask 60416  }
 0x40f   : > { %v6330_v44 = vrot.slane %v6328_v62, 6  ;;  %v6333_v19 = vrot.slane %v6331_v24, 7  ;;  %vm6312_vm5 = vmand %vm6311_vm13, %vm14827_vm9  ;;  %vm14832_vm9 = vcmask 1044480   ;;  %vm7254_vm15 = vcmask 58369  }
 0x410   : > { %v6303_v28 = vrot.slane %v6301_v9, 6  ;;  %v6306_v61 = vrot.slane %v6304_v34, 7  ;;  %v6404_v1 = vld [vmem:[#allocation3] sm:$0xf] }
 0x411   : > { %v6334_v22 = vor.u32 %v6333_v19, %v6330_v44  ;;  %v6655_v6 = vld [vmem:[#allocation3] sm:$0x8] }
 0x412   : > { %v6308_v48 = vrot.slane %v6303_v28, 4  ;;  %v6307_v60 = vor.u32 %v6306_v61, %v6303_v28 }
 0x413   : > { %v6336_v52 = vmax.bf16 %v6334_v22, %v6325_v31  ;;  %v6915_v22 = vld [vmem:[#allocation3 + $0x10] sm:$0x3] }
 0x414   : > { %v6278_v55 = vld [vmem:[#allocation3 + $0x4] sm:$0x6]  ;;  %v6319_v32 = vsel %vm13605_vm1, %v6308_v48, %v6318_v33  ;;  %v6361_v23 = vld [vmem:[#allocation8 + $0x10] sm:$0xe]  ;;  %v6360_v56 = vld [vmem:[#allocation8 + $0x10] sm:$0x1] }
 0x415   : > { %v6279_v45 = vsel %vm6277_vm11, 0, %v6278_v55  ;;  %6320 = vst [vmem:[#allocation3 + $0x8] sm:$0x1] %v6319_v32  ;;  %v6363_v2 = vshrl.u32 %v6361_v23, 16  ;;  %v6366_v50 = vshll.u32 %v6361_v23, 16  ;;  %v6338_v16 = vshrl.u32 %v6336_v52, 16 }
 0x416   : > { %6280 = vst [vmem:[#allocation3 + $0x4] sm:$0x6] %v6279_v45  ;;  %v6341_v8 = vshll.u32 %v6336_v52, 16  ;;  %vm6347_vm1 = vcmask 257025   ;;  %vm14828_vm11 = vsmask.f32 3338 }
 0x417   : > { %v6365_v14 = vrot.slane %v6363_v2, 6  ;;  %v6368_v35 = vrot.slane %v6366_v50, 7  ;;  %v6340_v49 = vrot.slane %v6338_v16, 4  ;;  %vm6349_vm8 = vmand %vm6347_vm1, %vm6348_vm0  ;;  %vm14834_vm1 = vsmask.f32 5376 }
 0x418   : > { %v6343_v58 = vrot.slane %v6341_v8, 5  ;;  %vm6400_vm12 = vmand %vm6311_vm13, %vm14828_vm11  ;;  %vm14830_vm13 = vcmask 1045504   ;;  %vm7268_vm0 = vcmask 1043456  }
 0x419   : > { %v6369_v42 = vor.u32 %v6368_v35, %v6365_v14 }
 0x41a   : > { %v6344_v0 = vor.u32 %v6343_v58, %v6340_v49 }
 0x41b   : > { %v6370_v26 = vrot.slane %v6369_v42, 4  ;;  %v6373_v54 = vmax.bf16 %v6369_v42, %v6359_v63 }
 0x41c   : > { %v6322_v53 = vld [vmem:[#allocation3 + $0x8] sm:$0x3]  ;;  %v6345_v43 = vrot.slane %v6344_v0, 4  ;;  %v10790_v0 = vld [vmem:[%s14504_s5 + $0x60] sm:$0xff]  }
 0x41d   : > { %v6313_v51 = vld [vmem:[#allocation3 + $0x4] sm:$0xc]  ;;  %v6323_v40 = vsel %vm6321_vm6, 0, %v6322_v53  ;;  %v6374_v37 = vmax.bf16 %v6370_v26, %v6360_v56  ;;  %v6376_v41 = vshrl.u32 %v6373_v54, 16  ;;  %v6379_v18 = vshll.u32 %v6373_v54, 16 }
 0x41e   : > { %v6314_v39 = vsel %vm6312_vm5, %v6307_v60, %v6313_v51  ;;  %6324 = vst [vmem:[#allocation3 + $0x8] sm:$0x3] %v6323_v40  ;;  %v10786_v51 = vld [vmem:[%s14504_s5] sm:$0xff]   ;;  %vm14831_vm6 = vcmask 1046528   ;;  %vm14833_vm5 = vmmov %vm14832_vm9 }
 0x41f   : > { %6315 = vst [vmem:[#allocation3 + $0x4] sm:$0xc] %v6314_v39  ;;  %v6378_v47 = vrot.slane %v6376_v41, 6  ;;  %v6381_v5 = vrot.slane %v6379_v18, 7  ;;  %v6385_v46 = vshrl.u32 %v6374_v37, 16  ;;  %v6388_v36 = vshll.u32 %v6374_v37, 16 }
 0x420   : > { %v7003_v41 = vld [vmem:[#allocation3 + $0x10] sm:$0x7] }
 0x421   : > { %v6382_v25 = vor.u32 %v6381_v5, %v6378_v47  ;;  %v6387_v30 = vrot.slane %v6385_v46, 6  ;;  %v6390_v57 = vrot.slane %v6388_v36, 7  ;;  %v6574_v47 = vld [vmem:[#allocation3] sm:$0xe]  ;;  %v10791_v5 = vld [vmem:[%s14504_s5 + $0x28] sm:$0xff]  }
 0x423   : > { %v6383_v38 = vrot.slane %v6382_v25, 4  ;;  %v6391_v21 = vor.u32 %v6390_v57, %v6387_v30 }
 0x425   : > { %v6350_v59 = vld [vmem:[#allocation3 + $0x8] sm:$0xe]  ;;  %v6392_v11 = vsel %vm12892_vm7, %v6383_v38, %v6391_v21  ;;  %vm14829_vm7 = vsmask.f32 7424 }
 0x426   : > { %v6351_v13 = vsel %vm6349_vm8, %v6345_v43, %v6350_v59  ;;  %v6398_v3 = vsel %vm6396_vm3, %v6392_v11, %v6397_v7  ;;  %v13738_v17 = vld [vmem:[#allocation3 + $0x4] sm:$0xf]  ;;  %v10792_v7 = vld [vmem:[%s14504_s5 + $0x88] sm:$0xff]   ;;  %vm7230_vm8 = vcmask 57344  }
 0x427   : > { %6352 = vst [vmem:[#allocation3 + $0x8] sm:$0xe] %v6351_v13  ;;  %6399 = vst [vmem:[#allocation3 + $0xc] sm:$0x7] %v6398_v3  ;;  %v9376_v62 = vcombine.low %v6404_v1, %v13738_v17  ;;  %v13746_v44 = vcombine.low %v6655_v6, %v13738_v17  ;;  %v6912_v8 = vld [vmem:[#allocation3 + $0x4] sm:$0xc]  ;;  %v9391_v46 = vcombine.low %v6574_v47, %v13738_v17 }
 0x428   : > { %v7098_v36 = vld [vmem:[#allocation3 + $0x4] sm:$0x8]  ;;  %v7338_v47 = vld [vmem:[%s14508_s9 + $0xc0] sm:$0xff] }
 0x429   : > { %v6430_v19 = vshll.u32 %v9376_v62, 16  ;;  %v6751_v28 = vshrl.u32 %v13746_v44, 16  ;;  %v6754_v33 = vshll.u32 %v13746_v44, 16  ;;  %v6428_v45 = vshrl.u32 %v9376_v62, 16  ;;  %v10796_v1 = vld [vmem:[%s14504_s5 + $0x38] sm:$0xff]  }
 0x42a   : > { %v6583_v21 = vrot.slane %v9391_v46, 1 }
 0x42b   : > { %v6432_v31 = vrot.slane %v6430_v19, 1  ;;  %v6753_v50 = vrot.slane %v6751_v28, 3  ;;  %v6756_v16 = vrot.slane %v6754_v33, 4  ;;  %v10798_v19 = vld [vmem:[%s14504_s5 + $0x58] sm:$0xff]  }
 0x42d   : > { %v6433_v49 = vor.u32 %v6432_v31, %v6428_v45  ;;  %v6757_v40 = vor.u32 %v6756_v16, %v6753_v50  ;;  %v10800_v45 = vld [vmem:[%s14504_s5 + $0x78] sm:$0xff]  }
 0x42e   : > { %v6353_v27 = vld [vmem:[#allocation3 + $0x8] sm:$0x8]  ;;  %v6401_v24 = vld [vmem:[#allocation3 + $0xc] sm:$0xc]  ;;  %v6411_v15 = vld [vmem:[#allocation3 + $0xc] sm:$0x1] }
 0x42f   : > { %v6354_v29 = vsel %vm13718_vm10, 0, %v6353_v27  ;;  %v6402_v9 = vsel %vm6400_vm12, 0, %v6401_v24  ;;  %vm6749_vm10 = vsmask.f32 4352  ;;  %v10795_v27 = vld [vmem:[%s14504_s5 + $0x80] sm:$0xff]   ;;  %v6668_v24 = vrot.slane %v13746_v44, 3 }
 0x430   : > { %6355 = vst [vmem:[#allocation3 + $0x8] sm:$0x8] %v6354_v29  ;;  %6403 = vst [vmem:[#allocation3 + $0xc] sm:$0xc] %v6402_v9  ;;  %v10797_v9 = vld [vmem:[%s14504_s5 + $0x30] sm:$0xff]  }
 0x437   : > { %v13750_v48 = vld [vmem:[#allocation3 + $0x8] sm:$0xf]  ;;  %v13755_v55 = vld [vmem:[#allocation3 + $0xc] sm:$0xf] }
 0x438   : > { %v13753_v52 = vcombine.low %v13750_v48, %v6411_v15  ;;  %v6913_v34 = vld [vmem:[#allocation3 + $0x8] sm:$0xf]  ;;  %v6914_v32 = vld [vmem:[#allocation3 + $0xc] sm:$0xf]  ;;  %v9410_v23 = vcombine.low %v13750_v48, %v13755_v55  ;;  %v9382_v38 = vcombine.low %v13750_v48, %v13750_v48  ;;  %v10799_v15 = vld [vmem:[%s14504_s5 + $0x50] sm:$0xff]   ;;  %v9419_v31 = vcombine.low %v13738_v17, %v13750_v48 }
 0x439   : > { %v13760_v35 = vcombine.low %v6912_v8, %v6913_v34  ;;  %v9430_v42 = vcombine.low %v6914_v32, %v6915_v22  ;;  %v9439_v25 = vcombine.low %v6914_v32, %v7003_v41  ;;  %v9448_v30 = vcombine.low %v7098_v36, %v6913_v34  ;;  %v6656_v43 = vld [vmem:[#allocation3 + $0xc] sm:$0x7] }
 0x43a   : > { %v6435_v2 = vshll.u32 %v13753_v52, 16  ;;  %v6759_v14 = vshrl.u32 %v9410_v23, 16  ;;  %v6762_v61 = vshll.u32 %v9410_v23, 16  ;;  %v6439_v63 = vshrl.u32 %v13753_v52, 16  ;;  %v7350_v41 = vld [vmem:[%s14508_s9 + $0x120] sm:$0xff] }
 0x43b   : > { %v6931_v39 = vrot.slane %v13760_v35, 2  ;;  %v6932_v37 = vrot.slane %v9430_v42, 2  ;;  %v6584_v57 = vrot.slane %v13753_v52, 1  ;;  %v7107_v59 = vrot.slane %v9448_v30, 3 }
 0x43c   : > { %v6437_v58 = vrot.slane %v6435_v2, 1  ;;  %v6761_v60 = vrot.slane %v6759_v14, 3  ;;  %v6764_v53 = vrot.slane %v6762_v61, 4  ;;  %v7108_v13 = vrot.slane %v9439_v25, 3  ;;  %v7370_v14 = vld [vmem:[%s14508_s9 + $0x1c0] sm:$0xff] }
 0x43d   : > { %v6585_v11 = vsel %vm14831_vm6, %v6583_v21, %v6584_v57  ;;  %v9401_v3 = vcombine.low %v13750_v48, %v6656_v43  ;;  %v7013_v44 = vshrl.u32 %v13760_v35, 16  ;;  %v7016_v28 = vshll.u32 %v13760_v35, 16  ;;  %v10801_v48 = vld [vmem:[%s14504_s5 + $0x70] sm:$0xff]   ;;  %v7374_v61 = vld [vmem:[%s14508_s9 + $0x1e0] sm:$0xff]  ;;  %v13854_v35 = vld [vmem:[%s14508_s9 + $0x1c8] sm:$0xff] }
 0x43e   : > { %v6438_v26 = vsel %vm14829_vm7, %v6433_v49, %v6437_v58  ;;  %v6441_v54 = vor.u32 %v6439_v63, %v6437_v58  ;;  %v6765_v56 = vor.u32 %v6764_v53, %v6761_v60  ;;  %v7109_v29 = vsel %vm14832_vm9, %v7107_v59, %v7108_v13  ;;  %v13859_v49 = vld [vmem:[%s14508_s9 + $0x1e8] sm:$0xff]  ;;  %v7362_v58 = vld [vmem:[%s14508_s9 + $0x180] sm:$0xff] }
 0x43f   : > { %10568 = vmatprep.mubr.msk.bf16.mxu1 %vm6166_vm4, %v6438_v26  ;;  %v7021_v33 = vshrl.u32 %v9439_v25, 16  ;;  %v7024_v22 = vshll.u32 %v9439_v25, 16  ;;  %v7015_v52 = vrot.slane %v7013_v44, 2  ;;  %v7018_v34 = vrot.slane %v7016_v28, 3  ;;  %v7366_v63 = vld [vmem:[%s14508_s9 + $0x1a0] sm:$0xff] }
 0x440   : > { %10569 = vmatmul.mubr.msk.bf16.vlgmr.msra.gmra.mxu1 %vm6166_vm4, %v6441_v54  ;;  %v6766_v18 = vsel %vm6749_vm10, %v6757_v40, %v6765_v56  ;;  %v9420_v17 = vcombine.low %v13755_v55, %v13755_v55  ;;  %v7257_v55 = vld [vmem:[%s14506_s7] sm:$0xf]  ;;  %v9515_v42 = vcombine.high %v7370_v14, %v7374_v61  ;;  %v9516_v60 = vcombine.low %v13854_v35, %v13859_v49 }
 0x441   : > { %10573 = vmatpush3.bf16.msra.mxu1 %v13631_v20  ;;  %10576 = vmatprep.mubr.msk.bf16.mxu1 %vm6166_vm4, %v9376_v62  ;;  %v6933_v20 = vsel %vm14830_vm13, %v6931_v39, %v6932_v37  ;;  %v6669_v62 = vrot.slane %v9401_v3, 3  ;;  %v7023_v32 = vrot.slane %v7021_v33, 2  ;;  %v7026_v23 = vrot.slane %v7024_v22, 3  ;;  %v7358_v40 = vld [vmem:[%s14508_s9 + $0x160] sm:$0xff] }
 0x442   : > { %10600 = vmatprep.mubr.msk.bf16.mxu0 %vm6166_vm4, %v6766_v18  ;;  %10574 = vmatprep.subr.bf16.mxu1 %v10786_v51  ;;  %v7019_v2 = vor.u32 %v7018_v34, %v7015_v52  ;;  %v7270_v8 = vsel %vm7268_vm0, %v7257_v55, 0  ;;  %v9517_v53 = vcombine.high %v13854_v35, %v13859_v49  ;;  %v9507_v26 = vcombine.high %v7362_v58, %v7366_v63  ;;  %v7334_v25 = vld [vmem:[%s14508_s9 + $0xa0] sm:$0xff]  ;;  %v7339_v35 = vld [vmem:[%s14508_s9 + $0xc8] sm:$0xff] }
 0x443   : > { %10601 = vmatmul.mubr.msk.bf16.vlgmr.msra.gmra.mxu0 %vm6166_vm4, %v6765_v56  ;;  %v6670_v6 = vsel %vm14833_vm5, %v6668_v24, %v6669_v62  ;;  %v7027_v50 = vor.u32 %v7026_v23, %v7023_v32  ;;  %v9506_v54 = vcombine.low %v7362_v58, %v7366_v63  ;;  %v7322_v43 = vld [vmem:[%s14508_s9 + $0x40] sm:$0xff]  ;;  %v7343_v49 = vld [vmem:[%s14508_s9 + $0xe8] sm:$0xff] }
 0x444   : > { %10613 = vmatpush3.bf16.msra.mxu0 %v13643_v10  ;;  %10616 = vmatprep.mubr.msk.bf16.mxu0 %vm6166_vm4, %v6933_v20  ;;  %v10793_v10 = vld [vmem:[%s14504_s5 + $0x20] sm:$0xff]  }
 0x445   : > { %10575 = vmatpush3.bf16.msra.mxu1 %v10786_v51  ;;  %10614 = vmatprep.subr.bf16.mxu0 %v10790_v0  ;;  %v7028_v16 = vsel %vm14834_vm1, %v7019_v2, %v7027_v50  ;;  %v7354_v51 = vld [vmem:[%s14508_s9 + $0x140] sm:$0xff] }
 0x446   : > { %10580 = vmatprep.subr.bf16.mxu1 %v10791_v5  ;;  %v9499_v56 = vcombine.high %v7354_v51, %v7358_v40  ;;  %v9498_v39 = vcombine.low %v7354_v51, %v7358_v40  ;;  %v7330_v20 = vld [vmem:[%s14508_s9 + $0x80] sm:$0xff] }
 0x447   : > { %v9475_v30 = vcombine.high %v7330_v20, %v7334_v25 }
 0x448   : > { %10615 = vmatpush3.bf16.msra.mxu0 %v10790_v0  ;;  %10577 = vmatmul.mubr.msk.bf16.vlgmr.msra.gmra.mxu1 %vm6166_vm4, %v9382_v38  ;;  %v7326_v38 = vld [vmem:[%s14508_s9 + $0x60] sm:$0xff] }
 0x449   : > { %10581 = vmatpush3.bf16.msra.mxu1 %v10791_v5  ;;  %10584 = vmatprep.mubr.msk.bf16.mxu1 %vm6166_vm4, %v6585_v11  ;;  %v7342_v5 = vld [vmem:[%s14508_s9 + $0xe0] sm:$0xff]  ;;  %v9467_v21 = vcombine.high %v7322_v43, %v7326_v38 }
 0x44a   : > { %10628 = vmatprep.subr.bf16.mxu0 %v10792_v7  ;;  %10582 = vmatprep.subr.bf16.mxu1 %v10793_v10  ;;  %v9483_v46 = vcombine.high %v7338_v47, %v7342_v5  ;;  %v9482_v36 = vcombine.low %v7338_v47, %v7342_v5 }
 0x44b   : > { %10617 = vmatmul.mubr.msk.bf16.vlgmr.msra.gmra.mxu0 %vm6166_vm4, %v6932_v37  ;;  %v7346_v37 = vld [vmem:[%s14508_s9 + $0x100] sm:$0xff] }
 0x44c   : > { %10629 = vmatpush3.bf16.msra.mxu0 %v10792_v7  ;;  %10632 = vmatprep.mubr.msk.bf16.mxu0 %vm6166_vm4, %v7109_v29  ;;  %v9491_v18 = vcombine.high %v7346_v37, %v7350_v41  ;;  %v9490_v0 = vcombine.low %v7346_v37, %v7350_v41  ;;  %v9466_v7 = vcombine.low %v7322_v43, %v7326_v38 }
 0x44d   : > { %10583 = vmatpush3.bf16.msra.mxu1 %v10793_v10  ;;  %10630 = vmatprep.subr.bf16.mxu0 %v10795_v27 }
 0x44e   : > { %10588 = vmatprep.subr.bf16.mxu1 %v10796_v1 }
 0x450   : > { %10631 = vmatpush3.bf16.msra.mxu0 %v10795_v27  ;;  %10585 = vmatmul.mubr.msk.bf16.vlgmr.msra.gmra.mxu1 %vm6166_vm4, %v6584_v57  ;;  %v9474_v57 = vcombine.low %v7330_v20, %v7334_v25 }
 0x451   : > { %10589 = vmatpush3.bf16.msra.mxu1 %v10796_v1  ;;  %10592 = vmatprep.mubr.msk.bf16.mxu1 %vm6166_vm4, %v6670_v6 }
 0x452   : > { %10590 = vmatprep.subr.bf16.mxu1 %v10797_v9  ;;  %7740 = vmatprep.subr.bf16.mxu0 %v9515_v42 }
 0x453   : > { %10633 = vmatmul.mubr.msk.bf16.vlgmr.msra.gmra.mxu0 %vm6166_vm4, %v7108_v13 }
 0x454   : > { %7772 = vmatprep.mubr.bf16.mxu0 %v14816_v4 }
 0x455   : > { %10591 = vmatpush3.bf16.msra.mxu1 %v10797_v9 }
 0x456   : > { %10604 = vmatprep.subr.bf16.mxu1 %v10798_v19 }
 0x458   : > { %10593 = vmatmul.mubr.msk.bf16.vlgmr.msra.gmra.mxu1 %vm6166_vm4, %v6669_v62 }
 0x459   : > { %10605 = vmatpush3.bf16.msra.mxu1 %v10798_v19  ;;  %10608 = vmatprep.mubr.msk.bf16.mxu1 %vm6166_vm4, %v9419_v31 }
 0x45a   : > { %10606 = vmatprep.subr.bf16.mxu1 %v10799_v15 }
 0x45d   : > { %10607 = vmatpush3.bf16.msra.mxu1 %v10799_v15 }
 0x45e   : > { %10620 = vmatprep.subr.bf16.mxu1 %v10800_v45 }
 0x460   : > { %10609 = vmatmul.mubr.msk.bf16.vlgmr.msra.gmra.mxu1 %vm6166_vm4, %v9420_v17 }
 0x461   : > { %10621 = vmatpush3.bf16.msra.mxu1 %v10800_v45  ;;  %10624 = vmatprep.mubr.msk.bf16.mxu1 %vm6166_vm4, %v7028_v16 }
 0x462   : > { %10622 = vmatprep.subr.bf16.mxu1 %v10801_v48 }
 0x465   : > { %10623 = vmatpush3.bf16.msra.mxu1 %v10801_v48 }
 0x466   : > { %10636 = vmatprep.subr.bf16.mxu1 %v14737_v12 }
 0x468   : > { %10625 = vmatmul.mubr.msk.bf16.vlgmr.msra.gmra.mxu1 %vm6166_vm4, %v7027_v50  ;;  %vm7215_vm4 = vcmask 58368  }
 0x469   : > { %10638 = vmatprep.mubr.msk.bf16.mxu1 %vm14738_vm14, %v14737_v12  ;;  %10637 = vmatpush3.bf16.msra.mxu1 %v7270_v8  ;;  %v9514_v12 = vcombine.low %v7370_v14, %v7374_v61  ;;  %vm7192_vm14 = vcmask 64512  }
 0x46a   : > { %7781 = vmatprep.subr.bf16.mxu1 %v9517_v53 }
 0x46b   : > { %7741 = vmatpush1.bf16.msra.mxu0 %v9514_v12 }
 0x46c   : > { %7742 = vmatprep.subr.bf16.mxu0 %v9507_v26 }
 0x46f   : > { %7743 = vmatpush1.bf16.msra.mxu0 %v9506_v54 }
 0x470   : > { %7744 = vmatprep.subr.bf16.mxu0 %v9499_v56 }
 0x473   : > { %7745 = vmatpush1.bf16.msra.mxu0 %v9498_v39 }
 0x474   : > { %7746 = vmatprep.subr.bf16.mxu0 %v9491_v18 }
 0x477   : > { %7747 = vmatpush1.bf16.msra.mxu0 %v9490_v0 }
 0x478   : > { %7748 = vmatprep.subr.bf16.mxu0 %v9483_v46  ;;  %v9453_v46 = vld [vmem:[%s14505_s6] ss:$0 sm:$0xff] }
 0x47b   : > { %7749 = vmatpush1.bf16.msra.mxu0 %v9482_v36 }
 0x47c   : > { %7750 = vmatprep.subr.bf16.mxu0 %v9475_v30 }
 0x47f   : > { %7751 = vmatpush1.bf16.msra.mxu0 %v9474_v57 }
 0x480   : > { %7752 = vmatprep.subr.bf16.mxu0 %v9467_v21 }
 0x483   : > { %7753 = vmatpush1.bf16.msra.mxu0 %v9466_v7 }
 0x500   : > { %v10570_v10 = vpop.f32.mrf.mxu1 }
 0x502   : > { %v6494_v59 = vpop.f32.mrf.mxu1 }
 0x503   : > { %v10602_v13 = vpop.f32.mrf.mxu0 }
 0x504   : > { %v10571_v11 = vpop.f32.mrf.mxu1 }
 0x505   : > { %v6819_v3 = vpop.f32.mrf.mxu0 }
 0x506   : > { %v6497_v27 = vpop.f32.mrf.mxu1 }
 0x507   : > { %v10603_v1 = vpop.f32.mrf.mxu0 }
 0x508   : > { %v10578_v29 = vpop.f32.mrf.mxu1 }
 0x509   : > { %v6822_v62 = vpop.f32.mrf.mxu0  ;;  %v6569_v2 = vadd.f32 %v10578_v29, %v10570_v10 }
 0x50a   : > { %v6560_v24 = vpop.f32.mrf.mxu1 }
 0x50b   : > { %v10618_v9 = vpop.f32.mrf.mxu0  ;;  %v6561_v17 = vadd.f32 %v6560_v24, %v6494_v59 }
 0x50c   : > { %v10579_v6 = vpop.f32.mrf.mxu1 }
 0x50d   : > { %v6986_v19 = vpop.f32.mrf.mxu0 }
 0x50e   : > { %v6563_v44 = vpop.f32.mrf.mxu1 }
 0x50f   : > { %v10619_v28 = vpop.f32.mrf.mxu0  ;;  %v6564_v61 = vadd.f32 %v6563_v44, %v6497_v27 }
 0x510   : > { %v10586_v33 = vpop.f32.mrf.mxu1 }
 0x511   : > { %v6989_v22 = vpop.f32.mrf.mxu0  ;;  %v6654_v48 = vadd.f32 %v10586_v33, %v6569_v2  ;;  %v11014_v33 = vmov 1983009808  }
 0x512   : > { %v6638_v15 = vpop.f32.mrf.mxu1 }
 0x513   : > { %v10634_v31 = vpop.f32.mrf.mxu0  ;;  %v6652_v55 = vadd.f32 %v6638_v15, %v6561_v17  ;;  %v7248_v15 = vlaneseq }
 0x514   : > { %v10587_v52 = vpop.f32.mrf.mxu1 }
 0x515   : > { %v7162_v34 = vpop.f32.mrf.mxu0 }
 0x516   : > { %v6641_v32 = vpop.f32.mrf.mxu1 }
 0x517   : > { %v10635_v23 = vpop.f32.mrf.mxu0  ;;  %v6653_v58 = vadd.f32 %v6641_v32, %v6564_v61 }
 0x518   : > { %v10594_v45 = vpop.f32.mrf.mxu1  ;;  %v13907_v23 = vshrl.u32 %v7248_v15, 7 }
 0x519   : > { %v6739_v8 = vadd.f32 %v10594_v45, %v6654_v48 }
 0x51a   : > { %v6723_v50 = vpop.f32.mrf.mxu1 }
 0x51b   : > { %v6737_v12 = vadd.f32 %v6723_v50, %v6652_v55  ;;  %v6835_v63 = vadd.f32 %v10602_v13, %v6739_v8  ;;  %v7165_v13 = vpop.f32.mrf.mxu0 }
 0x51c   : > { %v10595_v16 = vpop.f32.mrf.mxu1 }
 0x51d   : > { %v6833_v51 = vadd.f32 %v6819_v3, %v6737_v12 }
 0x51e   : > { %v6726_v14 = vpop.f32.mrf.mxu1 }
 0x51f   : > { %v6738_v26 = vadd.f32 %v6726_v14, %v6653_v58 }
 0x520   : > { %v10610_v42 = vpop.f32.mrf.mxu1 }
 0x521   : > { %v6911_v54 = vadd.f32 %v10610_v42, %v6835_v63  ;;  %v6834_v37 = vadd.f32 %v6822_v62, %v6738_v26 }
 0x522   : > { %v6895_v53 = vpop.f32.mrf.mxu1 }
 0x523   : > { %v6909_v56 = vadd.f32 %v6895_v53, %v6833_v51  ;;  %v7002_v41 = vadd.f32 %v10618_v9, %v6911_v54  ;;  %v7363_v51 = vld [vmem:[%s14508_s9 + $0x188] sm:$0xff] }
 0x524   : > { %v10611_v40 = vpop.f32.mrf.mxu1 }
 0x525   : > { %v7000_v5 = vadd.f32 %v6986_v19, %v6909_v56  ;;  %v7367_v40 = vld [vmem:[%s14508_s9 + $0x1a8] sm:$0xff] }
 0x526   : > { %v6898_v39 = vpop.f32.mrf.mxu1  ;;  %v9509_v56 = vcombine.high %v7363_v51, %v7367_v40 }
 0x527   : > { %v6910_v0 = vadd.f32 %v6898_v39, %v6834_v37  ;;  %v7355_v37 = vld [vmem:[%s14508_s9 + $0x148] sm:$0xff] }
 0x528   : > { %v10626_v18 = vpop.f32.mrf.mxu1 }
 0x529   : > { %v7097_v47 = vadd.f32 %v10626_v18, %v7002_v41  ;;  %v7001_v38 = vadd.f32 %v6989_v22, %v6910_v0  ;;  %v7246_v22 = vunpack.c.l.s4 %v11014_v33  ;;  %v7359_v41 = vld [vmem:[%s14508_s9 + $0x168] sm:$0xff]  ;;  %v9508_v18 = vcombine.low %v7363_v51, %v7367_v40  ;;  %v7377_v33 = vld [vmem:[%s14508_s9 + $0x1f8] sm:$0xff]  ;;  %v7348_v40 = vld [vmem:[%s14508_s9 + $0x110] sm:$0xff] }
 0x52a   : > { %v7081_v36 = vpop.f32.mrf.mxu1  ;;  %v9501_v0 = vcombine.high %v7355_v37, %v7359_v41 }
 0x52b   : > { %v7178_v20 = vadd.f32 %v10634_v31, %v7097_v47  ;;  %v7095_v25 = vadd.f32 %v7081_v36, %v7000_v5  ;;  %v7247_v32 = vunpack.c.0.s8 %v7246_v22  ;;  %v7347_v47 = vld [vmem:[%s14508_s9 + $0x108] sm:$0xff] }
 0x52c   : > { %v10627_v30 = vpop.f32.mrf.mxu1  ;;  %v7351_v5 = vld [vmem:[%s14508_s9 + $0x128] sm:$0xff] }
 0x52d   : > { %v7188_v57 = vadd.f32 %v9453_v46, %v7178_v20  ;;  %v7176_v43 = vadd.f32 %v7162_v34, %v7095_v25  ;;  %v7250_v17 = vsub.s32 %v7247_v32, %v13907_v23  ;;  %v9493_v36 = vcombine.high %v7347_v47, %v7351_v5  ;;  %v7331_v25 = vld [vmem:[%s14508_s9 + $0x88] sm:$0xff]  ;;  %v7364_v32 = vld [vmem:[%s14508_s9 + $0x190] sm:$0xff] }
 0x52e   : > { %v7084_v21 = vpop.f32.mrf.mxu1  ;;  %v9485_v20 = vcombine.high %v7339_v35, %v7343_v49  ;;  %v7335_v30 = vld [vmem:[%s14508_s9 + $0xa8] sm:$0xff] }
 0x52f   : > { %v7191_v7 = vmax.f32 %v7188_v57, 0.0  ;;  %v7186_v10 = vadd.f32 %v9453_v46, %v7176_v43  ;;  %v7096_v59 = vadd.f32 %v7084_v21, %v7001_v38  ;;  %v9484_v57 = vcombine.low %v7339_v35, %v7343_v49  ;;  %v7323_v38 = vld [vmem:[%s14508_s9 + $0x48] sm:$0xff] }
 0x530   : > { %v9477_v43 = vcombine.high %v7331_v25, %v7335_v30  ;;  %v7327_v21 = vld [vmem:[%s14508_s9 + $0x68] sm:$0xff] }
 0x531   : > { %7195 = vst.msk [vmem:[#allocation6 + $0x10] sm:$0xff] %vm7192_vm14, %v7191_v7  ;;  %v7189_v11 = vmax.f32 %v7186_v10, 0.0  ;;  %v7177_v3 = vadd.f32 %v7165_v13, %v7096_v59  ;;  %v9476_v7 = vcombine.low %v7331_v25, %v7335_v30  ;;  %v9469_v10 = vcombine.high %v7323_v38, %v7327_v21  ;;  %v7314_v13 = vld [vmem:[%s14508_s9] sm:$0xff]  ;;  %v7332_v25 = vld [vmem:[%s14508_s9 + $0x90] sm:$0xff] }
 0x532   : > { %v9468_v59 = vcombine.low %v7323_v38, %v7327_v21  ;;  %v7336_v30 = vld [vmem:[%s14508_s9 + $0xb0] sm:$0xff] }
 0x533   : > { %7193 = vst.msk [vmem:[#allocation6] sm:$0xff] %vm7192_vm14, %v7189_v11  ;;  %v7187_v27 = vadd.f32 %v9453_v46, %v7177_v3  ;;  %v9500_v46 = vcombine.low %v7355_v37, %v7359_v41  ;;  %v7318_v11 = vld [vmem:[%s14508_s9 + $0x20] sm:$0xff]  ;;  %v7315_v3 = vld [vmem:[%s14508_s9 + $0x8] sm:$0xff]  ;;  %v7353_v37 = vld [vmem:[%s14508_s9 + $0x138] sm:$0xff] }
 0x535   : > { %v7190_v1 = vmax.f32 %v7187_v27, 0.0  ;;  %v9458_v27 = vcombine.low %v7314_v13, %v7318_v11 }
 0x537   : > { %7194 = vst.msk [vmem:[#allocation6 + $0x8] sm:$0xff] %vm7192_vm14, %v7190_v1  ;;  %v9459_v1 = vcombine.high %v7314_v13, %v7318_v11  ;;  %v7328_v13 = vld [vmem:[%s14508_s9 + $0x70] sm:$0xff]  ;;  %v7325_v11 = vld [vmem:[%s14508_s9 + $0x58] sm:$0xff] }
 0x538   : > { %v7198_v29 = vld [vmem:[#allocation6 + $0x10] ss:$2 sm:$0xf]  ;;  %v7202_v62 = vld [vmem:[#allocation6 + $0x11] ss:$2 sm:$0xf] }
 0x539   : > { %v7204_v24 = vmax.f32 %v7198_v29, %v7202_v62  ;;  %v7319_v29 = vld [vmem:[%s14508_s9 + $0x28] sm:$0xff]  ;;  %v7372_v62 = vld [vmem:[%s14508_s9 + $0x1d0] sm:$0xff]  ;;  %7754 = vmatprep.subr.bf16.mxu0 %v9459_v1 }
 0x53a   : > { %7755 = vmatpush1.bf16.msra.mxu0 %v9458_v27  ;;  %v9478_v27 = vcombine.low %v7332_v25, %v7336_v30 }
 0x53b   : > { %v9679_v9 = vpack.c.bf16 %v7204_v24, %v7204_v24  ;;  %v7376_v24 = vld [vmem:[%s14508_s9 + $0x1f0] sm:$0xff] }
 0x53d   : > { %7216 = vst.msk [vmem:[#allocation9 + $0x4] sm:$0x3] %vm7215_vm4, %v9679_v9  ;;  %v9460_v9 = vcombine.low %v7315_v3, %v7319_v29 }
 0x53e   : > { %v7196_v6 = vld [vmem:[#allocation6] ss:$2 sm:$0xff]  ;;  %v7200_v19 = vld [vmem:[#allocation6 + $0x1] ss:$2 sm:$0xff] }
 0x53f   : > { %v7203_v44 = vmax.f32 %v7196_v6, %v7200_v19  ;;  %v9461_v6 = vcombine.high %v7315_v3, %v7319_v29  ;;  %v9518_v19 = vcombine.low %v7372_v62, %v7376_v24  ;;  %v7329_v3 = vld [vmem:[%s14508_s9 + $0x78] sm:$0xff] }
 0x541   : > { %v9678_v28 = vpack.c.bf16 %v7203_v44, %v7203_v44  ;;  %v9519_v44 = vcombine.high %v7372_v62, %v7376_v24  ;;  %v9473_v62 = vcombine.high %v7325_v11, %v7329_v3  ;;  %v7316_v24 = vld [vmem:[%s14508_s9 + $0x10] sm:$0xff] }
 0x543   : > { %7214 = vst.msk [vmem:[#allocation9] sm:$0xf] %vm7213_vm2, %v9678_v28  ;;  %v7373_v28 = vld [vmem:[%s14508_s9 + $0x1d8] sm:$0xff]  ;;  %7822 = vmatprep.subr.bf16.mxu0 %v9519_v44 }
 0x544   : > { %v7233_v31 = vld [vmem:[#allocation9 + $0x4] sm:$0x3]  ;;  %v9520_v22 = vcombine.low %v7373_v28, %v7377_v33  ;;  %v9521_v15 = vcombine.high %v7373_v28, %v7377_v33  ;;  %v9472_v28 = vcombine.low %v7325_v11, %v7329_v3  ;;  %v10871_v11 = vld [vmem:[%s14510_s11 + $0x1c0] ss:$8 sps:$4 sm:$0xff]   ;;  %v10876_v3 = vld [vmem:[%s14510_s11 + $0xb4] ss:$8 sps:$4 sm:$0xff]  }
 0x545   : > { %v7235_v52 = vshrl.u32 %v7233_v31, 16  ;;  %v7238_v34 = vshll.u32 %v7233_v31, 16  ;;  %v9456_v31 = vld [vmem:[%s14507_s8] ss:$0 sm:$0xff] }
 0x547   : > { %v7237_v45 = vrot.slane %v7235_v52, 5  ;;  %v7240_v2 = vrot.slane %v7238_v34, 6 }
 0x549   : > { %v7241_v50 = vor.u32 %v7240_v2, %v7237_v45  ;;  %v7368_v2 = vld [vmem:[%s14508_s9 + $0x1b0] sm:$0xff] }
 0x54a   : > { %v7218_v48 = vld [vmem:[#allocation9] sm:$0x6]  ;;  %v7232_v16 = vld [vmem:[#allocation9] sm:$0x8]  ;;  %v7217_v26 = vld [vmem:[#allocation9] sm:$0x1] }
 0x54b   : > { %v7220_v55 = vshrl.u32 %v7218_v48, 16  ;;  %v7223_v8 = vshll.u32 %v7218_v48, 16  ;;  %v7243_v14 = vmax.bf16 %v7241_v50, %v7232_v16  ;;  %v7365_v50 = vld [vmem:[%s14508_s9 + $0x198] sm:$0xff] }
 0x54d   : > { %v7222_v61 = vrot.slane %v7220_v55, 5  ;;  %v7225_v12 = vrot.slane %v7223_v8, 6  ;;  %v7251_v42 = vrot.slane %v7243_v14, %v7250_v17  ;;  %v7369_v17 = vld [vmem:[%s14508_s9 + $0x1b8] sm:$0xff]  ;;  %v9511_v8 = vcombine.high %v7364_v32, %v7368_v2 }
 0x54e   : > { %v9513_v14 = vcombine.high %v7365_v50, %v7369_v17 }
 0x54f   : > { %v7226_v58 = vor.u32 %v7225_v12, %v7222_v61  ;;  %v7252_v63 = vcombine.high %v7251_v42, %v7251_v42  ;;  %v7356_v61 = vld [vmem:[%s14508_s9 + $0x150] sm:$0xff] }
 0x550   : > { %v7360_v42 = vld [vmem:[%s14508_s9 + $0x170] sm:$0xff] }
 0x551   : > { %v7227_v53 = vrot.slane %v7226_v58, 4  ;;  %7255 = vst.msk [vmem:[#allocation10] sm:$0x2] %vm7254_vm15, %v7252_v63  ;;  %v7357_v58 = vld [vmem:[%s14508_s9 + $0x158] sm:$0xff]  ;;  %v9502_v41 = vcombine.low %v7356_v61, %v7360_v42 }
 0x552   : > { %v7361_v63 = vld [vmem:[%s14508_s9 + $0x178] sm:$0xff] }
 0x553   : > { %v7229_v54 = vmax.bf16 %v7227_v53, %v7217_v26  ;;  %v9510_v53 = vcombine.low %v7364_v32, %v7368_v2  ;;  %v9512_v26 = vcombine.low %v7365_v50, %v7369_v17  ;;  %v9505_v51 = vcombine.high %v7357_v58, %v7361_v63  ;;  %v10802_v32 = vld [vmem:[%s14510_s11 + $0x70] ss:$8 sps:$4 sm:$0xff]   ;;  %v10810_v2 = vld [vmem:[%s14510_s11 + $0x64] ss:$8 sps:$4 sm:$0xff]   ;;  %v10808_v17 = vld [vmem:[%s14510_s11 + $0x60] ss:$8 sps:$4 sm:$0xff]  }
 0x554   : > { %v10813_v50 = vld [vmem:[%s14510_s11 + $0x164] ss:$8 sps:$4 sm:$0xff]  }
 0x555   : > { %7231 = vst.msk [vmem:[#allocation10] sm:$0x1] %vm7230_vm8, %v7229_v54  ;;  %v9503_v54 = vcombine.high %v7356_v61, %v7360_v42  ;;  %v10822_v61 = vld [vmem:[%s14510_s11 + $0x44] ss:$8 sps:$4 sm:$0xff]   ;;  %v10820_v42 = vld [vmem:[%s14510_s11 + $0x40] ss:$8 sps:$4 sm:$0xff]  }
 0x55c   : > { %v7256_v39 = vld [vmem:[#allocation10] sm:$0x3] }
 0x55d   : > { %10639 = vmatmul.mubr.msk.bf16.vlgmr.msra.gmra.mxu1 %vm7192_vm14, %v7256_v39  ;;  %v7349_v39 = vld [vmem:[%s14508_s9 + $0x118] sm:$0xff] }
 0x55e   : > { %7782 = vmatpush1.bf16.msra.mxu1 %v9516_v60  ;;  %7813 = vmatprep.mubr.bf16.mxu1 %v14816_v4  ;;  %v9492_v60 = vcombine.low %v7347_v47, %v7351_v5  ;;  %v9497_v47 = vcombine.high %v7349_v39, %v7353_v37  ;;  %v7340_v5 = vld [vmem:[%s14508_s9 + $0xd0] sm:$0xff]  ;;  %v9496_v49 = vcombine.low %v7349_v39, %v7353_v37  ;;  %v10835_v39 = vld [vmem:[%s14510_s11 + $0x120] ss:$8 sps:$4 sm:$0xff]  }
 0x55f   : > { %7783 = vmatprep.subr.bf16.mxu1 %v9509_v56  ;;  %v7352_v56 = vld [vmem:[%s14508_s9 + $0x130] sm:$0xff] }
 0x560   : > { %v9494_v35 = vcombine.low %v7348_v40, %v7352_v56  ;;  %v10840_v37 = vld [vmem:[%s14510_s11 + $0x14] ss:$8 sps:$4 sm:$0xff]  }
 0x562   : > { %7784 = vmatpush1.bf16.msra.mxu1 %v9508_v18  ;;  %v9504_v18 = vcombine.low %v7357_v58, %v7361_v63  ;;  %v10823_v58 = vld [vmem:[%s14510_s11 + $0x140] ss:$8 sps:$4 sm:$0xff]   ;;  %v10828_v63 = vld [vmem:[%s14510_s11 + $0x34] ss:$8 sps:$4 sm:$0xff]  }
 0x563   : > { %7785 = vmatprep.subr.bf16.mxu1 %v9501_v0  ;;  %v9495_v0 = vcombine.high %v7348_v40, %v7352_v56  ;;  %v10837_v40 = vld [vmem:[%s14510_s11 + $0x124] ss:$8 sps:$4 sm:$0xff]   ;;  %v10832_v56 = vld [vmem:[%s14510_s11 + $0x20] ss:$8 sps:$4 sm:$0xff]  }
 0x566   : > { %7786 = vmatpush1.bf16.msra.mxu1 %v9500_v46  ;;  %v7344_v46 = vld [vmem:[%s14508_s9 + $0xf0] sm:$0xff] }
 0x567   : > { %7787 = vmatprep.subr.bf16.mxu1 %v9493_v36  ;;  %v7345_v36 = vld [vmem:[%s14508_s9 + $0xf8] sm:$0xff]  ;;  %v9486_v38 = vcombine.low %v7340_v5, %v7344_v46 }
 0x56a   : > { %7788 = vmatpush1.bf16.msra.mxu1 %v9492_v60  ;;  %v9487_v60 = vcombine.high %v7340_v5, %v7344_v46  ;;  %v10849_v5 = vld [vmem:[%s14510_s11 + $0x104] ss:$8 sps:$4 sm:$0xff]   ;;  %v10844_v46 = vld [vmem:[%s14510_s11] ss:$8 sps:$4 sm:$0xff]  }
 0x56b   : > { %7789 = vmatprep.subr.bf16.mxu1 %v9485_v20 }
 0x56e   : > { %7790 = vmatpush1.bf16.msra.mxu1 %v9484_v57  ;;  %v7333_v57 = vld [vmem:[%s14508_s9 + $0x98] sm:$0xff] }
 0x56f   : > { %7791 = vmatprep.subr.bf16.mxu1 %v9477_v43  ;;  %v7337_v43 = vld [vmem:[%s14508_s9 + $0xb8] sm:$0xff] }
 0x570   : > { %v9480_v1 = vcombine.low %v7333_v57, %v7337_v43 }
 0x572   : > { %7792 = vmatpush1.bf16.msra.mxu1 %v9476_v7  ;;  %v9479_v7 = vcombine.high %v7332_v25, %v7336_v30  ;;  %v10861_v25 = vld [vmem:[%s14510_s11 + $0x1e4] ss:$8 sps:$4 sm:$0xff]   ;;  %v10856_v30 = vld [vmem:[%s14510_s11 + $0xe0] ss:$8 sps:$4 sm:$0xff]  }
 0x573   : > { %7793 = vmatprep.subr.bf16.mxu1 %v9469_v10  ;;  %v9481_v10 = vcombine.high %v7333_v57, %v7337_v43  ;;  %v10859_v57 = vld [vmem:[%s14510_s11 + $0x1e0] ss:$8 sps:$4 sm:$0xff]   ;;  %v10864_v43 = vld [vmem:[%s14510_s11 + $0xd4] ss:$8 sps:$4 sm:$0xff]  }
 0x576   : > { %7794 = vmatpush1.bf16.msra.mxu1 %v9468_v59  ;;  %v7324_v59 = vld [vmem:[%s14508_s9 + $0x50] sm:$0xff] }
 0x577   : > { %7795 = vmatprep.subr.bf16.mxu1 %v9461_v6  ;;  %v9471_v29 = vcombine.high %v7324_v59, %v7328_v13  ;;  %v7317_v6 = vld [vmem:[%s14508_s9 + $0x18] sm:$0xff]  ;;  %v9470_v44 = vcombine.low %v7324_v59, %v7328_v13  ;;  %v10873_v59 = vld [vmem:[%s14510_s11 + $0x1c4] ss:$8 sps:$4 sm:$0xff]   ;;  %v10868_v13 = vld [vmem:[%s14510_s11 + $0xc0] ss:$8 sps:$4 sm:$0xff]  }
 0x57a   : > { %7796 = vmatpush1.bf16.msra.mxu1 %v9460_v9  ;;  %v7320_v9 = vld [vmem:[%s14508_s9 + $0x30] sm:$0xff] }
 0x57b   : > { %7863 = vmatprep.subr.bf16.mxu1 %v9521_v15  ;;  %v9463_v33 = vcombine.high %v7316_v24, %v7320_v9  ;;  %v9462_v15 = vcombine.low %v7316_v24, %v7320_v9  ;;  %v10885_v24 = vld [vmem:[%s14510_s11 + $0x1a4] ss:$8 sps:$4 sm:$0xff]   ;;  %v10880_v9 = vld [vmem:[%s14510_s11 + $0xa0] ss:$8 sps:$4 sm:$0xff]  }
 0x61d   : > { %v7306_v52 = vpop.f32.mrf.mxu1 }
 0x61e   : > { %v7307_v34 = vadd.f32 %v9456_v31, %v7306_v52  ;;  %v10804_v52 = vld [vmem:[%s14510_s11 + $0x74] ss:$8 sps:$4 sm:$0xff]  }
 0x61f   : > { %v10640_v45 = vpop.f32.mrf.mxu1 }
 0x620   : > { %v7312_v48 = vmax.f32 %v7307_v34, 0.0  ;;  %v10807_v34 = vld [vmem:[%s14510_s11 + $0x174] ss:$8 sps:$4 sm:$0xff]   ;;  %v10805_v45 = vld [vmem:[%s14510_s11 + $0x170] ss:$8 sps:$4 sm:$0xff]  }
 0x621   : > { %v7309_v16 = vpop.f32.mrf.mxu1 }
 0x622   : > { %v13990_v55 = vpack.c.bf16 %v7312_v48, %v7312_v48  ;;  %v10811_v48 = vld [vmem:[%s14510_s11 + $0x160] ss:$8 sps:$4 sm:$0xff]   ;;  %v10816_v16 = vld [vmem:[%s14510_s11 + $0x54] ss:$8 sps:$4 sm:$0xff]  }
 0x623   : > { %v10641_v12 = vpop.f32.mrf.mxu1 }
 0x624   : > { %7773 = vmatmul.mubr.bf16.vlgmr.msra.gmra.mxu0 %v13990_v55  ;;  %7814 = vmatmul.mubr.bf16.vlgmr.msra.gmra.mxu1 %v13990_v55  ;;  %v10825_v12 = vld [vmem:[%s14510_s11 + $0x144] ss:$8 sps:$4 sm:$0xff]  }
 0x625   : > { %7823 = vmatpush1.bf16.msra.mxu0 %v9518_v19  ;;  %7864 = vmatpush1.bf16.msra.mxu1 %v9520_v22  ;;  %v7321_v19 = vld [vmem:[%s14508_s9 + $0x38] sm:$0xff] }
 0x626   : > { %7824 = vmatprep.subr.bf16.mxu0 %v9511_v8  ;;  %7865 = vmatprep.subr.bf16.mxu1 %v9513_v14  ;;  %v9465_v22 = vcombine.high %v7317_v6, %v7321_v19  ;;  %v9464_v31 = vcombine.low %v7317_v6, %v7321_v19  ;;  %v10814_v8 = vld [vmem:[%s14510_s11 + $0x50] ss:$8 sps:$4 sm:$0xff]   ;;  %v10883_v6 = vld [vmem:[%s14510_s11 + $0x1a0] ss:$8 sps:$4 sm:$0xff]   ;;  %v10888_v19 = vld [vmem:[%s14510_s11 + $0x94] ss:$8 sps:$4 sm:$0xff]  }
 0x627   : > { %7854 = vmatprep.mubr.bf16.mxu0 %v14816_v4  ;;  %7895 = vmatprep.mubr.bf16.mxu1 %v14816_v4  ;;  %v7341_v4 = vld [vmem:[%s14508_s9 + $0xd8] sm:$0xff] }
 0x628   : > { %v9489_v20 = vcombine.high %v7341_v4, %v7345_v36  ;;  %v9488_v21 = vcombine.low %v7341_v4, %v7345_v36  ;;  %v10817_v14 = vld [vmem:[%s14510_s11 + $0x150] ss:$8 sps:$4 sm:$0xff]   ;;  %v10847_v4 = vld [vmem:[%s14510_s11 + $0x100] ss:$8 sps:$4 sm:$0xff]   ;;  %v10852_v36 = vld [vmem:[%s14510_s11 + $0xf4] ss:$8 sps:$4 sm:$0xff]  }
 0x629   : > { %7825 = vmatpush1.bf16.msra.mxu0 %v9510_v53  ;;  %7866 = vmatpush1.bf16.msra.mxu1 %v9512_v26  ;;  %v10831_v53 = vld [vmem:[%s14510_s11 + $0x134] ss:$8 sps:$4 sm:$0xff]   ;;  %v10826_v26 = vld [vmem:[%s14510_s11 + $0x30] ss:$8 sps:$4 sm:$0xff]  }
 0x62a   : > { %7826 = vmatprep.subr.bf16.mxu0 %v9503_v54  ;;  %7867 = vmatprep.subr.bf16.mxu1 %v9505_v51  ;;  %v10829_v54 = vld [vmem:[%s14510_s11 + $0x130] ss:$8 sps:$4 sm:$0xff]   ;;  %v10834_v51 = vld [vmem:[%s14510_s11 + $0x24] ss:$8 sps:$4 sm:$0xff]  }
 0x62d   : > { %7827 = vmatpush1.bf16.msra.mxu0 %v9502_v41  ;;  %7868 = vmatpush1.bf16.msra.mxu1 %v9504_v18  ;;  %v10843_v41 = vld [vmem:[%s14510_s11 + $0x114] ss:$8 sps:$4 sm:$0xff]   ;;  %v10838_v18 = vld [vmem:[%s14510_s11 + $0x10] ss:$8 sps:$4 sm:$0xff]  }
 0x62e   : > { %7828 = vmatprep.subr.bf16.mxu0 %v9495_v0  ;;  %7869 = vmatprep.subr.bf16.mxu1 %v9497_v47  ;;  %v10841_v0 = vld [vmem:[%s14510_s11 + $0x110] ss:$8 sps:$4 sm:$0xff]   ;;  %v10846_v47 = vld [vmem:[%s14510_s11 + $0x4] ss:$8 sps:$4 sm:$0xff]  }
 0x631   : > { %7829 = vmatpush1.bf16.msra.mxu0 %v9494_v35  ;;  %7870 = vmatpush1.bf16.msra.mxu1 %v9496_v49  ;;  %v10855_v35 = vld [vmem:[%s14510_s11 + $0x1f4] ss:$8 sps:$4 sm:$0xff]   ;;  %v10850_v49 = vld [vmem:[%s14510_s11 + $0xf0] ss:$8 sps:$4 sm:$0xff]  }
 0x632   : > { %7830 = vmatprep.subr.bf16.mxu0 %v9487_v60  ;;  %7871 = vmatprep.subr.bf16.mxu1 %v9489_v20  ;;  %v10853_v60 = vld [vmem:[%s14510_s11 + $0x1f0] ss:$8 sps:$4 sm:$0xff]   ;;  %v10858_v20 = vld [vmem:[%s14510_s11 + $0xe4] ss:$8 sps:$4 sm:$0xff]  }
 0x635   : > { %7831 = vmatpush1.bf16.msra.mxu0 %v9486_v38  ;;  %7872 = vmatpush1.bf16.msra.mxu1 %v9488_v21  ;;  %v10867_v38 = vld [vmem:[%s14510_s11 + $0x1d4] ss:$8 sps:$4 sm:$0xff]   ;;  %v10862_v21 = vld [vmem:[%s14510_s11 + $0xd0] ss:$8 sps:$4 sm:$0xff]  }
 0x636   : > { %7832 = vmatprep.subr.bf16.mxu0 %v9479_v7  ;;  %7873 = vmatprep.subr.bf16.mxu1 %v9481_v10  ;;  %v10865_v7 = vld [vmem:[%s14510_s11 + $0x1d0] ss:$8 sps:$4 sm:$0xff]   ;;  %v10870_v10 = vld [vmem:[%s14510_s11 + $0xc4] ss:$8 sps:$4 sm:$0xff]  }
 0x639   : > { %7833 = vmatpush1.bf16.msra.mxu0 %v9478_v27  ;;  %7874 = vmatpush1.bf16.msra.mxu1 %v9480_v1  ;;  %v10879_v27 = vld [vmem:[%s14510_s11 + $0x1b4] ss:$8 sps:$4 sm:$0xff]   ;;  %v10874_v1 = vld [vmem:[%s14510_s11 + $0xb0] ss:$8 sps:$4 sm:$0xff]  }
 0x63a   : > { %7834 = vmatprep.subr.bf16.mxu0 %v9471_v29  ;;  %7875 = vmatprep.subr.bf16.mxu1 %v9473_v62  ;;  %v10877_v29 = vld [vmem:[%s14510_s11 + $0x1b0] ss:$8 sps:$4 sm:$0xff]   ;;  %v10882_v62 = vld [vmem:[%s14510_s11 + $0xa4] ss:$8 sps:$4 sm:$0xff]  }
 0x63d   : > { %7835 = vmatpush1.bf16.msra.mxu0 %v9470_v44  ;;  %7876 = vmatpush1.bf16.msra.mxu1 %v9472_v28  ;;  %v10891_v44 = vld [vmem:[%s14510_s11 + $0x194] ss:$8 sps:$4 sm:$0xff]   ;;  %v10886_v28 = vld [vmem:[%s14510_s11 + $0x90] ss:$8 sps:$4 sm:$0xff]  }
 0x63e   : > { %7836 = vmatprep.subr.bf16.mxu0 %v9463_v33  ;;  %7877 = vmatprep.subr.bf16.mxu1 %v9465_v22  ;;  %v10889_v33 = vld [vmem:[%s14510_s11 + $0x190] ss:$8 sps:$4 sm:$0xff]   ;;  %v10894_v22 = vld [vmem:[%s14510_s11 + $0x84] ss:$8 sps:$4 sm:$0xff]  }
 0x641   : > { %7837 = vmatpush1.bf16.msra.mxu0 %v9462_v15  ;;  %7878 = vmatpush1.bf16.msra.mxu1 %v9464_v31  ;;  %v10897_v15 = vld [vmem:[%s14510_s11 + $0x184] ss:$8 sps:$4 sm:$0xff]   ;;  %v10892_v31 = vld [vmem:[%s14510_s11 + $0x80] ss:$8 sps:$4 sm:$0xff]  }
 0x642   : > { %8700 = vmatprep.subr.bf16.mxu0 %v10804_v52  ;;  %8741 = vmatprep.subr.bf16.mxu1 %v10807_v34  ;;  %v10895_v52 = vld [vmem:[%s14510_s11 + $0x180] ss:$8 sps:$4 sm:$0xff]   ;;  %v10900_v34 = vld [vmem:[%s14510_s11 + $0x274] ss:$8 sps:$4 sm:$0xff]  }
 0x644   : > { %7855 = vmatmul.mubr.bf16.vlgmr.msra.gmra.mxu0 %v13990_v55  ;;  %7896 = vmatmul.mubr.bf16.vlgmr.msra.gmra.mxu1 %v13990_v55  ;;  %v10819_v55 = vld [vmem:[%s14510_s11 + $0x154] ss:$8 sps:$4 sm:$0xff]  }
 0x645   : > { %8701 = vmatpush1.bf16.msra.mxu0 %v10802_v32  ;;  %8742 = vmatpush1.bf16.msra.mxu1 %v10805_v45  ;;  %v10903_v32 = vld [vmem:[%s14510_s11 + $0x374] ss:$8 sps:$4 sm:$0xff]   ;;  %v7382_v45 = vsub.s32 0, %v13907_v23 }
 0x646   : > { %8702 = vmatprep.subr.bf16.mxu0 %v10810_v2  ;;  %8743 = vmatprep.subr.bf16.mxu1 %v10813_v50  ;;  %v7390_v2 = vsub.s32 2, %v13907_v23  ;;  %v14273_v50 = vld [vmem:[%s14509_s10] sm:$0xff] }
 0x649   : > { %8703 = vmatpush1.bf16.msra.mxu0 %v10808_v17  ;;  %8744 = vmatpush1.bf16.msra.mxu1 %v10811_v48  ;;  %v7386_v17 = vsub.s32 1, %v13907_v23  ;;  %v7394_v48 = vsub.s32 3, %v13907_v23 }
 0x64a   : > { %8704 = vmatprep.subr.bf16.mxu0 %v10816_v16  ;;  %8745 = vmatprep.subr.bf16.mxu1 %v10819_v55  ;;  %v7383_v16 = vrot.slane %v14273_v50, %v7382_v45  ;;  %v7391_v55 = vrot.slane %v14273_v50, %v7390_v2 }
 0x64d   : > { %8705 = vmatpush1.bf16.msra.mxu0 %v10814_v8  ;;  %8746 = vmatpush1.bf16.msra.mxu1 %v10817_v14  ;;  %v7387_v8 = vrot.slane %v14273_v50, %v7386_v17  ;;  %v7395_v14 = vrot.slane %v14273_v50, %v7394_v48 }
 0x64e   : > { %8706 = vmatprep.subr.bf16.mxu0 %v10822_v61  ;;  %8747 = vmatprep.subr.bf16.mxu1 %v10825_v12 }
 0x651   : > { %8707 = vmatpush1.bf16.msra.mxu0 %v10820_v42  ;;  %8748 = vmatpush1.bf16.msra.mxu1 %v10823_v58 }
 0x652   : > { %8708 = vmatprep.subr.bf16.mxu0 %v10828_v63  ;;  %8749 = vmatprep.subr.bf16.mxu1 %v10831_v53 }
 0x655   : > { %8709 = vmatpush1.bf16.msra.mxu0 %v10826_v26  ;;  %8750 = vmatpush1.bf16.msra.mxu1 %v10829_v54 }
 0x656   : > { %8710 = vmatprep.subr.bf16.mxu0 %v10834_v51  ;;  %8751 = vmatprep.subr.bf16.mxu1 %v10837_v40 }
 0x659   : > { %8711 = vmatpush1.bf16.msra.mxu0 %v10832_v56  ;;  %8752 = vmatpush1.bf16.msra.mxu1 %v10835_v39 }
 0x65a   : > { %8712 = vmatprep.subr.bf16.mxu0 %v10840_v37  ;;  %8753 = vmatprep.subr.bf16.mxu1 %v10843_v41 }
 0x65d   : > { %8713 = vmatpush1.bf16.msra.mxu0 %v10838_v18  ;;  %8754 = vmatpush1.bf16.msra.mxu1 %v10841_v0 }
 0x65e   : > { %8714 = vmatprep.subr.bf16.mxu0 %v10846_v47  ;;  %8755 = vmatprep.subr.bf16.mxu1 %v10849_v5 }
 0x661   : > { %8715 = vmatpush1.bf16.msra.mxu0 %v10844_v46  ;;  %8756 = vmatpush1.bf16.msra.mxu1 %v10847_v4  ;;  %v10898_v46 = vld [vmem:[%s14510_s11 + $0x270] ss:$8 sps:$4 sm:$0xff]  }
 0x662   : > { %8716 = vmatprep.subr.bf16.mxu0 %v10852_v36  ;;  %8757 = vmatprep.subr.bf16.mxu1 %v10855_v35  ;;  %v10901_v4 = vld [vmem:[%s14510_s11 + $0x370] ss:$8 sps:$4 sm:$0xff]  }
 0x665   : > { %8717 = vmatpush2.bf16.msra.mxu0 %v10850_v49  ;;  %8758 = vmatpush2.bf16.msra.mxu1 %v10853_v60  ;;  %v10906_v49 = vld [vmem:[%s14510_s11 + $0x264] ss:$8 sps:$4 sm:$0xff]  }
 0x666   : > { %8718 = vmatprep.subr.bf16.mxu0 %v10858_v20  ;;  %8759 = vmatprep.subr.bf16.mxu1 %v10861_v25  ;;  %v10909_v60 = vld [vmem:[%s14510_s11 + $0x364] ss:$8 sps:$4 sm:$0xff]   ;;  %v10904_v20 = vld [vmem:[%s14510_s11 + $0x260] ss:$8 sps:$4 sm:$0xff]  }
 0x667   : > { %v10907_v25 = vld [vmem:[%s14510_s11 + $0x360] ss:$8 sps:$4 sm:$0xff]  }
 0x669   : > { %8719 = vmatpush2.bf16.msra.mxu0 %v10856_v30  ;;  %8760 = vmatpush2.bf16.msra.mxu1 %v10859_v57  ;;  %v10912_v30 = vld [vmem:[%s14510_s11 + $0x254] ss:$8 sps:$4 sm:$0xff]  }
 0x66a   : > { %8720 = vmatprep.subr.bf16.mxu0 %v10864_v43  ;;  %8761 = vmatprep.subr.bf16.mxu1 %v10867_v38  ;;  %v10915_v57 = vld [vmem:[%s14510_s11 + $0x354] ss:$8 sps:$4 sm:$0xff]   ;;  %v10910_v43 = vld [vmem:[%s14510_s11 + $0x250] ss:$8 sps:$4 sm:$0xff]  }
 0x66b   : > { %v10913_v38 = vld [vmem:[%s14510_s11 + $0x350] ss:$8 sps:$4 sm:$0xff]  }
 0x66d   : > { %8721 = vmatpush2.bf16.msra.mxu0 %v10862_v21  ;;  %8762 = vmatpush2.bf16.msra.mxu1 %v10865_v7  ;;  %v10918_v21 = vld [vmem:[%s14510_s11 + $0x244] ss:$8 sps:$4 sm:$0xff]  }
 0x66e   : > { %8722 = vmatprep.subr.bf16.mxu0 %v10870_v10  ;;  %8763 = vmatprep.subr.bf16.mxu1 %v10873_v59  ;;  %v10921_v7 = vld [vmem:[%s14510_s11 + $0x344] ss:$8 sps:$4 sm:$0xff]   ;;  %v10916_v10 = vld [vmem:[%s14510_s11 + $0x240] ss:$8 sps:$4 sm:$0xff]  }
 0x66f   : > { %v10919_v59 = vld [vmem:[%s14510_s11 + $0x340] ss:$8 sps:$4 sm:$0xff]  }
 0x671   : > { %8723 = vmatpush2.bf16.msra.mxu0 %v10868_v13  ;;  %8764 = vmatpush2.bf16.msra.mxu1 %v10871_v11  ;;  %v10924_v13 = vld [vmem:[%s14510_s11 + $0x234] ss:$8 sps:$4 sm:$0xff]  }
 0x672   : > { %8724 = vmatprep.subr.bf16.mxu0 %v10876_v3  ;;  %8765 = vmatprep.subr.bf16.mxu1 %v10879_v27  ;;  %v10927_v11 = vld [vmem:[%s14510_s11 + $0x334] ss:$8 sps:$4 sm:$0xff]   ;;  %v10922_v3 = vld [vmem:[%s14510_s11 + $0x230] ss:$8 sps:$4 sm:$0xff]  }
 0x673   : > { %v10925_v27 = vld [vmem:[%s14510_s11 + $0x330] ss:$8 sps:$4 sm:$0xff]  }
 0x675   : > { %8725 = vmatpush2.bf16.msra.mxu0 %v10874_v1  ;;  %8766 = vmatpush2.bf16.msra.mxu1 %v10877_v29  ;;  %v10930_v1 = vld [vmem:[%s14510_s11 + $0x224] ss:$8 sps:$4 sm:$0xff]  }
 0x676   : > { %8726 = vmatprep.subr.bf16.mxu0 %v10882_v62  ;;  %8767 = vmatprep.subr.bf16.mxu1 %v10885_v24  ;;  %v10933_v29 = vld [vmem:[%s14510_s11 + $0x324] ss:$8 sps:$4 sm:$0xff]   ;;  %v10928_v62 = vld [vmem:[%s14510_s11 + $0x220] ss:$8 sps:$4 sm:$0xff]  }
 0x677   : > { %v10931_v24 = vld [vmem:[%s14510_s11 + $0x320] ss:$8 sps:$4 sm:$0xff]  }
 0x679   : > { %8727 = vmatpush2.bf16.msra.mxu0 %v10880_v9  ;;  %8768 = vmatpush2.bf16.msra.mxu1 %v10883_v6  ;;  %v7402_v9 = vsub.s32 5, %v13907_v23  ;;  %v7410_v6 = vsub.s32 7, %v13907_v23 }
 0x67a   : > { %8728 = vmatprep.subr.bf16.mxu0 %v10888_v19  ;;  %8769 = vmatprep.subr.bf16.mxu1 %v10891_v44  ;;  %v10936_v19 = vld [vmem:[%s14510_s11 + $0x214] ss:$8 sps:$4 sm:$0xff]  }
 0x67b   : > { %v10939_v44 = vld [vmem:[%s14510_s11 + $0x314] ss:$8 sps:$4 sm:$0xff]  }
 0x67d   : > { %8729 = vmatpush2.bf16.msra.mxu0 %v10886_v28  ;;  %8770 = vmatpush2.bf16.msra.mxu1 %v10889_v33  ;;  %v7403_v28 = vrot.slane %v14273_v50, %v7402_v9  ;;  %v7411_v33 = vrot.slane %v14273_v50, %v7410_v6  ;;  %v10993_v9 = vld [vmem:[%s14510_s11 + $0x384] ss:$8 sps:$4 sm:$0xff]   ;;  %v10988_v6 = vld [vmem:[%s14510_s11 + $0x280] ss:$8 sps:$4 sm:$0xff]  }
 0x67e   : > { %8730 = vmatprep.subr.bf16.mxu0 %v10894_v22  ;;  %8771 = vmatprep.subr.bf16.mxu1 %v10897_v15  ;;  %v10934_v22 = vld [vmem:[%s14510_s11 + $0x210] ss:$8 sps:$4 sm:$0xff]  }
 0x67f   : > { %v10937_v15 = vld [vmem:[%s14510_s11 + $0x310] ss:$8 sps:$4 sm:$0xff]  }
 0x681   : > { %8731 = vmatpush2.bf16.msra.mxu0 %v10892_v31  ;;  %8772 = vmatpush2.bf16.msra.mxu1 %v10895_v52 }
 0x682   : > { %8782 = vmatprep.subr.bf16.mxu0 %v10900_v34  ;;  %8823 = vmatprep.subr.bf16.mxu1 %v10903_v32  ;;  %v10942_v34 = vld [vmem:[%s14510_s11 + $0x204] ss:$8 sps:$4 sm:$0xff]  }
 0x683   : > { %v10945_v32 = vld [vmem:[%s14510_s11 + $0x304] ss:$8 sps:$4 sm:$0xff]  }
 0x6e4   : > { %v7774_v61 = vpop.f32.mrf.mxu0  ;;  %v7815_v12 = vpop.f32.mrf.mxu1 }
 0x6e5   : > { %v7775_v42 = vadd.f32 %v7774_v61, %v7383_v16  ;;  %v7816_v58 = vadd.f32 %v7815_v12, %v7391_v55 }
 0x6e6   : > { %v7776_v63 = vpop.f32.mrf.mxu0  ;;  %v7817_v53 = vpop.f32.mrf.mxu1 }
 0x6e7   : > { %v7777_v26 = vadd.f32 %v7776_v63, %v7387_v8  ;;  %v7818_v54 = vadd.f32 %v7817_v53, %v7395_v14  ;;  %v7904_v51 = vmax.f32 %v7775_v42, 0.0  ;;  %v7906_v40 = vmax.f32 %v7816_v58, 0.0  ;;  %v10940_v8 = vld [vmem:[%s14510_s11 + $0x200] ss:$8 sps:$4 sm:$0xff]   ;;  %v10948_v42 = vld [vmem:[%s14510_s11 + $0x2f4] ss:$8 sps:$4 sm:$0xff]  }
 0x6e8   : > { %v7778_v56 = vpop.f32.mrf.mxu0  ;;  %v7819_v39 = vpop.f32.mrf.mxu1  ;;  %v10943_v14 = vld [vmem:[%s14510_s11 + $0x300] ss:$8 sps:$4 sm:$0xff]   ;;  %v10951_v58 = vld [vmem:[%s14510_s11 + $0x3f4] ss:$8 sps:$4 sm:$0xff]  }
 0x6e9   : > { %v7905_v37 = vmax.f32 %v7777_v26, 0.0  ;;  %v7907_v41 = vmax.f32 %v7818_v54, 0.0  ;;  %v7912_v36 = vpack.c.bf16 %v7904_v51, %v7904_v51  ;;  %v7914_v35 = vpack.c.bf16 %v7906_v40, %v7906_v40  ;;  %v10946_v56 = vld [vmem:[%s14510_s11 + $0x2f0] ss:$8 sps:$4 sm:$0xff]  }
 0x6ea   : > { %v7779_v18 = vpop.f32.mrf.mxu0  ;;  %v7820_v0 = vpop.f32.mrf.mxu1  ;;  %v10949_v39 = vld [vmem:[%s14510_s11 + $0x3f0] ss:$8 sps:$4 sm:$0xff]  }
 0x6eb   : > { %v7913_v47 = vpack.c.bf16 %v7905_v37, %v7905_v37  ;;  %v7915_v5 = vpack.c.bf16 %v7907_v41, %v7907_v41  ;;  %v10954_v37 = vld [vmem:[%s14510_s11 + $0x2e4] ss:$8 sps:$4 sm:$0xff]   ;;  %v10952_v18 = vld [vmem:[%s14510_s11 + $0x2e0] ss:$8 sps:$4 sm:$0xff]  }
 0x6ec   : > { %v10957_v41 = vld [vmem:[%s14510_s11 + $0x3e4] ss:$8 sps:$4 sm:$0xff]   ;;  %v10955_v0 = vld [vmem:[%s14510_s11 + $0x3e0] ss:$8 sps:$4 sm:$0xff]  }
 0x6ed   : > { %8732 = vmatprep.mubr.bf16.mxu0 %v7913_v47  ;;  %8773 = vmatprep.mubr.bf16.mxu1 %v7915_v5  ;;  %v10960_v47 = vld [vmem:[%s14510_s11 + $0x2d4] ss:$8 sps:$4 sm:$0xff]  }
 0x6ee   : > { %8733 = vmatmul.mubr.bf16.vlgmr.msra.gmra.mxu0 %v7912_v36  ;;  %8774 = vmatmul.mubr.bf16.vlgmr.msra.gmra.mxu1 %v7914_v35  ;;  %v10963_v5 = vld [vmem:[%s14510_s11 + $0x3d4] ss:$8 sps:$4 sm:$0xff]   ;;  %v10966_v36 = vld [vmem:[%s14510_s11 + $0x2c4] ss:$8 sps:$4 sm:$0xff]  }
 0x6ef   : > { %8783 = vmatpush1.bf16.msra.mxu0 %v10898_v46  ;;  %8824 = vmatpush1.bf16.msra.mxu1 %v10901_v4  ;;  %v10958_v46 = vld [vmem:[%s14510_s11 + $0x2d0] ss:$8 sps:$4 sm:$0xff]   ;;  %v10969_v35 = vld [vmem:[%s14510_s11 + $0x3c4] ss:$8 sps:$4 sm:$0xff]  }
 0x6f0   : > { %8784 = vmatprep.subr.bf16.mxu0 %v10906_v49  ;;  %8825 = vmatprep.subr.bf16.mxu1 %v10909_v60  ;;  %v10961_v4 = vld [vmem:[%s14510_s11 + $0x3d0] ss:$8 sps:$4 sm:$0xff]   ;;  %v10964_v49 = vld [vmem:[%s14510_s11 + $0x2c0] ss:$8 sps:$4 sm:$0xff]  }
 0x6f1   : > { %v10967_v60 = vld [vmem:[%s14510_s11 + $0x3c0] ss:$8 sps:$4 sm:$0xff]  }
 0x6f3   : > { %8785 = vmatpush1.bf16.msra.mxu0 %v10904_v20  ;;  %8826 = vmatpush1.bf16.msra.mxu1 %v10907_v25  ;;  %v10972_v20 = vld [vmem:[%s14510_s11 + $0x2b4] ss:$8 sps:$4 sm:$0xff]  }
 0x6f4   : > { %8786 = vmatprep.subr.bf16.mxu0 %v10912_v30  ;;  %8827 = vmatprep.subr.bf16.mxu1 %v10915_v57  ;;  %v10975_v25 = vld [vmem:[%s14510_s11 + $0x3b4] ss:$8 sps:$4 sm:$0xff]   ;;  %v10970_v30 = vld [vmem:[%s14510_s11 + $0x2b0] ss:$8 sps:$4 sm:$0xff]  }
 0x6f5   : > { %v10973_v57 = vld [vmem:[%s14510_s11 + $0x3b0] ss:$8 sps:$4 sm:$0xff]  }
 0x6f7   : > { %8787 = vmatpush1.bf16.msra.mxu0 %v10910_v43  ;;  %8828 = vmatpush1.bf16.msra.mxu1 %v10913_v38  ;;  %v7398_v43 = vsub.s32 4, %v13907_v23  ;;  %v7406_v38 = vsub.s32 6, %v13907_v23 }
 0x6f8   : > { %8788 = vmatprep.subr.bf16.mxu0 %v10918_v21  ;;  %8829 = vmatprep.subr.bf16.mxu1 %v10921_v7  ;;  %v10978_v21 = vld [vmem:[%s14510_s11 + $0x2a4] ss:$8 sps:$4 sm:$0xff]  }
 0x6f9   : > { %v10981_v7 = vld [vmem:[%s14510_s11 + $0x3a4] ss:$8 sps:$4 sm:$0xff]  }
 0x6fb   : > { %8789 = vmatpush1.bf16.msra.mxu0 %v10916_v10  ;;  %8830 = vmatpush1.bf16.msra.mxu1 %v10919_v59  ;;  %v10976_v10 = vld [vmem:[%s14510_s11 + $0x2a0] ss:$8 sps:$4 sm:$0xff]  }
 0x6fc   : > { %8790 = vmatprep.subr.bf16.mxu0 %v10924_v13  ;;  %8831 = vmatprep.subr.bf16.mxu1 %v10927_v11  ;;  %v10979_v59 = vld [vmem:[%s14510_s11 + $0x3a0] ss:$8 sps:$4 sm:$0xff]   ;;  %v7399_v13 = vrot.slane %v14273_v50, %v7398_v43  ;;  %v7407_v11 = vrot.slane %v14273_v50, %v7406_v38  ;;  %v10985_v50 = vld [vmem:[%s14510_s11 + $0x390] ss:$8 sps:$4 sm:$0xff]  }
 0x6ff   : > { %8791 = vmatpush1.bf16.msra.mxu0 %v10922_v3  ;;  %8832 = vmatpush1.bf16.msra.mxu1 %v10925_v27  ;;  %v10984_v3 = vld [vmem:[%s14510_s11 + $0x294] ss:$8 sps:$4 sm:$0xff]  }
 0x700   : > { %8792 = vmatprep.subr.bf16.mxu0 %v10930_v1  ;;  %8833 = vmatprep.subr.bf16.mxu1 %v10933_v29  ;;  %v10987_v27 = vld [vmem:[%s14510_s11 + $0x394] ss:$8 sps:$4 sm:$0xff]   ;;  %v10982_v1 = vld [vmem:[%s14510_s11 + $0x290] ss:$8 sps:$4 sm:$0xff]  }
 0x703   : > { %8793 = vmatpush1.bf16.msra.mxu0 %v10928_v62  ;;  %8834 = vmatpush1.bf16.msra.mxu1 %v10931_v24  ;;  %v10990_v24 = vld [vmem:[%s14510_s11 + $0x284] ss:$8 sps:$4 sm:$0xff]  }
 0x704   : > { %v14367_v31 = vpop.f32.mrf.mxu0  ;;  %v14369_v52 = vpop.f32.mrf.mxu1  ;;  %8794 = vmatprep.subr.bf16.mxu0 %v10936_v19  ;;  %8835 = vmatprep.subr.bf16.mxu1 %v10939_v44  ;;  %v10991_v19 = vld [vmem:[%s14510_s11 + $0x380] ss:$8 sps:$4 sm:$0xff]  }
 0x705   : > { %v7857_v29 = vadd.f32 %v14367_v31, %v7399_v13  ;;  %v7898_v62 = vadd.f32 %v14369_v52, %v7407_v11 }
 0x706   : > { %v7858_v2 = vpop.f32.mrf.mxu0  ;;  %v7899_v48 = vpop.f32.mrf.mxu1 }
 0x707   : > { %v7859_v16 = vadd.f32 %v7858_v2, %v7403_v28  ;;  %v7900_v55 = vadd.f32 %v7899_v48, %v7411_v33  ;;  %8795 = vmatpush1.bf16.msra.mxu0 %v10934_v22  ;;  %8836 = vmatpush1.bf16.msra.mxu1 %v10937_v15  ;;  %v7908_v44 = vmax.f32 %v7857_v29, 0.0  ;;  %v7910_v28 = vmax.f32 %v7898_v62, 0.0 }
 0x708   : > { %v7860_v61 = vpop.f32.mrf.mxu0  ;;  %v7901_v12 = vpop.f32.mrf.mxu1  ;;  %8796 = vmatprep.subr.bf16.mxu0 %v10942_v34  ;;  %8837 = vmatprep.subr.bf16.mxu1 %v10945_v32 }
 0x709   : > { %v7909_v63 = vmax.f32 %v7859_v16, 0.0  ;;  %v7911_v53 = vmax.f32 %v7900_v55, 0.0  ;;  %v7916_v33 = vpack.c.bf16 %v7908_v44, %v7908_v44  ;;  %v7918_v22 = vpack.c.bf16 %v7910_v28, %v7910_v28  ;;  %v8048_v55 = vld [vmem:[%s14511_s12] sm:$0x3] }
 0x70a   : > { %v7861_v26 = vpop.f32.mrf.mxu0  ;;  %v7902_v54 = vpop.f32.mrf.mxu1 }
 0x70b   : > { %v7917_v51 = vpack.c.bf16 %v7909_v63, %v7909_v63  ;;  %v7919_v40 = vpack.c.bf16 %v7911_v53, %v7911_v53  ;;  %8797 = vmatpush1.bf16.msra.mxu0 %v10940_v8  ;;  %8838 = vmatpush1.bf16.msra.mxu1 %v10943_v14  ;;  %v8053_v8 = vrot.slane %v8048_v55, %v7382_v45 }
 0x70c   : > { %8798 = vmatprep.subr.bf16.mxu0 %v10948_v42  ;;  %8839 = vmatprep.subr.bf16.mxu1 %v10951_v58  ;;  %v8057_v14 = vrot.slane %v8048_v55, %v7386_v17 }
 0x70d   : > { %8814 = vmatprep.mubr.bf16.mxu0 %v7917_v51  ;;  %8855 = vmatprep.mubr.bf16.mxu1 %v7919_v40 }
 0x70f   : > { %8799 = vmatpush2.bf16.msra.mxu0 %v10946_v56  ;;  %8840 = vmatpush2.bf16.msra.mxu1 %v10949_v39 }
 0x710   : > { %8800 = vmatprep.subr.bf16.mxu0 %v10954_v37  ;;  %8841 = vmatprep.subr.bf16.mxu1 %v10957_v41 }
 0x713   : > { %8801 = vmatpush2.bf16.msra.mxu0 %v10952_v18  ;;  %8842 = vmatpush2.bf16.msra.mxu1 %v10955_v0 }
 0x714   : > { %8802 = vmatprep.subr.bf16.mxu0 %v10960_v47  ;;  %8843 = vmatprep.subr.bf16.mxu1 %v10963_v5 }
 0x717   : > { %8803 = vmatpush2.bf16.msra.mxu0 %v10958_v46  ;;  %8844 = vmatpush2.bf16.msra.mxu1 %v10961_v4 }
 0x718   : > { %8804 = vmatprep.subr.bf16.mxu0 %v10966_v36  ;;  %8845 = vmatprep.subr.bf16.mxu1 %v10969_v35 }
 0x71b   : > { %8805 = vmatpush2.bf16.msra.mxu0 %v10964_v49  ;;  %8846 = vmatpush2.bf16.msra.mxu1 %v10967_v60 }
 0x71c   : > { %8806 = vmatprep.subr.bf16.mxu0 %v10972_v20  ;;  %8847 = vmatprep.subr.bf16.mxu1 %v10975_v25 }
 0x71f   : > { %8807 = vmatpush2.bf16.msra.mxu0 %v10970_v30  ;;  %8848 = vmatpush2.bf16.msra.mxu1 %v10973_v57 }
 0x720   : > { %8808 = vmatprep.subr.bf16.mxu0 %v10978_v21  ;;  %8849 = vmatprep.subr.bf16.mxu1 %v10981_v7 }
 0x723   : > { %8809 = vmatpush2.bf16.msra.mxu0 %v10976_v10  ;;  %8850 = vmatpush2.bf16.msra.mxu1 %v10979_v59 }
 0x724   : > { %8810 = vmatprep.subr.bf16.mxu0 %v10984_v3  ;;  %8851 = vmatprep.subr.bf16.mxu1 %v10987_v27 }
 0x727   : > { %8811 = vmatpush2.bf16.msra.mxu0 %v10982_v1  ;;  %8852 = vmatpush2.bf16.msra.mxu1 %v10985_v50 }
 0x728   : > { %8812 = vmatprep.subr.bf16.mxu0 %v10990_v24  ;;  %8853 = vmatprep.subr.bf16.mxu1 %v10993_v9 }
 0x72b   : > { %8813 = vmatpush2.bf16.msra.mxu0 %v10988_v6  ;;  %8854 = vmatpush2.bf16.msra.mxu1 %v10991_v19 }
 0x72e   : > { %8815 = vmatmul.mubr.bf16.vlgmr.msra.gmra.mxu0 %v7916_v33  ;;  %8856 = vmatmul.mubr.bf16.vlgmr.msra.gmra.mxu1 %v7918_v22 }
 0x7ae   : > { %v8734_v15 = vpop.f32.mrf.mxu0  ;;  %v8775_v31 = vpop.f32.mrf.mxu1 }
 0x7af   : > { %v8735_v61 = vadd.f32 %v8734_v15, %v8053_v8 }
 0x7b0   : > { %v8736_v52 = vpop.f32.mrf.mxu0  ;;  %v8777_v34 = vpop.f32.mrf.mxu1 }
 0x7b1   : > { %v8737_v12 = vadd.f32 %v8736_v52, %v8057_v14  ;;  %v8776_v42 = vadd.f32 %v8775_v31, %v8735_v61 }
 0x7b2   : > { %v8738_v32 = vpop.f32.mrf.mxu0  ;;  %v8779_v2 = vpop.f32.mrf.mxu1 }
 0x7b3   : > { %v8778_v53 = vadd.f32 %v8777_v34, %v8737_v12 }
 0x7b4   : > { %v8739_v48 = vpop.f32.mrf.mxu0  ;;  %v8780_v16 = vpop.f32.mrf.mxu1 }
 0x7ee   : > { %v8816_v58 = vpop.f32.mrf.mxu0  ;;  %v8857_v63 = vpop.f32.mrf.mxu1 }
 0x7ef   : > { %v8817_v26 = vadd.f32 %v8816_v58, %v8776_v42 }
 0x7f0   : > { %v8818_v54 = vpop.f32.mrf.mxu0  ;;  %v8859_v51 = vpop.f32.mrf.mxu1 }
 0x7f1   : > { %v8858_v40 = vadd.f32 %v8857_v63, %v8817_v26  ;;  %v8819_v56 = vadd.f32 %v8818_v54, %v8778_v53 }
 0x7f2   : > { %v8820_v39 = vpop.f32.mrf.mxu0  ;;  %v8861_v37 = vpop.f32.mrf.mxu1 }
 0x7f3   : > { %v9650_v41 = vmul.f32 -1.442695, %v8858_v40  ;;  %v8860_v18 = vadd.f32 %v8859_v51, %v8819_v56 }
 0x7f4   : > { %v8821_v45 = vpop.f32.mrf.mxu0  ;;  %v8862_v0 = vpop.f32.mrf.mxu1 }
 0x7f5   : > { %10994 = vpow2.f32 %v9650_v41  ;;  %v9651_v23 = vmul.f32 -1.442695, %v8860_v18 }
 0x7f7   : > { %10996 = vpow2.f32 %v9651_v23 }
 0x802   : > { %v10995_v17 = vpop.eup %10994 }
 0x803   : > { %v8870_v47 = vadd.f32 1.0, %v10995_v17 }
 0x804   : > { %v10997_v5 = vpop.eup %10996 }
 0x805   : > { %v8871_v46 = vadd.f32 1.0, %v10997_v5  ;;  %10998 = vrcp.f32 %v8870_v47 }
 0x807   : > { %11000 = vrcp.f32 %v8871_v46 }
 0x812   : > { %v10999_v4 = vpop.eup %10998 }
 0x814   : > { %v11001_v36 = vpop.eup %11000 }
 0x815   : > { %v8878_v35 = vcombine.low %v10999_v4, %v11001_v36 }
 0x817   : > { %8880 = vst [vmem:[%s440_s16] sm:$0xff] %v8878_v35 }
 0x818 PF: > { %s23_s25 = sadd.s32 1, %s11008_s25  }
 0x819   : > { %p20_p4 = scmp.ge.s32.totalorder %s23_s25, 4  }
 0x81b   :  { %22 = sbr.rel (!%p20_p4) target bundleno = 1 (0x1), region = 173 }

</bundles_post_ra>
